<compile_context>
chip_gen: v7x
topology: tpu7x:2x2x1
jax: 0.10.0
libtpu: 0.0.40
codegen_flags: <defaults>
</compile_context>

<pallas_src>
import functools

import jax
import jax.numpy as jnp
from jax.experimental import pallas as pl
from jax.experimental.pallas import tpu as pltpu

HIDDEN = 32          # conv channels
NUM_CLASSES = 16     # stand-in for the real head
NC_PAD = 128         # class dim zero-padded to one full 128-lane register
CIN_PAD = 32         # RGB channels zero-padded so the stem contraction is aligned
VMEM_LIMIT = 32 * 1024 * 1024


# ---------------------------------------------------------------------------
# Pallas kernels
# ---------------------------------------------------------------------------
def _conv3x3_kernel(x_ref, w_ref, b_ref, o_ref, *, H, relu):
    """3x3 same-conv on one image as 3 banded MXU matmuls (one per kernel row).

    x_ref: (H+2, (W+2)*Cin)        bf16  spatially padded, lane-flattened image
    w_ref: (3, (W+2)*Cin, W*Cout)  bf16  Toeplitz-expanded conv weights
    b_ref: (1, W*Cout)             f32
    o_ref: (H, W*Cout)             bf16  lane-dense output slab
    """
    acc = jnp.zeros(o_ref.shape, jnp.float32)
    for dh in range(3):
        acc += jnp.dot(x_ref[dh:dh + H, :], w_ref[dh],
                       preferred_element_type=jnp.float32)
    acc = acc + b_ref[...]
    if relu:
        acc = jnp.maximum(acc, 0.0)
    o_ref[...] = acc.astype(o_ref.dtype)


def _conv3x3_res_gap_fc_kernel(x_ref, skip_ref, w_ref, b_ref, wfc_ref, bfc_ref,
                               o_ref, *, H, W):
    """Fused conv2 + residual add + ReLU + global-average-pool + FC head.

    x_ref   : (H+2, (W+2)*C)     bf16
    skip_ref: (H, W*C)           bf16  (stem activation, slab layout)
    w_ref   : (3, (W+2)*C, W*C)  bf16
    b_ref   : (1, W*C)           f32
    wfc_ref : (W*C, NC_PAD)      f32   (FC weight tiled over the W lane-groups)
    bfc_ref : (1, NC_PAD)        f32
    o_ref   : (1, NC_PAD)        f32
    """
    acc = jnp.zeros(skip_ref.shape, jnp.float32)
    for dh in range(3):
        acc += jnp.dot(x_ref[dh:dh + H, :], w_ref[dh],
                       preferred_element_type=jnp.float32)
    h = jnp.maximum(acc + b_ref[...] + skip_ref[...].astype(jnp.float32), 0.0)
    # GAP + FC via linearity: mean_{h,w}(act) @ Wfc == mean_rows(act_slab @ Wfc_tiled)
    fc = jnp.dot(h, wfc_ref[...], preferred_element_type=jnp.float32)   # (H, NC_PAD)
    o_ref[...] = jnp.sum(fc, axis=0, keepdims=True) * (1.0 / (H * W)) + bfc_ref[...]


# ---------------------------------------------------------------------------
# pallas_call wrappers
# ---------------------------------------------------------------------------
def conv3x3_slab(x_flat, w_big, bias_slab, *, relu, H, W, cout):
    """x_flat: [N, H+2, (W+2)*Cin] bf16 -> [N, H, W*cout] bf16."""
    N, Hp2, kin = x_flat.shape
    return pl.pallas_call(
        functools.partial(_conv3x3_kernel, H=H, relu=relu),
        out_shape=jax.ShapeDtypeStruct((N, H, W * cout), jnp.bfloat16),
        grid=(N,),
        in_specs=[
            pl.BlockSpec((None, Hp2, kin), lambda n: (n, 0, 0)),
            pl.BlockSpec(w_big.shape, lambda n: (0, 0, 0)),      # resident weights
            pl.BlockSpec(bias_slab.shape, lambda n: (0, 0)),
        ],
        out_specs=pl.BlockSpec((None, H, W * cout), lambda n: (n, 0, 0)),
        compiler_params=pltpu.CompilerParams(
            dimension_semantics=("parallel",),
            vmem_limit_bytes=VMEM_LIMIT,
        ),
    )(x_flat, w_big, bias_slab)


def conv_res_gap_fc(x_flat, skip_slab, w_big, bias_slab, w_fc_slab, b_fc, *, H, W):
    """Fused tail: returns logits [N, NC_PAD] (padded classes)."""
    N, Hp2, kin = x_flat.shape
    wc = skip_slab.shape[2]
    ncp = w_fc_slab.shape[1]
    out = pl.pallas_call(
        functools.partial(_conv3x3_res_gap_fc_kernel, H=H, W=W),
        out_shape=jax.ShapeDtypeStruct((N, 1, ncp), jnp.float32),
        grid=(N,),
        in_specs=[
            pl.BlockSpec((None, Hp2, kin), lambda n: (n, 0, 0)),
            pl.BlockSpec((None, H, wc), lambda n: (n, 0, 0)),
            pl.BlockSpec(w_big.shape, lambda n: (0, 0, 0)),
            pl.BlockSpec(bias_slab.shape, lambda n: (0, 0)),
            pl.BlockSpec(w_fc_slab.shape, lambda n: (0, 0)),
            pl.BlockSpec(b_fc.shape, lambda n: (0, 0)),
        ],
        out_specs=pl.BlockSpec((None, 1, ncp), lambda n: (n, 0, 0)),
        compiler_params=pltpu.CompilerParams(
            dimension_semantics=("parallel",),
            vmem_limit_bytes=VMEM_LIMIT,
        ),
    )(x_flat, skip_slab, w_big, bias_slab, w_fc_slab, b_fc)
    return out.reshape(N, ncp)


# ---------------------------------------------------------------------------
# Parameter construction (done ONCE; casts/pads/reshapes hoisted out of forward)
# ---------------------------------------------------------------------------
def init_params(key, cin=3, hidden=HIDDEN, num_classes=NUM_CLASSES):
    ks = jax.random.split(key, 8)

    def conv_w(k, c_in, c_out):
        fan_in = 9 * c_in
        return jax.random.normal(k, (9, c_in, c_out), jnp.float32) / jnp.sqrt(
            jnp.float32(fan_in))

    return {
        "w_stem": conv_w(ks[0], cin, hidden),
        "b_stem": 0.1 * jax.random.normal(ks[4], (hidden,), jnp.float32),
        "w1": conv_w(ks[1], hidden, hidden),
        "b1": 0.1 * jax.random.normal(ks[5], (hidden,), jnp.float32),
        "w2": conv_w(ks[2], hidden, hidden),
        "b2": 0.1 * jax.random.normal(ks[6], (hidden,), jnp.float32),
        "w_fc": jax.random.normal(ks[3], (hidden, num_classes), jnp.float32)
        / jnp.sqrt(jnp.float32(hidden)),
        "b_fc": 0.1 * jax.random.normal(ks[7], (num_classes,), jnp.float32),
    }


def _toeplitz_conv_weight(w9, W):
    """(9, cin, cout) tap weights -> (3, (W+2)*cin, W*cout) banded matmul weights.

    W_big[dh, (w+dw)*cin + ci, w*cout + co] = w9[dh*3+dw, ci, co]
    """
    _, cin, cout = w9.shape
    eye = jnp.eye(W, dtype=w9.dtype)
    rows = []
    for dh in range(3):
        m = jnp.zeros(((W + 2) * cin, W * cout), w9.dtype)
        for dw in range(3):
            shift = jnp.pad(eye, ((dw, 2 - dw), (0, 0)))        # (W+2, W)
            m = m + jnp.kron(shift, w9[dh * 3 + dw])
        rows.append(m)
    return jnp.stack(rows, axis=0)


def prep_params(params, *, W, cin=3, hidden=HIDDEN, num_classes=NUM_CLASSES):
    w_stem9 = jnp.pad(params["w_stem"], ((0, 0), (0, CIN_PAD - cin), (0, 0)))

    def slab_bias(b):  # bias per channel -> bias per slab column (w*cout + co)
        return jnp.tile(b, (W,)).reshape(1, W * b.shape[0]).astype(jnp.float32)

    w_fc = jnp.zeros((hidden, NC_PAD), jnp.float32).at[:, :num_classes].set(params["w_fc"])
    b_fc = jnp.zeros((1, NC_PAD), jnp.float32).at[0, :num_classes].set(params["b_fc"])
    return {
        "w_stem": _toeplitz_conv_weight(w_stem9, W).astype(jnp.bfloat16),
        "b_stem": slab_bias(params["b_stem"]),
        "w1": _toeplitz_conv_weight(params["w1"], W).astype(jnp.bfloat16),
        "b1": slab_bias(params["b1"]),
        "w2": _toeplitz_conv_weight(params["w2"], W).astype(jnp.bfloat16),
        "b2": slab_bias(params["b2"]),
        "w_fc": jnp.tile(w_fc, (W, 1)),        # (W*hidden, NC_PAD), f32 head
        "b_fc": b_fc,
    }


# ---------------------------------------------------------------------------
# Forward pass (3 pallas_calls total)
# ---------------------------------------------------------------------------
def classify_net_forward(prepped, x_nchw):
    """x_nchw: [N, 3, H, W] f32 -> padded logits [N, NC_PAD] f32."""
    x = jnp.transpose(x_nchw, (0, 2, 3, 1))                       # NHWC
    N, H, W, cin = x.shape
    hidden = HIDDEN

    def to_flat_padded(a_nhwc):
        n, h, w, c = a_nhwc.shape
        ap = jnp.pad(a_nhwc, ((0, 0), (1, 1), (1, 1), (0, 0)))    # spatial pad=1
        return ap.reshape(n, h + 2, (w + 2) * c).astype(jnp.bfloat16)

    x = jnp.pad(x, ((0, 0), (0, 0), (0, 0), (0, CIN_PAD - cin)))  # align stem K

    # Stem conv + ReLU
    h1 = conv3x3_slab(to_flat_padded(x), prepped["w_stem"], prepped["b_stem"],
                      relu=True, H=H, W=W, cout=hidden)           # (N, H, W*hid) bf16
    # Residual block conv1 + ReLU
    r = conv3x3_slab(to_flat_padded(h1.reshape(N, H, W, hidden)),
                     prepped["w1"], prepped["b1"], relu=True, H=H, W=W, cout=hidden)
    # conv2 + residual add + ReLU + GAP + FC (fused; post-residual act never hits HBM)
    logits = conv_res_gap_fc(to_flat_padded(r.reshape(N, H, W, hidden)), h1,
                             prepped["w2"], prepped["b2"],
                             prepped["w_fc"], prepped["b_fc"], H=H, W=W)
    return logits                                                  # (N, NC_PAD)


# ---------------------------------------------------------------------------
# Pure-JAX reference (same bf16 storage rounding as the kernel path)
# ---------------------------------------------------------------------------
def _conv3x3_ref(x_nhwc, w9, b):
    N, H, W, _ = x_nhwc.shape
    cout = w9.shape[2]
    xp = jnp.pad(x_nhwc, ((0, 0), (1, 1), (1, 1), (0, 0)))
    acc = jnp.zeros((N, H, W, cout), jnp.float32)
    for t in range(9):
        dh, dw = t // 3, t % 3
        acc = acc + jnp.einsum("nhwc,cd->nhwd", xp[:, dh:dh + H, dw:dw + W, :],
                               w9[t], precision=jax.lax.Precision.HIGHEST)
    return acc + b


def classify_net_reference(params, x_nchw):
    bf = lambda a: a.astype(jnp.bfloat16).astype(jnp.float32)
    x = bf(jnp.transpose(x_nchw, (0, 2, 3, 1)).astype(jnp.float32))
    w_stem, w1, w2 = bf(params["w_stem"]), bf(params["w1"]), bf(params["w2"])

    h1 = bf(jnp.maximum(_conv3x3_ref(x, w_stem, params["b_stem"]), 0.0))
    r = bf(jnp.maximum(_conv3x3_ref(h1, w1, params["b1"]), 0.0))
    h2 = jnp.maximum(_conv3x3_ref(r, w2, params["b2"]) + h1, 0.0)
    pooled = jnp.mean(h2, axis=(1, 2))
    return pooled @ params["w_fc"] + params["b_fc"]


if __name__ == "__main__":
    key = jax.random.PRNGKey(0)
    k_param, k_x = jax.random.split(key)

    N, C, H, W = 2, 3, 16, 16
    params = init_params(k_param, cin=C, hidden=HIDDEN, num_classes=NUM_CLASSES)
    prepped = prep_params(params, W=W, cin=C)
    x = jax.random.normal(k_x, (N, C, H, W), jnp.float32)

    fwd = jax.jit(classify_net_forward)
    logits_padded = jax.block_until_ready(fwd(prepped, x))
    logits = logits_padded[:, :NUM_CLASSES]

    assert logits.shape == (N, NUM_CLASSES)
    assert bool(jnp.all(jnp.isfinite(logits)))

    ref = classify_net_reference(params, x)
    max_err = float(jnp.max(jnp.abs(logits - ref)))
    assert bool(jnp.allclose(logits, ref, rtol=2e-2, atol=2e-2)), max_err

    print("KERNEL_OK")
</pallas_src>

<mosaic_0001>
module attributes {stable_mosaic.version = 11 : i64} {
  func.func @_conv3x3_kernel(%arg0: i32, %arg1: memref<1x18x576xbf16, #tpu.memory_space<vmem>>, %arg2: memref<3x576x512xbf16, #tpu.memory_space<vmem>>, %arg3: memref<1x512xf32, #tpu.memory_space<vmem>>, %arg4: memref<1x16x512xbf16, #tpu.memory_space<vmem>>) attributes {dimension_semantics = [#tpu.dimension_semantics<parallel>], iteration_bounds = array<i64: 2>, scalar_prefetch = 0 : i64, scratch_operands = 0 : i64, tpu.core_type = #tpu.core_type<tc>, window_params = [{transform_indices = @transform_0, window_bounds = array<i64: 1, 18, 576>}, {pipeline_mode = #tpu.pipeline_mode<synchronous>, transform_indices = @transform_1, window_bounds = array<i64: 3, 576, 512>}, {pipeline_mode = #tpu.pipeline_mode<synchronous>, transform_indices = @transform_2, window_bounds = array<i64: 1, 512>}, {transform_indices = @transform_3, window_bounds = array<i64: 1, 16, 512>}]} {
    %cst = arith.constant 0.000000e+00 : f32
    %0 = vector.broadcast %cst : f32 to vector<16x512xf32>
    %c0 = arith.constant 0 : index
    %c0_0 = arith.constant 0 : index
    %c0_1 = arith.constant 0 : index
    %1 = vector.load %arg1[%c0, %c0_0, %c0_1] : memref<1x18x576xbf16, #tpu.memory_space<vmem>>, vector<1x16x576xbf16>
    %2 = vector.shape_cast %1 : vector<1x16x576xbf16> to vector<16x576xbf16>
    %c0_2 = arith.constant 0 : index
    %c0_3 = arith.constant 0 : index
    %c0_4 = arith.constant 0 : index
    %3 = vector.load %arg2[%c0_2, %c0_3, %c0_4] : memref<3x576x512xbf16, #tpu.memory_space<vmem>>, vector<1x576x512xbf16>
    %4 = vector.shape_cast %3 : vector<1x576x512xbf16> to vector<576x512xbf16>
    %cst_5 = arith.constant dense<0.000000e+00> : vector<16x512xf32>
    %5 = tpu.matmul %2, %4, %cst_5 {dimension_numbers = #tpu.dot_dimension_numbers<[1], [0], [0], [1], [0, 0, 1, 1], [], []>} : vector<16x576xbf16>, vector<576x512xbf16>, vector<16x512xf32> -> vector<16x512xf32>
    %6 = arith.addf %0, %5 : vector<16x512xf32>
    %c0_6 = arith.constant 0 : index
    %c1 = arith.constant 1 : index
    %c0_7 = arith.constant 0 : index
    %7 = vector.load %arg1[%c0_6, %c1, %c0_7] : memref<1x18x576xbf16, #tpu.memory_space<vmem>>, vector<1x16x576xbf16>
    %8 = vector.shape_cast %7 : vector<1x16x576xbf16> to vector<16x576xbf16>
    %c1_8 = arith.constant 1 : index
    %c0_9 = arith.constant 0 : index
    %c0_10 = arith.constant 0 : index
    %9 = vector.load %arg2[%c1_8, %c0_9, %c0_10] : memref<3x576x512xbf16, #tpu.memory_space<vmem>>, vector<1x576x512xbf16>
    %10 = vector.shape_cast %9 : vector<1x576x512xbf16> to vector<576x512xbf16>
    %cst_11 = arith.constant dense<0.000000e+00> : vector<16x512xf32>
    %11 = tpu.matmul %8, %10, %cst_11 {dimension_numbers = #tpu.dot_dimension_numbers<[1], [0], [0], [1], [0, 0, 1, 1], [], []>} : vector<16x576xbf16>, vector<576x512xbf16>, vector<16x512xf32> -> vector<16x512xf32>
    %12 = arith.addf %6, %11 : vector<16x512xf32>
    %c0_12 = arith.constant 0 : index
    %c2 = arith.constant 2 : index
    %c0_13 = arith.constant 0 : index
    %13 = vector.load %arg1[%c0_12, %c2, %c0_13] : memref<1x18x576xbf16, #tpu.memory_space<vmem>>, vector<1x16x576xbf16>
    %14 = vector.shape_cast %13 : vector<1x16x576xbf16> to vector<16x576xbf16>
    %c2_14 = arith.constant 2 : index
    %c0_15 = arith.constant 0 : index
    %c0_16 = arith.constant 0 : index
    %15 = vector.load %arg2[%c2_14, %c0_15, %c0_16] : memref<3x576x512xbf16, #tpu.memory_space<vmem>>, vector<1x576x512xbf16>
    %16 = vector.shape_cast %15 : vector<1x576x512xbf16> to vector<576x512xbf16>
    %cst_17 = arith.constant dense<0.000000e+00> : vector<16x512xf32>
    %17 = tpu.matmul %14, %16, %cst_17 {dimension_numbers = #tpu.dot_dimension_numbers<[1], [0], [0], [1], [0, 0, 1, 1], [], []>} : vector<16x576xbf16>, vector<576x512xbf16>, vector<16x512xf32> -> vector<16x512xf32>
    %18 = arith.addf %12, %17 : vector<16x512xf32>
    %c0_18 = arith.constant 0 : index
    %c0_19 = arith.constant 0 : index
    %19 = vector.load %arg3[%c0_18, %c0_19] : memref<1x512xf32, #tpu.memory_space<vmem>>, vector<1x512xf32>
    %20 = vector.broadcast %19 : vector<1x512xf32> to vector<16x512xf32>
    %21 = arith.addf %18, %20 : vector<16x512xf32>
    %cst_20 = arith.constant 0.000000e+00 : f32
    %22 = vector.broadcast %cst_20 : f32 to vector<16x512xf32>
    %23 = arith.maximumf %21, %22 : vector<16x512xf32>
    %24 = arith.truncf %23 : vector<16x512xf32> to vector<16x512xbf16>
    %c0_21 = arith.constant 0 : index
    %c0_22 = arith.constant 0 : index
    %c0_23 = arith.constant 0 : index
    %25 = vector.load %arg4[%c0_21, %c0_22, %c0_23] : memref<1x16x512xbf16, #tpu.memory_space<vmem>>, vector<1x16x512xbf16>
    %26 = vector.shape_cast %25 : vector<1x16x512xbf16> to vector<16x512xbf16>
    %27 = vector.shape_cast %24 : vector<16x512xbf16> to vector<1x16x512xbf16>
    tpu.vector_store %arg4[%c0_21, %c0_22, %c0_23], %27 {strides = array<i32>} : memref<1x16x512xbf16, #tpu.memory_space<vmem>>, vector<1x16x512xbf16>,
    return
  }
  func.func @transform_0(%arg0: i32) -> (i32, i32, i32) {
    %c0_i32 = arith.constant 0 : i32
    %c0_i32_0 = arith.constant 0 : i32
    %c0_i32_1 = arith.constant 0 : i32
    return %arg0, %c0_i32, %c0_i32_0 : i32, i32, i32
  }
  func.func @transform_1(%arg0: i32) -> (i32, i32, i32) {
    %c0_i32 = arith.constant 0 : i32
    %c0_i32_0 = arith.constant 0 : i32
    %c0_i32_1 = arith.constant 0 : i32
    %c0_i32_2 = arith.constant 0 : i32
    return %c0_i32, %c0_i32_0, %c0_i32_1 : i32, i32, i32
  }
  func.func @transform_2(%arg0: i32) -> (i32, i32) {
    %c0_i32 = arith.constant 0 : i32
    %c0_i32_0 = arith.constant 0 : i32
    %c0_i32_1 = arith.constant 0 : i32
    return %c0_i32, %c0_i32_0 : i32, i32
  }
  func.func @transform_3(%arg0: i32) -> (i32, i32, i32) {
    %c0_i32 = arith.constant 0 : i32
    %c0_i32_0 = arith.constant 0 : i32
    %c0_i32_1 = arith.constant 0 : i32
    return %arg0, %c0_i32, %c0_i32_0 : i32, i32, i32
  }
}

module attributes {stable_mosaic.version = 11 : i64} {
  func.func @_conv3x3_kernel(%arg0: i32, %arg1: memref<1x18x576xbf16, #tpu.memory_space<vmem>>, %arg2: memref<3x576x512xbf16, #tpu.memory_space<vmem>>, %arg3: memref<1x512xf32, #tpu.memory_space<vmem>>, %arg4: memref<1x16x512xbf16, #tpu.memory_space<vmem>>) attributes {dimension_semantics = [#tpu.dimension_semantics<parallel>], iteration_bounds = array<i64: 2>, scalar_prefetch = 0 : i64, scratch_operands = 0 : i64, tpu.core_type = #tpu.core_type<tc>, window_params = [{transform_indices = @transform_0, window_bounds = array<i64: 1, 18, 576>}, {pipeline_mode = #tpu.pipeline_mode<synchronous>, transform_indices = @transform_1, window_bounds = array<i64: 3, 576, 512>}, {pipeline_mode = #tpu.pipeline_mode<synchronous>, transform_indices = @transform_2, window_bounds = array<i64: 1, 512>}, {transform_indices = @transform_3, window_bounds = array<i64: 1, 16, 512>}]} {
    %cst = arith.constant 0.000000e+00 : f32
    %0 = vector.broadcast %cst : f32 to vector<16x512xf32>
    %c0 = arith.constant 0 : index
    %c0_0 = arith.constant 0 : index
    %c0_1 = arith.constant 0 : index
    %1 = vector.load %arg1[%c0, %c0_0, %c0_1] : memref<1x18x576xbf16, #tpu.memory_space<vmem>>, vector<1x16x576xbf16>
    %2 = vector.shape_cast %1 : vector<1x16x576xbf16> to vector<16x576xbf16>
    %c0_2 = arith.constant 0 : index
    %c0_3 = arith.constant 0 : index
    %c0_4 = arith.constant 0 : index
    %3 = vector.load %arg2[%c0_2, %c0_3, %c0_4] : memref<3x576x512xbf16, #tpu.memory_space<vmem>>, vector<1x576x512xbf16>
    %4 = vector.shape_cast %3 : vector<1x576x512xbf16> to vector<576x512xbf16>
    %cst_5 = arith.constant dense<0.000000e+00> : vector<16x512xf32>
    %5 = tpu.matmul %2, %4, %cst_5 {dimension_numbers = #tpu.dot_dimension_numbers<[1], [0], [0], [1], [0, 0, 1, 1], [], []>} : vector<16x576xbf16>, vector<576x512xbf16>, vector<16x512xf32> -> vector<16x512xf32>
    %6 = arith.addf %0, %5 : vector<16x512xf32>
    %c0_6 = arith.constant 0 : index
    %c1 = arith.constant 1 : index
    %c0_7 = arith.constant 0 : index
    %7 = vector.load %arg1[%c0_6, %c1, %c0_7] : memref<1x18x576xbf16, #tpu.memory_space<vmem>>, vector<1x16x576xbf16>
    %8 = vector.shape_cast %7 : vector<1x16x576xbf16> to vector<16x576xbf16>
    %c1_8 = arith.constant 1 : index
    %c0_9 = arith.constant 0 : index
    %c0_10 = arith.constant 0 : index
    %9 = vector.load %arg2[%c1_8, %c0_9, %c0_10] : memref<3x576x512xbf16, #tpu.memory_space<vmem>>, vector<1x576x512xbf16>
    %10 = vector.shape_cast %9 : vector<1x576x512xbf16> to vector<576x512xbf16>
    %cst_11 = arith.constant dense<0.000000e+00> : vector<16x512xf32>
    %11 = tpu.matmul %8, %10, %cst_11 {dimension_numbers = #tpu.dot_dimension_numbers<[1], [0], [0], [1], [0, 0, 1, 1], [], []>} : vector<16x576xbf16>, vector<576x512xbf16>, vector<16x512xf32> -> vector<16x512xf32>
    %12 = arith.addf %6, %11 : vector<16x512xf32>
    %c0_12 = arith.constant 0 : index
    %c2 = arith.constant 2 : index
    %c0_13 = arith.constant 0 : index
    %13 = vector.load %arg1[%c0_12, %c2, %c0_13] : memref<1x18x576xbf16, #tpu.memory_space<vmem>>, vector<1x16x576xbf16>
    %14 = vector.shape_cast %13 : vector<1x16x576xbf16> to vector<16x576xbf16>
    %c2_14 = arith.constant 2 : index
    %c0_15 = arith.constant 0 : index
    %c0_16 = arith.constant 0 : index
    %15 = vector.load %arg2[%c2_14, %c0_15, %c0_16] : memref<3x576x512xbf16, #tpu.memory_space<vmem>>, vector<1x576x512xbf16>
    %16 = vector.shape_cast %15 : vector<1x576x512xbf16> to vector<576x512xbf16>
    %cst_17 = arith.constant dense<0.000000e+00> : vector<16x512xf32>
    %17 = tpu.matmul %14, %16, %cst_17 {dimension_numbers = #tpu.dot_dimension_numbers<[1], [0], [0], [1], [0, 0, 1, 1], [], []>} : vector<16x576xbf16>, vector<576x512xbf16>, vector<16x512xf32> -> vector<16x512xf32>
    %18 = arith.addf %12, %17 : vector<16x512xf32>
    %c0_18 = arith.constant 0 : index
    %c0_19 = arith.constant 0 : index
    %19 = vector.load %arg3[%c0_18, %c0_19] : memref<1x512xf32, #tpu.memory_space<vmem>>, vector<1x512xf32>
    %20 = vector.broadcast %19 : vector<1x512xf32> to vector<16x512xf32>
    %21 = arith.addf %18, %20 : vector<16x512xf32>
    %cst_20 = arith.constant 0.000000e+00 : f32
    %22 = vector.broadcast %cst_20 : f32 to vector<16x512xf32>
    %23 = arith.maximumf %21, %22 : vector<16x512xf32>
    %24 = arith.truncf %23 : vector<16x512xf32> to vector<16x512xbf16>
    %c0_21 = arith.constant 0 : index
    %c0_22 = arith.constant 0 : index
    %c0_23 = arith.constant 0 : index
    %25 = vector.load %arg4[%c0_21, %c0_22, %c0_23] : memref<1x16x512xbf16, #tpu.memory_space<vmem>>, vector<1x16x512xbf16>
    %26 = vector.shape_cast %25 : vector<1x16x512xbf16> to vector<16x512xbf16>
    %27 = vector.shape_cast %24 : vector<16x512xbf16> to vector<1x16x512xbf16>
    tpu.vector_store %arg4[%c0_21, %c0_22, %c0_23], %27 {strides = array<i32>} : memref<1x16x512xbf16, #tpu.memory_space<vmem>>, vector<1x16x512xbf16>,
    return
  }
  func.func @transform_0(%arg0: i32) -> (i32, i32, i32) {
    %c0_i32 = arith.constant 0 : i32
    %c0_i32_0 = arith.constant 0 : i32
    %c0_i32_1 = arith.constant 0 : i32
    return %arg0, %c0_i32, %c0_i32_0 : i32, i32, i32
  }
  func.func @transform_1(%arg0: i32) -> (i32, i32, i32) {
    %c0_i32 = arith.constant 0 : i32
    %c0_i32_0 = arith.constant 0 : i32
    %c0_i32_1 = arith.constant 0 : i32
    %c0_i32_2 = arith.constant 0 : i32
    return %c0_i32, %c0_i32_0, %c0_i32_1 : i32, i32, i32
  }
  func.func @transform_2(%arg0: i32) -> (i32, i32) {
    %c0_i32 = arith.constant 0 : i32
    %c0_i32_0 = arith.constant 0 : i32
    %c0_i32_1 = arith.constant 0 : i32
    return %c0_i32, %c0_i32_0 : i32, i32
  }
  func.func @transform_3(%arg0: i32) -> (i32, i32, i32) {
    %c0_i32 = arith.constant 0 : i32
    %c0_i32_0 = arith.constant 0 : i32
    %c0_i32_1 = arith.constant 0 : i32
    return %arg0, %c0_i32, %c0_i32_0 : i32, i32, i32
  }
}

module attributes {stable_mosaic.version = 11 : i64} {
  func.func @_conv3x3_res_gap_fc_kernel(%arg0: i32, %arg1: memref<1x18x576xbf16, #tpu.memory_space<vmem>>, %arg2: memref<1x16x512xbf16, #tpu.memory_space<vmem>>, %arg3: memref<3x576x512xbf16, #tpu.memory_space<vmem>>, %arg4: memref<1x512xf32, #tpu.memory_space<vmem>>, %arg5: memref<512x128xf32, #tpu.memory_space<vmem>>, %arg6: memref<1x128xf32, #tpu.memory_space<vmem>>, %arg7: memref<1x1x128xf32, #tpu.memory_space<vmem>>) attributes {dimension_semantics = [#tpu.dimension_semantics<parallel>], iteration_bounds = array<i64: 2>, scalar_prefetch = 0 : i64, scratch_operands = 0 : i64, tpu.core_type = #tpu.core_type<tc>, window_params = [{transform_indices = @transform_0, window_bounds = array<i64: 1, 18, 576>}, {transform_indices = @transform_1, window_bounds = array<i64: 1, 16, 512>}, {pipeline_mode = #tpu.pipeline_mode<synchronous>, transform_indices = @transform_2, window_bounds = array<i64: 3, 576, 512>}, {pipeline_mode = #tpu.pipeline_mode<synchronous>, transform_indices = @transform_3, window_bounds = array<i64: 1, 512>}, {pipeline_mode = #tpu.pipeline_mode<synchronous>, transform_indices = @transform_4, window_bounds = array<i64: 512, 128>}, {pipeline_mode = #tpu.pipeline_mode<synchronous>, transform_indices = @transform_5, window_bounds = array<i64: 1, 128>}, {transform_indices = @transform_6, window_bounds = array<i64: 1, 1, 128>}]} {
    %cst = arith.constant 0.000000e+00 : f32
    %0 = vector.broadcast %cst : f32 to vector<16x512xf32>
    %c0 = arith.constant 0 : index
    %c0_0 = arith.constant 0 : index
    %c0_1 = arith.constant 0 : index
    %1 = vector.load %arg1[%c0, %c0_0, %c0_1] : memref<1x18x576xbf16, #tpu.memory_space<vmem>>, vector<1x16x576xbf16>
    %2 = vector.shape_cast %1 : vector<1x16x576xbf16> to vector<16x576xbf16>
    %c0_2 = arith.constant 0 : index
    %c0_3 = arith.constant 0 : index
    %c0_4 = arith.constant 0 : index
    %3 = vector.load %arg3[%c0_2, %c0_3, %c0_4] : memref<3x576x512xbf16, #tpu.memory_space<vmem>>, vector<1x576x512xbf16>
    %4 = vector.shape_cast %3 : vector<1x576x512xbf16> to vector<576x512xbf16>
    %cst_5 = arith.constant dense<0.000000e+00> : vector<16x512xf32>
    %5 = tpu.matmul %2, %4, %cst_5 {dimension_numbers = #tpu.dot_dimension_numbers<[1], [0], [0], [1], [0, 0, 1, 1], [], []>} : vector<16x576xbf16>, vector<576x512xbf16>, vector<16x512xf32> -> vector<16x512xf32>
    %6 = arith.addf %0, %5 : vector<16x512xf32>
    %c0_6 = arith.constant 0 : index
    %c1 = arith.constant 1 : index
    %c0_7 = arith.constant 0 : index
    %7 = vector.load %arg1[%c0_6, %c1, %c0_7] : memref<1x18x576xbf16, #tpu.memory_space<vmem>>, vector<1x16x576xbf16>
    %8 = vector.shape_cast %7 : vector<1x16x576xbf16> to vector<16x576xbf16>
    %c1_8 = arith.constant 1 : index
    %c0_9 = arith.constant 0 : index
    %c0_10 = arith.constant 0 : index
    %9 = vector.load %arg3[%c1_8, %c0_9, %c0_10] : memref<3x576x512xbf16, #tpu.memory_space<vmem>>, vector<1x576x512xbf16>
    %10 = vector.shape_cast %9 : vector<1x576x512xbf16> to vector<576x512xbf16>
    %cst_11 = arith.constant dense<0.000000e+00> : vector<16x512xf32>
    %11 = tpu.matmul %8, %10, %cst_11 {dimension_numbers = #tpu.dot_dimension_numbers<[1], [0], [0], [1], [0, 0, 1, 1], [], []>} : vector<16x576xbf16>, vector<576x512xbf16>, vector<16x512xf32> -> vector<16x512xf32>
    %12 = arith.addf %6, %11 : vector<16x512xf32>
    %c0_12 = arith.constant 0 : index
    %c2 = arith.constant 2 : index
    %c0_13 = arith.constant 0 : index
    %13 = vector.load %arg1[%c0_12, %c2, %c0_13] : memref<1x18x576xbf16, #tpu.memory_space<vmem>>, vector<1x16x576xbf16>
    %14 = vector.shape_cast %13 : vector<1x16x576xbf16> to vector<16x576xbf16>
    %c2_14 = arith.constant 2 : index
    %c0_15 = arith.constant 0 : index
    %c0_16 = arith.constant 0 : index
    %15 = vector.load %arg3[%c2_14, %c0_15, %c0_16] : memref<3x576x512xbf16, #tpu.memory_space<vmem>>, vector<1x576x512xbf16>
    %16 = vector.shape_cast %15 : vector<1x576x512xbf16> to vector<576x512xbf16>
    %cst_17 = arith.constant dense<0.000000e+00> : vector<16x512xf32>
    %17 = tpu.matmul %14, %16, %cst_17 {dimension_numbers = #tpu.dot_dimension_numbers<[1], [0], [0], [1], [0, 0, 1, 1], [], []>} : vector<16x576xbf16>, vector<576x512xbf16>, vector<16x512xf32> -> vector<16x512xf32>
    %18 = arith.addf %12, %17 : vector<16x512xf32>
    %c0_18 = arith.constant 0 : index
    %c0_19 = arith.constant 0 : index
    %19 = vector.load %arg4[%c0_18, %c0_19] : memref<1x512xf32, #tpu.memory_space<vmem>>, vector<1x512xf32>
    %20 = vector.broadcast %19 : vector<1x512xf32> to vector<16x512xf32>
    %21 = arith.addf %18, %20 : vector<16x512xf32>
    %c0_20 = arith.constant 0 : index
    %c0_21 = arith.constant 0 : index
    %c0_22 = arith.constant 0 : index
    %22 = vector.load %arg2[%c0_20, %c0_21, %c0_22] : memref<1x16x512xbf16, #tpu.memory_space<vmem>>, vector<1x16x512xbf16>
    %23 = vector.shape_cast %22 : vector<1x16x512xbf16> to vector<16x512xbf16>
    %24 = arith.extf %23 : vector<16x512xbf16> to vector<16x512xf32>
    %25 = arith.addf %21, %24 : vector<16x512xf32>
    %cst_23 = arith.constant 0.000000e+00 : f32
    %26 = vector.broadcast %cst_23 : f32 to vector<16x512xf32>
    %27 = arith.maximumf %25, %26 : vector<16x512xf32>
    %c0_24 = arith.constant 0 : index
    %c0_25 = arith.constant 0 : index
    %28 = vector.load %arg5[%c0_24, %c0_25] : memref<512x128xf32, #tpu.memory_space<vmem>>, vector<512x128xf32>
    %cst_26 = arith.constant dense<0.000000e+00> : vector<16x128xf32>
    %29 = tpu.matmul %27, %28, %cst_26 {dimension_numbers = #tpu.dot_dimension_numbers<[1], [0], [0], [1], [0, 0, 1, 1], [], []>} : vector<16x512xf32>, vector<512x128xf32>, vector<16x128xf32> -> vector<16x128xf32>
    %cst_27 = arith.constant dense<0.000000e+00> : vector<128xf32>
    %30 = vector.multi_reduction <add>, %29, %cst_27 [0] : vector<16x128xf32> to vector<128xf32>
    %31 = vector.shape_cast %30 : vector<128xf32> to vector<1x128xf32>
    %cst_28 = arith.constant 3.906250e-03 : f32
    %32 = vector.broadcast %cst_28 : f32 to vector<1x128xf32>
    %33 = arith.mulf %31, %32 : vector<1x128xf32>
    %c0_29 = arith.constant 0 : index
    %c0_30 = arith.constant 0 : index
    %34 = vector.load %arg6[%c0_29, %c0_30] : memref<1x128xf32, #tpu.memory_space<vmem>>, vector<1x128xf32>
    %35 = arith.addf %33, %34 : vector<1x128xf32>
    %c0_31 = arith.constant 0 : index
    %c0_32 = arith.constant 0 : index
    %c0_33 = arith.constant 0 : index
    %36 = vector.load %arg7[%c0_31, %c0_32, %c0_33] : memref<1x1x128xf32, #tpu.memory_space<vmem>>, vector<1x1x128xf32>
    %37 = vector.shape_cast %36 : vector<1x1x128xf32> to vector<1x128xf32>
    %38 = vector.shape_cast %35 : vector<1x128xf32> to vector<1x1x128xf32>
    tpu.vector_store %arg7[%c0_31, %c0_32, %c0_33], %38 {strides = array<i32>} : memref<1x1x128xf32, #tpu.memory_space<vmem>>, vector<1x1x128xf32>,
    return
  }
  func.func @transform_0(%arg0: i32) -> (i32, i32, i32) {
    %c0_i32 = arith.constant 0 : i32
    %c0_i32_0 = arith.constant 0 : i32
    %c0_i32_1 = arith.constant 0 : i32
    return %arg0, %c0_i32, %c0_i32_0 : i32, i32, i32
  }
  func.func @transform_1(%arg0: i32) -> (i32, i32, i32) {
    %c0_i32 = arith.constant 0 : i32
    %c0_i32_0 = arith.constant 0 : i32
    %c0_i32_1 = arith.constant 0 : i32
    return %arg0, %c0_i32, %c0_i32_0 : i32, i32, i32
  }
  func.func @transform_2(%arg0: i32) -> (i32, i32, i32) {
    %c0_i32 = arith.constant 0 : i32
    %c0_i32_0 = arith.constant 0 : i32
    %c0_i32_1 = arith.constant 0 : i32
    %c0_i32_2 = arith.constant 0 : i32
    return %c0_i32, %c0_i32_0, %c0_i32_1 : i32, i32, i32
  }
  func.func @transform_3(%arg0: i32) -> (i32, i32) {
    %c0_i32 = arith.constant 0 : i32
    %c0_i32_0 = arith.constant 0 : i32
    %c0_i32_1 = arith.constant 0 : i32
    return %c0_i32, %c0_i32_0 : i32, i32
  }
  func.func @transform_4(%arg0: i32) -> (i32, i32) {
    %c0_i32 = arith.constant 0 : i32
    %c0_i32_0 = arith.constant 0 : i32
    %c0_i32_1 = arith.constant 0 : i32
    return %c0_i32, %c0_i32_0 : i32, i32
  }
  func.func @transform_5(%arg0: i32) -> (i32, i32) {
    %c0_i32 = arith.constant 0 : i32
    %c0_i32_0 = arith.constant 0 : i32
    %c0_i32_1 = arith.constant 0 : i32
    return %c0_i32, %c0_i32_0 : i32, i32
  }
  func.func @transform_6(%arg0: i32) -> (i32, i32, i32) {
    %c0_i32 = arith.constant 0 : i32
    %c0_i32_0 = arith.constant 0 : i32
    %c0_i32_1 = arith.constant 0 : i32
    return %arg0, %c0_i32, %c0_i32_0 : i32, i32, i32
  }
}

</mosaic_0001>

<bundles_post_ra>
// kernel: classify_net_forward.3
= control target key start
LH: loop header
LB: loop body
LE: loop exit
PB: predicated region body
PF: predicated region fallthrough
CT: control target
= control target key end

     0   :  { %8 = vsyncpa [#allocation3], 0  ;;  %s5426_s0 = inlined_call_operand.vmem [shape: bf16[2,18,576], index: 0, kind: input, shape index: {}]   ;;  %s5427_s1 = inlined_call_operand.hbm [shape: bf16[3,576,512], index: 1, kind: input, shape index: {}]   ;;  %s5428_s2 = inlined_call_operand.hbm [shape: f32[1,512], index: 2, kind: input, shape index: {}]   ;;  %s5429_s3 = inlined_call_operand.vmem [shape: bf16[2,16,512], index: 3, kind: output, shape index: {}]  }
   0x1   :  { %9 = vsyncpa [#allocation5], 0  ;;  %s5213_s12 = smov 0  }
   0x2 LB: > { %s5219_s13 = sadd.s32 4294967295, %s5186_s12   ;;  %p3878_p0 = scmp.ge.s32.totalorder %s5186_s12, 1  ;;  %s5186_s12 = sphi %s5213_s12, %s15_s12  }
   0x3   : > { %p114_p1 = scmp.lt.s32.totalorder %s5186_s12, 3  ;;  %s5188_s14 = smov [#allocation2]  }
   0x4   : > { %s126_s15 = sshll.u32 %s5188_s14, 4  ;;  %p5430_p3 = scmp.eq.s32.totalorder %s5219_s13, 0  ;;  %s127_s15 = int_to_ptr.vmem [resolvable:$true] %s126_s15 }
   0x5   : > { %p5223_p2 = pnand %p3878_p0, %p114_p1  ;;  %s5189_s17 = smov [#allocation4]  }
   0x6   : > { %s140_s18 = sshll.u32 %s5189_s17, 4  ;;  %s5116_s22 = scalar_lea.hbm %s5427_s1, 55296  ;;  %s5236_s18 = int_to_ptr.vmem [resolvable:$true] %s140_s18 }
   0x7   : > { %s5432_s16 = scalar_select %p5223_p2, 1, 0 }
   0x8   : > { %p4425_p4 = pneg %p5223_p2  ;;  %p5117_p6 = scmp.ne.s32.totalorder %s5427_s1, %s5116_s22 }
   0x9   : > { %p5123_p10 = scmp.lt.u32.totalorder %s5116_s22, %s5427_s1 }
   0xa   : > { %p5232_p5 = pnand %p5430_p3, %p4425_p4 }
   0xc   : > { %p5118_p7 = pneg %p5232_p5 }
   0xe   : > { %p5119_p8 = pnand %p5118_p7, %p5117_p6 }
  0x10   : > { %p5120_p9 = pneg %p5119_p8 }
  0x12   : > { %p5125_p11 = pnand %p5123_p10, %p5120_p9 }
  0x14   : > { %5128 = shalt.err (!%p5125_p11)
}
  0x15   : > { %s5129_s27 = scalar_lea.vmem %s127_s15, 55296  ;;  %p5137_p1 = scmp.lt.s32.totalorder %s127_s15, %s127_s15 }
  0x16   : > { %p5130_p12 = scmp.ne.s32.totalorder %s127_s15, %s5129_s27  ;;  %p5138_p4 = scmp.lt.s32.totalorder %s5129_s27, %s5129_s27 }
  0x18   : > { %p5132_p13 = pnand %p5130_p12, %p5118_p7  ;;  %p5139_p3 = por %p5138_p4, %p5137_p1 }
  0x1a   : > { %p5133_p0 = pneg %p5132_p13 }
  0x1c   : > { %p5140_p2 = pnand %p5139_p3, %p5133_p0 }
  0x1e   : > { %5143 = shalt.err (!%p5140_p2)
}
  0x1f   : > { %s5190_s28 = smov 256   ;;  %s5191_s29 = smov 16  }
  0x20   : > { %4428 = dma.hbm_to_vmem [thread:$0]  (!%p5232_p5), %s5427_s1, 55296, %s127_s15, [#allocation3], %s5190_s28, %s5190_s28, %s5191_s29  }
  0x21   : > { %s5144_s7 = scalar_lea.hbm %s5428_s2, 64 }
  0x22   : > { %p5145_p6 = scmp.ne.s32.totalorder %s5428_s2, %s5144_s7  ;;  %p5151_p8 = scmp.lt.u32.totalorder %s5144_s7, %s5428_s2 }
  0x24   : > { %p5147_p2 = pnand %p5145_p6, %p5118_p7 }
  0x26   : > { %p5148_p3 = pneg %p5147_p2 }
  0x28   : > { %p5153_p9 = pnand %p5151_p8, %p5148_p3 }
  0x2a   : > { %5156 = shalt.err (!%p5153_p9)
}
  0x2b   : > { %s5157_s14 = scalar_lea.vmem %s5236_s18, 64  ;;  %p5165_p13 = scmp.lt.s32.totalorder %s5236_s18, %s5236_s18 }
  0x2c   : > { %p5158_p10 = scmp.ne.s32.totalorder %s5236_s18, %s5157_s14  ;;  %p5166_p0 = scmp.lt.s32.totalorder %s5157_s14, %s5157_s14 }
  0x2e   : > { %p5160_p11 = pnand %p5158_p10, %p5118_p7  ;;  %p5167_p1 = por %p5166_p0, %p5165_p13 }
  0x30   : > { %p5161_p12 = pneg %p5160_p11 }
  0x32   : > { %p5168_p4 = pnand %p5167_p1, %p5161_p12 }
  0x34   : > { %5171 = shalt.err (!%p5168_p4)
}
  0x35   : > { %4431 = dma.hbm_to_vmem [thread:$0]  (!%p5232_p5), %s5428_s2, 64, %s5236_s18, [#allocation5]  }
  0x36   : > { %p5434_p6 = scmp.ne.s32.totalorder %s5432_s16, 0 }
  0x37   : > { %p5435_p2 = scmp.eq.s32.totalorder (!%p5434_p6), %s5219_s13, 0 }
  0x38   : > { %161 = sbr.rel (%p5434_p6) target bundleno = 722 (0x2d2), region = 32 }
  0x3f   : > { %5177 = dma.done.wait (%p5435_p2), [#allocation3], 55296   ;;  %p5436_p7 = pmov %p5435_p2 }
  0x40   : > { %p5437_p3 = pmov %p5435_p2 }
  0x41   : > { %5179 = vsyncadd (%p5436_p7), [#allocation3], 4294912000 }
  0x42   : > { %5181 = dma.done.wait (%p5437_p3), [#allocation5], 64   ;;  %p5438_p8 = pmov %p5435_p2 }
  0x43   : > { %v4449_v0 = vld [vmem:[#allocation2 + $0x484] ss:$16 sps:$4 sm:$0xff]   ;;  %v4451_v1 = vld [vmem:[#allocation2 + $0x48c] ss:$16 sps:$4 sm:$0xff]   ;;  %v4453_v2 = vld [vmem:[#allocation2 + $0x480] ss:$16 sps:$4 sm:$0xff]  }
  0x44   : > { %5183 = vsyncadd (%p5438_p8), [#allocation5], 4294967232  ;;  %1321 = vmatprep.subr.bf16.mxu0 %v4449_v0  ;;  %v4454_v3 = vld [vmem:[#allocation2 + $0x488] ss:$16 sps:$4 sm:$0xff]   ;;  %1450 = vmatprep.subr.bf16.mxu1 %v4451_v1  ;;  %v4455_v4 = vld [vmem:[#allocation2 + $0x4a4] ss:$16 sps:$4 sm:$0xff]  }
  0x45   : > { %1322 = vmatpush1.bf16.msra.mxu0 %v4453_v2  ;;  %1451 = vmatpush1.bf16.msra.mxu1 %v4454_v3  ;;  %v4457_v5 = vld [vmem:[#allocation2 + $0x4ac] ss:$16 sps:$4 sm:$0xff]   ;;  %v4459_v6 = vld [vmem:[#allocation2 + $0x4a0] ss:$16 sps:$4 sm:$0xff]   ;;  %v4460_v7 = vld [vmem:[#allocation2 + $0x4a8] ss:$16 sps:$4 sm:$0xff]  }
  0x46   : > { %1323 = vmatprep.subr.bf16.mxu0 %v4455_v4  ;;  %1452 = vmatprep.subr.bf16.mxu1 %v4457_v5  ;;  %v4461_v8 = vld [vmem:[#allocation2 + $0x4c4] ss:$16 sps:$4 sm:$0xff]   ;;  %v4463_v9 = vld [vmem:[#allocation2 + $0x4cc] ss:$16 sps:$4 sm:$0xff]   ;;  %v4465_v10 = vld [vmem:[#allocation2 + $0x4c0] ss:$16 sps:$4 sm:$0xff]  }
  0x47   : > { %v4466_v11 = vld [vmem:[#allocation2 + $0x4c8] ss:$16 sps:$4 sm:$0xff]   ;;  %v4467_v12 = vld [vmem:[#allocation2 + $0x4e4] ss:$16 sps:$4 sm:$0xff]   ;;  %v4469_v13 = vld [vmem:[#allocation2 + $0x4ec] ss:$16 sps:$4 sm:$0xff]  }
  0x48   : > { %v4471_v14 = vld [vmem:[#allocation2 + $0x4e0] ss:$16 sps:$4 sm:$0xff]   ;;  %v4472_v15 = vld [vmem:[#allocation2 + $0x4e8] ss:$16 sps:$4 sm:$0xff]   ;;  %v4473_v16 = vld [vmem:[#allocation2 + $0x504] ss:$16 sps:$4 sm:$0xff]  }
  0x49   : > { %1324 = vmatpush1.bf16.msra.mxu0 %v4459_v6  ;;  %1453 = vmatpush1.bf16.msra.mxu1 %v4460_v7  ;;  %v4475_v17 = vld [vmem:[#allocation2 + $0x50c] ss:$16 sps:$4 sm:$0xff]   ;;  %v4477_v18 = vld [vmem:[#allocation2 + $0x500] ss:$16 sps:$4 sm:$0xff]   ;;  %v4478_v19 = vld [vmem:[#allocation2 + $0x508] ss:$16 sps:$4 sm:$0xff]  }
  0x4a   : > { %1325 = vmatprep.subr.bf16.mxu0 %v4461_v8  ;;  %1454 = vmatprep.subr.bf16.mxu1 %v4463_v9  ;;  %v4479_v20 = vld [vmem:[#allocation2 + $0x524] ss:$16 sps:$4 sm:$0xff]   ;;  %v4481_v21 = vld [vmem:[#allocation2 + $0x52c] ss:$16 sps:$4 sm:$0xff]   ;;  %v4483_v22 = vld [vmem:[#allocation2 + $0x520] ss:$16 sps:$4 sm:$0xff]  }
  0x4b   : > { %v4484_v23 = vld [vmem:[#allocation2 + $0x528] ss:$16 sps:$4 sm:$0xff]   ;;  %v4485_v24 = vld [vmem:[#allocation2 + $0x544] ss:$16 sps:$4 sm:$0xff]   ;;  %v4487_v25 = vld [vmem:[#allocation2 + $0x54c] ss:$16 sps:$4 sm:$0xff]  }
  0x4c   : > { %v4489_v26 = vld [vmem:[#allocation2 + $0x540] ss:$16 sps:$4 sm:$0xff]   ;;  %v4490_v27 = vld [vmem:[#allocation2 + $0x548] ss:$16 sps:$4 sm:$0xff]   ;;  %v4491_v28 = vld [vmem:[#allocation2 + $0x564] ss:$16 sps:$4 sm:$0xff]  }
  0x4d   : > { %1326 = vmatpush1.bf16.msra.mxu0 %v4465_v10  ;;  %1455 = vmatpush1.bf16.msra.mxu1 %v4466_v11  ;;  %v4493_v29 = vld [vmem:[#allocation2 + $0x56c] ss:$16 sps:$4 sm:$0xff]   ;;  %v4495_v30 = vld [vmem:[#allocation2 + $0x560] ss:$16 sps:$4 sm:$0xff]   ;;  %p189_p5 = scmp.lt.s32.totalorder %s5219_s13, 1  ;;  %vm1317_vm1 = vcmask 523264  }
  0x4e   : > { %1327 = vmatprep.subr.bf16.mxu0 %v4467_v12  ;;  %1456 = vmatprep.subr.bf16.mxu1 %v4469_v13  ;;  %v4496_v31 = vld [vmem:[#allocation2 + $0x568] ss:$16 sps:$4 sm:$0xff]   ;;  %v4497_v32 = vld [vmem:[#allocation2 + $0x584] ss:$16 sps:$4 sm:$0xff]   ;;  %v4499_v33 = vld [vmem:[#allocation2 + $0x58c] ss:$16 sps:$4 sm:$0xff]  }
  0x4f   : > { %v4501_v34 = vld [vmem:[#allocation2 + $0x580] ss:$16 sps:$4 sm:$0xff]   ;;  %v4502_v35 = vld [vmem:[#allocation2 + $0x588] ss:$16 sps:$4 sm:$0xff]   ;;  %s5440_s13 = smov (!%p189_p5, %s5219_s13), 1  ;;  %vm2724_vm2 = vcmask 1046528  }
  0x50   : > { %v4503_v36 = vld [vmem:[#allocation2 + $0x5a4] ss:$16 sps:$4 sm:$0xff]   ;;  %v4505_v37 = vld [vmem:[#allocation2 + $0x5ac] ss:$16 sps:$4 sm:$0xff]   ;;  %v4507_v38 = vld [vmem:[#allocation2 + $0x5a0] ss:$16 sps:$4 sm:$0xff]  }
  0x51   : > { %1328 = vmatpush1.bf16.msra.mxu0 %v4471_v14  ;;  %1457 = vmatpush1.bf16.msra.mxu1 %v4472_v15  ;;  %s4416_s16 = smul.u32 60, %s5440_s13  ;;  %v4508_v39 = vld [vmem:[#allocation2 + $0x5a8] ss:$16 sps:$4 sm:$0xff]   ;;  %v4509_v40 = vld [vmem:[#allocation2 + $0x5c4] ss:$16 sps:$4 sm:$0xff]   ;;  %s4347_s21 = sshll.u32 %s5440_s13, 5 }
  0x52   : > { %1329 = vmatprep.subr.bf16.mxu0 %v4473_v16  ;;  %1458 = vmatprep.subr.bf16.mxu1 %v4475_v17  ;;  %v4511_v41 = vld [vmem:[#allocation2 + $0x5cc] ss:$16 sps:$4 sm:$0xff]   ;;  %v4513_v42 = vld [vmem:[#allocation2 + $0x5c0] ss:$16 sps:$4 sm:$0xff]   ;;  %v4514_v43 = vld [vmem:[#allocation2 + $0x5c8] ss:$16 sps:$4 sm:$0xff]   ;;  %s198_s24 = scalar_lea.vmem %s5429_s3, %s4347_s21 }
  0x53   : > { %s5303_s20 = scalar_lea.vmem %s5426_s0, %s4416_s16  ;;  %v4515_v44 = vld [vmem:[#allocation2 + $0x5e4] ss:$16 sps:$4 sm:$0xff]   ;;  %v4517_v45 = vld [vmem:[#allocation2 + $0x5ec] ss:$16 sps:$4 sm:$0xff]   ;;  %v4519_v46 = vld [vmem:[#allocation2 + $0x5e0] ss:$16 sps:$4 sm:$0xff]  }
  0x54   : > { %v200_v47 = vld [vmem:[%s5303_s20] sm:$0xff]  ;;  %v203_v48 = vld [vmem:[%s5303_s20 + $0x14] sm:$0xff]  ;;  %v350_v49 = vld [vmem:[%s5303_s20 + $0x28] sm:$0x11]  ;;  %vm532_vm0 = vsmask.f32 7424 }
  0x55   : > { %1330 = vmatpush1.bf16.msra.mxu0 %v4477_v18  ;;  %1459 = vmatpush1.bf16.msra.mxu1 %v4478_v19  ;;  %v4520_v50 = vld [vmem:[#allocation2 + $0x5e8] ss:$16 sps:$4 sm:$0xff]   ;;  %v4521_v51 = vld [vmem:[#allocation2 + $0x604] ss:$16 sps:$4 sm:$0xff]   ;;  %v5308_v52 = vcombine.high %v200_v47, %v203_v48  ;;  %v5310_v53 = vcombine.high %v350_v49, %v350_v49  ;;  %v4523_v54 = vld [vmem:[#allocation2 + $0x60c] ss:$16 sps:$4 sm:$0xff]   ;;  %v5315_v62 = vcombine.low %v200_v47, %v203_v48 }
  0x56   : > { %1331 = vmatprep.subr.bf16.mxu0 %v4479_v20  ;;  %1460 = vmatprep.subr.bf16.mxu1 %v4481_v21  ;;  %v4525_v58 = vld [vmem:[#allocation2 + $0x600] ss:$16 sps:$4 sm:$0xff]   ;;  %v4526_v59 = vld [vmem:[#allocation2 + $0x608] ss:$16 sps:$4 sm:$0xff]   ;;  %v4527_v63 = vld [vmem:[#allocation2 + $0x624] ss:$16 sps:$4 sm:$0xff]   ;;  %v5318_v5 = vcombine.low %v350_v49, %v350_v49 }
  0x57   : > { %v546_v55 = vshrl.u32 %v5308_v52, 16  ;;  %v548_v56 = vshll.u32 %v5308_v52, 16  ;;  %v553_v57 = vshll.u32 %v5310_v53, 16  ;;  %v4529_v0 = vld [vmem:[#allocation2 + $0x62c] ss:$16 sps:$4 sm:$0xff]   ;;  %v536_v6 = vshll.u32 %v5315_v62, 16 }
  0x58   : > { %v4531_v2 = vld [vmem:[#allocation2 + $0x620] ss:$16 sps:$4 sm:$0xff]   ;;  %v4532_v3 = vld [vmem:[#allocation2 + $0x628] ss:$16 sps:$4 sm:$0xff]   ;;  %v4533_v7 = vld [vmem:[#allocation2 + $0x644] ss:$16 sps:$4 sm:$0xff]  }
  0x59   : > { %1332 = vmatpush1.bf16.msra.mxu0 %v4483_v22  ;;  %1461 = vmatpush1.bf16.msra.mxu1 %v4484_v23  ;;  %v550_v60 = vrot.slane %v548_v56, 1  ;;  %v555_v61 = vrot.slane %v553_v57, 1  ;;  %v4535_v8 = vld [vmem:[#allocation2 + $0x64c] ss:$16 sps:$4 sm:$0xff]   ;;  %v4537_v9 = vld [vmem:[#allocation2 + $0x640] ss:$16 sps:$4 sm:$0xff]  }
  0x5a   : > { %1333 = vmatprep.subr.bf16.mxu0 %v4485_v24  ;;  %1462 = vmatprep.subr.bf16.mxu1 %v4487_v25  ;;  %v4538_v10 = vld [vmem:[#allocation2 + $0x648] ss:$16 sps:$4 sm:$0xff]   ;;  %v534_v11 = vshrl.u32 %v5315_v62, 16  ;;  %v538_v12 = vrot.slane %v536_v6, 1  ;;  %v541_v13 = vshll.u32 %v5318_v5, 16 }
  0x5b   : > { %v551_v1 = vor.u32 %v550_v60, %v546_v55  ;;  %v4539_v14 = vld [vmem:[#allocation2 + $0x664] ss:$16 sps:$4 sm:$0xff]   ;;  %v4541_v15 = vld [vmem:[#allocation2 + $0x66c] ss:$16 sps:$4 sm:$0xff]   ;;  %v4543_v16 = vld [vmem:[#allocation2 + $0x660] ss:$16 sps:$4 sm:$0xff]  }
  0x5c   : > { %v4544_v17 = vld [vmem:[#allocation2 + $0x668] ss:$16 sps:$4 sm:$0xff]   ;;  %v539_v18 = vor.u32 %v538_v12, %v534_v11  ;;  %v543_v19 = vrot.slane %v541_v13, 1  ;;  %v4549_v20 = vld [vmem:[#allocation2 + $0x684] ss:$16 sps:$4 sm:$0xff]  }
  0x5d   : > { %1334 = vmatpush1.bf16.msra.mxu0 %v4489_v26  ;;  %1463 = vmatpush1.bf16.msra.mxu1 %v4490_v27  ;;  %v556_v4 = vsel %vm532_vm0, %v551_v1, %v555_v61  ;;  %v4552_v21 = vld [vmem:[#allocation2 + $0x68c] ss:$16 sps:$4 sm:$0xff]   ;;  %v4547_v22 = vld [vmem:[#allocation2 + $0x680] ss:$16 sps:$4 sm:$0xff]   ;;  %v4550_v23 = vld [vmem:[#allocation2 + $0x688] ss:$16 sps:$4 sm:$0xff]  }
  0x5e   : > { %1335 = vmatprep.subr.bf16.mxu0 %v4491_v28  ;;  %1464 = vmatprep.subr.bf16.mxu1 %v4493_v29  ;;  %v544_v24 = vsel %vm532_vm0, %v539_v18, %v543_v19  ;;  %v4557_v25 = vld [vmem:[#allocation2 + $0x6a4] ss:$16 sps:$4 sm:$0xff]   ;;  %v4560_v26 = vld [vmem:[#allocation2 + $0x6ac] ss:$16 sps:$4 sm:$0xff]   ;;  %v4555_v27 = vld [vmem:[#allocation2 + $0x6a0] ss:$16 sps:$4 sm:$0xff]  }
  0x5f   : > { %1353 = vmatprep.mubr.bf16.mxu0 %v556_v4  ;;  %1482 = vmatprep.mubr.bf16.mxu1 %v556_v4  ;;  %v4558_v28 = vld [vmem:[#allocation2 + $0x6a8] ss:$16 sps:$4 sm:$0xff]   ;;  %v4563_v29 = vld [vmem:[#allocation2 + $0x6c4] ss:$16 sps:$4 sm:$0xff]   ;;  %v4585_v47 = vld [vmem:[#allocation2 + $0x740] ss:$16 sps:$4 sm:$0xff]  }
  0x60   : > { %v4588_v48 = vld [vmem:[#allocation2 + $0x748] ss:$16 sps:$4 sm:$0xff]   ;;  %v4593_v55 = vld [vmem:[#allocation2 + $0x764] ss:$16 sps:$4 sm:$0xff]   ;;  %v4596_v56 = vld [vmem:[#allocation2 + $0x76c] ss:$16 sps:$4 sm:$0xff]  }
  0x61   : > { %1336 = vmatpush1.bf16.msra.mxu0 %v4495_v30  ;;  %1465 = vmatpush1.bf16.msra.mxu1 %v4496_v31  ;;  %v4566_v30 = vld [vmem:[#allocation2 + $0x6cc] ss:$16 sps:$4 sm:$0xff]   ;;  %v4561_v31 = vld [vmem:[#allocation2 + $0x6c0] ss:$16 sps:$4 sm:$0xff]   ;;  %v4594_v61 = vld [vmem:[#allocation2 + $0x768] ss:$16 sps:$4 sm:$0xff]  }
  0x62   : > { %1337 = vmatprep.subr.bf16.mxu0 %v4497_v32  ;;  %1466 = vmatprep.subr.bf16.mxu1 %v4499_v33  ;;  %v4564_v32 = vld [vmem:[#allocation2 + $0x6c8] ss:$16 sps:$4 sm:$0xff]   ;;  %v4569_v33 = vld [vmem:[#allocation2 + $0x6e4] ss:$16 sps:$4 sm:$0xff]   ;;  %v4591_v60 = vld [vmem:[#allocation2 + $0x760] ss:$16 sps:$4 sm:$0xff]  }
  0x63   : > { %v5325_v49 = vld [vmem:[%s5303_s20 + $0x8] sm:$0xff]  ;;  %v4597_v6 = vld [vmem:[#allocation2 + $0x780] ss:$16 sps:$4 sm:$0xff]   ;;  %v4611_v13 = vld [vmem:[#allocation2 + $0x7c4] ss:$16 sps:$4 sm:$0xff]  }
  0x64   : > { %v4602_v1 = vld [vmem:[#allocation2 + $0x78c] ss:$16 sps:$4 sm:$0xff]   ;;  %v4603_v11 = vld [vmem:[#allocation2 + $0x7a0] ss:$16 sps:$4 sm:$0xff]   ;;  %v4606_v12 = vld [vmem:[#allocation2 + $0x7a8] ss:$16 sps:$4 sm:$0xff]  }
  0x65   : > { %1338 = vmatpush1.bf16.msra.mxu0 %v4501_v34  ;;  %1467 = vmatpush1.bf16.msra.mxu1 %v4502_v35  ;;  %v4572_v34 = vld [vmem:[#allocation2 + $0x6ec] ss:$16 sps:$4 sm:$0xff]   ;;  %v4567_v35 = vld [vmem:[#allocation2 + $0x6e0] ss:$16 sps:$4 sm:$0xff]  }
  0x66   : > { %1339 = vmatprep.subr.bf16.mxu0 %v4503_v36  ;;  %1468 = vmatprep.subr.bf16.mxu1 %v4505_v37  ;;  %v4570_v36 = vld [vmem:[#allocation2 + $0x6e8] ss:$16 sps:$4 sm:$0xff]   ;;  %v4575_v37 = vld [vmem:[#allocation2 + $0x704] ss:$16 sps:$4 sm:$0xff]   ;;  %v4620_v18 = vld [vmem:[#allocation2 + $0x7ec] ss:$16 sps:$4 sm:$0xff]  }
  0x67   : > { %v4615_v19 = vld [vmem:[#allocation2 + $0x7e0] ss:$16 sps:$4 sm:$0xff]  }
  0x69   : > { %1340 = vmatpush1.bf16.msra.mxu0 %v4507_v38  ;;  %1469 = vmatpush1.bf16.msra.mxu1 %v4508_v39  ;;  %v4578_v38 = vld [vmem:[#allocation2 + $0x70c] ss:$16 sps:$4 sm:$0xff]   ;;  %v4573_v39 = vld [vmem:[#allocation2 + $0x700] ss:$16 sps:$4 sm:$0xff]  }
  0x6a   : > { %1341 = vmatprep.subr.bf16.mxu0 %v4509_v40  ;;  %1470 = vmatprep.subr.bf16.mxu1 %v4511_v41  ;;  %v4576_v40 = vld [vmem:[#allocation2 + $0x708] ss:$16 sps:$4 sm:$0xff]   ;;  %v4581_v41 = vld [vmem:[#allocation2 + $0x724] ss:$16 sps:$4 sm:$0xff]  }
  0x6d   : > { %1342 = vmatpush1.bf16.msra.mxu0 %v4513_v42  ;;  %1471 = vmatpush1.bf16.msra.mxu1 %v4514_v43  ;;  %v4584_v42 = vld [vmem:[#allocation2 + $0x72c] ss:$16 sps:$4 sm:$0xff]   ;;  %v4579_v43 = vld [vmem:[#allocation2 + $0x720] ss:$16 sps:$4 sm:$0xff]  }
  0x6e   : > { %1343 = vmatprep.subr.bf16.mxu0 %v4515_v44  ;;  %1472 = vmatprep.subr.bf16.mxu1 %v4517_v45  ;;  %v4582_v44 = vld [vmem:[#allocation2 + $0x728] ss:$16 sps:$4 sm:$0xff]   ;;  %v4587_v45 = vld [vmem:[#allocation2 + $0x744] ss:$16 sps:$4 sm:$0xff]  }
  0x71   : > { %1344 = vmatpush1.bf16.msra.mxu0 %v4519_v46  ;;  %1473 = vmatpush1.bf16.msra.mxu1 %v4520_v50  ;;  %v4590_v46 = vld [vmem:[#allocation2 + $0x74c] ss:$16 sps:$4 sm:$0xff]  }
  0x72   : > { %1345 = vmatprep.subr.bf16.mxu0 %v4521_v51  ;;  %1474 = vmatprep.subr.bf16.mxu1 %v4523_v54  ;;  %v5328_v50 = vld [vmem:[%s5303_s20 + $0x1c] sm:$0xff]  ;;  %v5331_v51 = vld [vmem:[%s5303_s20 + $0x30] sm:$0x11] }
  0x73   : > { %v5335_v54 = vcombine.high %v5325_v49, %v5328_v50  ;;  %v5339_v57 = vcombine.high %v5331_v51, %v5331_v51 }
  0x75   : > { %1346 = vmatpush1.bf16.msra.mxu0 %v4525_v58  ;;  %1475 = vmatpush1.bf16.msra.mxu1 %v4526_v59  ;;  %v570_v58 = vshrl.u32 %v5335_v54, 16  ;;  %v572_v59 = vshll.u32 %v5335_v54, 16 }
  0x76   : > { %1347 = vmatprep.subr.bf16.mxu0 %v4527_v63  ;;  %1476 = vmatprep.subr.bf16.mxu1 %v4529_v0  ;;  %v577_v63 = vshll.u32 %v5339_v57, 16  ;;  %v4599_v0 = vld [vmem:[#allocation2 + $0x784] ss:$16 sps:$4 sm:$0xff]  }
  0x79   : > { %1348 = vmatpush1.bf16.msra.mxu0 %v4531_v2  ;;  %1477 = vmatpush1.bf16.msra.mxu1 %v4532_v3  ;;  %v574_v2 = vrot.slane %v572_v59, 1  ;;  %v579_v3 = vrot.slane %v577_v63, 1  ;;  %v4655_v59 = vld [vmem:[#allocation2 + $0x8a0] ss:$16 sps:$4 sm:$0xff]  }
  0x7a   : > { %1349 = vmatprep.subr.bf16.mxu0 %v4533_v7  ;;  %1478 = vmatprep.subr.bf16.mxu1 %v4535_v8  ;;  %v4600_v7 = vld [vmem:[#allocation2 + $0x788] ss:$16 sps:$4 sm:$0xff]   ;;  %v4605_v8 = vld [vmem:[#allocation2 + $0x7a4] ss:$16 sps:$4 sm:$0xff]  }
  0x7b   : > { %v575_v4 = vor.u32 %v574_v2, %v570_v58  ;;  %v4660_v58 = vld [vmem:[#allocation2 + $0x8ac] ss:$16 sps:$4 sm:$0xff]   ;;  %v4680_v63 = vld [vmem:[%s5303_s20 + $0x38] ss:$0 sps:$4 sm:$0x11]  }
  0x7c   : > { %v4661_v2 = vld [vmem:[#allocation2 + $0x8c0] ss:$16 sps:$4 sm:$0xff]  }
  0x7d   : > { %1350 = vmatpush1.bf16.msra.mxu0 %v4537_v9  ;;  %1479 = vmatpush1.bf16.msra.mxu1 %v4538_v10  ;;  %v580_v9 = vsel %vm532_vm0, %v575_v4, %v579_v3  ;;  %v4608_v10 = vld [vmem:[#allocation2 + $0x7ac] ss:$16 sps:$4 sm:$0xff]   ;;  %v5192_v3 = vmov 0   ;;  %v4664_v4 = vld [vmem:[#allocation2 + $0x8c8] ss:$16 sps:$4 sm:$0xff]  }
  0x7e   : > { %1351 = vmatprep.subr.bf16.mxu0 %v4539_v14  ;;  %1480 = vmatprep.subr.bf16.mxu1 %v4541_v15  ;;  %v4614_v14 = vld [vmem:[#allocation2 + $0x7cc] ss:$16 sps:$4 sm:$0xff]   ;;  %v4609_v15 = vld [vmem:[#allocation2 + $0x7c0] ss:$16 sps:$4 sm:$0xff]  }
  0x81   : > { %1352 = vmatpush1.bf16.msra.mxu0 %v4543_v16  ;;  %1481 = vmatpush1.bf16.msra.mxu1 %v4544_v17  ;;  %v4612_v16 = vld [vmem:[#allocation2 + $0x7c8] ss:$16 sps:$4 sm:$0xff]   ;;  %v4617_v17 = vld [vmem:[#allocation2 + $0x7e4] ss:$16 sps:$4 sm:$0xff]  }
  0x82   : > { %1364 = vmatprep.subr.bf16.mxu0 %v4549_v20  ;;  %1493 = vmatprep.subr.bf16.mxu1 %v4552_v21  ;;  %v4618_v20 = vld [vmem:[#allocation2 + $0x7e8] ss:$16 sps:$4 sm:$0xff]   ;;  %v4623_v21 = vld [vmem:[#allocation2 + $0x804] ss:$16 sps:$4 sm:$0xff]  }
  0x84   : > { %1354 = vmatmul.mubr.bf16.vlgmr.msra.gmra.mrb[0].mxu0 %v544_v24  ;;  %1483 = vmatmul.mubr.bf16.vlgmr.msra.gmra.mrb[0].mxu1 %v544_v24  ;;  %v4624_v24 = vld [vmem:[#allocation2 + $0x808] ss:$16 sps:$4 sm:$0xff]  }
  0x85   : > { %1365 = vmatpush1.bf16.msra.mxu0 %v4547_v22  ;;  %1494 = vmatpush1.bf16.msra.mxu1 %v4550_v23  ;;  %v4626_v22 = vld [vmem:[#allocation2 + $0x80c] ss:$16 sps:$4 sm:$0xff]   ;;  %v4621_v23 = vld [vmem:[#allocation2 + $0x800] ss:$16 sps:$4 sm:$0xff]  }
  0x86   : > { %1366 = vmatprep.subr.bf16.mxu0 %v4557_v25  ;;  %1495 = vmatprep.subr.bf16.mxu1 %v4560_v26  ;;  %v4629_v25 = vld [vmem:[#allocation2 + $0x824] ss:$16 sps:$4 sm:$0xff]   ;;  %v5347_v26 = vcombine.low %v5325_v49, %v5328_v50  ;;  %v4647_v49 = vld [vmem:[#allocation2 + $0x880] ss:$16 sps:$4 sm:$0xff]   ;;  %v4650_v50 = vld [vmem:[#allocation2 + $0x888] ss:$16 sps:$4 sm:$0xff]  }
  0x87   : > { %1396 = vmatprep.mubr.bf16.mxu0 %v580_v9  ;;  %1525 = vmatprep.mubr.bf16.mxu1 %v580_v9  ;;  %v589_v9 = vshll.u32 %v4680_v63, 16  ;;  %v4737_v63 = vld [vmem:[#allocation2 + $0x144] ss:$16 sps:$4 sm:$0xff]  }
  0x89   : > { %1367 = vmatpush1.bf16.msra.mxu0 %v4555_v27  ;;  %1496 = vmatpush1.bf16.msra.mxu1 %v4558_v28  ;;  %v4632_v27 = vld [vmem:[#allocation2 + $0x82c] ss:$16 sps:$4 sm:$0xff]   ;;  %v4627_v28 = vld [vmem:[#allocation2 + $0x820] ss:$16 sps:$4 sm:$0xff]  }
  0x8a   : > { %1368 = vmatprep.subr.bf16.mxu0 %v4563_v29  ;;  %1497 = vmatprep.subr.bf16.mxu1 %v4566_v30  ;;  %v4630_v29 = vld [vmem:[#allocation2 + $0x828] ss:$16 sps:$4 sm:$0xff]   ;;  %v4635_v30 = vld [vmem:[#allocation2 + $0x844] ss:$16 sps:$4 sm:$0xff]  }
  0x8d   : > { %1369 = vmatpush1.bf16.msra.mxu0 %v4561_v31  ;;  %1498 = vmatpush1.bf16.msra.mxu1 %v4564_v32  ;;  %v5351_v31 = vcombine.low %v5331_v51, %v5331_v51  ;;  %v560_v32 = vshll.u32 %v5347_v26, 16 }
  0x8e   : > { %1370 = vmatprep.subr.bf16.mxu0 %v4569_v33  ;;  %1499 = vmatprep.subr.bf16.mxu1 %v4572_v34  ;;  %v4638_v33 = vld [vmem:[#allocation2 + $0x84c] ss:$16 sps:$4 sm:$0xff]   ;;  %v4633_v34 = vld [vmem:[#allocation2 + $0x840] ss:$16 sps:$4 sm:$0xff]  }
  0x91   : > { %1371 = vmatpush1.bf16.msra.mxu0 %v4567_v35  ;;  %1500 = vmatpush1.bf16.msra.mxu1 %v4570_v36  ;;  %v4636_v35 = vld [vmem:[#allocation2 + $0x848] ss:$16 sps:$4 sm:$0xff]   ;;  %v4641_v36 = vld [vmem:[#allocation2 + $0x864] ss:$16 sps:$4 sm:$0xff]  }
  0x92   : > { %1372 = vmatprep.subr.bf16.mxu0 %v4575_v37  ;;  %1501 = vmatprep.subr.bf16.mxu1 %v4578_v38  ;;  %v558_v37 = vshrl.u32 %v5347_v26, 16  ;;  %v562_v38 = vrot.slane %v560_v32, 1  ;;  %v4693_v32 = vld [vmem:[#allocation2 + $0x60] ss:$16 sps:$4 sm:$0xff]  }
  0x95   : > { %1373 = vmatpush1.bf16.msra.mxu0 %v4573_v39  ;;  %1502 = vmatpush1.bf16.msra.mxu1 %v4576_v40  ;;  %v565_v39 = vshll.u32 %v5351_v31, 16  ;;  %v4644_v40 = vld [vmem:[#allocation2 + $0x86c] ss:$16 sps:$4 sm:$0xff]  }
  0x96   : > { %1374 = vmatprep.subr.bf16.mxu0 %v4581_v41  ;;  %1503 = vmatprep.subr.bf16.mxu1 %v4584_v42  ;;  %v4639_v41 = vld [vmem:[#allocation2 + $0x860] ss:$16 sps:$4 sm:$0xff]   ;;  %v4642_v42 = vld [vmem:[#allocation2 + $0x868] ss:$16 sps:$4 sm:$0xff]  }
  0x99   : > { %1375 = vmatpush1.bf16.msra.mxu0 %v4579_v43  ;;  %1504 = vmatpush1.bf16.msra.mxu1 %v4582_v44  ;;  %v4649_v43 = vld [vmem:[#allocation2 + $0x884] ss:$16 sps:$4 sm:$0xff]   ;;  %v4652_v44 = vld [vmem:[#allocation2 + $0x88c] ss:$16 sps:$4 sm:$0xff]  }
  0x9a   : > { %1376 = vmatprep.subr.bf16.mxu0 %v4587_v45  ;;  %1505 = vmatprep.subr.bf16.mxu1 %v4590_v46  ;;  %v563_v45 = vor.u32 %v562_v38, %v558_v37  ;;  %v567_v46 = vrot.slane %v565_v39, 1  ;;  %v4702_v37 = vld [vmem:[#allocation2 + $0x88] ss:$16 sps:$4 sm:$0xff]   ;;  %v4710_v38 = vld [vmem:[#allocation2 + $0xac] ss:$16 sps:$4 sm:$0xff]  }
  0x9b   : > { %v4705_v39 = vld [vmem:[#allocation2 + $0xa0] ss:$16 sps:$4 sm:$0xff]  }
  0x9c   : > { %v568_v51 = vsel %vm532_vm0, %v563_v45, %v567_v46  ;;  %v4719_v45 = vld [vmem:[#allocation2 + $0xe4] ss:$16 sps:$4 sm:$0xff]   ;;  %v4722_v46 = vld [vmem:[#allocation2 + $0xec] ss:$16 sps:$4 sm:$0xff]  }
  0x9d   : > { %1377 = vmatpush1.bf16.msra.mxu0 %v4585_v47  ;;  %1506 = vmatpush1.bf16.msra.mxu1 %v4588_v48  ;;  %v202_v47 = vld [vmem:[%s5303_s20 + $0x10] sm:$0xf]  ;;  %v205_v48 = vld [vmem:[%s5303_s20 + $0x24] sm:$0xf] }
  0x9e   : > { %1378 = vmatprep.subr.bf16.mxu0 %v4593_v55  ;;  %1507 = vmatprep.subr.bf16.mxu1 %v4596_v56  ;;  %v4657_v55 = vld [vmem:[#allocation2 + $0x8a4] ss:$16 sps:$4 sm:$0xff]   ;;  %v5359_v56 = vcombine.low %v202_v47, %v205_v48  ;;  %v4717_v47 = vld [vmem:[#allocation2 + $0xe0] ss:$16 sps:$4 sm:$0xff]   ;;  %v4720_v48 = vld [vmem:[#allocation2 + $0xe8] ss:$16 sps:$4 sm:$0xff]  }
  0xa1   : > { %1379 = vmatpush1.bf16.msra.mxu0 %v4591_v60  ;;  %1508 = vmatpush1.bf16.msra.mxu1 %v4594_v61  ;;  %v4658_v60 = vld [vmem:[#allocation2 + $0x8a8] ss:$16 sps:$4 sm:$0xff]   ;;  %v4663_v61 = vld [vmem:[#allocation2 + $0x8c4] ss:$16 sps:$4 sm:$0xff]  }
  0xa2   : > { %1380 = vmatprep.subr.bf16.mxu0 %v4599_v0  ;;  %1509 = vmatprep.subr.bf16.mxu1 %v4602_v1  ;;  %v584_v0 = vshll.u32 %v5359_v56, 16  ;;  %v4666_v1 = vld [vmem:[#allocation2 + $0x8cc] ss:$16 sps:$4 sm:$0xff]  }
  0xa5   : > { %1381 = vmatpush1.bf16.msra.mxu0 %v4597_v6  ;;  %1510 = vmatpush1.bf16.msra.mxu1 %v4600_v7  ;;  %v4669_v6 = vld [vmem:[#allocation2 + $0x8e4] ss:$16 sps:$4 sm:$0xff]   ;;  %v582_v7 = vshrl.u32 %v5359_v56, 16 }
  0xa6   : > { %1382 = vmatprep.subr.bf16.mxu0 %v4605_v8  ;;  %1511 = vmatprep.subr.bf16.mxu1 %v4608_v10  ;;  %v586_v8 = vrot.slane %v584_v0, 1  ;;  %v4672_v10 = vld [vmem:[#allocation2 + $0x8ec] ss:$16 sps:$4 sm:$0xff]  }
  0xa7   : > { %v4740_v0 = vld [vmem:[#allocation2 + $0x14c] ss:$16 sps:$4 sm:$0xff]  }
  0xa9   : > { %1383 = vmatpush1.bf16.msra.mxu0 %v4603_v11  ;;  %1512 = vmatpush1.bf16.msra.mxu1 %v4606_v12  ;;  %v4667_v11 = vld [vmem:[#allocation2 + $0x8e0] ss:$16 sps:$4 sm:$0xff]   ;;  %v4670_v12 = vld [vmem:[#allocation2 + $0x8e8] ss:$16 sps:$4 sm:$0xff]  }
  0xaa   : > { %1384 = vmatprep.subr.bf16.mxu0 %v4611_v13  ;;  %1513 = vmatprep.subr.bf16.mxu1 %v4614_v14  ;;  %v4675_v13 = vld [vmem:[#allocation2 + $0x4] ss:$16 sps:$4 sm:$0xff]   ;;  %v587_v14 = vor.u32 %v586_v8, %v582_v7  ;;  %v4741_v7 = vld [vmem:[#allocation2 + $0x160] ss:$16 sps:$4 sm:$0xff]   ;;  %v4744_v8 = vld [vmem:[#allocation2 + $0x168] ss:$16 sps:$4 sm:$0xff]  }
  0xad   : > { %1385 = vmatpush1.bf16.msra.mxu0 %v4609_v15  ;;  %1514 = vmatpush1.bf16.msra.mxu1 %v4612_v16  ;;  %v591_v15 = vrot.slane %v589_v9, 1  ;;  %v4678_v16 = vld [vmem:[#allocation2 + $0xc] ss:$16 sps:$4 sm:$0xff]   ;;  %v4749_v9 = vld [vmem:[#allocation2 + $0x184] ss:$16 sps:$4 sm:$0xff]  }
  0xae   : > { %1386 = vmatprep.subr.bf16.mxu0 %v4617_v17  ;;  %1515 = vmatprep.subr.bf16.mxu1 %v4620_v18  ;;  %v4673_v17 = vld [vmem:[#allocation2] ss:$16 sps:$4 sm:$0xff]   ;;  %v4676_v18 = vld [vmem:[#allocation2 + $0x8] ss:$16 sps:$4 sm:$0xff]  }
  0xb1   : > { %1387 = vmatpush1.bf16.msra.mxu0 %v4615_v19  ;;  %1516 = vmatpush1.bf16.msra.mxu1 %v4618_v20  ;;  %v592_v19 = vsel %vm532_vm0, %v587_v14, %v591_v15  ;;  %v4683_v20 = vld [vmem:[#allocation2 + $0x24] ss:$16 sps:$4 sm:$0xff]   ;;  %v4758_v14 = vld [vmem:[#allocation2 + $0x1ac] ss:$16 sps:$4 sm:$0xff]   ;;  %v4753_v15 = vld [vmem:[#allocation2 + $0x1a0] ss:$16 sps:$4 sm:$0xff]  }
  0xb2   : > { %1388 = vmatprep.subr.bf16.mxu0 %v4623_v21  ;;  %1517 = vmatprep.subr.bf16.mxu1 %v4626_v22  ;;  %v4686_v21 = vld [vmem:[#allocation2 + $0x2c] ss:$16 sps:$4 sm:$0xff]   ;;  %v4681_v22 = vld [vmem:[#allocation2 + $0x20] ss:$16 sps:$4 sm:$0xff]  }
  0xb5   : > { %1389 = vmatpush1.bf16.msra.mxu0 %v4621_v23  ;;  %1518 = vmatpush1.bf16.msra.mxu1 %v4624_v24  ;;  %v4684_v23 = vld [vmem:[#allocation2 + $0x28] ss:$16 sps:$4 sm:$0xff]   ;;  %v4689_v24 = vld [vmem:[#allocation2 + $0x44] ss:$16 sps:$4 sm:$0xff]  }
  0xb6   : > { %1390 = vmatprep.subr.bf16.mxu0 %v4629_v25  ;;  %1519 = vmatprep.subr.bf16.mxu1 %v4632_v27  ;;  %v4692_v25 = vld [vmem:[#allocation2 + $0x4c] ss:$16 sps:$4 sm:$0xff]   ;;  %v4687_v27 = vld [vmem:[#allocation2 + $0x40] ss:$16 sps:$4 sm:$0xff]  }
  0xb9   : > { %1391 = vmatpush1.bf16.msra.mxu0 %v4627_v28  ;;  %1520 = vmatpush1.bf16.msra.mxu1 %v4630_v29  ;;  %v4690_v28 = vld [vmem:[#allocation2 + $0x48] ss:$16 sps:$4 sm:$0xff]   ;;  %v4695_v29 = vld [vmem:[#allocation2 + $0x64] ss:$16 sps:$4 sm:$0xff]  }
  0xba   : > { %1392 = vmatprep.subr.bf16.mxu0 %v4635_v30  ;;  %1521 = vmatprep.subr.bf16.mxu1 %v4638_v33  ;;  %v4698_v30 = vld [vmem:[#allocation2 + $0x6c] ss:$16 sps:$4 sm:$0xff]   ;;  %v4696_v33 = vld [vmem:[#allocation2 + $0x68] ss:$16 sps:$4 sm:$0xff]  }
  0xbd   : > { %1393 = vmatpush1.bf16.msra.mxu0 %v4633_v34  ;;  %1522 = vmatpush1.bf16.msra.mxu1 %v4636_v35  ;;  %v4701_v34 = vld [vmem:[#allocation2 + $0x84] ss:$16 sps:$4 sm:$0xff]   ;;  %v4704_v35 = vld [vmem:[#allocation2 + $0x8c] ss:$16 sps:$4 sm:$0xff]  }
  0xbe   : > { %1394 = vmatprep.subr.bf16.mxu0 %v4641_v36  ;;  %1523 = vmatprep.subr.bf16.mxu1 %v4644_v40  ;;  %v4699_v36 = vld [vmem:[#allocation2 + $0x80] ss:$16 sps:$4 sm:$0xff]   ;;  %v4708_v40 = vld [vmem:[#allocation2 + $0xa8] ss:$16 sps:$4 sm:$0xff]  }
  0xc1   : > { %1395 = vmatpush1.bf16.msra.mxu0 %v4639_v41  ;;  %1524 = vmatpush1.bf16.msra.mxu1 %v4642_v42  ;;  %v4713_v41 = vld [vmem:[#allocation2 + $0xc4] ss:$16 sps:$4 sm:$0xff]   ;;  %v4716_v42 = vld [vmem:[#allocation2 + $0xcc] ss:$16 sps:$4 sm:$0xff]  }
  0xc2   : > { %1407 = vmatprep.subr.bf16.mxu0 %v4649_v43  ;;  %1536 = vmatprep.subr.bf16.mxu1 %v4652_v44  ;;  %v4711_v43 = vld [vmem:[#allocation2 + $0xc0] ss:$16 sps:$4 sm:$0xff]   ;;  %v4714_v44 = vld [vmem:[#allocation2 + $0xc8] ss:$16 sps:$4 sm:$0xff]  }
  0xc4   : > { %1397 = vmatmul.mubr.bf16.vlgmr.msra.gmra.mrb[0].mxu0 %v568_v51  ;;  %1526 = vmatmul.mubr.bf16.vlgmr.msra.gmra.mrb[0].mxu1 %v568_v51  ;;  %v4723_v51 = vld [vmem:[#allocation2 + $0x100] ss:$16 sps:$4 sm:$0xff]  }
  0xc5   : > { %1408 = vmatpush1.bf16.msra.mxu0 %v4647_v49  ;;  %1537 = vmatpush1.bf16.msra.mxu1 %v4650_v50  ;;  %v4725_v49 = vld [vmem:[#allocation2 + $0x104] ss:$16 sps:$4 sm:$0xff]   ;;  %v4728_v50 = vld [vmem:[#allocation2 + $0x10c] ss:$16 sps:$4 sm:$0xff]  }
  0xc6   : > { %1409 = vmatprep.subr.bf16.mxu0 %v4657_v55  ;;  %1538 = vmatprep.subr.bf16.mxu1 %v4660_v58  ;;  %v4726_v55 = vld [vmem:[#allocation2 + $0x108] ss:$16 sps:$4 sm:$0xff]   ;;  %v4731_v58 = vld [vmem:[#allocation2 + $0x124] ss:$16 sps:$4 sm:$0xff]  }
  0xc7   : > { %1439 = vmatprep.mubr.bf16.mxu0 %v5192_v3  ;;  %1568 = vmatprep.mubr.bf16.mxu1 %v5192_v3 }
  0xc9   : > { %1410 = vmatpush1.bf16.msra.mxu0 %v4655_v59  ;;  %1539 = vmatpush1.bf16.msra.mxu1 %v4658_v60  ;;  %v4734_v59 = vld [vmem:[#allocation2 + $0x12c] ss:$16 sps:$4 sm:$0xff]   ;;  %v4729_v60 = vld [vmem:[#allocation2 + $0x120] ss:$16 sps:$4 sm:$0xff]  }
  0xca   : > { %1411 = vmatprep.subr.bf16.mxu0 %v4663_v61  ;;  %1540 = vmatprep.subr.bf16.mxu1 %v4666_v1  ;;  %v4732_v61 = vld [vmem:[#allocation2 + $0x128] ss:$16 sps:$4 sm:$0xff]   ;;  %v4735_v1 = vld [vmem:[#allocation2 + $0x140] ss:$16 sps:$4 sm:$0xff]  }
  0xcd   : > { %1412 = vmatpush1.bf16.msra.mxu0 %v4661_v2  ;;  %1541 = vmatpush1.bf16.msra.mxu1 %v4664_v4  ;;  %v4738_v2 = vld [vmem:[#allocation2 + $0x148] ss:$16 sps:$4 sm:$0xff]   ;;  %v4743_v4 = vld [vmem:[#allocation2 + $0x164] ss:$16 sps:$4 sm:$0xff]  }
  0xce   : > { %1413 = vmatprep.subr.bf16.mxu0 %v4669_v6  ;;  %1542 = vmatprep.subr.bf16.mxu1 %v4672_v10  ;;  %v4746_v6 = vld [vmem:[#allocation2 + $0x16c] ss:$16 sps:$4 sm:$0xff]  }
  0xcf   : > { %v4752_v10 = vld [vmem:[#allocation2 + $0x18c] ss:$16 sps:$4 sm:$0xff]  }
  0xd1   : > { %1414 = vmatpush1.bf16.msra.mxu0 %v4667_v11  ;;  %1543 = vmatpush1.bf16.msra.mxu1 %v4670_v12  ;;  %v4747_v11 = vld [vmem:[#allocation2 + $0x180] ss:$16 sps:$4 sm:$0xff]   ;;  %v4750_v12 = vld [vmem:[#allocation2 + $0x188] ss:$16 sps:$4 sm:$0xff]  }
  0xd2   : > { %2305 = vmatprep.subr.bf16.mxu0 %v4675_v13  ;;  %2434 = vmatprep.subr.bf16.mxu1 %v4678_v16  ;;  %v4755_v13 = vld [vmem:[#allocation2 + $0x1a4] ss:$16 sps:$4 sm:$0xff]   ;;  %v4756_v16 = vld [vmem:[#allocation2 + $0x1a8] ss:$16 sps:$4 sm:$0xff]  }
  0xd4   : > { %4042 = vmatmul.mubr.msk.bf16.vlgmr.msra.gmra.mrb[0].mxu0 %vm1317_vm1, %v592_v19  ;;  %4043 = vmatmul.mubr.msk.bf16.vlgmr.msra.gmra.mrb[0].mxu1 %vm1317_vm1, %v592_v19  ;;  %v4759_v19 = vld [vmem:[#allocation2 + $0x1c0] ss:$16 sps:$4 sm:$0xff]  }
  0xd5   : > { %2306 = vmatpush1.bf16.msra.mxu0 %v4673_v17  ;;  %2435 = vmatpush1.bf16.msra.mxu1 %v4676_v18  ;;  %v4761_v17 = vld [vmem:[#allocation2 + $0x1c4] ss:$16 sps:$4 sm:$0xff]   ;;  %v4764_v18 = vld [vmem:[#allocation2 + $0x1cc] ss:$16 sps:$4 sm:$0xff]  }
  0xd6   : > { %2307 = vmatprep.subr.bf16.mxu0 %v4683_v20  ;;  %2436 = vmatprep.subr.bf16.mxu1 %v4686_v21  ;;  %v4762_v20 = vld [vmem:[#allocation2 + $0x1c8] ss:$16 sps:$4 sm:$0xff]   ;;  %v4767_v21 = vld [vmem:[#allocation2 + $0x1e4] ss:$16 sps:$4 sm:$0xff]  }
  0xd7   : > { %2337 = vmatprep.mubr.bf16.mxu0 %v5308_v52  ;;  %2466 = vmatprep.mubr.bf16.mxu1 %v5308_v52  ;;  %v4707_v52 = vld [vmem:[#allocation2 + $0xa4] ss:$16 sps:$4 sm:$0xff]  }
  0xd9   : > { %2308 = vmatpush1.bf16.msra.mxu0 %v4681_v22  ;;  %2437 = vmatpush1.bf16.msra.mxu1 %v4684_v23  ;;  %v4770_v22 = vld [vmem:[#allocation2 + $0x1ec] ss:$16 sps:$4 sm:$0xff]   ;;  %v4765_v23 = vld [vmem:[#allocation2 + $0x1e0] ss:$16 sps:$4 sm:$0xff]  }
  0xda   : > { %2309 = vmatprep.subr.bf16.mxu0 %v4689_v24  ;;  %2438 = vmatprep.subr.bf16.mxu1 %v4692_v25  ;;  %v4768_v24 = vld [vmem:[#allocation2 + $0x1e8] ss:$16 sps:$4 sm:$0xff]   ;;  %v4773_v25 = vld [vmem:[#allocation2 + $0x204] ss:$16 sps:$4 sm:$0xff]  }
  0xdd   : > { %2310 = vmatpush1.bf16.msra.mxu0 %v4687_v27  ;;  %2439 = vmatpush1.bf16.msra.mxu1 %v4690_v28  ;;  %v4776_v27 = vld [vmem:[#allocation2 + $0x20c] ss:$16 sps:$4 sm:$0xff]   ;;  %v4771_v28 = vld [vmem:[#allocation2 + $0x200] ss:$16 sps:$4 sm:$0xff]  }
  0xde   : > { %2311 = vmatprep.subr.bf16.mxu0 %v4695_v29  ;;  %2440 = vmatprep.subr.bf16.mxu1 %v4698_v30  ;;  %v4774_v29 = vld [vmem:[#allocation2 + $0x208] ss:$16 sps:$4 sm:$0xff]   ;;  %v4779_v30 = vld [vmem:[#allocation2 + $0x224] ss:$16 sps:$4 sm:$0xff]  }
  0xe1   : > { %2312 = vmatpush1.bf16.msra.mxu0 %v4693_v32  ;;  %2441 = vmatpush1.bf16.msra.mxu1 %v4696_v33  ;;  %v4782_v32 = vld [vmem:[#allocation2 + $0x22c] ss:$16 sps:$4 sm:$0xff]   ;;  %v4777_v33 = vld [vmem:[#allocation2 + $0x220] ss:$16 sps:$4 sm:$0xff]  }
  0xe2   : > { %2313 = vmatprep.subr.bf16.mxu0 %v4701_v34  ;;  %2442 = vmatprep.subr.bf16.mxu1 %v4704_v35  ;;  %v4780_v34 = vld [vmem:[#allocation2 + $0x228] ss:$16 sps:$4 sm:$0xff]   ;;  %v4785_v35 = vld [vmem:[#allocation2 + $0x244] ss:$16 sps:$4 sm:$0xff]  }
  0xe5   : > { %2314 = vmatpush1.bf16.msra.mxu0 %v4699_v36  ;;  %2443 = vmatpush1.bf16.msra.mxu1 %v4702_v37  ;;  %v4788_v36 = vld [vmem:[#allocation2 + $0x24c] ss:$16 sps:$4 sm:$0xff]   ;;  %v4783_v37 = vld [vmem:[#allocation2 + $0x240] ss:$16 sps:$4 sm:$0xff]  }
  0xe6   : > { %2315 = vmatprep.subr.bf16.mxu0 %v4707_v52  ;;  %2444 = vmatprep.subr.bf16.mxu1 %v4710_v38  ;;  %v4786_v52 = vld [vmem:[#allocation2 + $0x248] ss:$16 sps:$4 sm:$0xff]   ;;  %v4791_v38 = vld [vmem:[#allocation2 + $0x264] ss:$16 sps:$4 sm:$0xff]  }
  0xe9   : > { %2316 = vmatpush1.bf16.msra.mxu0 %v4705_v39  ;;  %2445 = vmatpush1.bf16.msra.mxu1 %v4708_v40  ;;  %v4789_v39 = vld [vmem:[#allocation2 + $0x260] ss:$16 sps:$4 sm:$0xff]   ;;  %v4792_v40 = vld [vmem:[#allocation2 + $0x268] ss:$16 sps:$4 sm:$0xff]  }
  0xea   : > { %2317 = vmatprep.subr.bf16.mxu0 %v4713_v41  ;;  %2446 = vmatprep.subr.bf16.mxu1 %v4716_v42  ;;  %v4797_v41 = vld [vmem:[#allocation2 + $0x284] ss:$16 sps:$4 sm:$0xff]   ;;  %v4800_v42 = vld [vmem:[#allocation2 + $0x28c] ss:$16 sps:$4 sm:$0xff]  }
  0xed   : > { %2318 = vmatpush1.bf16.msra.mxu0 %v4711_v43  ;;  %2447 = vmatpush1.bf16.msra.mxu1 %v4714_v44  ;;  %v4795_v43 = vld [vmem:[#allocation2 + $0x280] ss:$16 sps:$4 sm:$0xff]   ;;  %v4798_v44 = vld [vmem:[#allocation2 + $0x288] ss:$16 sps:$4 sm:$0xff]  }
  0xee   : > { %2319 = vmatprep.subr.bf16.mxu0 %v4719_v45  ;;  %2448 = vmatprep.subr.bf16.mxu1 %v4722_v46  ;;  %v4806_v45 = vld [vmem:[#allocation2 + $0x2ac] ss:$16 sps:$4 sm:$0xff]   ;;  %v4801_v46 = vld [vmem:[#allocation2 + $0x2a0] ss:$16 sps:$4 sm:$0xff]  }
  0xf1   : > { %2320 = vmatpush1.bf16.msra.mxu0 %v4717_v47  ;;  %2449 = vmatpush1.bf16.msra.mxu1 %v4720_v48  ;;  %v4804_v47 = vld [vmem:[#allocation2 + $0x2a8] ss:$16 sps:$4 sm:$0xff]   ;;  %v4809_v48 = vld [vmem:[#allocation2 + $0x2c4] ss:$16 sps:$4 sm:$0xff]  }
  0xf2   : > { %2321 = vmatprep.subr.bf16.mxu0 %v4725_v49  ;;  %2450 = vmatprep.subr.bf16.mxu1 %v4728_v50  ;;  %v4812_v49 = vld [vmem:[#allocation2 + $0x2cc] ss:$16 sps:$4 sm:$0xff]   ;;  %v4807_v50 = vld [vmem:[#allocation2 + $0x2c0] ss:$16 sps:$4 sm:$0xff]  }
  0xf5   : > { %2322 = vmatpush1.bf16.msra.mxu0 %v4723_v51  ;;  %2451 = vmatpush1.bf16.msra.mxu1 %v4726_v55  ;;  %v4810_v51 = vld [vmem:[#allocation2 + $0x2c8] ss:$16 sps:$4 sm:$0xff]   ;;  %v4815_v55 = vld [vmem:[#allocation2 + $0x2e4] ss:$16 sps:$4 sm:$0xff]  }
  0xf6   : > { %2323 = vmatprep.subr.bf16.mxu0 %v4731_v58  ;;  %2452 = vmatprep.subr.bf16.mxu1 %v4734_v59  ;;  %v4818_v58 = vld [vmem:[#allocation2 + $0x2ec] ss:$16 sps:$4 sm:$0xff]   ;;  %v4813_v59 = vld [vmem:[#allocation2 + $0x2e0] ss:$16 sps:$4 sm:$0xff]  }
  0xf9   : > { %2324 = vmatpush1.bf16.msra.mxu0 %v4729_v60  ;;  %2453 = vmatpush1.bf16.msra.mxu1 %v4732_v61  ;;  %v4816_v60 = vld [vmem:[#allocation2 + $0x2e8] ss:$16 sps:$4 sm:$0xff]   ;;  %v4821_v61 = vld [vmem:[#allocation2 + $0x304] ss:$16 sps:$4 sm:$0xff]  }
  0xfa   : > { %2325 = vmatprep.subr.bf16.mxu0 %v4737_v63  ;;  %2454 = vmatprep.subr.bf16.mxu1 %v4740_v0  ;;  %v4824_v63 = vld [vmem:[#allocation2 + $0x30c] ss:$16 sps:$4 sm:$0xff]   ;;  %v4819_v0 = vld [vmem:[#allocation2 + $0x300] ss:$16 sps:$4 sm:$0xff]  }
  0xfd   : > { %2326 = vmatpush1.bf16.msra.mxu0 %v4735_v1  ;;  %2455 = vmatpush1.bf16.msra.mxu1 %v4738_v2  ;;  %v4822_v1 = vld [vmem:[#allocation2 + $0x308] ss:$16 sps:$4 sm:$0xff]   ;;  %v4827_v2 = vld [vmem:[#allocation2 + $0x324] ss:$16 sps:$4 sm:$0xff]  }
  0xfe   : > { %2327 = vmatprep.subr.bf16.mxu0 %v4743_v4  ;;  %2456 = vmatprep.subr.bf16.mxu1 %v4746_v6  ;;  %v4830_v4 = vld [vmem:[#allocation2 + $0x32c] ss:$16 sps:$4 sm:$0xff]   ;;  %v4825_v6 = vld [vmem:[#allocation2 + $0x320] ss:$16 sps:$4 sm:$0xff]  }
 0x101   : > { %2328 = vmatpush1.bf16.msra.mxu0 %v4741_v7  ;;  %2457 = vmatpush1.bf16.msra.mxu1 %v4744_v8  ;;  %v4828_v7 = vld [vmem:[#allocation2 + $0x328] ss:$16 sps:$4 sm:$0xff]   ;;  %v4833_v8 = vld [vmem:[#allocation2 + $0x344] ss:$16 sps:$4 sm:$0xff]  }
 0x102   : > { %2329 = vmatprep.subr.bf16.mxu0 %v4749_v9  ;;  %2458 = vmatprep.subr.bf16.mxu1 %v4752_v10  ;;  %v4836_v9 = vld [vmem:[#allocation2 + $0x34c] ss:$16 sps:$4 sm:$0xff]   ;;  %v4831_v10 = vld [vmem:[#allocation2 + $0x340] ss:$16 sps:$4 sm:$0xff]  }
 0x105   : > { %2330 = vmatpush1.bf16.msra.mxu0 %v4747_v11  ;;  %2459 = vmatpush1.bf16.msra.mxu1 %v4750_v12  ;;  %v4834_v11 = vld [vmem:[#allocation2 + $0x348] ss:$16 sps:$4 sm:$0xff]   ;;  %v4839_v12 = vld [vmem:[#allocation2 + $0x364] ss:$16 sps:$4 sm:$0xff]  }
 0x106   : > { %2331 = vmatprep.subr.bf16.mxu0 %v4755_v13  ;;  %2460 = vmatprep.subr.bf16.mxu1 %v4758_v14  ;;  %v4842_v13 = vld [vmem:[#allocation2 + $0x36c] ss:$16 sps:$4 sm:$0xff]   ;;  %v4837_v14 = vld [vmem:[#allocation2 + $0x360] ss:$16 sps:$4 sm:$0xff]  }
 0x109   : > { %2332 = vmatpush1.bf16.msra.mxu0 %v4753_v15  ;;  %2461 = vmatpush1.bf16.msra.mxu1 %v4756_v16  ;;  %v4840_v15 = vld [vmem:[#allocation2 + $0x368] ss:$16 sps:$4 sm:$0xff]   ;;  %v4845_v16 = vld [vmem:[#allocation2 + $0x384] ss:$16 sps:$4 sm:$0xff]  }
 0x10a   : > { %2333 = vmatprep.subr.bf16.mxu0 %v4761_v17  ;;  %2462 = vmatprep.subr.bf16.mxu1 %v4764_v18  ;;  %v4848_v17 = vld [vmem:[#allocation2 + $0x38c] ss:$16 sps:$4 sm:$0xff]   ;;  %v4843_v18 = vld [vmem:[#allocation2 + $0x380] ss:$16 sps:$4 sm:$0xff]  }
 0x10d   : > { %2334 = vmatpush1.bf16.msra.mxu0 %v4759_v19  ;;  %2463 = vmatpush1.bf16.msra.mxu1 %v4762_v20  ;;  %v4846_v19 = vld [vmem:[#allocation2 + $0x388] ss:$16 sps:$4 sm:$0xff]   ;;  %v4851_v20 = vld [vmem:[#allocation2 + $0x3a4] ss:$16 sps:$4 sm:$0xff]  }
 0x10e   : > { %2335 = vmatprep.subr.bf16.mxu0 %v4767_v21  ;;  %2464 = vmatprep.subr.bf16.mxu1 %v4770_v22  ;;  %v4854_v21 = vld [vmem:[#allocation2 + $0x3ac] ss:$16 sps:$4 sm:$0xff]   ;;  %v4849_v22 = vld [vmem:[#allocation2 + $0x3a0] ss:$16 sps:$4 sm:$0xff]  }
 0x111   : > { %2336 = vmatpush1.bf16.msra.mxu0 %v4765_v23  ;;  %2465 = vmatpush1.bf16.msra.mxu1 %v4768_v24  ;;  %v4852_v23 = vld [vmem:[#allocation2 + $0x3a8] ss:$16 sps:$4 sm:$0xff]   ;;  %v4857_v24 = vld [vmem:[#allocation2 + $0x3c4] ss:$16 sps:$4 sm:$0xff]  }
 0x112   : > { %2348 = vmatprep.subr.bf16.mxu0 %v4773_v25  ;;  %2477 = vmatprep.subr.bf16.mxu1 %v4776_v27  ;;  %v4860_v25 = vld [vmem:[#allocation2 + $0x3cc] ss:$16 sps:$4 sm:$0xff]   ;;  %v4855_v27 = vld [vmem:[#allocation2 + $0x3c0] ss:$16 sps:$4 sm:$0xff]  }
 0x114   : > { %2338 = vmatmul.mubr.bf16.vlgmr.msra.gmra.mrb[0].mxu0 %v5315_v62  ;;  %2467 = vmatmul.mubr.bf16.vlgmr.msra.gmra.mrb[0].mxu1 %v5315_v62  ;;  %v4794_v62 = vld [vmem:[#allocation2 + $0x26c] ss:$16 sps:$4 sm:$0xff]  }
 0x115   : > { %2349 = vmatpush1.bf16.msra.mxu0 %v4771_v28  ;;  %2478 = vmatpush1.bf16.msra.mxu1 %v4774_v29  ;;  %v4858_v28 = vld [vmem:[#allocation2 + $0x3c8] ss:$16 sps:$4 sm:$0xff]   ;;  %v4863_v29 = vld [vmem:[#allocation2 + $0x3e4] ss:$16 sps:$4 sm:$0xff]  }
 0x116   : > { %2350 = vmatprep.subr.bf16.mxu0 %v4779_v30  ;;  %2479 = vmatprep.subr.bf16.mxu1 %v4782_v32  ;;  %v4866_v30 = vld [vmem:[#allocation2 + $0x3ec] ss:$16 sps:$4 sm:$0xff]   ;;  %v4861_v32 = vld [vmem:[#allocation2 + $0x3e0] ss:$16 sps:$4 sm:$0xff]  }
 0x117   : > { %2380 = vmatprep.mubr.bf16.mxu0 %v5335_v54  ;;  %2509 = vmatprep.mubr.bf16.mxu1 %v5335_v54  ;;  %v4803_v54 = vld [vmem:[#allocation2 + $0x2a4] ss:$16 sps:$4 sm:$0xff]  }
 0x119   : > { %2351 = vmatpush1.bf16.msra.mxu0 %v4777_v33  ;;  %2480 = vmatpush1.bf16.msra.mxu1 %v4780_v34  ;;  %v4864_v33 = vld [vmem:[#allocation2 + $0x3e8] ss:$16 sps:$4 sm:$0xff]   ;;  %v4869_v34 = vld [vmem:[#allocation2 + $0x404] ss:$16 sps:$4 sm:$0xff]  }
 0x11a   : > { %2352 = vmatprep.subr.bf16.mxu0 %v4785_v35  ;;  %2481 = vmatprep.subr.bf16.mxu1 %v4788_v36  ;;  %v4872_v35 = vld [vmem:[#allocation2 + $0x40c] ss:$16 sps:$4 sm:$0xff]   ;;  %v4867_v36 = vld [vmem:[#allocation2 + $0x400] ss:$16 sps:$4 sm:$0xff]  }
 0x11d   : > { %2353 = vmatpush1.bf16.msra.mxu0 %v4783_v37  ;;  %2482 = vmatpush1.bf16.msra.mxu1 %v4786_v52  ;;  %v4870_v37 = vld [vmem:[#allocation2 + $0x408] ss:$16 sps:$4 sm:$0xff]   ;;  %v4875_v52 = vld [vmem:[#allocation2 + $0x424] ss:$16 sps:$4 sm:$0xff]  }
 0x11e   : > { %2354 = vmatprep.subr.bf16.mxu0 %v4791_v38  ;;  %2483 = vmatprep.subr.bf16.mxu1 %v4794_v62  ;;  %v4878_v38 = vld [vmem:[#allocation2 + $0x42c] ss:$16 sps:$4 sm:$0xff]   ;;  %v4873_v62 = vld [vmem:[#allocation2 + $0x420] ss:$16 sps:$4 sm:$0xff]  }
 0x121   : > { %2355 = vmatpush1.bf16.msra.mxu0 %v4789_v39  ;;  %2484 = vmatpush1.bf16.msra.mxu1 %v4792_v40  ;;  %v4876_v39 = vld [vmem:[#allocation2 + $0x428] ss:$16 sps:$4 sm:$0xff]   ;;  %v4881_v40 = vld [vmem:[#allocation2 + $0x444] ss:$16 sps:$4 sm:$0xff]  }
 0x122   : > { %2356 = vmatprep.subr.bf16.mxu0 %v4797_v41  ;;  %2485 = vmatprep.subr.bf16.mxu1 %v4800_v42  ;;  %v4884_v41 = vld [vmem:[#allocation2 + $0x44c] ss:$16 sps:$4 sm:$0xff]   ;;  %v4879_v42 = vld [vmem:[#allocation2 + $0x440] ss:$16 sps:$4 sm:$0xff]  }
 0x125   : > { %2357 = vmatpush1.bf16.msra.mxu0 %v4795_v43  ;;  %2486 = vmatpush1.bf16.msra.mxu1 %v4798_v44  ;;  %v4882_v43 = vld [vmem:[#allocation2 + $0x448] ss:$16 sps:$4 sm:$0xff]   ;;  %v5380_v44 = vld [vmem:[%s5303_s20] sm:$0xee] }
 0x126   : > { %2358 = vmatprep.subr.bf16.mxu0 %v4803_v54  ;;  %2487 = vmatprep.subr.bf16.mxu1 %v4806_v45  ;;  %v4890_v54 = vld [vmem:[#allocation2 + $0x46c] ss:$16 sps:$4 sm:$0xff]   ;;  %v5383_v45 = vld [vmem:[%s5303_s20 + $0x14] sm:$0xff] }
 0x129   : > { %2359 = vmatpush1.bf16.msra.mxu0 %v4801_v46  ;;  %2488 = vmatpush1.bf16.msra.mxu1 %v4804_v47  ;;  %v4191_v46 = vcombine.high %v5380_v44, %v5383_v45  ;;  %v4885_v47 = vld [vmem:[#allocation2 + $0x460] ss:$16 sps:$4 sm:$0xff]  }
 0x12a   : > { %2360 = vmatprep.subr.bf16.mxu0 %v4809_v48  ;;  %2489 = vmatprep.subr.bf16.mxu1 %v4812_v49  ;;  %v4888_v48 = vld [vmem:[#allocation2 + $0x468] ss:$16 sps:$4 sm:$0xff]   ;;  %v4893_v49 = vld [vmem:[#allocation2 + $0x904] ss:$16 sps:$4 sm:$0xff]  }
 0x12d   : > { %2361 = vmatpush1.bf16.msra.mxu0 %v4807_v50  ;;  %2490 = vmatpush1.bf16.msra.mxu1 %v4810_v51  ;;  %v4896_v50 = vld [vmem:[#allocation2 + $0x90c] ss:$16 sps:$4 sm:$0xff]   ;;  %v2728_v51 = vrot.slane %v4191_v46, 1  ;;  %v4971_v46 = vld [vmem:[#allocation2 + $0xaa4] ss:$16 sps:$4 sm:$0xff]  }
 0x12e   : > { %2362 = vmatprep.subr.bf16.mxu0 %v4815_v55  ;;  %2491 = vmatprep.subr.bf16.mxu1 %v4818_v58  ;;  %v2729_v55 = vrot.slane %v5310_v53, 1  ;;  %v4891_v58 = vld [vmem:[#allocation2 + $0x900] ss:$16 sps:$4 sm:$0xff]  }
 0x12f   : > { %v4897_v53 = vld [vmem:[#allocation2 + $0x920] ss:$16 sps:$4 sm:$0xff]  }
 0x131   : > { %2363 = vmatpush1.bf16.msra.mxu0 %v4813_v59  ;;  %2492 = vmatpush1.bf16.msra.mxu1 %v4816_v60  ;;  %v4894_v59 = vld [vmem:[#allocation2 + $0x908] ss:$16 sps:$4 sm:$0xff]   ;;  %v4899_v60 = vld [vmem:[#allocation2 + $0x924] ss:$16 sps:$4 sm:$0xff]  }
 0x132   : > { %2364 = vmatprep.subr.bf16.mxu0 %v4821_v61  ;;  %2493 = vmatprep.subr.bf16.mxu1 %v4824_v63  ;;  %v4902_v61 = vld [vmem:[#allocation2 + $0x92c] ss:$16 sps:$4 sm:$0xff]   ;;  %v2730_v63 = vsel %vm2724_vm2, %v2728_v51, %v2729_v55  ;;  %v4975_v55 = vld [vmem:[#allocation2 + $0xac0] ss:$16 sps:$4 sm:$0xff]  }
 0x133   : > { %v4980_v51 = vld [vmem:[#allocation2 + $0xacc] ss:$16 sps:$4 sm:$0xff]  }
 0x135   : > { %2365 = vmatpush1.bf16.msra.mxu0 %v4819_v0  ;;  %2494 = vmatpush1.bf16.msra.mxu1 %v4822_v1  ;;  %v4900_v0 = vld [vmem:[#allocation2 + $0x928] ss:$16 sps:$4 sm:$0xff]   ;;  %v4905_v1 = vld [vmem:[#allocation2 + $0x944] ss:$16 sps:$4 sm:$0xff]  }
 0x136   : > { %2366 = vmatprep.subr.bf16.mxu0 %v4827_v2  ;;  %2495 = vmatprep.subr.bf16.mxu1 %v4830_v4  ;;  %v4908_v2 = vld [vmem:[#allocation2 + $0x94c] ss:$16 sps:$4 sm:$0xff]   ;;  %v4903_v4 = vld [vmem:[#allocation2 + $0x940] ss:$16 sps:$4 sm:$0xff]  }
 0x139   : > { %2367 = vmatpush1.bf16.msra.mxu0 %v4825_v6  ;;  %2496 = vmatpush1.bf16.msra.mxu1 %v4828_v7  ;;  %v4906_v6 = vld [vmem:[#allocation2 + $0x948] ss:$16 sps:$4 sm:$0xff]   ;;  %v4911_v7 = vld [vmem:[#allocation2 + $0x964] ss:$16 sps:$4 sm:$0xff]  }
 0x13a   : > { %2368 = vmatprep.subr.bf16.mxu0 %v4833_v8  ;;  %2497 = vmatprep.subr.bf16.mxu1 %v4836_v9  ;;  %v4909_v8 = vld [vmem:[#allocation2 + $0x960] ss:$16 sps:$4 sm:$0xff]   ;;  %v4912_v9 = vld [vmem:[#allocation2 + $0x968] ss:$16 sps:$4 sm:$0xff]  }
 0x13d   : > { %2369 = vmatpush1.bf16.msra.mxu0 %v4831_v10  ;;  %2498 = vmatpush1.bf16.msra.mxu1 %v4834_v11  ;;  %v4917_v10 = vld [vmem:[#allocation2 + $0x984] ss:$16 sps:$4 sm:$0xff]   ;;  %v4920_v11 = vld [vmem:[#allocation2 + $0x98c] ss:$16 sps:$4 sm:$0xff]  }
 0x13e   : > { %2370 = vmatprep.subr.bf16.mxu0 %v4839_v12  ;;  %2499 = vmatprep.subr.bf16.mxu1 %v4842_v13  ;;  %v4915_v12 = vld [vmem:[#allocation2 + $0x980] ss:$16 sps:$4 sm:$0xff]   ;;  %v4918_v13 = vld [vmem:[#allocation2 + $0x988] ss:$16 sps:$4 sm:$0xff]  }
 0x141   : > { %2371 = vmatpush1.bf16.msra.mxu0 %v4837_v14  ;;  %2500 = vmatpush1.bf16.msra.mxu1 %v4840_v15  ;;  %v4923_v14 = vld [vmem:[#allocation2 + $0x9a4] ss:$16 sps:$4 sm:$0xff]   ;;  %v4926_v15 = vld [vmem:[#allocation2 + $0x9ac] ss:$16 sps:$4 sm:$0xff]  }
 0x142   : > { %2372 = vmatprep.subr.bf16.mxu0 %v4845_v16  ;;  %2501 = vmatprep.subr.bf16.mxu1 %v4848_v17  ;;  %v4921_v16 = vld [vmem:[#allocation2 + $0x9a0] ss:$16 sps:$4 sm:$0xff]   ;;  %v4924_v17 = vld [vmem:[#allocation2 + $0x9a8] ss:$16 sps:$4 sm:$0xff]  }
 0x145   : > { %2373 = vmatpush1.bf16.msra.mxu0 %v4843_v18  ;;  %2502 = vmatpush1.bf16.msra.mxu1 %v4846_v19  ;;  %v4929_v18 = vld [vmem:[#allocation2 + $0x9c4] ss:$16 sps:$4 sm:$0xff]   ;;  %v4932_v19 = vld [vmem:[#allocation2 + $0x9cc] ss:$16 sps:$4 sm:$0xff]  }
 0x146   : > { %2374 = vmatprep.subr.bf16.mxu0 %v4851_v20  ;;  %2503 = vmatprep.subr.bf16.mxu1 %v4854_v21  ;;  %v4927_v20 = vld [vmem:[#allocation2 + $0x9c0] ss:$16 sps:$4 sm:$0xff]   ;;  %v4930_v21 = vld [vmem:[#allocation2 + $0x9c8] ss:$16 sps:$4 sm:$0xff]  }
 0x149   : > { %2375 = vmatpush1.bf16.msra.mxu0 %v4849_v22  ;;  %2504 = vmatpush1.bf16.msra.mxu1 %v4852_v23  ;;  %v4935_v22 = vld [vmem:[#allocation2 + $0x9e4] ss:$16 sps:$4 sm:$0xff]   ;;  %v4938_v23 = vld [vmem:[#allocation2 + $0x9ec] ss:$16 sps:$4 sm:$0xff]  }
 0x14a   : > { %2376 = vmatprep.subr.bf16.mxu0 %v4857_v24  ;;  %2505 = vmatprep.subr.bf16.mxu1 %v4860_v25  ;;  %v4933_v24 = vld [vmem:[#allocation2 + $0x9e0] ss:$16 sps:$4 sm:$0xff]   ;;  %v4936_v25 = vld [vmem:[#allocation2 + $0x9e8] ss:$16 sps:$4 sm:$0xff]  }
 0x14d   : > { %2377 = vmatpush1.bf16.msra.mxu0 %v4855_v27  ;;  %2506 = vmatpush1.bf16.msra.mxu1 %v4858_v28  ;;  %v4941_v27 = vld [vmem:[#allocation2 + $0xa04] ss:$16 sps:$4 sm:$0xff]   ;;  %v4944_v28 = vld [vmem:[#allocation2 + $0xa0c] ss:$16 sps:$4 sm:$0xff]  }
 0x14e   : > { %2378 = vmatprep.subr.bf16.mxu0 %v4863_v29  ;;  %2507 = vmatprep.subr.bf16.mxu1 %v4866_v30  ;;  %v4939_v29 = vld [vmem:[#allocation2 + $0xa00] ss:$16 sps:$4 sm:$0xff]   ;;  %v4942_v30 = vld [vmem:[#allocation2 + $0xa08] ss:$16 sps:$4 sm:$0xff]  }
 0x151   : > { %2379 = vmatpush1.bf16.msra.mxu0 %v4861_v32  ;;  %2508 = vmatpush1.bf16.msra.mxu1 %v4864_v33  ;;  %v4947_v32 = vld [vmem:[#allocation2 + $0xa24] ss:$16 sps:$4 sm:$0xff]   ;;  %v4950_v33 = vld [vmem:[#allocation2 + $0xa2c] ss:$16 sps:$4 sm:$0xff]  }
 0x152   : > { %2391 = vmatprep.subr.bf16.mxu0 %v4869_v34  ;;  %2520 = vmatprep.subr.bf16.mxu1 %v4872_v35  ;;  %v4945_v34 = vld [vmem:[#allocation2 + $0xa20] ss:$16 sps:$4 sm:$0xff]   ;;  %v4948_v35 = vld [vmem:[#allocation2 + $0xa28] ss:$16 sps:$4 sm:$0xff]  }
 0x154   : > { %2381 = vmatmul.mubr.bf16.vlgmr.msra.gmra.mrb[0].mxu0 %v5347_v26  ;;  %2510 = vmatmul.mubr.bf16.vlgmr.msra.gmra.mrb[0].mxu1 %v5347_v26  ;;  %v4887_v26 = vld [vmem:[#allocation2 + $0x464] ss:$16 sps:$4 sm:$0xff]  }
 0x155   : > { %2392 = vmatpush1.bf16.msra.mxu0 %v4867_v36  ;;  %2521 = vmatpush1.bf16.msra.mxu1 %v4870_v37  ;;  %v4953_v36 = vld [vmem:[#allocation2 + $0xa44] ss:$16 sps:$4 sm:$0xff]   ;;  %v4956_v37 = vld [vmem:[#allocation2 + $0xa4c] ss:$16 sps:$4 sm:$0xff]  }
 0x156   : > { %2393 = vmatprep.subr.bf16.mxu0 %v4875_v52  ;;  %2522 = vmatprep.subr.bf16.mxu1 %v4878_v38  ;;  %v4951_v52 = vld [vmem:[#allocation2 + $0xa40] ss:$16 sps:$4 sm:$0xff]   ;;  %v4954_v38 = vld [vmem:[#allocation2 + $0xa48] ss:$16 sps:$4 sm:$0xff]  }
 0x157   : > { %2423 = vmatprep.mubr.bf16.mxu0 %v5192_v3  ;;  %2552 = vmatprep.mubr.bf16.mxu1 %v5192_v3 }
 0x159   : > { %2394 = vmatpush1.bf16.msra.mxu0 %v4873_v62  ;;  %2523 = vmatpush1.bf16.msra.mxu1 %v4876_v39  ;;  %v4959_v62 = vld [vmem:[#allocation2 + $0xa64] ss:$16 sps:$4 sm:$0xff]   ;;  %v4962_v39 = vld [vmem:[#allocation2 + $0xa6c] ss:$16 sps:$4 sm:$0xff]  }
 0x15a   : > { %2395 = vmatprep.subr.bf16.mxu0 %v4881_v40  ;;  %2524 = vmatprep.subr.bf16.mxu1 %v4884_v41  ;;  %v4957_v40 = vld [vmem:[#allocation2 + $0xa60] ss:$16 sps:$4 sm:$0xff]   ;;  %v4960_v41 = vld [vmem:[#allocation2 + $0xa68] ss:$16 sps:$4 sm:$0xff]  }
 0x15d   : > { %2396 = vmatpush1.bf16.msra.mxu0 %v4879_v42  ;;  %2525 = vmatpush1.bf16.msra.mxu1 %v4882_v43  ;;  %v4965_v42 = vld [vmem:[#allocation2 + $0xa84] ss:$16 sps:$4 sm:$0xff]   ;;  %v4968_v43 = vld [vmem:[#allocation2 + $0xa8c] ss:$16 sps:$4 sm:$0xff]  }
 0x15e   : > { %2397 = vmatprep.subr.bf16.mxu0 %v4887_v26  ;;  %2526 = vmatprep.subr.bf16.mxu1 %v4890_v54  ;;  %v4963_v26 = vld [vmem:[#allocation2 + $0xa80] ss:$16 sps:$4 sm:$0xff]   ;;  %v4966_v54 = vld [vmem:[#allocation2 + $0xa88] ss:$16 sps:$4 sm:$0xff]  }
 0x161   : > { %2398 = vmatpush1.bf16.msra.mxu0 %v4885_v47  ;;  %2527 = vmatpush1.bf16.msra.mxu1 %v4888_v48  ;;  %v4974_v47 = vld [vmem:[#allocation2 + $0xaac] ss:$16 sps:$4 sm:$0xff]   ;;  %v4969_v48 = vld [vmem:[#allocation2 + $0xaa0] ss:$16 sps:$4 sm:$0xff]  }
 0x162   : > { %3467 = vmatprep.subr.bf16.mxu0 %v4893_v49  ;;  %3596 = vmatprep.subr.bf16.mxu1 %v4896_v50  ;;  %v4972_v49 = vld [vmem:[#allocation2 + $0xaa8] ss:$16 sps:$4 sm:$0xff]   ;;  %v4977_v50 = vld [vmem:[#allocation2 + $0xac4] ss:$16 sps:$4 sm:$0xff]  }
 0x164   : > { %4188 = vmatmul.mubr.msk.bf16.vlgmr.msra.gmra.mrb[0].mxu0 %vm1317_vm1, %v5359_v56  ;;  %4189 = vmatmul.mubr.msk.bf16.vlgmr.msra.gmra.mrb[0].mxu1 %vm1317_vm1, %v5359_v56  ;;  %v4914_v56 = vld [vmem:[#allocation2 + $0x96c] ss:$16 sps:$4 sm:$0xff]  }
 0x165   : > { %3468 = vmatpush1.bf16.msra.mxu0 %v4891_v58  ;;  %3597 = vmatpush1.bf16.msra.mxu1 %v4894_v59  ;;  %v4978_v58 = vld [vmem:[#allocation2 + $0xac8] ss:$16 sps:$4 sm:$0xff]   ;;  %v4190_v59 = vcombine.low %v5380_v44, %v5383_v45  ;;  %v4990_v44 = vld [vmem:[#allocation2 + $0xb04] ss:$16 sps:$4 sm:$0xff]   ;;  %v4993_v45 = vld [vmem:[#allocation2 + $0xb0c] ss:$16 sps:$4 sm:$0xff]  }
 0x166   : > { %3469 = vmatprep.subr.bf16.mxu0 %v4899_v60  ;;  %3598 = vmatprep.subr.bf16.mxu1 %v4902_v61  ;;  %v5396_v60 = vld [vmem:[%s5303_s20 + $0x8] sm:$0xee]  ;;  %v4983_v61 = vld [vmem:[#allocation2 + $0xae4] ss:$16 sps:$4 sm:$0xff]  }
 0x167   : > { %3499 = vmatprep.mubr.bf16.mxu0 %v2730_v63  ;;  %3628 = vmatprep.mubr.bf16.mxu1 %v2730_v63  ;;  %v4986_v63 = vld [vmem:[#allocation2 + $0xaec] ss:$16 sps:$4 sm:$0xff]  }
 0x169   : > { %3470 = vmatpush1.bf16.msra.mxu0 %v4897_v53  ;;  %3599 = vmatpush1.bf16.msra.mxu1 %v4900_v0  ;;  %v5399_v53 = vld [vmem:[%s5303_s20 + $0x1c] sm:$0xff] }
 0x16a   : > { %3471 = vmatprep.subr.bf16.mxu0 %v4905_v1  ;;  %3600 = vmatprep.subr.bf16.mxu1 %v4908_v2  ;;  %v4193_v0 = vcombine.high %v5396_v60, %v5399_v53  ;;  %v4981_v1 = vld [vmem:[#allocation2 + $0xae0] ss:$16 sps:$4 sm:$0xff]   ;;  %v4984_v2 = vld [vmem:[#allocation2 + $0xae8] ss:$16 sps:$4 sm:$0xff]  }
 0x16d   : > { %3472 = vmatpush1.bf16.msra.mxu0 %v4903_v4  ;;  %3601 = vmatpush1.bf16.msra.mxu1 %v4906_v6  ;;  %v2725_v4 = vrot.slane %v4190_v59, 1  ;;  %v2726_v6 = vrot.slane %v5318_v5, 1  ;;  %v5063_v59 = vld [vmem:[#allocation2 + $0xc84] ss:$16 sps:$4 sm:$0xff]  }
 0x16e   : > { %3473 = vmatprep.subr.bf16.mxu0 %v4911_v7  ;;  %3602 = vmatprep.subr.bf16.mxu1 %v4914_v56  ;;  %v2734_v7 = vrot.slane %v4193_v0, 1  ;;  %v2735_v56 = vrot.slane %v5339_v57, 1  ;;  %v5003_v57 = vld [vmem:[#allocation2 + $0xb44] ss:$16 sps:$4 sm:$0xff]   ;;  %v5064_v0 = vld [vmem:[#allocation2 + $0xc88] ss:$16 sps:$4 sm:$0xff]  }
 0x170   : > { %v2736_v5 = vsel %vm2724_vm2, %v2734_v7, %v2735_v56  ;;  %v5073_v7 = vld [vmem:[#allocation2 + $0xcc0] ss:$16 sps:$4 sm:$0xff]   ;;  %v5076_v56 = vld [vmem:[#allocation2 + $0xcc8] ss:$16 sps:$4 sm:$0xff]  }
 0x171   : > { %3474 = vmatpush1.bf16.msra.mxu0 %v4909_v8  ;;  %3603 = vmatpush1.bf16.msra.mxu1 %v4912_v9  ;;  %v4988_v8 = vld [vmem:[#allocation2 + $0xb00] ss:$16 sps:$4 sm:$0xff]   ;;  %v4991_v9 = vld [vmem:[#allocation2 + $0xb08] ss:$16 sps:$4 sm:$0xff]  }
 0x172   : > { %3475 = vmatprep.subr.bf16.mxu0 %v4917_v10  ;;  %3604 = vmatprep.subr.bf16.mxu1 %v4920_v11  ;;  %v2727_v10 = vsel %vm2724_vm2, %v2725_v4, %v2726_v6  ;;  %v4997_v11 = vld [vmem:[#allocation2 + $0xb24] ss:$16 sps:$4 sm:$0xff]   ;;  %v5067_v4 = vld [vmem:[#allocation2 + $0xca0] ss:$16 sps:$4 sm:$0xff]   ;;  %v5070_v6 = vld [vmem:[#allocation2 + $0xca8] ss:$16 sps:$4 sm:$0xff]  }
 0x175   : > { %3476 = vmatpush1.bf16.msra.mxu0 %v4915_v12  ;;  %3605 = vmatpush1.bf16.msra.mxu1 %v4918_v13  ;;  %v5000_v12 = vld [vmem:[#allocation2 + $0xb2c] ss:$16 sps:$4 sm:$0xff]   ;;  %v4995_v13 = vld [vmem:[#allocation2 + $0xb20] ss:$16 sps:$4 sm:$0xff]  }
 0x176   : > { %3477 = vmatprep.subr.bf16.mxu0 %v4923_v14  ;;  %3606 = vmatprep.subr.bf16.mxu1 %v4926_v15  ;;  %v4998_v14 = vld [vmem:[#allocation2 + $0xb28] ss:$16 sps:$4 sm:$0xff]   ;;  %v5006_v15 = vld [vmem:[#allocation2 + $0xb4c] ss:$16 sps:$4 sm:$0xff]  }
 0x179   : > { %3478 = vmatpush1.bf16.msra.mxu0 %v4921_v16  ;;  %3607 = vmatpush1.bf16.msra.mxu1 %v4924_v17  ;;  %v5001_v16 = vld [vmem:[#allocation2 + $0xb40] ss:$16 sps:$4 sm:$0xff]   ;;  %v5004_v17 = vld [vmem:[#allocation2 + $0xb48] ss:$16 sps:$4 sm:$0xff]  }
 0x17a   : > { %3479 = vmatprep.subr.bf16.mxu0 %v4929_v18  ;;  %3608 = vmatprep.subr.bf16.mxu1 %v4932_v19  ;;  %v5009_v18 = vld [vmem:[#allocation2 + $0xb64] ss:$16 sps:$4 sm:$0xff]   ;;  %v5012_v19 = vld [vmem:[#allocation2 + $0xb6c] ss:$16 sps:$4 sm:$0xff]  }
 0x17d   : > { %3480 = vmatpush1.bf16.msra.mxu0 %v4927_v20  ;;  %3609 = vmatpush1.bf16.msra.mxu1 %v4930_v21  ;;  %v5007_v20 = vld [vmem:[#allocation2 + $0xb60] ss:$16 sps:$4 sm:$0xff]   ;;  %v5010_v21 = vld [vmem:[#allocation2 + $0xb68] ss:$16 sps:$4 sm:$0xff]  }
 0x17e   : > { %3481 = vmatprep.subr.bf16.mxu0 %v4935_v22  ;;  %3610 = vmatprep.subr.bf16.mxu1 %v4938_v23  ;;  %v5015_v22 = vld [vmem:[#allocation2 + $0xb84] ss:$16 sps:$4 sm:$0xff]   ;;  %v5018_v23 = vld [vmem:[#allocation2 + $0xb8c] ss:$16 sps:$4 sm:$0xff]  }
 0x181   : > { %3482 = vmatpush1.bf16.msra.mxu0 %v4933_v24  ;;  %3611 = vmatpush1.bf16.msra.mxu1 %v4936_v25  ;;  %v5013_v24 = vld [vmem:[#allocation2 + $0xb80] ss:$16 sps:$4 sm:$0xff]   ;;  %v5016_v25 = vld [vmem:[#allocation2 + $0xb88] ss:$16 sps:$4 sm:$0xff]  }
 0x182   : > { %3483 = vmatprep.subr.bf16.mxu0 %v4941_v27  ;;  %3612 = vmatprep.subr.bf16.mxu1 %v4944_v28  ;;  %v5021_v27 = vld [vmem:[#allocation2 + $0xba4] ss:$16 sps:$4 sm:$0xff]   ;;  %v5024_v28 = vld [vmem:[#allocation2 + $0xbac] ss:$16 sps:$4 sm:$0xff]  }
 0x185   : > { %3484 = vmatpush1.bf16.msra.mxu0 %v4939_v29  ;;  %3613 = vmatpush1.bf16.msra.mxu1 %v4942_v30  ;;  %v5019_v29 = vld [vmem:[#allocation2 + $0xba0] ss:$16 sps:$4 sm:$0xff]   ;;  %v5022_v30 = vld [vmem:[#allocation2 + $0xba8] ss:$16 sps:$4 sm:$0xff]  }
 0x186   : > { %3485 = vmatprep.subr.bf16.mxu0 %v4947_v32  ;;  %3614 = vmatprep.subr.bf16.mxu1 %v4950_v33  ;;  %v5027_v32 = vld [vmem:[#allocation2 + $0xbc4] ss:$16 sps:$4 sm:$0xff]   ;;  %v5030_v33 = vld [vmem:[#allocation2 + $0xbcc] ss:$16 sps:$4 sm:$0xff]  }
 0x189   : > { %3486 = vmatpush1.bf16.msra.mxu0 %v4945_v34  ;;  %3615 = vmatpush1.bf16.msra.mxu1 %v4948_v35  ;;  %v5025_v34 = vld [vmem:[#allocation2 + $0xbc0] ss:$16 sps:$4 sm:$0xff]   ;;  %v5028_v35 = vld [vmem:[#allocation2 + $0xbc8] ss:$16 sps:$4 sm:$0xff]  }
 0x18a   : > { %3487 = vmatprep.subr.bf16.mxu0 %v4953_v36  ;;  %3616 = vmatprep.subr.bf16.mxu1 %v4956_v37  ;;  %v5033_v36 = vld [vmem:[#allocation2 + $0xbe4] ss:$16 sps:$4 sm:$0xff]   ;;  %v5036_v37 = vld [vmem:[#allocation2 + $0xbec] ss:$16 sps:$4 sm:$0xff]  }
 0x18d   : > { %3488 = vmatpush1.bf16.msra.mxu0 %v4951_v52  ;;  %3617 = vmatpush1.bf16.msra.mxu1 %v4954_v38  ;;  %v5031_v52 = vld [vmem:[#allocation2 + $0xbe0] ss:$16 sps:$4 sm:$0xff]   ;;  %v5034_v38 = vld [vmem:[#allocation2 + $0xbe8] ss:$16 sps:$4 sm:$0xff]  }
 0x18e   : > { %3489 = vmatprep.subr.bf16.mxu0 %v4959_v62  ;;  %3618 = vmatprep.subr.bf16.mxu1 %v4962_v39  ;;  %v5039_v62 = vld [vmem:[#allocation2 + $0xc04] ss:$16 sps:$4 sm:$0xff]   ;;  %v5042_v39 = vld [vmem:[#allocation2 + $0xc0c] ss:$16 sps:$4 sm:$0xff]  }
 0x191   : > { %3490 = vmatpush1.bf16.msra.mxu0 %v4957_v40  ;;  %3619 = vmatpush1.bf16.msra.mxu1 %v4960_v41  ;;  %v5037_v40 = vld [vmem:[#allocation2 + $0xc00] ss:$16 sps:$4 sm:$0xff]   ;;  %v5040_v41 = vld [vmem:[#allocation2 + $0xc08] ss:$16 sps:$4 sm:$0xff]  }
 0x192   : > { %3491 = vmatprep.subr.bf16.mxu0 %v4965_v42  ;;  %3620 = vmatprep.subr.bf16.mxu1 %v4968_v43  ;;  %v5045_v42 = vld [vmem:[#allocation2 + $0xc24] ss:$16 sps:$4 sm:$0xff]   ;;  %v5048_v43 = vld [vmem:[#allocation2 + $0xc2c] ss:$16 sps:$4 sm:$0xff]  }
 0x195   : > { %3492 = vmatpush1.bf16.msra.mxu0 %v4963_v26  ;;  %3621 = vmatpush1.bf16.msra.mxu1 %v4966_v54  ;;  %v5043_v26 = vld [vmem:[#allocation2 + $0xc20] ss:$16 sps:$4 sm:$0xff]   ;;  %v5046_v54 = vld [vmem:[#allocation2 + $0xc28] ss:$16 sps:$4 sm:$0xff]  }
 0x196   : > { %3493 = vmatprep.subr.bf16.mxu0 %v4971_v46  ;;  %3622 = vmatprep.subr.bf16.mxu1 %v4974_v47  ;;  %v5051_v46 = vld [vmem:[#allocation2 + $0xc44] ss:$16 sps:$4 sm:$0xff]   ;;  %v5054_v47 = vld [vmem:[#allocation2 + $0xc4c] ss:$16 sps:$4 sm:$0xff]  }
 0x199   : > { %3494 = vmatpush1.bf16.msra.mxu0 %v4969_v48  ;;  %3623 = vmatpush1.bf16.msra.mxu1 %v4972_v49  ;;  %v5049_v48 = vld [vmem:[#allocation2 + $0xc40] ss:$16 sps:$4 sm:$0xff]   ;;  %v5052_v49 = vld [vmem:[#allocation2 + $0xc48] ss:$16 sps:$4 sm:$0xff]  }
 0x19a   : > { %3495 = vmatprep.subr.bf16.mxu0 %v4977_v50  ;;  %3624 = vmatprep.subr.bf16.mxu1 %v4980_v51  ;;  %v5057_v50 = vld [vmem:[#allocation2 + $0xc64] ss:$16 sps:$4 sm:$0xff]   ;;  %v5060_v51 = vld [vmem:[#allocation2 + $0xc6c] ss:$16 sps:$4 sm:$0xff]  }
 0x19d   : > { %3496 = vmatpush1.bf16.msra.mxu0 %v4975_v55  ;;  %3625 = vmatpush1.bf16.msra.mxu1 %v4978_v58  ;;  %v5055_v55 = vld [vmem:[#allocation2 + $0xc60] ss:$16 sps:$4 sm:$0xff]   ;;  %v5058_v58 = vld [vmem:[#allocation2 + $0xc68] ss:$16 sps:$4 sm:$0xff]  }
 0x19e   : > { %3497 = vmatprep.subr.bf16.mxu0 %v4983_v61  ;;  %3626 = vmatprep.subr.bf16.mxu1 %v4986_v63  ;;  %v5066_v61 = vld [vmem:[#allocation2 + $0xc8c] ss:$16 sps:$4 sm:$0xff]   ;;  %v5061_v63 = vld [vmem:[#allocation2 + $0xc80] ss:$16 sps:$4 sm:$0xff]  }
 0x1a1   : > { %3498 = vmatpush1.bf16.msra.mxu0 %v4981_v1  ;;  %3627 = vmatpush1.bf16.msra.mxu1 %v4984_v2  ;;  %v5069_v1 = vld [vmem:[#allocation2 + $0xca4] ss:$16 sps:$4 sm:$0xff]   ;;  %v5072_v2 = vld [vmem:[#allocation2 + $0xcac] ss:$16 sps:$4 sm:$0xff]  }
 0x1a2   : > { %3510 = vmatprep.subr.bf16.mxu0 %v4990_v44  ;;  %3639 = vmatprep.subr.bf16.mxu1 %v4993_v45  ;;  %v5075_v44 = vld [vmem:[#allocation2 + $0xcc4] ss:$16 sps:$4 sm:$0xff]   ;;  %v5078_v45 = vld [vmem:[#allocation2 + $0xccc] ss:$16 sps:$4 sm:$0xff]  }
 0x1a4   : > { %3500 = vmatmul.mubr.bf16.vlgmr.msra.gmra.mrb[0].mxu0 %v2727_v10  ;;  %3629 = vmatmul.mubr.bf16.vlgmr.msra.gmra.mrb[0].mxu1 %v2727_v10  ;;  %v5084_v10 = vld [vmem:[#allocation2 + $0xcec] ss:$16 sps:$4 sm:$0xff]  }
 0x1a5   : > { %3511 = vmatpush1.bf16.msra.mxu0 %v4988_v8  ;;  %3640 = vmatpush1.bf16.msra.mxu1 %v4991_v9  ;;  %v4192_v8 = vcombine.low %v5396_v60, %v5399_v53  ;;  %v5081_v9 = vld [vmem:[#allocation2 + $0xce4] ss:$16 sps:$4 sm:$0xff]  }
 0x1a6   : > { %3512 = vmatprep.subr.bf16.mxu0 %v4997_v11  ;;  %3641 = vmatprep.subr.bf16.mxu1 %v5000_v12  ;;  %v5079_v11 = vld [vmem:[#allocation2 + $0xce0] ss:$16 sps:$4 sm:$0xff]   ;;  %v5082_v12 = vld [vmem:[#allocation2 + $0xce8] ss:$16 sps:$4 sm:$0xff]   ;;  %v5095_v53 = vld [vmem:[#allocation2 + $0xd24] ss:$16 sps:$4 sm:$0xff]  }
 0x1a7   : > { %3542 = vmatprep.mubr.bf16.mxu0 %v2736_v5  ;;  %3671 = vmatprep.mubr.bf16.mxu1 %v2736_v5  ;;  %v2731_v5 = vrot.slane %v4192_v8, 1 }
 0x1a9   : > { %3513 = vmatpush1.bf16.msra.mxu0 %v4995_v13  ;;  %3642 = vmatpush1.bf16.msra.mxu1 %v4998_v14  ;;  %v2732_v13 = vrot.slane %v5351_v31, 1  ;;  %v5088_v14 = vld [vmem:[#allocation2 + $0xd04] ss:$16 sps:$4 sm:$0xff]   ;;  %v5093_v31 = vld [vmem:[#allocation2 + $0xd20] ss:$16 sps:$4 sm:$0xff]  }
 0x1aa   : > { %3514 = vmatprep.subr.bf16.mxu0 %v5003_v57  ;;  %3643 = vmatprep.subr.bf16.mxu1 %v5006_v15  ;;  %v5091_v57 = vld [vmem:[#allocation2 + $0xd0c] ss:$16 sps:$4 sm:$0xff]   ;;  %v5086_v15 = vld [vmem:[#allocation2 + $0xd00] ss:$16 sps:$4 sm:$0xff]  }
 0x1ab   : > { %v2733_v60 = vsel %vm2724_vm2, %v2731_v5, %v2732_v13 }
 0x1ad   : > { %3515 = vmatpush1.bf16.msra.mxu0 %v5001_v16  ;;  %3644 = vmatpush1.bf16.msra.mxu1 %v5004_v17  ;;  %v5089_v16 = vld [vmem:[#allocation2 + $0xd08] ss:$16 sps:$4 sm:$0xff]   ;;  %v5098_v17 = vld [vmem:[#allocation2 + $0xd2c] ss:$16 sps:$4 sm:$0xff]  }
 0x1ae   : > { %3516 = vmatprep.subr.bf16.mxu0 %v5009_v18  ;;  %3645 = vmatprep.subr.bf16.mxu1 %v5012_v19  ;;  %v5096_v18 = vld [vmem:[#allocation2 + $0xd28] ss:$16 sps:$4 sm:$0xff]   ;;  %v5101_v19 = vld [vmem:[#allocation2 + $0xd44] ss:$16 sps:$4 sm:$0xff]  }
 0x1b1   : > { %3517 = vmatpush1.bf16.msra.mxu0 %v5007_v20  ;;  %3646 = vmatpush1.bf16.msra.mxu1 %v5010_v21  ;;  %v5104_v20 = vld [vmem:[#allocation2 + $0xd4c] ss:$16 sps:$4 sm:$0xff]   ;;  %v2565_v21 = vld [vmem:[%s5303_s20 + $0x10] sm:$0xe] }
 0x1b2   : > { %3518 = vmatprep.subr.bf16.mxu0 %v5015_v22  ;;  %3647 = vmatprep.subr.bf16.mxu1 %v5018_v23  ;;  %v5099_v22 = vld [vmem:[#allocation2 + $0xd40] ss:$16 sps:$4 sm:$0xff]   ;;  %v5102_v23 = vld [vmem:[#allocation2 + $0xd48] ss:$16 sps:$4 sm:$0xff]  }
 0x1b5   : > { %3519 = vmatpush1.bf16.msra.mxu0 %v5013_v24  ;;  %3648 = vmatpush1.bf16.msra.mxu1 %v5016_v25  ;;  %v5114_v24 = vld [vmem:[%s5303_s20 + $0x24] sm:$0xf] }
 0x1b6   : > { %3520 = vmatprep.subr.bf16.mxu0 %v5021_v27  ;;  %3649 = vmatprep.subr.bf16.mxu1 %v5024_v28  ;;  %v4194_v25 = vcombine.low %v2565_v21, %v5114_v24  ;;  %v5107_v27 = vld [vmem:[#allocation2 + $0xd64] ss:$16 sps:$4 sm:$0xff]   ;;  %v5110_v28 = vld [vmem:[#allocation2 + $0xd6c] ss:$16 sps:$4 sm:$0xff]  }
 0x1b9   : > { %3521 = vmatpush1.bf16.msra.mxu0 %v5019_v29  ;;  %3650 = vmatpush1.bf16.msra.mxu1 %v5022_v30  ;;  %v5105_v29 = vld [vmem:[#allocation2 + $0xd60] ss:$16 sps:$4 sm:$0xff]   ;;  %v5108_v30 = vld [vmem:[#allocation2 + $0xd68] ss:$16 sps:$4 sm:$0xff]  }
 0x1ba   : > { %3522 = vmatprep.subr.bf16.mxu0 %v5027_v32  ;;  %3651 = vmatprep.subr.bf16.mxu1 %v5030_v33  ;;  %v2737_v32 = vrot.slane %v4194_v25, 1  ;;  %v5115_v33 = vld [vmem:[%s5303_s20 + $0x38] ss:$0 sps:$4 sm:$0x11]  }
 0x1bd   : > { %3523 = vmatpush1.bf16.msra.mxu0 %v5025_v34  ;;  %3652 = vmatpush1.bf16.msra.mxu1 %v5028_v35  ;;  %v2738_v34 = vrot.slane %v5115_v33, 1  ;;  %v3735_v35 = vlaneseq }
 0x1be   : > { %3524 = vmatprep.subr.bf16.mxu0 %v5033_v36  ;;  %3653 = vmatprep.subr.bf16.mxu1 %v5036_v37 }
 0x1bf   : > { %v3736_v36 = vshrl.u32 %v3735_v35, 7 }
 0x1c1   : > { %3525 = vmatpush1.bf16.msra.mxu0 %v5031_v52  ;;  %3654 = vmatpush1.bf16.msra.mxu1 %v5034_v38  ;;  %v3737_v37 = vsub.s32 0, %v3736_v36  ;;  %v3745_v52 = vsub.s32 2, %v3736_v36  ;;  %v3733_v38 = vld [vmem:[#allocation4] sm:$0xf] }
 0x1c2   : > { %3526 = vmatprep.subr.bf16.mxu0 %v5039_v62  ;;  %3655 = vmatprep.subr.bf16.mxu1 %v5042_v39  ;;  %v3741_v62 = vsub.s32 1, %v3736_v36  ;;  %v3749_v39 = vsub.s32 3, %v3736_v36 }
 0x1c5   : > { %3527 = vmatpush1.bf16.msra.mxu0 %v5037_v40  ;;  %3656 = vmatpush1.bf16.msra.mxu1 %v5040_v41  ;;  %v3738_v40 = vrot.slane %v3733_v38, %v3737_v37  ;;  %v3746_v41 = vrot.slane %v3733_v38, %v3745_v52 }
 0x1c6   : > { %3528 = vmatprep.subr.bf16.mxu0 %v5045_v42  ;;  %3657 = vmatprep.subr.bf16.mxu1 %v5048_v43  ;;  %v3742_v42 = vrot.slane %v3733_v38, %v3741_v62  ;;  %v3750_v43 = vrot.slane %v3733_v38, %v3749_v39 }
 0x1c9   : > { %3529 = vmatpush1.bf16.msra.mxu0 %v5043_v26  ;;  %3658 = vmatpush1.bf16.msra.mxu1 %v5046_v54 }
 0x1ca   : > { %3530 = vmatprep.subr.bf16.mxu0 %v5051_v46  ;;  %3659 = vmatprep.subr.bf16.mxu1 %v5054_v47 }
 0x1cd   : > { %3531 = vmatpush1.bf16.msra.mxu0 %v5049_v48  ;;  %3660 = vmatpush1.bf16.msra.mxu1 %v5052_v49 }
 0x1ce   : > { %3532 = vmatprep.subr.bf16.mxu0 %v5057_v50  ;;  %3661 = vmatprep.subr.bf16.mxu1 %v5060_v51 }
 0x1d1   : > { %3533 = vmatpush1.bf16.msra.mxu0 %v5055_v55  ;;  %3662 = vmatpush1.bf16.msra.mxu1 %v5058_v58 }
 0x1d2   : > { %3534 = vmatprep.subr.bf16.mxu0 %v5063_v59  ;;  %3663 = vmatprep.subr.bf16.mxu1 %v5066_v61 }
 0x1d5   : > { %3535 = vmatpush1.bf16.msra.mxu0 %v5061_v63  ;;  %3664 = vmatpush1.bf16.msra.mxu1 %v5064_v0 }
 0x1d6   : > { %3536 = vmatprep.subr.bf16.mxu0 %v5069_v1  ;;  %3665 = vmatprep.subr.bf16.mxu1 %v5072_v2 }
 0x1d9   : > { %3537 = vmatpush1.bf16.msra.mxu0 %v5067_v4  ;;  %3666 = vmatpush1.bf16.msra.mxu1 %v5070_v6 }
 0x1da   : > { %3538 = vmatprep.subr.bf16.mxu0 %v5075_v44  ;;  %3667 = vmatprep.subr.bf16.mxu1 %v5078_v45 }
 0x1dd   : > { %3539 = vmatpush1.bf16.msra.mxu0 %v5073_v7  ;;  %3668 = vmatpush1.bf16.msra.mxu1 %v5076_v56 }
 0x1de   : > { %3540 = vmatprep.subr.bf16.mxu0 %v5081_v9  ;;  %3669 = vmatprep.subr.bf16.mxu1 %v5084_v10 }
 0x1e1   : > { %3541 = vmatpush1.bf16.msra.mxu0 %v5079_v11  ;;  %3670 = vmatpush1.bf16.msra.mxu1 %v5082_v12 }
 0x1e2   : > { %3553 = vmatprep.subr.bf16.mxu0 %v5088_v14  ;;  %3682 = vmatprep.subr.bf16.mxu1 %v5091_v57 }
 0x1e4   : > { %3543 = vmatmul.mubr.bf16.vlgmr.msra.gmra.mrb[0].mxu0 %v2733_v60  ;;  %3672 = vmatmul.mubr.bf16.vlgmr.msra.gmra.mrb[0].mxu1 %v2733_v60 }
 0x1e5   : > { %3554 = vmatpush1.bf16.msra.mxu0 %v5086_v15  ;;  %3683 = vmatpush1.bf16.msra.mxu1 %v5089_v16 }
 0x1e6   : > { %3555 = vmatprep.subr.bf16.mxu0 %v5095_v53  ;;  %3684 = vmatprep.subr.bf16.mxu1 %v5098_v17 }
 0x1e7   : > { %3585 = vmatprep.mubr.bf16.mxu0 %v5192_v3  ;;  %3714 = vmatprep.mubr.bf16.mxu1 %v5192_v3  ;;  %v2739_v3 = vsel %vm2724_vm2, %v2737_v32, %v2738_v34 }
 0x1e9   : > { %3556 = vmatpush1.bf16.msra.mxu0 %v5093_v31  ;;  %3685 = vmatpush1.bf16.msra.mxu1 %v5096_v18 }
 0x1ea   : > { %3557 = vmatprep.subr.bf16.mxu0 %v5101_v19  ;;  %3686 = vmatprep.subr.bf16.mxu1 %v5104_v20 }
 0x1ed   : > { %3558 = vmatpush1.bf16.msra.mxu0 %v5099_v22  ;;  %3687 = vmatpush1.bf16.msra.mxu1 %v5102_v23 }
 0x1ee   : > { %3559 = vmatprep.subr.bf16.mxu0 %v5107_v27  ;;  %3688 = vmatprep.subr.bf16.mxu1 %v5110_v28 }
 0x1f1   : > { %3560 = vmatpush1.bf16.msra.mxu0 %v5105_v29  ;;  %3689 = vmatpush1.bf16.msra.mxu1 %v5108_v30 }
 0x1f4   : > { %4339 = vmatmul.mubr.msk.bf16.vlgmr.msra.gmra.mrb[0].mxu0 %vm1317_vm1, %v2739_v3  ;;  %4340 = vmatmul.mubr.msk.bf16.vlgmr.msra.gmra.mrb[0].mxu1 %vm1317_vm1, %v2739_v3 }
 0x2c7   : > { %v3587_v26 = vpop.f32.mrb[0].mxu0  ;;  %v3716_v54 = vpop.f32.mrb[0].mxu1 }
 0x2c8   : > { %v3755_v46 = vadd.f32 %v3738_v40, %v3587_v26  ;;  %v3757_v47 = vadd.f32 %v3746_v41, %v3716_v54  ;;  %v3589_v48 = vpop.f32.mrb[1].mxu0  ;;  %v3718_v49 = vpop.f32.mrb[1].mxu1 }
 0x2c9   : > { %v3756_v50 = vadd.f32 %v3742_v42, %v3589_v48  ;;  %v3758_v51 = vadd.f32 %v3750_v43, %v3718_v49  ;;  %v3591_v55 = vpop.f32.mrb[2].mxu0  ;;  %v3720_v58 = vpop.f32.mrb[2].mxu1 }
 0x2ca   : > { %v3763_v59 = vmax.f32 %v3755_v46, 0.0  ;;  %v3765_v61 = vmax.f32 %v3757_v47, 0.0  ;;  %v3759_v63 = vadd.f32 %v3738_v40, %v3591_v55  ;;  %v3761_v0 = vadd.f32 %v3746_v41, %v3720_v58  ;;  %v3593_v1 = vpop.f32.mrb[3].mxu0  ;;  %v3722_v2 = vpop.f32.mrb[3].mxu1 }
 0x2cb   : > { %v3764_v4 = vmax.f32 %v3756_v50, 0.0  ;;  %v3766_v6 = vmax.f32 %v3758_v51, 0.0  ;;  %v3760_v44 = vadd.f32 %v3742_v42, %v3593_v1  ;;  %v3762_v45 = vadd.f32 %v3750_v43, %v3722_v2 }
 0x2cc   : > { %v3767_v7 = vmax.f32 %v3759_v63, 0.0  ;;  %v3769_v56 = vmax.f32 %v3761_v0, 0.0 }
 0x2cd   : > { %v4348_v8 = vpack.c.bf16 %v3764_v4, %v3763_v59  ;;  %v4349_v9 = vpack.c.bf16 %v3766_v6, %v3765_v61  ;;  %v3768_v10 = vmax.f32 %v3760_v44, 0.0  ;;  %v3770_v11 = vmax.f32 %v3762_v45, 0.0 }
 0x2cf   : > { %3795 = vst [vmem:[%s198_s24] sm:$0xff] %v4348_v8  ;;  %3796 = vst [vmem:[%s198_s24 + $0x8] sm:$0xff] %v4349_v9  ;;  %v4350_v12 = vpack.c.bf16 %v3768_v10, %v3767_v7  ;;  %v4351_v5 = vpack.c.bf16 %v3770_v11, %v3769_v56 }
 0x2d1   : > { %3797 = vst [vmem:[%s198_s24 + $0x10] sm:$0xff] %v4350_v12  ;;  %3798 = vst [vmem:[%s198_s24 + $0x18] sm:$0xff] %v4351_v5 }
 0x2d2 PF: > { %s15_s12 = sadd.s32 1, %s5186_s12  }
 0x2d3   : > { %p12_p9 = scmp.ge.s32.totalorder %s15_s12, 4  }
 0x2d5   :  { %14 = sbr.rel (!%p12_p9) target bundleno = 2 (0x2), region = 73 }
 0x2dc   :  { %3820 = vsyncpa [#allocation3], 1 }
 0x2dd   :  { %3822 = vsyncpa [#allocation3 + $0x1], 1 }
 0x2de   :  { %3823 = vsyncpa [#allocation5], 1 }

// kernel: classify_net_forward.4
= control target key start
LH: loop header
LB: loop body
LE: loop exit
PB: predicated region body
PF: predicated region fallthrough
CT: control target
= control target key end

     0   :  { %s5356_s12 = smov 0   ;;  %s6796_s0 = inlined_call_operand.vmem [shape: bf16[2,18,576], index: 0, kind: input, shape index: {}]   ;;  %s6797_s1 = inlined_call_operand.vmem [shape: bf16[3,576,512], index: 1, kind: input, shape index: {}]   ;;  %s6798_s2 = inlined_call_operand.vmem [shape: f32[1,512], index: 2, kind: input, shape index: {}]   ;;  %s6799_s3 = inlined_call_operand.vmem [shape: bf16[2,16,512], index: 3, kind: output, shape index: {}]  }
   0x1 LB: > { %s3826_s13 = sadd.s32 4294967295, %s5333_s12   ;;  %p3830_p0 = scmp.ge.s32.totalorder %s5333_s12, 1  ;;  %s5333_s12 = sphi %s5356_s12, %s13_s12  }
   0x2   : > { %p137_p1 = scmp.lt.s32.totalorder %s5333_s12, 3 }
   0x4   : > { %p138_p2 = pnand %p3830_p0, %p137_p1 }
   0x5   : > { %v4660_v0 = vld [vmem:[%s6797_s1 + $0x484] ss:$16 sps:$4 sm:$0xff] (!%p138_p2)   ;;  %v4662_v1 = vld [vmem:[%s6797_s1 + $0x48c] ss:$16 sps:$4 sm:$0xff] (!%p138_p2)   ;;  %v4664_v2 = vld [vmem:[%s6797_s1 + $0x480] ss:$16 sps:$4 sm:$0xff] (!%p138_p2)  }
   0x6   : > { %141 = sbr.rel (%p138_p2) target bundleno = 660 (0x294), region = 32  ;;  %1293 = vmatprep.subr.bf16.mxu0 (!%p138_p2), %v4660_v0  ;;  %v4665_v3 = vld [vmem:[%s6797_s1 + $0x488] ss:$16 sps:$4 sm:$0xff] (!%p138_p2)   ;;  %1422 = vmatprep.subr.bf16.mxu1 (!%p138_p2), %v4662_v1  ;;  %v4666_v4 = vld [vmem:[%s6797_s1 + $0x4a4] ss:$16 sps:$4 sm:$0xff] (!%p138_p2)   ;;  %p161_p3 = scmp.lt.s32.totalorder (!%p138_p2), %s3826_s13, 1 }
   0x7   : > { %1294 = vmatpush1.bf16.msra.mxu0 (!%p138_p2), %v4664_v2  ;;  %1423 = vmatpush1.bf16.msra.mxu1 (!%p138_p2), %v4665_v3  ;;  %v4668_v5 = vld [vmem:[%s6797_s1 + $0x4ac] ss:$16 sps:$4 sm:$0xff] (!%p138_p2)   ;;  %v4670_v6 = vld [vmem:[%s6797_s1 + $0x4a0] ss:$16 sps:$4 sm:$0xff] (!%p138_p2)   ;;  %v4671_v7 = vld [vmem:[%s6797_s1 + $0x4a8] ss:$16 sps:$4 sm:$0xff] (!%p138_p2)  }
   0x8   : > { %1295 = vmatprep.subr.bf16.mxu0 (!%p138_p2), %v4666_v4  ;;  %1424 = vmatprep.subr.bf16.mxu1 (!%p138_p2), %v4668_v5  ;;  %v4672_v8 = vld [vmem:[%s6797_s1 + $0x4c4] ss:$16 sps:$4 sm:$0xff] (!%p138_p2)   ;;  %v4674_v9 = vld [vmem:[%s6797_s1 + $0x4cc] ss:$16 sps:$4 sm:$0xff] (!%p138_p2)   ;;  %v4676_v10 = vld [vmem:[%s6797_s1 + $0x4c0] ss:$16 sps:$4 sm:$0xff] (!%p138_p2)  }
   0x9   : > { %v4677_v11 = vld [vmem:[%s6797_s1 + $0x4c8] ss:$16 sps:$4 sm:$0xff] (!%p138_p2)   ;;  %v4678_v12 = vld [vmem:[%s6797_s1 + $0x4e4] ss:$16 sps:$4 sm:$0xff] (!%p138_p2)   ;;  %v4680_v13 = vld [vmem:[%s6797_s1 + $0x4ec] ss:$16 sps:$4 sm:$0xff] (!%p138_p2)  }
   0xa   : > { %v4682_v14 = vld [vmem:[%s6797_s1 + $0x4e0] ss:$16 sps:$4 sm:$0xff] (!%p138_p2)   ;;  %v4683_v15 = vld [vmem:[%s6797_s1 + $0x4e8] ss:$16 sps:$4 sm:$0xff] (!%p138_p2)   ;;  %v4684_v16 = vld [vmem:[%s6797_s1 + $0x504] ss:$16 sps:$4 sm:$0xff] (!%p138_p2)  }
   0xb   : > { %1296 = vmatpush1.bf16.msra.mxu0 (!%p138_p2), %v4670_v6  ;;  %1425 = vmatpush1.bf16.msra.mxu1 (!%p138_p2), %v4671_v7  ;;  %v4686_v17 = vld [vmem:[%s6797_s1 + $0x50c] ss:$16 sps:$4 sm:$0xff] (!%p138_p2)   ;;  %v4688_v18 = vld [vmem:[%s6797_s1 + $0x500] ss:$16 sps:$4 sm:$0xff] (!%p138_p2)   ;;  %v4689_v19 = vld [vmem:[%s6797_s1 + $0x508] ss:$16 sps:$4 sm:$0xff] (!%p138_p2)  }
   0xc   : > { %1297 = vmatprep.subr.bf16.mxu0 (!%p138_p2), %v4672_v8  ;;  %1426 = vmatprep.subr.bf16.mxu1 (!%p138_p2), %v4674_v9  ;;  %v4690_v20 = vld [vmem:[%s6797_s1 + $0x524] ss:$16 sps:$4 sm:$0xff] (!%p138_p2)   ;;  %v4692_v21 = vld [vmem:[%s6797_s1 + $0x52c] ss:$16 sps:$4 sm:$0xff] (!%p138_p2)   ;;  %v4694_v22 = vld [vmem:[%s6797_s1 + $0x520] ss:$16 sps:$4 sm:$0xff] (!%p138_p2)  }
   0xd   : > { %v4695_v23 = vld [vmem:[%s6797_s1 + $0x528] ss:$16 sps:$4 sm:$0xff]   ;;  %v4696_v24 = vld [vmem:[%s6797_s1 + $0x544] ss:$16 sps:$4 sm:$0xff]   ;;  %v4698_v25 = vld [vmem:[%s6797_s1 + $0x54c] ss:$16 sps:$4 sm:$0xff]  }
   0xe   : > { %v4700_v26 = vld [vmem:[%s6797_s1 + $0x540] ss:$16 sps:$4 sm:$0xff]   ;;  %v4701_v27 = vld [vmem:[%s6797_s1 + $0x548] ss:$16 sps:$4 sm:$0xff]   ;;  %v4702_v28 = vld [vmem:[%s6797_s1 + $0x564] ss:$16 sps:$4 sm:$0xff]  }
   0xf   : > { %1298 = vmatpush1.bf16.msra.mxu0 %v4676_v10  ;;  %1427 = vmatpush1.bf16.msra.mxu1 %v4677_v11  ;;  %v4704_v29 = vld [vmem:[%s6797_s1 + $0x56c] ss:$16 sps:$4 sm:$0xff]   ;;  %v4706_v30 = vld [vmem:[%s6797_s1 + $0x560] ss:$16 sps:$4 sm:$0xff]   ;;  %v4707_v31 = vld [vmem:[%s6797_s1 + $0x568] ss:$16 sps:$4 sm:$0xff]  }
  0x10   : > { %1299 = vmatprep.subr.bf16.mxu0 %v4678_v12  ;;  %1428 = vmatprep.subr.bf16.mxu1 %v4680_v13  ;;  %v4708_v32 = vld [vmem:[%s6797_s1 + $0x584] ss:$16 sps:$4 sm:$0xff]   ;;  %v4710_v33 = vld [vmem:[%s6797_s1 + $0x58c] ss:$16 sps:$4 sm:$0xff]   ;;  %v4712_v34 = vld [vmem:[%s6797_s1 + $0x580] ss:$16 sps:$4 sm:$0xff]  }
  0x11   : > { %v4713_v35 = vld [vmem:[%s6797_s1 + $0x588] ss:$16 sps:$4 sm:$0xff]   ;;  %s6801_s13 = smov (!%p161_p3, %s3826_s13), 1  ;;  %v4714_v36 = vld [vmem:[%s6797_s1 + $0x5a4] ss:$16 sps:$4 sm:$0xff]   ;;  %vm1289_vm1 = vcmask 523264  }
  0x12   : > { %v4716_v37 = vld [vmem:[%s6797_s1 + $0x5ac] ss:$16 sps:$4 sm:$0xff]   ;;  %v4718_v38 = vld [vmem:[%s6797_s1 + $0x5a0] ss:$16 sps:$4 sm:$0xff]   ;;  %s4650_s17 = smul.u32 60, %s6801_s13  ;;  %vm2696_vm2 = vcmask 1046528  }
  0x13   : > { %1300 = vmatpush1.bf16.msra.mxu0 %v4682_v14  ;;  %1429 = vmatpush1.bf16.msra.mxu1 %v4683_v15  ;;  %v4719_v39 = vld [vmem:[%s6797_s1 + $0x5a8] ss:$16 sps:$4 sm:$0xff]   ;;  %v4720_v40 = vld [vmem:[%s6797_s1 + $0x5c4] ss:$16 sps:$4 sm:$0xff]   ;;  %v4722_v41 = vld [vmem:[%s6797_s1 + $0x5cc] ss:$16 sps:$4 sm:$0xff]  }
  0x14   : > { %1301 = vmatprep.subr.bf16.mxu0 %v4684_v16  ;;  %1430 = vmatprep.subr.bf16.mxu1 %v4686_v17  ;;  %v4724_v42 = vld [vmem:[%s6797_s1 + $0x5c0] ss:$16 sps:$4 sm:$0xff]   ;;  %v4725_v43 = vld [vmem:[%s6797_s1 + $0x5c8] ss:$16 sps:$4 sm:$0xff]   ;;  %s5506_s30 = scalar_lea.vmem %s6796_s0, %s4650_s17  ;;  %v4726_v44 = vld [vmem:[%s6797_s1 + $0x5e4] ss:$16 sps:$4 sm:$0xff]  }
  0x15   : > { %v4728_v45 = vld [vmem:[%s6797_s1 + $0x5ec] ss:$16 sps:$4 sm:$0xff]   ;;  %v4730_v46 = vld [vmem:[%s6797_s1 + $0x5e0] ss:$16 sps:$4 sm:$0xff]   ;;  %v175_v48 = vld [vmem:[%s5506_s30 + $0x14] sm:$0xff] }
  0x16   : > { %v172_v47 = vld [vmem:[%s5506_s30] sm:$0xff]  ;;  %v322_v49 = vld [vmem:[%s5506_s30 + $0x28] sm:$0x11]  ;;  %vm504_vm0 = vsmask.f32 7424 }
  0x17   : > { %1302 = vmatpush1.bf16.msra.mxu0 %v4688_v18  ;;  %1431 = vmatpush1.bf16.msra.mxu1 %v4689_v19  ;;  %v4731_v50 = vld [vmem:[%s6797_s1 + $0x5e8] ss:$16 sps:$4 sm:$0xff]   ;;  %v4732_v51 = vld [vmem:[%s6797_s1 + $0x604] ss:$16 sps:$4 sm:$0xff]   ;;  %v5526_v52 = vcombine.high %v172_v47, %v175_v48  ;;  %v5528_v53 = vcombine.high %v322_v49, %v322_v49  ;;  %v4734_v54 = vld [vmem:[%s6797_s1 + $0x60c] ss:$16 sps:$4 sm:$0xff]   ;;  %v5542_v62 = vcombine.low %v172_v47, %v175_v48 }
  0x18   : > { %1303 = vmatprep.subr.bf16.mxu0 %v4690_v20  ;;  %1432 = vmatprep.subr.bf16.mxu1 %v4692_v21  ;;  %v4736_v58 = vld [vmem:[%s6797_s1 + $0x600] ss:$16 sps:$4 sm:$0xff]   ;;  %v4737_v59 = vld [vmem:[%s6797_s1 + $0x608] ss:$16 sps:$4 sm:$0xff]   ;;  %v4738_v63 = vld [vmem:[%s6797_s1 + $0x624] ss:$16 sps:$4 sm:$0xff]   ;;  %v5557_v5 = vcombine.low %v322_v49, %v322_v49 }
  0x19   : > { %v518_v55 = vshrl.u32 %v5526_v52, 16  ;;  %v520_v56 = vshll.u32 %v5526_v52, 16  ;;  %v525_v57 = vshll.u32 %v5528_v53, 16  ;;  %v4740_v0 = vld [vmem:[%s6797_s1 + $0x62c] ss:$16 sps:$4 sm:$0xff]   ;;  %v508_v6 = vshll.u32 %v5542_v62, 16 }
  0x1a   : > { %v4742_v2 = vld [vmem:[%s6797_s1 + $0x620] ss:$16 sps:$4 sm:$0xff]   ;;  %v4743_v3 = vld [vmem:[%s6797_s1 + $0x628] ss:$16 sps:$4 sm:$0xff]   ;;  %v4744_v7 = vld [vmem:[%s6797_s1 + $0x644] ss:$16 sps:$4 sm:$0xff]  }
  0x1b   : > { %1304 = vmatpush1.bf16.msra.mxu0 %v4694_v22  ;;  %1433 = vmatpush1.bf16.msra.mxu1 %v4695_v23  ;;  %v522_v60 = vrot.slane %v520_v56, 1  ;;  %v527_v61 = vrot.slane %v525_v57, 1  ;;  %v4746_v8 = vld [vmem:[%s6797_s1 + $0x64c] ss:$16 sps:$4 sm:$0xff]   ;;  %v4748_v9 = vld [vmem:[%s6797_s1 + $0x640] ss:$16 sps:$4 sm:$0xff]  }
  0x1c   : > { %1305 = vmatprep.subr.bf16.mxu0 %v4696_v24  ;;  %1434 = vmatprep.subr.bf16.mxu1 %v4698_v25  ;;  %v4749_v10 = vld [vmem:[%s6797_s1 + $0x648] ss:$16 sps:$4 sm:$0xff]   ;;  %v506_v11 = vshrl.u32 %v5542_v62, 16  ;;  %v510_v12 = vrot.slane %v508_v6, 1  ;;  %v513_v13 = vshll.u32 %v5557_v5, 16 }
  0x1d   : > { %v523_v1 = vor.u32 %v522_v60, %v518_v55  ;;  %v4750_v14 = vld [vmem:[%s6797_s1 + $0x664] ss:$16 sps:$4 sm:$0xff]   ;;  %v4752_v15 = vld [vmem:[%s6797_s1 + $0x66c] ss:$16 sps:$4 sm:$0xff]   ;;  %v4754_v16 = vld [vmem:[%s6797_s1 + $0x660] ss:$16 sps:$4 sm:$0xff]  }
  0x1e   : > { %v4755_v17 = vld [vmem:[%s6797_s1 + $0x668] ss:$16 sps:$4 sm:$0xff]   ;;  %v511_v18 = vor.u32 %v510_v12, %v506_v11  ;;  %v515_v19 = vrot.slane %v513_v13, 1  ;;  %v4760_v20 = vld [vmem:[%s6797_s1 + $0x684] ss:$16 sps:$4 sm:$0xff]  }
  0x1f   : > { %1306 = vmatpush1.bf16.msra.mxu0 %v4700_v26  ;;  %1435 = vmatpush1.bf16.msra.mxu1 %v4701_v27  ;;  %v528_v4 = vsel %vm504_vm0, %v523_v1, %v527_v61  ;;  %v4763_v21 = vld [vmem:[%s6797_s1 + $0x68c] ss:$16 sps:$4 sm:$0xff]   ;;  %v4758_v22 = vld [vmem:[%s6797_s1 + $0x680] ss:$16 sps:$4 sm:$0xff]   ;;  %v4761_v23 = vld [vmem:[%s6797_s1 + $0x688] ss:$16 sps:$4 sm:$0xff]  }
  0x20   : > { %1307 = vmatprep.subr.bf16.mxu0 %v4702_v28  ;;  %1436 = vmatprep.subr.bf16.mxu1 %v4704_v29  ;;  %v516_v24 = vsel %vm504_vm0, %v511_v18, %v515_v19  ;;  %v4768_v25 = vld [vmem:[%s6797_s1 + $0x6a4] ss:$16 sps:$4 sm:$0xff]   ;;  %v4771_v26 = vld [vmem:[%s6797_s1 + $0x6ac] ss:$16 sps:$4 sm:$0xff]   ;;  %v4766_v27 = vld [vmem:[%s6797_s1 + $0x6a0] ss:$16 sps:$4 sm:$0xff]  }
  0x21   : > { %1325 = vmatprep.mubr.bf16.mxu0 %v528_v4  ;;  %1454 = vmatprep.mubr.bf16.mxu1 %v528_v4  ;;  %v4769_v28 = vld [vmem:[%s6797_s1 + $0x6a8] ss:$16 sps:$4 sm:$0xff]   ;;  %v4774_v29 = vld [vmem:[%s6797_s1 + $0x6c4] ss:$16 sps:$4 sm:$0xff]   ;;  %v4796_v47 = vld [vmem:[%s6797_s1 + $0x740] ss:$16 sps:$4 sm:$0xff]  }
  0x22   : > { %v4799_v48 = vld [vmem:[%s6797_s1 + $0x748] ss:$16 sps:$4 sm:$0xff]   ;;  %v4804_v55 = vld [vmem:[%s6797_s1 + $0x764] ss:$16 sps:$4 sm:$0xff]   ;;  %v4807_v56 = vld [vmem:[%s6797_s1 + $0x76c] ss:$16 sps:$4 sm:$0xff]  }
  0x23   : > { %1308 = vmatpush1.bf16.msra.mxu0 %v4706_v30  ;;  %1437 = vmatpush1.bf16.msra.mxu1 %v4707_v31  ;;  %v4777_v30 = vld [vmem:[%s6797_s1 + $0x6cc] ss:$16 sps:$4 sm:$0xff]   ;;  %v4772_v31 = vld [vmem:[%s6797_s1 + $0x6c0] ss:$16 sps:$4 sm:$0xff]   ;;  %v4805_v61 = vld [vmem:[%s6797_s1 + $0x768] ss:$16 sps:$4 sm:$0xff]  }
  0x24   : > { %1309 = vmatprep.subr.bf16.mxu0 %v4708_v32  ;;  %1438 = vmatprep.subr.bf16.mxu1 %v4710_v33  ;;  %v4775_v32 = vld [vmem:[%s6797_s1 + $0x6c8] ss:$16 sps:$4 sm:$0xff]   ;;  %v4780_v33 = vld [vmem:[%s6797_s1 + $0x6e4] ss:$16 sps:$4 sm:$0xff]   ;;  %v4802_v60 = vld [vmem:[%s6797_s1 + $0x760] ss:$16 sps:$4 sm:$0xff]  }
  0x25   : > { %v5672_v49 = vld [vmem:[%s5506_s30 + $0x8] sm:$0xff]  ;;  %v4808_v6 = vld [vmem:[%s6797_s1 + $0x780] ss:$16 sps:$4 sm:$0xff]   ;;  %v4822_v13 = vld [vmem:[%s6797_s1 + $0x7c4] ss:$16 sps:$4 sm:$0xff]  }
  0x26   : > { %v4813_v1 = vld [vmem:[%s6797_s1 + $0x78c] ss:$16 sps:$4 sm:$0xff]   ;;  %v4814_v11 = vld [vmem:[%s6797_s1 + $0x7a0] ss:$16 sps:$4 sm:$0xff]   ;;  %v4817_v12 = vld [vmem:[%s6797_s1 + $0x7a8] ss:$16 sps:$4 sm:$0xff]  }
  0x27   : > { %1310 = vmatpush1.bf16.msra.mxu0 %v4712_v34  ;;  %1439 = vmatpush1.bf16.msra.mxu1 %v4713_v35  ;;  %v4783_v34 = vld [vmem:[%s6797_s1 + $0x6ec] ss:$16 sps:$4 sm:$0xff]   ;;  %v4778_v35 = vld [vmem:[%s6797_s1 + $0x6e0] ss:$16 sps:$4 sm:$0xff]  }
  0x28   : > { %1311 = vmatprep.subr.bf16.mxu0 %v4714_v36  ;;  %1440 = vmatprep.subr.bf16.mxu1 %v4716_v37  ;;  %v4781_v36 = vld [vmem:[%s6797_s1 + $0x6e8] ss:$16 sps:$4 sm:$0xff]   ;;  %v4786_v37 = vld [vmem:[%s6797_s1 + $0x704] ss:$16 sps:$4 sm:$0xff]   ;;  %v4831_v18 = vld [vmem:[%s6797_s1 + $0x7ec] ss:$16 sps:$4 sm:$0xff]  }
  0x29   : > { %v4826_v19 = vld [vmem:[%s6797_s1 + $0x7e0] ss:$16 sps:$4 sm:$0xff]  }
  0x2b   : > { %1312 = vmatpush1.bf16.msra.mxu0 %v4718_v38  ;;  %1441 = vmatpush1.bf16.msra.mxu1 %v4719_v39  ;;  %v4789_v38 = vld [vmem:[%s6797_s1 + $0x70c] ss:$16 sps:$4 sm:$0xff]   ;;  %v4784_v39 = vld [vmem:[%s6797_s1 + $0x700] ss:$16 sps:$4 sm:$0xff]  }
  0x2c   : > { %1313 = vmatprep.subr.bf16.mxu0 %v4720_v40  ;;  %1442 = vmatprep.subr.bf16.mxu1 %v4722_v41  ;;  %v4787_v40 = vld [vmem:[%s6797_s1 + $0x708] ss:$16 sps:$4 sm:$0xff]   ;;  %v4792_v41 = vld [vmem:[%s6797_s1 + $0x724] ss:$16 sps:$4 sm:$0xff]  }
  0x2f   : > { %1314 = vmatpush1.bf16.msra.mxu0 %v4724_v42  ;;  %1443 = vmatpush1.bf16.msra.mxu1 %v4725_v43  ;;  %v4795_v42 = vld [vmem:[%s6797_s1 + $0x72c] ss:$16 sps:$4 sm:$0xff]   ;;  %v4790_v43 = vld [vmem:[%s6797_s1 + $0x720] ss:$16 sps:$4 sm:$0xff]  }
  0x30   : > { %1315 = vmatprep.subr.bf16.mxu0 %v4726_v44  ;;  %1444 = vmatprep.subr.bf16.mxu1 %v4728_v45  ;;  %v4793_v44 = vld [vmem:[%s6797_s1 + $0x728] ss:$16 sps:$4 sm:$0xff]   ;;  %v4798_v45 = vld [vmem:[%s6797_s1 + $0x744] ss:$16 sps:$4 sm:$0xff]  }
  0x33   : > { %1316 = vmatpush1.bf16.msra.mxu0 %v4730_v46  ;;  %1445 = vmatpush1.bf16.msra.mxu1 %v4731_v50  ;;  %v4801_v46 = vld [vmem:[%s6797_s1 + $0x74c] ss:$16 sps:$4 sm:$0xff]  }
  0x34   : > { %1317 = vmatprep.subr.bf16.mxu0 %v4732_v51  ;;  %1446 = vmatprep.subr.bf16.mxu1 %v4734_v54  ;;  %v5675_v50 = vld [vmem:[%s5506_s30 + $0x1c] sm:$0xff]  ;;  %v5678_v51 = vld [vmem:[%s5506_s30 + $0x30] sm:$0x11] }
  0x35   : > { %v5682_v54 = vcombine.high %v5672_v49, %v5675_v50  ;;  %v5692_v57 = vcombine.high %v5678_v51, %v5678_v51 }
  0x37   : > { %1318 = vmatpush1.bf16.msra.mxu0 %v4736_v58  ;;  %1447 = vmatpush1.bf16.msra.mxu1 %v4737_v59  ;;  %v542_v58 = vshrl.u32 %v5682_v54, 16  ;;  %v544_v59 = vshll.u32 %v5682_v54, 16 }
  0x38   : > { %1319 = vmatprep.subr.bf16.mxu0 %v4738_v63  ;;  %1448 = vmatprep.subr.bf16.mxu1 %v4740_v0  ;;  %v549_v63 = vshll.u32 %v5692_v57, 16  ;;  %v4810_v0 = vld [vmem:[%s6797_s1 + $0x784] ss:$16 sps:$4 sm:$0xff]  }
  0x3b   : > { %1320 = vmatpush1.bf16.msra.mxu0 %v4742_v2  ;;  %1449 = vmatpush1.bf16.msra.mxu1 %v4743_v3  ;;  %v546_v2 = vrot.slane %v544_v59, 1  ;;  %v551_v3 = vrot.slane %v549_v63, 1  ;;  %v4866_v59 = vld [vmem:[%s6797_s1 + $0x8a0] ss:$16 sps:$4 sm:$0xff]  }
  0x3c   : > { %1321 = vmatprep.subr.bf16.mxu0 %v4744_v7  ;;  %1450 = vmatprep.subr.bf16.mxu1 %v4746_v8  ;;  %v4811_v7 = vld [vmem:[%s6797_s1 + $0x788] ss:$16 sps:$4 sm:$0xff]   ;;  %v4816_v8 = vld [vmem:[%s6797_s1 + $0x7a4] ss:$16 sps:$4 sm:$0xff]  }
  0x3d   : > { %v547_v4 = vor.u32 %v546_v2, %v542_v58  ;;  %v4871_v58 = vld [vmem:[%s6797_s1 + $0x8ac] ss:$16 sps:$4 sm:$0xff]   ;;  %v4891_v63 = vld [vmem:[%s5506_s30 + $0x38] ss:$0 sps:$4 sm:$0x11]  }
  0x3e   : > { %v4872_v2 = vld [vmem:[%s6797_s1 + $0x8c0] ss:$16 sps:$4 sm:$0xff]  }
  0x3f   : > { %1322 = vmatpush1.bf16.msra.mxu0 %v4748_v9  ;;  %1451 = vmatpush1.bf16.msra.mxu1 %v4749_v10  ;;  %v552_v9 = vsel %vm504_vm0, %v547_v4, %v551_v3  ;;  %v4819_v10 = vld [vmem:[%s6797_s1 + $0x7ac] ss:$16 sps:$4 sm:$0xff]   ;;  %v5335_v3 = vmov 0   ;;  %v4875_v4 = vld [vmem:[%s6797_s1 + $0x8c8] ss:$16 sps:$4 sm:$0xff]  }
  0x40   : > { %1323 = vmatprep.subr.bf16.mxu0 %v4750_v14  ;;  %1452 = vmatprep.subr.bf16.mxu1 %v4752_v15  ;;  %v4825_v14 = vld [vmem:[%s6797_s1 + $0x7cc] ss:$16 sps:$4 sm:$0xff]   ;;  %v4820_v15 = vld [vmem:[%s6797_s1 + $0x7c0] ss:$16 sps:$4 sm:$0xff]  }
  0x43   : > { %1324 = vmatpush1.bf16.msra.mxu0 %v4754_v16  ;;  %1453 = vmatpush1.bf16.msra.mxu1 %v4755_v17  ;;  %v4823_v16 = vld [vmem:[%s6797_s1 + $0x7c8] ss:$16 sps:$4 sm:$0xff]   ;;  %v4828_v17 = vld [vmem:[%s6797_s1 + $0x7e4] ss:$16 sps:$4 sm:$0xff]  }
  0x44   : > { %1336 = vmatprep.subr.bf16.mxu0 %v4760_v20  ;;  %1465 = vmatprep.subr.bf16.mxu1 %v4763_v21  ;;  %v4829_v20 = vld [vmem:[%s6797_s1 + $0x7e8] ss:$16 sps:$4 sm:$0xff]   ;;  %v4834_v21 = vld [vmem:[%s6797_s1 + $0x804] ss:$16 sps:$4 sm:$0xff]  }
  0x46   : > { %1326 = vmatmul.mubr.bf16.vlgmr.msra.gmra.mrb[0].mxu0 %v516_v24  ;;  %1455 = vmatmul.mubr.bf16.vlgmr.msra.gmra.mrb[0].mxu1 %v516_v24  ;;  %v4835_v24 = vld [vmem:[%s6797_s1 + $0x808] ss:$16 sps:$4 sm:$0xff]  }
  0x47   : > { %1337 = vmatpush1.bf16.msra.mxu0 %v4758_v22  ;;  %1466 = vmatpush1.bf16.msra.mxu1 %v4761_v23  ;;  %v4837_v22 = vld [vmem:[%s6797_s1 + $0x80c] ss:$16 sps:$4 sm:$0xff]   ;;  %v4832_v23 = vld [vmem:[%s6797_s1 + $0x800] ss:$16 sps:$4 sm:$0xff]  }
  0x48   : > { %1338 = vmatprep.subr.bf16.mxu0 %v4768_v25  ;;  %1467 = vmatprep.subr.bf16.mxu1 %v4771_v26  ;;  %v4840_v25 = vld [vmem:[%s6797_s1 + $0x824] ss:$16 sps:$4 sm:$0xff]   ;;  %v5769_v26 = vcombine.low %v5672_v49, %v5675_v50  ;;  %v4858_v49 = vld [vmem:[%s6797_s1 + $0x880] ss:$16 sps:$4 sm:$0xff]   ;;  %v4861_v50 = vld [vmem:[%s6797_s1 + $0x888] ss:$16 sps:$4 sm:$0xff]  }
  0x49   : > { %1368 = vmatprep.mubr.bf16.mxu0 %v552_v9  ;;  %1497 = vmatprep.mubr.bf16.mxu1 %v552_v9  ;;  %v561_v9 = vshll.u32 %v4891_v63, 16  ;;  %v4948_v63 = vld [vmem:[%s6797_s1 + $0x144] ss:$16 sps:$4 sm:$0xff]  }
  0x4b   : > { %1339 = vmatpush1.bf16.msra.mxu0 %v4766_v27  ;;  %1468 = vmatpush1.bf16.msra.mxu1 %v4769_v28  ;;  %v4843_v27 = vld [vmem:[%s6797_s1 + $0x82c] ss:$16 sps:$4 sm:$0xff]   ;;  %v4838_v28 = vld [vmem:[%s6797_s1 + $0x820] ss:$16 sps:$4 sm:$0xff]  }
  0x4c   : > { %1340 = vmatprep.subr.bf16.mxu0 %v4774_v29  ;;  %1469 = vmatprep.subr.bf16.mxu1 %v4777_v30  ;;  %v4841_v29 = vld [vmem:[%s6797_s1 + $0x828] ss:$16 sps:$4 sm:$0xff]   ;;  %v4846_v30 = vld [vmem:[%s6797_s1 + $0x844] ss:$16 sps:$4 sm:$0xff]  }
  0x4f   : > { %1341 = vmatpush1.bf16.msra.mxu0 %v4772_v31  ;;  %1470 = vmatpush1.bf16.msra.mxu1 %v4775_v32  ;;  %v5785_v31 = vcombine.low %v5678_v51, %v5678_v51  ;;  %v532_v32 = vshll.u32 %v5769_v26, 16 }
  0x50   : > { %1342 = vmatprep.subr.bf16.mxu0 %v4780_v33  ;;  %1471 = vmatprep.subr.bf16.mxu1 %v4783_v34  ;;  %v4849_v33 = vld [vmem:[%s6797_s1 + $0x84c] ss:$16 sps:$4 sm:$0xff]   ;;  %v4844_v34 = vld [vmem:[%s6797_s1 + $0x840] ss:$16 sps:$4 sm:$0xff]  }
  0x53   : > { %1343 = vmatpush1.bf16.msra.mxu0 %v4778_v35  ;;  %1472 = vmatpush1.bf16.msra.mxu1 %v4781_v36  ;;  %v4847_v35 = vld [vmem:[%s6797_s1 + $0x848] ss:$16 sps:$4 sm:$0xff]   ;;  %v4852_v36 = vld [vmem:[%s6797_s1 + $0x864] ss:$16 sps:$4 sm:$0xff]  }
  0x54   : > { %1344 = vmatprep.subr.bf16.mxu0 %v4786_v37  ;;  %1473 = vmatprep.subr.bf16.mxu1 %v4789_v38  ;;  %v530_v37 = vshrl.u32 %v5769_v26, 16  ;;  %v534_v38 = vrot.slane %v532_v32, 1  ;;  %v4907_v32 = vld [vmem:[%s6797_s1 + $0x68] ss:$16 sps:$4 sm:$0xff]  }
  0x57   : > { %1345 = vmatpush1.bf16.msra.mxu0 %v4784_v39  ;;  %1474 = vmatpush1.bf16.msra.mxu1 %v4787_v40  ;;  %v537_v39 = vshll.u32 %v5785_v31, 16  ;;  %v4855_v40 = vld [vmem:[%s6797_s1 + $0x86c] ss:$16 sps:$4 sm:$0xff]  }
  0x58   : > { %1346 = vmatprep.subr.bf16.mxu0 %v4792_v41  ;;  %1475 = vmatprep.subr.bf16.mxu1 %v4795_v42  ;;  %v4850_v41 = vld [vmem:[%s6797_s1 + $0x860] ss:$16 sps:$4 sm:$0xff]   ;;  %v4853_v42 = vld [vmem:[%s6797_s1 + $0x868] ss:$16 sps:$4 sm:$0xff]  }
  0x5b   : > { %1347 = vmatpush1.bf16.msra.mxu0 %v4790_v43  ;;  %1476 = vmatpush1.bf16.msra.mxu1 %v4793_v44  ;;  %v4860_v43 = vld [vmem:[%s6797_s1 + $0x884] ss:$16 sps:$4 sm:$0xff]   ;;  %v4863_v44 = vld [vmem:[%s6797_s1 + $0x88c] ss:$16 sps:$4 sm:$0xff]  }
  0x5c   : > { %1348 = vmatprep.subr.bf16.mxu0 %v4798_v45  ;;  %1477 = vmatprep.subr.bf16.mxu1 %v4801_v46  ;;  %v535_v45 = vor.u32 %v534_v38, %v530_v37  ;;  %v539_v46 = vrot.slane %v537_v39, 1  ;;  %v4918_v37 = vld [vmem:[%s6797_s1 + $0xa4] ss:$16 sps:$4 sm:$0xff]   ;;  %v4921_v38 = vld [vmem:[%s6797_s1 + $0xac] ss:$16 sps:$4 sm:$0xff]  }
  0x5d   : > { %v4916_v39 = vld [vmem:[%s6797_s1 + $0xa0] ss:$16 sps:$4 sm:$0xff]  }
  0x5e   : > { %v540_v51 = vsel %vm504_vm0, %v535_v45, %v539_v46  ;;  %v4930_v45 = vld [vmem:[%s6797_s1 + $0xe4] ss:$16 sps:$4 sm:$0xff]   ;;  %v4933_v46 = vld [vmem:[%s6797_s1 + $0xec] ss:$16 sps:$4 sm:$0xff]  }
  0x5f   : > { %1349 = vmatpush1.bf16.msra.mxu0 %v4796_v47  ;;  %1478 = vmatpush1.bf16.msra.mxu1 %v4799_v48  ;;  %v174_v47 = vld [vmem:[%s5506_s30 + $0x10] sm:$0xf]  ;;  %v177_v48 = vld [vmem:[%s5506_s30 + $0x24] sm:$0xf] }
  0x60   : > { %1350 = vmatprep.subr.bf16.mxu0 %v4804_v55  ;;  %1479 = vmatprep.subr.bf16.mxu1 %v4807_v56  ;;  %v4868_v55 = vld [vmem:[%s6797_s1 + $0x8a4] ss:$16 sps:$4 sm:$0xff]   ;;  %v5829_v56 = vcombine.low %v174_v47, %v177_v48  ;;  %v4928_v47 = vld [vmem:[%s6797_s1 + $0xe0] ss:$16 sps:$4 sm:$0xff]   ;;  %v4931_v48 = vld [vmem:[%s6797_s1 + $0xe8] ss:$16 sps:$4 sm:$0xff]  }
  0x63   : > { %1351 = vmatpush1.bf16.msra.mxu0 %v4802_v60  ;;  %1480 = vmatpush1.bf16.msra.mxu1 %v4805_v61  ;;  %v4869_v60 = vld [vmem:[%s6797_s1 + $0x8a8] ss:$16 sps:$4 sm:$0xff]   ;;  %v4874_v61 = vld [vmem:[%s6797_s1 + $0x8c4] ss:$16 sps:$4 sm:$0xff]  }
  0x64   : > { %1352 = vmatprep.subr.bf16.mxu0 %v4810_v0  ;;  %1481 = vmatprep.subr.bf16.mxu1 %v4813_v1  ;;  %v556_v0 = vshll.u32 %v5829_v56, 16  ;;  %v4877_v1 = vld [vmem:[%s6797_s1 + $0x8cc] ss:$16 sps:$4 sm:$0xff]  }
  0x67   : > { %1353 = vmatpush1.bf16.msra.mxu0 %v4808_v6  ;;  %1482 = vmatpush1.bf16.msra.mxu1 %v4811_v7  ;;  %v4880_v6 = vld [vmem:[%s6797_s1 + $0x8e4] ss:$16 sps:$4 sm:$0xff]   ;;  %v554_v7 = vshrl.u32 %v5829_v56, 16 }
  0x68   : > { %1354 = vmatprep.subr.bf16.mxu0 %v4816_v8  ;;  %1483 = vmatprep.subr.bf16.mxu1 %v4819_v10  ;;  %v558_v8 = vrot.slane %v556_v0, 1  ;;  %v4883_v10 = vld [vmem:[%s6797_s1 + $0x8ec] ss:$16 sps:$4 sm:$0xff]  }
  0x69   : > { %v4951_v0 = vld [vmem:[%s6797_s1 + $0x14c] ss:$16 sps:$4 sm:$0xff]  }
  0x6b   : > { %1355 = vmatpush1.bf16.msra.mxu0 %v4814_v11  ;;  %1484 = vmatpush1.bf16.msra.mxu1 %v4817_v12  ;;  %v4878_v11 = vld [vmem:[%s6797_s1 + $0x8e0] ss:$16 sps:$4 sm:$0xff]   ;;  %v4881_v12 = vld [vmem:[%s6797_s1 + $0x8e8] ss:$16 sps:$4 sm:$0xff]  }
  0x6c   : > { %1356 = vmatprep.subr.bf16.mxu0 %v4822_v13  ;;  %1485 = vmatprep.subr.bf16.mxu1 %v4825_v14  ;;  %v4886_v13 = vld [vmem:[%s6797_s1 + $0x4] ss:$16 sps:$4 sm:$0xff]   ;;  %v559_v14 = vor.u32 %v558_v8, %v554_v7  ;;  %v4952_v7 = vld [vmem:[%s6797_s1 + $0x160] ss:$16 sps:$4 sm:$0xff]   ;;  %v4955_v8 = vld [vmem:[%s6797_s1 + $0x168] ss:$16 sps:$4 sm:$0xff]  }
  0x6f   : > { %1357 = vmatpush1.bf16.msra.mxu0 %v4820_v15  ;;  %1486 = vmatpush1.bf16.msra.mxu1 %v4823_v16  ;;  %v563_v15 = vrot.slane %v561_v9, 1  ;;  %v4889_v16 = vld [vmem:[%s6797_s1 + $0xc] ss:$16 sps:$4 sm:$0xff]   ;;  %v4960_v9 = vld [vmem:[%s6797_s1 + $0x184] ss:$16 sps:$4 sm:$0xff]  }
  0x70   : > { %1358 = vmatprep.subr.bf16.mxu0 %v4828_v17  ;;  %1487 = vmatprep.subr.bf16.mxu1 %v4831_v18  ;;  %v4884_v17 = vld [vmem:[%s6797_s1] ss:$16 sps:$4 sm:$0xff]   ;;  %v4887_v18 = vld [vmem:[%s6797_s1 + $0x8] ss:$16 sps:$4 sm:$0xff]  }
  0x73   : > { %1359 = vmatpush1.bf16.msra.mxu0 %v4826_v19  ;;  %1488 = vmatpush1.bf16.msra.mxu1 %v4829_v20  ;;  %v564_v19 = vsel %vm504_vm0, %v559_v14, %v563_v15  ;;  %v4894_v20 = vld [vmem:[%s6797_s1 + $0x24] ss:$16 sps:$4 sm:$0xff]   ;;  %v4969_v14 = vld [vmem:[%s6797_s1 + $0x1ac] ss:$16 sps:$4 sm:$0xff]   ;;  %v4964_v15 = vld [vmem:[%s6797_s1 + $0x1a0] ss:$16 sps:$4 sm:$0xff]  }
  0x74   : > { %1360 = vmatprep.subr.bf16.mxu0 %v4834_v21  ;;  %1489 = vmatprep.subr.bf16.mxu1 %v4837_v22  ;;  %v4897_v21 = vld [vmem:[%s6797_s1 + $0x2c] ss:$16 sps:$4 sm:$0xff]   ;;  %v4892_v22 = vld [vmem:[%s6797_s1 + $0x20] ss:$16 sps:$4 sm:$0xff]  }
  0x77   : > { %1361 = vmatpush1.bf16.msra.mxu0 %v4832_v23  ;;  %1490 = vmatpush1.bf16.msra.mxu1 %v4835_v24  ;;  %v4895_v23 = vld [vmem:[%s6797_s1 + $0x28] ss:$16 sps:$4 sm:$0xff]   ;;  %v4900_v24 = vld [vmem:[%s6797_s1 + $0x44] ss:$16 sps:$4 sm:$0xff]  }
  0x78   : > { %1362 = vmatprep.subr.bf16.mxu0 %v4840_v25  ;;  %1491 = vmatprep.subr.bf16.mxu1 %v4843_v27  ;;  %v4903_v25 = vld [vmem:[%s6797_s1 + $0x4c] ss:$16 sps:$4 sm:$0xff]   ;;  %v4898_v27 = vld [vmem:[%s6797_s1 + $0x40] ss:$16 sps:$4 sm:$0xff]  }
  0x7b   : > { %1363 = vmatpush1.bf16.msra.mxu0 %v4838_v28  ;;  %1492 = vmatpush1.bf16.msra.mxu1 %v4841_v29  ;;  %v4901_v28 = vld [vmem:[%s6797_s1 + $0x48] ss:$16 sps:$4 sm:$0xff]   ;;  %v4906_v29 = vld [vmem:[%s6797_s1 + $0x64] ss:$16 sps:$4 sm:$0xff]  }
  0x7c   : > { %1364 = vmatprep.subr.bf16.mxu0 %v4846_v30  ;;  %1493 = vmatprep.subr.bf16.mxu1 %v4849_v33  ;;  %v4904_v30 = vld [vmem:[%s6797_s1 + $0x60] ss:$16 sps:$4 sm:$0xff]   ;;  %v4912_v33 = vld [vmem:[%s6797_s1 + $0x84] ss:$16 sps:$4 sm:$0xff]  }
  0x7f   : > { %1365 = vmatpush1.bf16.msra.mxu0 %v4844_v34  ;;  %1494 = vmatpush1.bf16.msra.mxu1 %v4847_v35  ;;  %v4915_v34 = vld [vmem:[%s6797_s1 + $0x8c] ss:$16 sps:$4 sm:$0xff]   ;;  %v4910_v35 = vld [vmem:[%s6797_s1 + $0x80] ss:$16 sps:$4 sm:$0xff]  }
  0x80   : > { %1366 = vmatprep.subr.bf16.mxu0 %v4852_v36  ;;  %1495 = vmatprep.subr.bf16.mxu1 %v4855_v40  ;;  %v4913_v36 = vld [vmem:[%s6797_s1 + $0x88] ss:$16 sps:$4 sm:$0xff]  }
  0x81   : > { %v4919_v40 = vld [vmem:[%s6797_s1 + $0xa8] ss:$16 sps:$4 sm:$0xff]  }
  0x83   : > { %1367 = vmatpush1.bf16.msra.mxu0 %v4850_v41  ;;  %1496 = vmatpush1.bf16.msra.mxu1 %v4853_v42  ;;  %v4924_v41 = vld [vmem:[%s6797_s1 + $0xc4] ss:$16 sps:$4 sm:$0xff]   ;;  %v4927_v42 = vld [vmem:[%s6797_s1 + $0xcc] ss:$16 sps:$4 sm:$0xff]  }
  0x84   : > { %1379 = vmatprep.subr.bf16.mxu0 %v4860_v43  ;;  %1508 = vmatprep.subr.bf16.mxu1 %v4863_v44  ;;  %v4922_v43 = vld [vmem:[%s6797_s1 + $0xc0] ss:$16 sps:$4 sm:$0xff]   ;;  %v4925_v44 = vld [vmem:[%s6797_s1 + $0xc8] ss:$16 sps:$4 sm:$0xff]  }
  0x86   : > { %1369 = vmatmul.mubr.bf16.vlgmr.msra.gmra.mrb[0].mxu0 %v540_v51  ;;  %1498 = vmatmul.mubr.bf16.vlgmr.msra.gmra.mrb[0].mxu1 %v540_v51  ;;  %v4934_v51 = vld [vmem:[%s6797_s1 + $0x100] ss:$16 sps:$4 sm:$0xff]  }
  0x87   : > { %1380 = vmatpush1.bf16.msra.mxu0 %v4858_v49  ;;  %1509 = vmatpush1.bf16.msra.mxu1 %v4861_v50  ;;  %v4936_v49 = vld [vmem:[%s6797_s1 + $0x104] ss:$16 sps:$4 sm:$0xff]   ;;  %v4939_v50 = vld [vmem:[%s6797_s1 + $0x10c] ss:$16 sps:$4 sm:$0xff]  }
  0x88   : > { %1381 = vmatprep.subr.bf16.mxu0 %v4868_v55  ;;  %1510 = vmatprep.subr.bf16.mxu1 %v4871_v58  ;;  %v4937_v55 = vld [vmem:[%s6797_s1 + $0x108] ss:$16 sps:$4 sm:$0xff]   ;;  %v4942_v58 = vld [vmem:[%s6797_s1 + $0x124] ss:$16 sps:$4 sm:$0xff]  }
  0x89   : > { %1411 = vmatprep.mubr.bf16.mxu0 %v5335_v3  ;;  %1540 = vmatprep.mubr.bf16.mxu1 %v5335_v3 }
  0x8b   : > { %1382 = vmatpush1.bf16.msra.mxu0 %v4866_v59  ;;  %1511 = vmatpush1.bf16.msra.mxu1 %v4869_v60  ;;  %v4945_v59 = vld [vmem:[%s6797_s1 + $0x12c] ss:$16 sps:$4 sm:$0xff]   ;;  %v4940_v60 = vld [vmem:[%s6797_s1 + $0x120] ss:$16 sps:$4 sm:$0xff]  }
  0x8c   : > { %1383 = vmatprep.subr.bf16.mxu0 %v4874_v61  ;;  %1512 = vmatprep.subr.bf16.mxu1 %v4877_v1  ;;  %v4943_v61 = vld [vmem:[%s6797_s1 + $0x128] ss:$16 sps:$4 sm:$0xff]   ;;  %v4946_v1 = vld [vmem:[%s6797_s1 + $0x140] ss:$16 sps:$4 sm:$0xff]  }
  0x8f   : > { %1384 = vmatpush1.bf16.msra.mxu0 %v4872_v2  ;;  %1513 = vmatpush1.bf16.msra.mxu1 %v4875_v4  ;;  %v4949_v2 = vld [vmem:[%s6797_s1 + $0x148] ss:$16 sps:$4 sm:$0xff]   ;;  %v4954_v4 = vld [vmem:[%s6797_s1 + $0x164] ss:$16 sps:$4 sm:$0xff]  }
  0x90   : > { %1385 = vmatprep.subr.bf16.mxu0 %v4880_v6  ;;  %1514 = vmatprep.subr.bf16.mxu1 %v4883_v10  ;;  %v4957_v6 = vld [vmem:[%s6797_s1 + $0x16c] ss:$16 sps:$4 sm:$0xff]  }
  0x91   : > { %v4963_v10 = vld [vmem:[%s6797_s1 + $0x18c] ss:$16 sps:$4 sm:$0xff]  }
  0x93   : > { %1386 = vmatpush1.bf16.msra.mxu0 %v4878_v11  ;;  %1515 = vmatpush1.bf16.msra.mxu1 %v4881_v12  ;;  %v4958_v11 = vld [vmem:[%s6797_s1 + $0x180] ss:$16 sps:$4 sm:$0xff]   ;;  %v4961_v12 = vld [vmem:[%s6797_s1 + $0x188] ss:$16 sps:$4 sm:$0xff]  }
  0x94   : > { %2277 = vmatprep.subr.bf16.mxu0 %v4886_v13  ;;  %2406 = vmatprep.subr.bf16.mxu1 %v4889_v16  ;;  %v4966_v13 = vld [vmem:[%s6797_s1 + $0x1a4] ss:$16 sps:$4 sm:$0xff]   ;;  %v4967_v16 = vld [vmem:[%s6797_s1 + $0x1a8] ss:$16 sps:$4 sm:$0xff]  }
  0x96   : > { %4132 = vmatmul.mubr.msk.bf16.vlgmr.msra.gmra.mrb[0].mxu0 %vm1289_vm1, %v564_v19  ;;  %4133 = vmatmul.mubr.msk.bf16.vlgmr.msra.gmra.mrb[0].mxu1 %vm1289_vm1, %v564_v19  ;;  %v4970_v19 = vld [vmem:[%s6797_s1 + $0x1c0] ss:$16 sps:$4 sm:$0xff]  }
  0x97   : > { %2278 = vmatpush1.bf16.msra.mxu0 %v4884_v17  ;;  %2407 = vmatpush1.bf16.msra.mxu1 %v4887_v18  ;;  %v4972_v17 = vld [vmem:[%s6797_s1 + $0x1c4] ss:$16 sps:$4 sm:$0xff]   ;;  %v4975_v18 = vld [vmem:[%s6797_s1 + $0x1cc] ss:$16 sps:$4 sm:$0xff]  }
  0x98   : > { %2279 = vmatprep.subr.bf16.mxu0 %v4894_v20  ;;  %2408 = vmatprep.subr.bf16.mxu1 %v4897_v21  ;;  %v4973_v20 = vld [vmem:[%s6797_s1 + $0x1c8] ss:$16 sps:$4 sm:$0xff]   ;;  %v4978_v21 = vld [vmem:[%s6797_s1 + $0x1e4] ss:$16 sps:$4 sm:$0xff]  }
  0x99   : > { %2309 = vmatprep.mubr.bf16.mxu0 %v5526_v52  ;;  %2438 = vmatprep.mubr.bf16.mxu1 %v5526_v52  ;;  %v4909_v52 = vld [vmem:[%s6797_s1 + $0x6c] ss:$16 sps:$4 sm:$0xff]  }
  0x9b   : > { %2280 = vmatpush1.bf16.msra.mxu0 %v4892_v22  ;;  %2409 = vmatpush1.bf16.msra.mxu1 %v4895_v23  ;;  %v4981_v22 = vld [vmem:[%s6797_s1 + $0x1ec] ss:$16 sps:$4 sm:$0xff]   ;;  %v4976_v23 = vld [vmem:[%s6797_s1 + $0x1e0] ss:$16 sps:$4 sm:$0xff]  }
  0x9c   : > { %2281 = vmatprep.subr.bf16.mxu0 %v4900_v24  ;;  %2410 = vmatprep.subr.bf16.mxu1 %v4903_v25  ;;  %v4979_v24 = vld [vmem:[%s6797_s1 + $0x1e8] ss:$16 sps:$4 sm:$0xff]   ;;  %v4984_v25 = vld [vmem:[%s6797_s1 + $0x204] ss:$16 sps:$4 sm:$0xff]  }
  0x9f   : > { %2282 = vmatpush1.bf16.msra.mxu0 %v4898_v27  ;;  %2411 = vmatpush1.bf16.msra.mxu1 %v4901_v28  ;;  %v4987_v27 = vld [vmem:[%s6797_s1 + $0x20c] ss:$16 sps:$4 sm:$0xff]   ;;  %v4982_v28 = vld [vmem:[%s6797_s1 + $0x200] ss:$16 sps:$4 sm:$0xff]  }
  0xa0   : > { %2283 = vmatprep.subr.bf16.mxu0 %v4906_v29  ;;  %2412 = vmatprep.subr.bf16.mxu1 %v4909_v52  ;;  %v4985_v29 = vld [vmem:[%s6797_s1 + $0x208] ss:$16 sps:$4 sm:$0xff]   ;;  %v4990_v52 = vld [vmem:[%s6797_s1 + $0x224] ss:$16 sps:$4 sm:$0xff]  }
  0xa3   : > { %2284 = vmatpush1.bf16.msra.mxu0 %v4904_v30  ;;  %2413 = vmatpush1.bf16.msra.mxu1 %v4907_v32  ;;  %v4993_v30 = vld [vmem:[%s6797_s1 + $0x22c] ss:$16 sps:$4 sm:$0xff]   ;;  %v4988_v32 = vld [vmem:[%s6797_s1 + $0x220] ss:$16 sps:$4 sm:$0xff]  }
  0xa4   : > { %2285 = vmatprep.subr.bf16.mxu0 %v4912_v33  ;;  %2414 = vmatprep.subr.bf16.mxu1 %v4915_v34  ;;  %v4991_v33 = vld [vmem:[%s6797_s1 + $0x228] ss:$16 sps:$4 sm:$0xff]   ;;  %v4996_v34 = vld [vmem:[%s6797_s1 + $0x244] ss:$16 sps:$4 sm:$0xff]  }
  0xa7   : > { %2286 = vmatpush1.bf16.msra.mxu0 %v4910_v35  ;;  %2415 = vmatpush1.bf16.msra.mxu1 %v4913_v36  ;;  %v4994_v35 = vld [vmem:[%s6797_s1 + $0x240] ss:$16 sps:$4 sm:$0xff]   ;;  %v4997_v36 = vld [vmem:[%s6797_s1 + $0x248] ss:$16 sps:$4 sm:$0xff]  }
  0xa8   : > { %2287 = vmatprep.subr.bf16.mxu0 %v4918_v37  ;;  %2416 = vmatprep.subr.bf16.mxu1 %v4921_v38  ;;  %v5002_v37 = vld [vmem:[%s6797_s1 + $0x264] ss:$16 sps:$4 sm:$0xff]   ;;  %v5000_v38 = vld [vmem:[%s6797_s1 + $0x260] ss:$16 sps:$4 sm:$0xff]  }
  0xab   : > { %2288 = vmatpush1.bf16.msra.mxu0 %v4916_v39  ;;  %2417 = vmatpush1.bf16.msra.mxu1 %v4919_v40  ;;  %v5003_v39 = vld [vmem:[%s6797_s1 + $0x268] ss:$16 sps:$4 sm:$0xff]   ;;  %v5008_v40 = vld [vmem:[%s6797_s1 + $0x284] ss:$16 sps:$4 sm:$0xff]  }
  0xac   : > { %2289 = vmatprep.subr.bf16.mxu0 %v4924_v41  ;;  %2418 = vmatprep.subr.bf16.mxu1 %v4927_v42  ;;  %v5011_v41 = vld [vmem:[%s6797_s1 + $0x28c] ss:$16 sps:$4 sm:$0xff]   ;;  %v5006_v42 = vld [vmem:[%s6797_s1 + $0x280] ss:$16 sps:$4 sm:$0xff]  }
  0xaf   : > { %2290 = vmatpush1.bf16.msra.mxu0 %v4922_v43  ;;  %2419 = vmatpush1.bf16.msra.mxu1 %v4925_v44  ;;  %v5009_v43 = vld [vmem:[%s6797_s1 + $0x288] ss:$16 sps:$4 sm:$0xff]   ;;  %v5014_v44 = vld [vmem:[%s6797_s1 + $0x2a4] ss:$16 sps:$4 sm:$0xff]  }
  0xb0   : > { %2291 = vmatprep.subr.bf16.mxu0 %v4930_v45  ;;  %2420 = vmatprep.subr.bf16.mxu1 %v4933_v46  ;;  %v5017_v45 = vld [vmem:[%s6797_s1 + $0x2ac] ss:$16 sps:$4 sm:$0xff]   ;;  %v5012_v46 = vld [vmem:[%s6797_s1 + $0x2a0] ss:$16 sps:$4 sm:$0xff]  }
  0xb3   : > { %2292 = vmatpush1.bf16.msra.mxu0 %v4928_v47  ;;  %2421 = vmatpush1.bf16.msra.mxu1 %v4931_v48  ;;  %v5015_v47 = vld [vmem:[%s6797_s1 + $0x2a8] ss:$16 sps:$4 sm:$0xff]   ;;  %v5020_v48 = vld [vmem:[%s6797_s1 + $0x2c4] ss:$16 sps:$4 sm:$0xff]  }
  0xb4   : > { %2293 = vmatprep.subr.bf16.mxu0 %v4936_v49  ;;  %2422 = vmatprep.subr.bf16.mxu1 %v4939_v50  ;;  %v5023_v49 = vld [vmem:[%s6797_s1 + $0x2cc] ss:$16 sps:$4 sm:$0xff]   ;;  %v5018_v50 = vld [vmem:[%s6797_s1 + $0x2c0] ss:$16 sps:$4 sm:$0xff]  }
  0xb7   : > { %2294 = vmatpush1.bf16.msra.mxu0 %v4934_v51  ;;  %2423 = vmatpush1.bf16.msra.mxu1 %v4937_v55  ;;  %v5021_v51 = vld [vmem:[%s6797_s1 + $0x2c8] ss:$16 sps:$4 sm:$0xff]   ;;  %v5026_v55 = vld [vmem:[%s6797_s1 + $0x2e4] ss:$16 sps:$4 sm:$0xff]  }
  0xb8   : > { %2295 = vmatprep.subr.bf16.mxu0 %v4942_v58  ;;  %2424 = vmatprep.subr.bf16.mxu1 %v4945_v59  ;;  %v5029_v58 = vld [vmem:[%s6797_s1 + $0x2ec] ss:$16 sps:$4 sm:$0xff]   ;;  %v5024_v59 = vld [vmem:[%s6797_s1 + $0x2e0] ss:$16 sps:$4 sm:$0xff]  }
  0xbb   : > { %2296 = vmatpush1.bf16.msra.mxu0 %v4940_v60  ;;  %2425 = vmatpush1.bf16.msra.mxu1 %v4943_v61  ;;  %v5027_v60 = vld [vmem:[%s6797_s1 + $0x2e8] ss:$16 sps:$4 sm:$0xff]   ;;  %v5032_v61 = vld [vmem:[%s6797_s1 + $0x304] ss:$16 sps:$4 sm:$0xff]  }
  0xbc   : > { %2297 = vmatprep.subr.bf16.mxu0 %v4948_v63  ;;  %2426 = vmatprep.subr.bf16.mxu1 %v4951_v0  ;;  %v5035_v63 = vld [vmem:[%s6797_s1 + $0x30c] ss:$16 sps:$4 sm:$0xff]   ;;  %v5030_v0 = vld [vmem:[%s6797_s1 + $0x300] ss:$16 sps:$4 sm:$0xff]  }
  0xbf   : > { %2298 = vmatpush1.bf16.msra.mxu0 %v4946_v1  ;;  %2427 = vmatpush1.bf16.msra.mxu1 %v4949_v2  ;;  %v5033_v1 = vld [vmem:[%s6797_s1 + $0x308] ss:$16 sps:$4 sm:$0xff]   ;;  %v5038_v2 = vld [vmem:[%s6797_s1 + $0x324] ss:$16 sps:$4 sm:$0xff]  }
  0xc0   : > { %2299 = vmatprep.subr.bf16.mxu0 %v4954_v4  ;;  %2428 = vmatprep.subr.bf16.mxu1 %v4957_v6  ;;  %v5041_v4 = vld [vmem:[%s6797_s1 + $0x32c] ss:$16 sps:$4 sm:$0xff]   ;;  %v5036_v6 = vld [vmem:[%s6797_s1 + $0x320] ss:$16 sps:$4 sm:$0xff]  }
  0xc3   : > { %2300 = vmatpush1.bf16.msra.mxu0 %v4952_v7  ;;  %2429 = vmatpush1.bf16.msra.mxu1 %v4955_v8  ;;  %v5039_v7 = vld [vmem:[%s6797_s1 + $0x328] ss:$16 sps:$4 sm:$0xff]   ;;  %v5044_v8 = vld [vmem:[%s6797_s1 + $0x344] ss:$16 sps:$4 sm:$0xff]  }
  0xc4   : > { %2301 = vmatprep.subr.bf16.mxu0 %v4960_v9  ;;  %2430 = vmatprep.subr.bf16.mxu1 %v4963_v10  ;;  %v5047_v9 = vld [vmem:[%s6797_s1 + $0x34c] ss:$16 sps:$4 sm:$0xff]   ;;  %v5042_v10 = vld [vmem:[%s6797_s1 + $0x340] ss:$16 sps:$4 sm:$0xff]  }
  0xc7   : > { %2302 = vmatpush1.bf16.msra.mxu0 %v4958_v11  ;;  %2431 = vmatpush1.bf16.msra.mxu1 %v4961_v12  ;;  %v5045_v11 = vld [vmem:[%s6797_s1 + $0x348] ss:$16 sps:$4 sm:$0xff]   ;;  %v5050_v12 = vld [vmem:[%s6797_s1 + $0x364] ss:$16 sps:$4 sm:$0xff]  }
  0xc8   : > { %2303 = vmatprep.subr.bf16.mxu0 %v4966_v13  ;;  %2432 = vmatprep.subr.bf16.mxu1 %v4969_v14  ;;  %v5053_v13 = vld [vmem:[%s6797_s1 + $0x36c] ss:$16 sps:$4 sm:$0xff]   ;;  %v5048_v14 = vld [vmem:[%s6797_s1 + $0x360] ss:$16 sps:$4 sm:$0xff]  }
  0xcb   : > { %2304 = vmatpush1.bf16.msra.mxu0 %v4964_v15  ;;  %2433 = vmatpush1.bf16.msra.mxu1 %v4967_v16  ;;  %v5051_v15 = vld [vmem:[%s6797_s1 + $0x368] ss:$16 sps:$4 sm:$0xff]   ;;  %v5056_v16 = vld [vmem:[%s6797_s1 + $0x384] ss:$16 sps:$4 sm:$0xff]  }
  0xcc   : > { %2305 = vmatprep.subr.bf16.mxu0 %v4972_v17  ;;  %2434 = vmatprep.subr.bf16.mxu1 %v4975_v18  ;;  %v5059_v17 = vld [vmem:[%s6797_s1 + $0x38c] ss:$16 sps:$4 sm:$0xff]   ;;  %v5054_v18 = vld [vmem:[%s6797_s1 + $0x380] ss:$16 sps:$4 sm:$0xff]  }
  0xcf   : > { %2306 = vmatpush1.bf16.msra.mxu0 %v4970_v19  ;;  %2435 = vmatpush1.bf16.msra.mxu1 %v4973_v20  ;;  %v5057_v19 = vld [vmem:[%s6797_s1 + $0x388] ss:$16 sps:$4 sm:$0xff]   ;;  %v5062_v20 = vld [vmem:[%s6797_s1 + $0x3a4] ss:$16 sps:$4 sm:$0xff]  }
  0xd0   : > { %2307 = vmatprep.subr.bf16.mxu0 %v4978_v21  ;;  %2436 = vmatprep.subr.bf16.mxu1 %v4981_v22  ;;  %v5065_v21 = vld [vmem:[%s6797_s1 + $0x3ac] ss:$16 sps:$4 sm:$0xff]   ;;  %v5060_v22 = vld [vmem:[%s6797_s1 + $0x3a0] ss:$16 sps:$4 sm:$0xff]  }
  0xd3   : > { %2308 = vmatpush1.bf16.msra.mxu0 %v4976_v23  ;;  %2437 = vmatpush1.bf16.msra.mxu1 %v4979_v24  ;;  %v5063_v23 = vld [vmem:[%s6797_s1 + $0x3a8] ss:$16 sps:$4 sm:$0xff]   ;;  %v5068_v24 = vld [vmem:[%s6797_s1 + $0x3c4] ss:$16 sps:$4 sm:$0xff]  }
  0xd4   : > { %2320 = vmatprep.subr.bf16.mxu0 %v4984_v25  ;;  %2449 = vmatprep.subr.bf16.mxu1 %v4987_v27  ;;  %v5071_v25 = vld [vmem:[%s6797_s1 + $0x3cc] ss:$16 sps:$4 sm:$0xff]   ;;  %v5066_v27 = vld [vmem:[%s6797_s1 + $0x3c0] ss:$16 sps:$4 sm:$0xff]  }
  0xd6   : > { %2310 = vmatmul.mubr.bf16.vlgmr.msra.gmra.mrb[0].mxu0 %v5542_v62  ;;  %2439 = vmatmul.mubr.bf16.vlgmr.msra.gmra.mrb[0].mxu1 %v5542_v62  ;;  %v4999_v62 = vld [vmem:[%s6797_s1 + $0x24c] ss:$16 sps:$4 sm:$0xff]  }
  0xd7   : > { %2321 = vmatpush1.bf16.msra.mxu0 %v4982_v28  ;;  %2450 = vmatpush1.bf16.msra.mxu1 %v4985_v29  ;;  %v5069_v28 = vld [vmem:[%s6797_s1 + $0x3c8] ss:$16 sps:$4 sm:$0xff]   ;;  %v5074_v29 = vld [vmem:[%s6797_s1 + $0x3e4] ss:$16 sps:$4 sm:$0xff]  }
  0xd8   : > { %2322 = vmatprep.subr.bf16.mxu0 %v4990_v52  ;;  %2451 = vmatprep.subr.bf16.mxu1 %v4993_v30  ;;  %v5077_v52 = vld [vmem:[%s6797_s1 + $0x3ec] ss:$16 sps:$4 sm:$0xff]   ;;  %v5072_v30 = vld [vmem:[%s6797_s1 + $0x3e0] ss:$16 sps:$4 sm:$0xff]  }
  0xd9   : > { %2352 = vmatprep.mubr.bf16.mxu0 %v5682_v54  ;;  %2481 = vmatprep.mubr.bf16.mxu1 %v5682_v54  ;;  %v5005_v54 = vld [vmem:[%s6797_s1 + $0x26c] ss:$16 sps:$4 sm:$0xff]  }
  0xdb   : > { %2323 = vmatpush1.bf16.msra.mxu0 %v4988_v32  ;;  %2452 = vmatpush1.bf16.msra.mxu1 %v4991_v33  ;;  %v5075_v32 = vld [vmem:[%s6797_s1 + $0x3e8] ss:$16 sps:$4 sm:$0xff]   ;;  %v5080_v33 = vld [vmem:[%s6797_s1 + $0x404] ss:$16 sps:$4 sm:$0xff]  }
  0xdc   : > { %2324 = vmatprep.subr.bf16.mxu0 %v4996_v34  ;;  %2453 = vmatprep.subr.bf16.mxu1 %v4999_v62  ;;  %v5083_v34 = vld [vmem:[%s6797_s1 + $0x40c] ss:$16 sps:$4 sm:$0xff]   ;;  %v5078_v62 = vld [vmem:[%s6797_s1 + $0x400] ss:$16 sps:$4 sm:$0xff]  }
  0xdf   : > { %2325 = vmatpush1.bf16.msra.mxu0 %v4994_v35  ;;  %2454 = vmatpush1.bf16.msra.mxu1 %v4997_v36  ;;  %v5081_v35 = vld [vmem:[%s6797_s1 + $0x408] ss:$16 sps:$4 sm:$0xff]   ;;  %v5086_v36 = vld [vmem:[%s6797_s1 + $0x424] ss:$16 sps:$4 sm:$0xff]  }
  0xe0   : > { %2326 = vmatprep.subr.bf16.mxu0 %v5002_v37  ;;  %2455 = vmatprep.subr.bf16.mxu1 %v5005_v54  ;;  %v5089_v37 = vld [vmem:[%s6797_s1 + $0x42c] ss:$16 sps:$4 sm:$0xff]   ;;  %v5084_v54 = vld [vmem:[%s6797_s1 + $0x420] ss:$16 sps:$4 sm:$0xff]  }
  0xe3   : > { %2327 = vmatpush1.bf16.msra.mxu0 %v5000_v38  ;;  %2456 = vmatpush1.bf16.msra.mxu1 %v5003_v39  ;;  %v5087_v38 = vld [vmem:[%s6797_s1 + $0x428] ss:$16 sps:$4 sm:$0xff]   ;;  %v5092_v39 = vld [vmem:[%s6797_s1 + $0x444] ss:$16 sps:$4 sm:$0xff]  }
  0xe4   : > { %2328 = vmatprep.subr.bf16.mxu0 %v5008_v40  ;;  %2457 = vmatprep.subr.bf16.mxu1 %v5011_v41  ;;  %v5090_v40 = vld [vmem:[%s6797_s1 + $0x440] ss:$16 sps:$4 sm:$0xff]   ;;  %v5093_v41 = vld [vmem:[%s6797_s1 + $0x448] ss:$16 sps:$4 sm:$0xff]  }
  0xe7   : > { %2329 = vmatpush1.bf16.msra.mxu0 %v5006_v42  ;;  %2458 = vmatpush1.bf16.msra.mxu1 %v5009_v43  ;;  %v6303_v42 = vld [vmem:[%s5506_s30] sm:$0xee] }
  0xe8   : > { %2330 = vmatprep.subr.bf16.mxu0 %v5014_v44  ;;  %2459 = vmatprep.subr.bf16.mxu1 %v5017_v45  ;;  %v5098_v43 = vld [vmem:[%s6797_s1 + $0x464] ss:$16 sps:$4 sm:$0xff]   ;;  %v5101_v44 = vld [vmem:[%s6797_s1 + $0x46c] ss:$16 sps:$4 sm:$0xff]  }
  0xe9   : > { %v6312_v45 = vld [vmem:[%s5506_s30 + $0x14] sm:$0xff] }
  0xeb   : > { %2331 = vmatpush1.bf16.msra.mxu0 %v5012_v46  ;;  %2460 = vmatpush1.bf16.msra.mxu1 %v5015_v47  ;;  %v4425_v46 = vcombine.high %v6303_v42, %v6312_v45  ;;  %v5096_v47 = vld [vmem:[%s6797_s1 + $0x460] ss:$16 sps:$4 sm:$0xff]  }
  0xec   : > { %2332 = vmatprep.subr.bf16.mxu0 %v5020_v48  ;;  %2461 = vmatprep.subr.bf16.mxu1 %v5023_v49  ;;  %v5099_v48 = vld [vmem:[%s6797_s1 + $0x468] ss:$16 sps:$4 sm:$0xff]   ;;  %v5104_v49 = vld [vmem:[%s6797_s1 + $0x904] ss:$16 sps:$4 sm:$0xff]  }
  0xef   : > { %2333 = vmatpush1.bf16.msra.mxu0 %v5018_v50  ;;  %2462 = vmatpush1.bf16.msra.mxu1 %v5021_v51  ;;  %v5107_v50 = vld [vmem:[%s6797_s1 + $0x90c] ss:$16 sps:$4 sm:$0xff]   ;;  %v2700_v51 = vrot.slane %v4425_v46, 1  ;;  %v5182_v46 = vld [vmem:[%s6797_s1 + $0xaa4] ss:$16 sps:$4 sm:$0xff]  }
  0xf0   : > { %2334 = vmatprep.subr.bf16.mxu0 %v5026_v55  ;;  %2463 = vmatprep.subr.bf16.mxu1 %v5029_v58  ;;  %v2701_v55 = vrot.slane %v5528_v53, 1  ;;  %v5102_v58 = vld [vmem:[%s6797_s1 + $0x900] ss:$16 sps:$4 sm:$0xff]   ;;  %v5113_v53 = vld [vmem:[%s6797_s1 + $0x92c] ss:$16 sps:$4 sm:$0xff]  }
  0xf3   : > { %2335 = vmatpush1.bf16.msra.mxu0 %v5024_v59  ;;  %2464 = vmatpush1.bf16.msra.mxu1 %v5027_v60  ;;  %v5105_v59 = vld [vmem:[%s6797_s1 + $0x908] ss:$16 sps:$4 sm:$0xff]   ;;  %v5110_v60 = vld [vmem:[%s6797_s1 + $0x924] ss:$16 sps:$4 sm:$0xff]  }
  0xf4   : > { %2336 = vmatprep.subr.bf16.mxu0 %v5032_v61  ;;  %2465 = vmatprep.subr.bf16.mxu1 %v5035_v63  ;;  %v2702_v61 = vsel %vm2696_vm2, %v2700_v51, %v2701_v55  ;;  %v5108_v63 = vld [vmem:[%s6797_s1 + $0x920] ss:$16 sps:$4 sm:$0xff]   ;;  %v5191_v51 = vld [vmem:[%s6797_s1 + $0xacc] ss:$16 sps:$4 sm:$0xff]  }
  0xf5   : > { %v5186_v55 = vld [vmem:[%s6797_s1 + $0xac0] ss:$16 sps:$4 sm:$0xff]  }
  0xf7   : > { %2337 = vmatpush1.bf16.msra.mxu0 %v5030_v0  ;;  %2466 = vmatpush1.bf16.msra.mxu1 %v5033_v1  ;;  %v5111_v0 = vld [vmem:[%s6797_s1 + $0x928] ss:$16 sps:$4 sm:$0xff]   ;;  %v5116_v1 = vld [vmem:[%s6797_s1 + $0x944] ss:$16 sps:$4 sm:$0xff]  }
  0xf8   : > { %2338 = vmatprep.subr.bf16.mxu0 %v5038_v2  ;;  %2467 = vmatprep.subr.bf16.mxu1 %v5041_v4  ;;  %v5114_v2 = vld [vmem:[%s6797_s1 + $0x940] ss:$16 sps:$4 sm:$0xff]   ;;  %v5117_v4 = vld [vmem:[%s6797_s1 + $0x948] ss:$16 sps:$4 sm:$0xff]  }
  0xfb   : > { %2339 = vmatpush1.bf16.msra.mxu0 %v5036_v6  ;;  %2468 = vmatpush1.bf16.msra.mxu1 %v5039_v7  ;;  %v5122_v6 = vld [vmem:[%s6797_s1 + $0x964] ss:$16 sps:$4 sm:$0xff]   ;;  %v5125_v7 = vld [vmem:[%s6797_s1 + $0x96c] ss:$16 sps:$4 sm:$0xff]  }
  0xfc   : > { %2340 = vmatprep.subr.bf16.mxu0 %v5044_v8  ;;  %2469 = vmatprep.subr.bf16.mxu1 %v5047_v9  ;;  %v5120_v8 = vld [vmem:[%s6797_s1 + $0x960] ss:$16 sps:$4 sm:$0xff]   ;;  %v5123_v9 = vld [vmem:[%s6797_s1 + $0x968] ss:$16 sps:$4 sm:$0xff]  }
  0xff   : > { %2341 = vmatpush1.bf16.msra.mxu0 %v5042_v10  ;;  %2470 = vmatpush1.bf16.msra.mxu1 %v5045_v11  ;;  %v5128_v10 = vld [vmem:[%s6797_s1 + $0x984] ss:$16 sps:$4 sm:$0xff]   ;;  %v5131_v11 = vld [vmem:[%s6797_s1 + $0x98c] ss:$16 sps:$4 sm:$0xff]  }
 0x100   : > { %2342 = vmatprep.subr.bf16.mxu0 %v5050_v12  ;;  %2471 = vmatprep.subr.bf16.mxu1 %v5053_v13  ;;  %v5126_v12 = vld [vmem:[%s6797_s1 + $0x980] ss:$16 sps:$4 sm:$0xff]   ;;  %v5129_v13 = vld [vmem:[%s6797_s1 + $0x988] ss:$16 sps:$4 sm:$0xff]  }
 0x103   : > { %2343 = vmatpush1.bf16.msra.mxu0 %v5048_v14  ;;  %2472 = vmatpush1.bf16.msra.mxu1 %v5051_v15  ;;  %v5134_v14 = vld [vmem:[%s6797_s1 + $0x9a4] ss:$16 sps:$4 sm:$0xff]   ;;  %v5137_v15 = vld [vmem:[%s6797_s1 + $0x9ac] ss:$16 sps:$4 sm:$0xff]  }
 0x104   : > { %2344 = vmatprep.subr.bf16.mxu0 %v5056_v16  ;;  %2473 = vmatprep.subr.bf16.mxu1 %v5059_v17  ;;  %v5132_v16 = vld [vmem:[%s6797_s1 + $0x9a0] ss:$16 sps:$4 sm:$0xff]   ;;  %v5135_v17 = vld [vmem:[%s6797_s1 + $0x9a8] ss:$16 sps:$4 sm:$0xff]  }
 0x107   : > { %2345 = vmatpush1.bf16.msra.mxu0 %v5054_v18  ;;  %2474 = vmatpush1.bf16.msra.mxu1 %v5057_v19  ;;  %v5140_v18 = vld [vmem:[%s6797_s1 + $0x9c4] ss:$16 sps:$4 sm:$0xff]   ;;  %v5143_v19 = vld [vmem:[%s6797_s1 + $0x9cc] ss:$16 sps:$4 sm:$0xff]  }
 0x108   : > { %2346 = vmatprep.subr.bf16.mxu0 %v5062_v20  ;;  %2475 = vmatprep.subr.bf16.mxu1 %v5065_v21  ;;  %v5138_v20 = vld [vmem:[%s6797_s1 + $0x9c0] ss:$16 sps:$4 sm:$0xff]   ;;  %v5141_v21 = vld [vmem:[%s6797_s1 + $0x9c8] ss:$16 sps:$4 sm:$0xff]  }
 0x10b   : > { %2347 = vmatpush1.bf16.msra.mxu0 %v5060_v22  ;;  %2476 = vmatpush1.bf16.msra.mxu1 %v5063_v23  ;;  %v5146_v22 = vld [vmem:[%s6797_s1 + $0x9e4] ss:$16 sps:$4 sm:$0xff]   ;;  %v5149_v23 = vld [vmem:[%s6797_s1 + $0x9ec] ss:$16 sps:$4 sm:$0xff]  }
 0x10c   : > { %2348 = vmatprep.subr.bf16.mxu0 %v5068_v24  ;;  %2477 = vmatprep.subr.bf16.mxu1 %v5071_v25  ;;  %v5144_v24 = vld [vmem:[%s6797_s1 + $0x9e0] ss:$16 sps:$4 sm:$0xff]   ;;  %v5147_v25 = vld [vmem:[%s6797_s1 + $0x9e8] ss:$16 sps:$4 sm:$0xff]  }
 0x10f   : > { %2349 = vmatpush1.bf16.msra.mxu0 %v5066_v27  ;;  %2478 = vmatpush1.bf16.msra.mxu1 %v5069_v28  ;;  %v5152_v27 = vld [vmem:[%s6797_s1 + $0xa04] ss:$16 sps:$4 sm:$0xff]   ;;  %v5155_v28 = vld [vmem:[%s6797_s1 + $0xa0c] ss:$16 sps:$4 sm:$0xff]  }
 0x110   : > { %2350 = vmatprep.subr.bf16.mxu0 %v5074_v29  ;;  %2479 = vmatprep.subr.bf16.mxu1 %v5077_v52  ;;  %v5150_v29 = vld [vmem:[%s6797_s1 + $0xa00] ss:$16 sps:$4 sm:$0xff]   ;;  %v5153_v52 = vld [vmem:[%s6797_s1 + $0xa08] ss:$16 sps:$4 sm:$0xff]  }
 0x113   : > { %2351 = vmatpush1.bf16.msra.mxu0 %v5072_v30  ;;  %2480 = vmatpush1.bf16.msra.mxu1 %v5075_v32  ;;  %v5158_v30 = vld [vmem:[%s6797_s1 + $0xa24] ss:$16 sps:$4 sm:$0xff]   ;;  %v5161_v32 = vld [vmem:[%s6797_s1 + $0xa2c] ss:$16 sps:$4 sm:$0xff]  }
 0x114   : > { %2363 = vmatprep.subr.bf16.mxu0 %v5080_v33  ;;  %2492 = vmatprep.subr.bf16.mxu1 %v5083_v34  ;;  %v5156_v33 = vld [vmem:[%s6797_s1 + $0xa20] ss:$16 sps:$4 sm:$0xff]   ;;  %v5159_v34 = vld [vmem:[%s6797_s1 + $0xa28] ss:$16 sps:$4 sm:$0xff]  }
 0x116   : > { %2353 = vmatmul.mubr.bf16.vlgmr.msra.gmra.mrb[0].mxu0 %v5769_v26  ;;  %2482 = vmatmul.mubr.bf16.vlgmr.msra.gmra.mrb[0].mxu1 %v5769_v26  ;;  %v5095_v26 = vld [vmem:[%s6797_s1 + $0x44c] ss:$16 sps:$4 sm:$0xff]  }
 0x117   : > { %2364 = vmatpush1.bf16.msra.mxu0 %v5078_v62  ;;  %2493 = vmatpush1.bf16.msra.mxu1 %v5081_v35  ;;  %v5164_v62 = vld [vmem:[%s6797_s1 + $0xa44] ss:$16 sps:$4 sm:$0xff]   ;;  %v5167_v35 = vld [vmem:[%s6797_s1 + $0xa4c] ss:$16 sps:$4 sm:$0xff]  }
 0x118   : > { %2365 = vmatprep.subr.bf16.mxu0 %v5086_v36  ;;  %2494 = vmatprep.subr.bf16.mxu1 %v5089_v37  ;;  %v5162_v36 = vld [vmem:[%s6797_s1 + $0xa40] ss:$16 sps:$4 sm:$0xff]   ;;  %v5165_v37 = vld [vmem:[%s6797_s1 + $0xa48] ss:$16 sps:$4 sm:$0xff]  }
 0x119   : > { %2395 = vmatprep.mubr.bf16.mxu0 %v5335_v3  ;;  %2524 = vmatprep.mubr.bf16.mxu1 %v5335_v3 }
 0x11b   : > { %2366 = vmatpush1.bf16.msra.mxu0 %v5084_v54  ;;  %2495 = vmatpush1.bf16.msra.mxu1 %v5087_v38  ;;  %v5170_v54 = vld [vmem:[%s6797_s1 + $0xa64] ss:$16 sps:$4 sm:$0xff]   ;;  %v5173_v38 = vld [vmem:[%s6797_s1 + $0xa6c] ss:$16 sps:$4 sm:$0xff]  }
 0x11c   : > { %2367 = vmatprep.subr.bf16.mxu0 %v5092_v39  ;;  %2496 = vmatprep.subr.bf16.mxu1 %v5095_v26  ;;  %v5168_v39 = vld [vmem:[%s6797_s1 + $0xa60] ss:$16 sps:$4 sm:$0xff]   ;;  %v5171_v26 = vld [vmem:[%s6797_s1 + $0xa68] ss:$16 sps:$4 sm:$0xff]  }
 0x11f   : > { %2368 = vmatpush1.bf16.msra.mxu0 %v5090_v40  ;;  %2497 = vmatpush1.bf16.msra.mxu1 %v5093_v41  ;;  %v5176_v40 = vld [vmem:[%s6797_s1 + $0xa84] ss:$16 sps:$4 sm:$0xff]   ;;  %v5179_v41 = vld [vmem:[%s6797_s1 + $0xa8c] ss:$16 sps:$4 sm:$0xff]  }
 0x120   : > { %2369 = vmatprep.subr.bf16.mxu0 %v5098_v43  ;;  %2498 = vmatprep.subr.bf16.mxu1 %v5101_v44  ;;  %v5174_v43 = vld [vmem:[%s6797_s1 + $0xa80] ss:$16 sps:$4 sm:$0xff]   ;;  %v5177_v44 = vld [vmem:[%s6797_s1 + $0xa88] ss:$16 sps:$4 sm:$0xff]  }
 0x123   : > { %2370 = vmatpush1.bf16.msra.mxu0 %v5096_v47  ;;  %2499 = vmatpush1.bf16.msra.mxu1 %v5099_v48  ;;  %v5185_v47 = vld [vmem:[%s6797_s1 + $0xaac] ss:$16 sps:$4 sm:$0xff]   ;;  %v5180_v48 = vld [vmem:[%s6797_s1 + $0xaa0] ss:$16 sps:$4 sm:$0xff]  }
 0x124   : > { %3439 = vmatprep.subr.bf16.mxu0 %v5104_v49  ;;  %3568 = vmatprep.subr.bf16.mxu1 %v5107_v50  ;;  %v5183_v49 = vld [vmem:[%s6797_s1 + $0xaa8] ss:$16 sps:$4 sm:$0xff]   ;;  %v5188_v50 = vld [vmem:[%s6797_s1 + $0xac4] ss:$16 sps:$4 sm:$0xff]  }
 0x126   : > { %4278 = vmatmul.mubr.msk.bf16.vlgmr.msra.gmra.mrb[0].mxu0 %vm1289_vm1, %v5829_v56  ;;  %4279 = vmatmul.mubr.msk.bf16.vlgmr.msra.gmra.mrb[0].mxu1 %vm1289_vm1, %v5829_v56  ;;  %v5119_v56 = vld [vmem:[%s6797_s1 + $0x94c] ss:$16 sps:$4 sm:$0xff]  }
 0x127   : > { %3440 = vmatpush1.bf16.msra.mxu0 %v5102_v58  ;;  %3569 = vmatpush1.bf16.msra.mxu1 %v5105_v59  ;;  %v5189_v58 = vld [vmem:[%s6797_s1 + $0xac8] ss:$16 sps:$4 sm:$0xff]   ;;  %v4424_v59 = vcombine.low %v6303_v42, %v6312_v45  ;;  %v5192_v42 = vld [vmem:[%s6797_s1 + $0xae0] ss:$16 sps:$4 sm:$0xff]  }
 0x128   : > { %3441 = vmatprep.subr.bf16.mxu0 %v5110_v60  ;;  %3570 = vmatprep.subr.bf16.mxu1 %v5113_v53  ;;  %v6511_v60 = vld [vmem:[%s5506_s30 + $0x8] sm:$0xee]  ;;  %v5194_v53 = vld [vmem:[%s6797_s1 + $0xae4] ss:$16 sps:$4 sm:$0xff]  }
 0x129   : > { %3471 = vmatprep.mubr.bf16.mxu0 %v2702_v61  ;;  %3600 = vmatprep.mubr.bf16.mxu1 %v2702_v61  ;;  %v5197_v61 = vld [vmem:[%s6797_s1 + $0xaec] ss:$16 sps:$4 sm:$0xff]   ;;  %v5195_v45 = vld [vmem:[%s6797_s1 + $0xae8] ss:$16 sps:$4 sm:$0xff]  }
 0x12b   : > { %3442 = vmatpush1.bf16.msra.mxu0 %v5108_v63  ;;  %3571 = vmatpush1.bf16.msra.mxu1 %v5111_v0  ;;  %v6520_v63 = vld [vmem:[%s5506_s30 + $0x1c] sm:$0xff] }
 0x12c   : > { %3443 = vmatprep.subr.bf16.mxu0 %v5116_v1  ;;  %3572 = vmatprep.subr.bf16.mxu1 %v5119_v56  ;;  %v4427_v0 = vcombine.high %v6511_v60, %v6520_v63  ;;  %v2697_v1 = vrot.slane %v4424_v59, 1  ;;  %v2698_v56 = vrot.slane %v5557_v5, 1  ;;  %v5202_v5 = vld [vmem:[%s6797_s1 + $0xb08] ss:$16 sps:$4 sm:$0xff]   ;;  %v5274_v59 = vld [vmem:[%s6797_s1 + $0xc84] ss:$16 sps:$4 sm:$0xff]  }
 0x12f   : > { %3444 = vmatpush1.bf16.msra.mxu0 %v5114_v2  ;;  %3573 = vmatpush1.bf16.msra.mxu1 %v5117_v4  ;;  %v5201_v2 = vld [vmem:[%s6797_s1 + $0xb04] ss:$16 sps:$4 sm:$0xff]   ;;  %v5204_v4 = vld [vmem:[%s6797_s1 + $0xb0c] ss:$16 sps:$4 sm:$0xff]  }
 0x130   : > { %3445 = vmatprep.subr.bf16.mxu0 %v5122_v6  ;;  %3574 = vmatprep.subr.bf16.mxu1 %v5125_v7  ;;  %v2706_v6 = vrot.slane %v4427_v0, 1  ;;  %v2707_v7 = vrot.slane %v5692_v57, 1  ;;  %v5211_v57 = vld [vmem:[%s6797_s1 + $0xb2c] ss:$16 sps:$4 sm:$0xff]   ;;  %v5275_v0 = vld [vmem:[%s6797_s1 + $0xc88] ss:$16 sps:$4 sm:$0xff]  }
 0x133   : > { %3446 = vmatpush1.bf16.msra.mxu0 %v5120_v8  ;;  %3575 = vmatpush1.bf16.msra.mxu1 %v5123_v9  ;;  %v5199_v8 = vld [vmem:[%s6797_s1 + $0xb00] ss:$16 sps:$4 sm:$0xff]   ;;  %v2699_v9 = vsel %vm2696_vm2, %v2697_v1, %v2698_v56  ;;  %v5281_v56 = vld [vmem:[%s6797_s1 + $0xca8] ss:$16 sps:$4 sm:$0xff]  }
 0x134   : > { %3447 = vmatprep.subr.bf16.mxu0 %v5128_v10  ;;  %3576 = vmatprep.subr.bf16.mxu1 %v5131_v11  ;;  %v5208_v10 = vld [vmem:[%s6797_s1 + $0xb24] ss:$16 sps:$4 sm:$0xff]   ;;  %v2708_v11 = vsel %vm2696_vm2, %v2706_v6, %v2707_v7  ;;  %v5278_v1 = vld [vmem:[%s6797_s1 + $0xca0] ss:$16 sps:$4 sm:$0xff]   ;;  %v5287_v7 = vld [vmem:[%s6797_s1 + $0xcc8] ss:$16 sps:$4 sm:$0xff]  }
 0x135   : > { %v5284_v6 = vld [vmem:[%s6797_s1 + $0xcc0] ss:$16 sps:$4 sm:$0xff]  }
 0x137   : > { %3448 = vmatpush1.bf16.msra.mxu0 %v5126_v12  ;;  %3577 = vmatpush1.bf16.msra.mxu1 %v5129_v13  ;;  %v5206_v12 = vld [vmem:[%s6797_s1 + $0xb20] ss:$16 sps:$4 sm:$0xff]   ;;  %v5209_v13 = vld [vmem:[%s6797_s1 + $0xb28] ss:$16 sps:$4 sm:$0xff]  }
 0x138   : > { %3449 = vmatprep.subr.bf16.mxu0 %v5134_v14  ;;  %3578 = vmatprep.subr.bf16.mxu1 %v5137_v15  ;;  %v5214_v14 = vld [vmem:[%s6797_s1 + $0xb44] ss:$16 sps:$4 sm:$0xff]   ;;  %v5217_v15 = vld [vmem:[%s6797_s1 + $0xb4c] ss:$16 sps:$4 sm:$0xff]  }
 0x13b   : > { %3450 = vmatpush1.bf16.msra.mxu0 %v5132_v16  ;;  %3579 = vmatpush1.bf16.msra.mxu1 %v5135_v17  ;;  %v5212_v16 = vld [vmem:[%s6797_s1 + $0xb40] ss:$16 sps:$4 sm:$0xff]   ;;  %v5215_v17 = vld [vmem:[%s6797_s1 + $0xb48] ss:$16 sps:$4 sm:$0xff]  }
 0x13c   : > { %3451 = vmatprep.subr.bf16.mxu0 %v5140_v18  ;;  %3580 = vmatprep.subr.bf16.mxu1 %v5143_v19  ;;  %v5220_v18 = vld [vmem:[%s6797_s1 + $0xb64] ss:$16 sps:$4 sm:$0xff]   ;;  %v5223_v19 = vld [vmem:[%s6797_s1 + $0xb6c] ss:$16 sps:$4 sm:$0xff]  }
 0x13f   : > { %3452 = vmatpush1.bf16.msra.mxu0 %v5138_v20  ;;  %3581 = vmatpush1.bf16.msra.mxu1 %v5141_v21  ;;  %v5218_v20 = vld [vmem:[%s6797_s1 + $0xb60] ss:$16 sps:$4 sm:$0xff]   ;;  %v5221_v21 = vld [vmem:[%s6797_s1 + $0xb68] ss:$16 sps:$4 sm:$0xff]  }
 0x140   : > { %3453 = vmatprep.subr.bf16.mxu0 %v5146_v22  ;;  %3582 = vmatprep.subr.bf16.mxu1 %v5149_v23  ;;  %v5226_v22 = vld [vmem:[%s6797_s1 + $0xb84] ss:$16 sps:$4 sm:$0xff]   ;;  %v5229_v23 = vld [vmem:[%s6797_s1 + $0xb8c] ss:$16 sps:$4 sm:$0xff]  }
 0x143   : > { %3454 = vmatpush1.bf16.msra.mxu0 %v5144_v24  ;;  %3583 = vmatpush1.bf16.msra.mxu1 %v5147_v25  ;;  %v5224_v24 = vld [vmem:[%s6797_s1 + $0xb80] ss:$16 sps:$4 sm:$0xff]   ;;  %v5227_v25 = vld [vmem:[%s6797_s1 + $0xb88] ss:$16 sps:$4 sm:$0xff]  }
 0x144   : > { %3455 = vmatprep.subr.bf16.mxu0 %v5152_v27  ;;  %3584 = vmatprep.subr.bf16.mxu1 %v5155_v28  ;;  %v5232_v27 = vld [vmem:[%s6797_s1 + $0xba4] ss:$16 sps:$4 sm:$0xff]   ;;  %v5235_v28 = vld [vmem:[%s6797_s1 + $0xbac] ss:$16 sps:$4 sm:$0xff]  }
 0x147   : > { %3456 = vmatpush1.bf16.msra.mxu0 %v5150_v29  ;;  %3585 = vmatpush1.bf16.msra.mxu1 %v5153_v52  ;;  %v5230_v29 = vld [vmem:[%s6797_s1 + $0xba0] ss:$16 sps:$4 sm:$0xff]   ;;  %v5233_v52 = vld [vmem:[%s6797_s1 + $0xba8] ss:$16 sps:$4 sm:$0xff]  }
 0x148   : > { %3457 = vmatprep.subr.bf16.mxu0 %v5158_v30  ;;  %3586 = vmatprep.subr.bf16.mxu1 %v5161_v32  ;;  %v5238_v30 = vld [vmem:[%s6797_s1 + $0xbc4] ss:$16 sps:$4 sm:$0xff]   ;;  %v5241_v32 = vld [vmem:[%s6797_s1 + $0xbcc] ss:$16 sps:$4 sm:$0xff]  }
 0x14b   : > { %3458 = vmatpush1.bf16.msra.mxu0 %v5156_v33  ;;  %3587 = vmatpush1.bf16.msra.mxu1 %v5159_v34  ;;  %v5236_v33 = vld [vmem:[%s6797_s1 + $0xbc0] ss:$16 sps:$4 sm:$0xff]   ;;  %v5239_v34 = vld [vmem:[%s6797_s1 + $0xbc8] ss:$16 sps:$4 sm:$0xff]  }
 0x14c   : > { %3459 = vmatprep.subr.bf16.mxu0 %v5164_v62  ;;  %3588 = vmatprep.subr.bf16.mxu1 %v5167_v35  ;;  %v5244_v62 = vld [vmem:[%s6797_s1 + $0xbe4] ss:$16 sps:$4 sm:$0xff]   ;;  %v5247_v35 = vld [vmem:[%s6797_s1 + $0xbec] ss:$16 sps:$4 sm:$0xff]  }
 0x14f   : > { %3460 = vmatpush1.bf16.msra.mxu0 %v5162_v36  ;;  %3589 = vmatpush1.bf16.msra.mxu1 %v5165_v37  ;;  %v5242_v36 = vld [vmem:[%s6797_s1 + $0xbe0] ss:$16 sps:$4 sm:$0xff]   ;;  %v5245_v37 = vld [vmem:[%s6797_s1 + $0xbe8] ss:$16 sps:$4 sm:$0xff]  }
 0x150   : > { %3461 = vmatprep.subr.bf16.mxu0 %v5170_v54  ;;  %3590 = vmatprep.subr.bf16.mxu1 %v5173_v38  ;;  %v5250_v54 = vld [vmem:[%s6797_s1 + $0xc04] ss:$16 sps:$4 sm:$0xff]   ;;  %v5253_v38 = vld [vmem:[%s6797_s1 + $0xc0c] ss:$16 sps:$4 sm:$0xff]  }
 0x153   : > { %3462 = vmatpush1.bf16.msra.mxu0 %v5168_v39  ;;  %3591 = vmatpush1.bf16.msra.mxu1 %v5171_v26  ;;  %v5248_v39 = vld [vmem:[%s6797_s1 + $0xc00] ss:$16 sps:$4 sm:$0xff]   ;;  %v5251_v26 = vld [vmem:[%s6797_s1 + $0xc08] ss:$16 sps:$4 sm:$0xff]  }
 0x154   : > { %3463 = vmatprep.subr.bf16.mxu0 %v5176_v40  ;;  %3592 = vmatprep.subr.bf16.mxu1 %v5179_v41  ;;  %v5256_v40 = vld [vmem:[%s6797_s1 + $0xc24] ss:$16 sps:$4 sm:$0xff]   ;;  %v5259_v41 = vld [vmem:[%s6797_s1 + $0xc2c] ss:$16 sps:$4 sm:$0xff]  }
 0x157   : > { %3464 = vmatpush1.bf16.msra.mxu0 %v5174_v43  ;;  %3593 = vmatpush1.bf16.msra.mxu1 %v5177_v44  ;;  %v5254_v43 = vld [vmem:[%s6797_s1 + $0xc20] ss:$16 sps:$4 sm:$0xff]   ;;  %v5257_v44 = vld [vmem:[%s6797_s1 + $0xc28] ss:$16 sps:$4 sm:$0xff]  }
 0x158   : > { %3465 = vmatprep.subr.bf16.mxu0 %v5182_v46  ;;  %3594 = vmatprep.subr.bf16.mxu1 %v5185_v47  ;;  %v5262_v46 = vld [vmem:[%s6797_s1 + $0xc44] ss:$16 sps:$4 sm:$0xff]   ;;  %v5265_v47 = vld [vmem:[%s6797_s1 + $0xc4c] ss:$16 sps:$4 sm:$0xff]  }
 0x15b   : > { %3466 = vmatpush1.bf16.msra.mxu0 %v5180_v48  ;;  %3595 = vmatpush1.bf16.msra.mxu1 %v5183_v49  ;;  %v5260_v48 = vld [vmem:[%s6797_s1 + $0xc40] ss:$16 sps:$4 sm:$0xff]   ;;  %v5263_v49 = vld [vmem:[%s6797_s1 + $0xc48] ss:$16 sps:$4 sm:$0xff]  }
 0x15c   : > { %3467 = vmatprep.subr.bf16.mxu0 %v5188_v50  ;;  %3596 = vmatprep.subr.bf16.mxu1 %v5191_v51  ;;  %v5268_v50 = vld [vmem:[%s6797_s1 + $0xc64] ss:$16 sps:$4 sm:$0xff]   ;;  %v5271_v51 = vld [vmem:[%s6797_s1 + $0xc6c] ss:$16 sps:$4 sm:$0xff]  }
 0x15f   : > { %3468 = vmatpush1.bf16.msra.mxu0 %v5186_v55  ;;  %3597 = vmatpush1.bf16.msra.mxu1 %v5189_v58  ;;  %v5266_v55 = vld [vmem:[%s6797_s1 + $0xc60] ss:$16 sps:$4 sm:$0xff]   ;;  %v5269_v58 = vld [vmem:[%s6797_s1 + $0xc68] ss:$16 sps:$4 sm:$0xff]  }
 0x160   : > { %3469 = vmatprep.subr.bf16.mxu0 %v5194_v53  ;;  %3598 = vmatprep.subr.bf16.mxu1 %v5197_v61  ;;  %v5277_v53 = vld [vmem:[%s6797_s1 + $0xc8c] ss:$16 sps:$4 sm:$0xff]   ;;  %v5272_v61 = vld [vmem:[%s6797_s1 + $0xc80] ss:$16 sps:$4 sm:$0xff]  }
 0x163   : > { %3470 = vmatpush1.bf16.msra.mxu0 %v5192_v42  ;;  %3599 = vmatpush1.bf16.msra.mxu1 %v5195_v45  ;;  %v5280_v42 = vld [vmem:[%s6797_s1 + $0xca4] ss:$16 sps:$4 sm:$0xff]   ;;  %v5283_v45 = vld [vmem:[%s6797_s1 + $0xcac] ss:$16 sps:$4 sm:$0xff]  }
 0x164   : > { %3482 = vmatprep.subr.bf16.mxu0 %v5201_v2  ;;  %3611 = vmatprep.subr.bf16.mxu1 %v5204_v4  ;;  %v5286_v2 = vld [vmem:[%s6797_s1 + $0xcc4] ss:$16 sps:$4 sm:$0xff]   ;;  %v5289_v4 = vld [vmem:[%s6797_s1 + $0xccc] ss:$16 sps:$4 sm:$0xff]  }
 0x166   : > { %3472 = vmatmul.mubr.bf16.vlgmr.msra.gmra.mrb[0].mxu0 %v2699_v9  ;;  %3601 = vmatmul.mubr.bf16.vlgmr.msra.gmra.mrb[0].mxu1 %v2699_v9  ;;  %v5295_v9 = vld [vmem:[%s6797_s1 + $0xcec] ss:$16 sps:$4 sm:$0xff]  }
 0x167   : > { %3483 = vmatpush1.bf16.msra.mxu0 %v5199_v8  ;;  %3612 = vmatpush1.bf16.msra.mxu1 %v5202_v5  ;;  %v4426_v8 = vcombine.low %v6511_v60, %v6520_v63  ;;  %v5292_v5 = vld [vmem:[%s6797_s1 + $0xce4] ss:$16 sps:$4 sm:$0xff]   ;;  %v5293_v60 = vld [vmem:[%s6797_s1 + $0xce8] ss:$16 sps:$4 sm:$0xff]  }
 0x168   : > { %3484 = vmatprep.subr.bf16.mxu0 %v5208_v10  ;;  %3613 = vmatprep.subr.bf16.mxu1 %v5211_v57  ;;  %v5290_v10 = vld [vmem:[%s6797_s1 + $0xce0] ss:$16 sps:$4 sm:$0xff]   ;;  %v2704_v57 = vrot.slane %v5785_v31, 1  ;;  %v5300_v31 = vld [vmem:[%s6797_s1 + $0xd08] ss:$16 sps:$4 sm:$0xff]  }
 0x169   : > { %3514 = vmatprep.mubr.bf16.mxu0 %v2708_v11  ;;  %3643 = vmatprep.mubr.bf16.mxu1 %v2708_v11  ;;  %v2703_v63 = vrot.slane %v4426_v8, 1  ;;  %v5299_v11 = vld [vmem:[%s6797_s1 + $0xd04] ss:$16 sps:$4 sm:$0xff]  }
 0x16b   : > { %3485 = vmatpush1.bf16.msra.mxu0 %v5206_v12  ;;  %3614 = vmatpush1.bf16.msra.mxu1 %v5209_v13  ;;  %v5302_v12 = vld [vmem:[%s6797_s1 + $0xd0c] ss:$16 sps:$4 sm:$0xff]   ;;  %v5297_v13 = vld [vmem:[%s6797_s1 + $0xd00] ss:$16 sps:$4 sm:$0xff]  }
 0x16c   : > { %3486 = vmatprep.subr.bf16.mxu0 %v5214_v14  ;;  %3615 = vmatprep.subr.bf16.mxu1 %v5217_v15  ;;  %v2705_v14 = vsel %vm2696_vm2, %v2703_v63, %v2704_v57  ;;  %v5306_v15 = vld [vmem:[%s6797_s1 + $0xd24] ss:$16 sps:$4 sm:$0xff]  }
 0x16f   : > { %3487 = vmatpush1.bf16.msra.mxu0 %v5212_v16  ;;  %3616 = vmatpush1.bf16.msra.mxu1 %v5215_v17  ;;  %v5309_v16 = vld [vmem:[%s6797_s1 + $0xd2c] ss:$16 sps:$4 sm:$0xff]   ;;  %v5304_v17 = vld [vmem:[%s6797_s1 + $0xd20] ss:$16 sps:$4 sm:$0xff]  }
 0x170   : > { %3488 = vmatprep.subr.bf16.mxu0 %v5220_v18  ;;  %3617 = vmatprep.subr.bf16.mxu1 %v5223_v19  ;;  %v5307_v18 = vld [vmem:[%s6797_s1 + $0xd28] ss:$16 sps:$4 sm:$0xff]   ;;  %v5312_v19 = vld [vmem:[%s6797_s1 + $0xd44] ss:$16 sps:$4 sm:$0xff]  }
 0x173   : > { %3489 = vmatpush1.bf16.msra.mxu0 %v5218_v20  ;;  %3618 = vmatpush1.bf16.msra.mxu1 %v5221_v21  ;;  %v5315_v20 = vld [vmem:[%s6797_s1 + $0xd4c] ss:$16 sps:$4 sm:$0xff]   ;;  %v2537_v21 = vld [vmem:[%s5506_s30 + $0x10] sm:$0xe] }
 0x174   : > { %3490 = vmatprep.subr.bf16.mxu0 %v5226_v22  ;;  %3619 = vmatprep.subr.bf16.mxu1 %v5229_v23  ;;  %v5310_v22 = vld [vmem:[%s6797_s1 + $0xd40] ss:$16 sps:$4 sm:$0xff]   ;;  %v5313_v23 = vld [vmem:[%s6797_s1 + $0xd48] ss:$16 sps:$4 sm:$0xff]  }
 0x177   : > { %3491 = vmatpush1.bf16.msra.mxu0 %v5224_v24  ;;  %3620 = vmatpush1.bf16.msra.mxu1 %v5227_v25  ;;  %v5325_v24 = vld [vmem:[%s5506_s30 + $0x24] sm:$0xf] }
 0x178   : > { %3492 = vmatprep.subr.bf16.mxu0 %v5232_v27  ;;  %3621 = vmatprep.subr.bf16.mxu1 %v5235_v28  ;;  %v4428_v25 = vcombine.low %v2537_v21, %v5325_v24  ;;  %v5318_v27 = vld [vmem:[%s6797_s1 + $0xd64] ss:$16 sps:$4 sm:$0xff]   ;;  %v5316_v28 = vld [vmem:[%s6797_s1 + $0xd60] ss:$16 sps:$4 sm:$0xff]  }
 0x17b   : > { %3493 = vmatpush1.bf16.msra.mxu0 %v5230_v29  ;;  %3622 = vmatpush1.bf16.msra.mxu1 %v5233_v52  ;;  %v5319_v29 = vld [vmem:[%s6797_s1 + $0xd68] ss:$16 sps:$4 sm:$0xff]   ;;  %v2709_v52 = vrot.slane %v4428_v25, 1 }
 0x17c   : > { %3494 = vmatprep.subr.bf16.mxu0 %v5238_v30  ;;  %3623 = vmatprep.subr.bf16.mxu1 %v5241_v32  ;;  %v5326_v30 = vld [vmem:[%s5506_s30 + $0x38] ss:$0 sps:$4 sm:$0x11]   ;;  %s4581_s30 = sshll.u32 %s6801_s13, 5 }
 0x17d   : > { %v2710_v32 = vrot.slane %v5326_v30, 1  ;;  %s170_s18 = scalar_lea.vmem %s6799_s3, %s4581_s30 }
 0x17f   : > { %3495 = vmatpush1.bf16.msra.mxu0 %v5236_v33  ;;  %3624 = vmatpush1.bf16.msra.mxu1 %v5239_v34  ;;  %v2711_v33 = vsel %vm2696_vm2, %v2709_v52, %v2710_v32  ;;  %v3707_v34 = vlaneseq }
 0x180   : > { %3496 = vmatprep.subr.bf16.mxu0 %v5244_v62  ;;  %3625 = vmatprep.subr.bf16.mxu1 %v5247_v35 }
 0x181   : > { %v3708_v62 = vshrl.u32 %v3707_v34, 7 }
 0x183   : > { %3497 = vmatpush1.bf16.msra.mxu0 %v5242_v36  ;;  %3626 = vmatpush1.bf16.msra.mxu1 %v5245_v37  ;;  %v3709_v35 = vsub.s32 0, %v3708_v62  ;;  %v3717_v36 = vsub.s32 2, %v3708_v62  ;;  %v3705_v37 = vld [vmem:[%s6798_s2] sm:$0xf] }
 0x184   : > { %3498 = vmatprep.subr.bf16.mxu0 %v5250_v54  ;;  %3627 = vmatprep.subr.bf16.mxu1 %v5253_v38  ;;  %v3713_v54 = vsub.s32 1, %v3708_v62  ;;  %v3721_v38 = vsub.s32 3, %v3708_v62 }
 0x187   : > { %3499 = vmatpush1.bf16.msra.mxu0 %v5248_v39  ;;  %3628 = vmatpush1.bf16.msra.mxu1 %v5251_v26  ;;  %v3710_v39 = vrot.slane %v3705_v37, %v3709_v35  ;;  %v3718_v26 = vrot.slane %v3705_v37, %v3717_v36 }
 0x188   : > { %3500 = vmatprep.subr.bf16.mxu0 %v5256_v40  ;;  %3629 = vmatprep.subr.bf16.mxu1 %v5259_v41  ;;  %v3714_v40 = vrot.slane %v3705_v37, %v3713_v54  ;;  %v3722_v41 = vrot.slane %v3705_v37, %v3721_v38 }
 0x18b   : > { %3501 = vmatpush1.bf16.msra.mxu0 %v5254_v43  ;;  %3630 = vmatpush1.bf16.msra.mxu1 %v5257_v44 }
 0x18c   : > { %3502 = vmatprep.subr.bf16.mxu0 %v5262_v46  ;;  %3631 = vmatprep.subr.bf16.mxu1 %v5265_v47 }
 0x18f   : > { %3503 = vmatpush1.bf16.msra.mxu0 %v5260_v48  ;;  %3632 = vmatpush1.bf16.msra.mxu1 %v5263_v49 }
 0x190   : > { %3504 = vmatprep.subr.bf16.mxu0 %v5268_v50  ;;  %3633 = vmatprep.subr.bf16.mxu1 %v5271_v51 }
 0x193   : > { %3505 = vmatpush1.bf16.msra.mxu0 %v5266_v55  ;;  %3634 = vmatpush1.bf16.msra.mxu1 %v5269_v58 }
 0x194   : > { %3506 = vmatprep.subr.bf16.mxu0 %v5274_v59  ;;  %3635 = vmatprep.subr.bf16.mxu1 %v5277_v53 }
 0x197   : > { %3507 = vmatpush1.bf16.msra.mxu0 %v5272_v61  ;;  %3636 = vmatpush1.bf16.msra.mxu1 %v5275_v0 }
 0x198   : > { %3508 = vmatprep.subr.bf16.mxu0 %v5280_v42  ;;  %3637 = vmatprep.subr.bf16.mxu1 %v5283_v45 }
 0x19b   : > { %3509 = vmatpush1.bf16.msra.mxu0 %v5278_v1  ;;  %3638 = vmatpush1.bf16.msra.mxu1 %v5281_v56 }
 0x19c   : > { %3510 = vmatprep.subr.bf16.mxu0 %v5286_v2  ;;  %3639 = vmatprep.subr.bf16.mxu1 %v5289_v4 }
 0x19f   : > { %3511 = vmatpush1.bf16.msra.mxu0 %v5284_v6  ;;  %3640 = vmatpush1.bf16.msra.mxu1 %v5287_v7 }
 0x1a0   : > { %3512 = vmatprep.subr.bf16.mxu0 %v5292_v5  ;;  %3641 = vmatprep.subr.bf16.mxu1 %v5295_v9 }
 0x1a3   : > { %3513 = vmatpush1.bf16.msra.mxu0 %v5290_v10  ;;  %3642 = vmatpush1.bf16.msra.mxu1 %v5293_v60 }
 0x1a4   : > { %3525 = vmatprep.subr.bf16.mxu0 %v5299_v11  ;;  %3654 = vmatprep.subr.bf16.mxu1 %v5302_v12 }
 0x1a6   : > { %3515 = vmatmul.mubr.bf16.vlgmr.msra.gmra.mrb[0].mxu0 %v2705_v14  ;;  %3644 = vmatmul.mubr.bf16.vlgmr.msra.gmra.mrb[0].mxu1 %v2705_v14 }
 0x1a7   : > { %3526 = vmatpush1.bf16.msra.mxu0 %v5297_v13  ;;  %3655 = vmatpush1.bf16.msra.mxu1 %v5300_v31 }
 0x1a8   : > { %3527 = vmatprep.subr.bf16.mxu0 %v5306_v15  ;;  %3656 = vmatprep.subr.bf16.mxu1 %v5309_v16 }
 0x1a9   : > { %3557 = vmatprep.mubr.bf16.mxu0 %v5335_v3  ;;  %3686 = vmatprep.mubr.bf16.mxu1 %v5335_v3  ;;  %v5321_v3 = vld [vmem:[%s6797_s1 + $0xd6c] ss:$16 sps:$4 sm:$0xff]  }
 0x1ab   : > { %3528 = vmatpush1.bf16.msra.mxu0 %v5304_v17  ;;  %3657 = vmatpush1.bf16.msra.mxu1 %v5307_v18 }
 0x1ac   : > { %3529 = vmatprep.subr.bf16.mxu0 %v5312_v19  ;;  %3658 = vmatprep.subr.bf16.mxu1 %v5315_v20 }
 0x1af   : > { %3530 = vmatpush1.bf16.msra.mxu0 %v5310_v22  ;;  %3659 = vmatpush1.bf16.msra.mxu1 %v5313_v23 }
 0x1b0   : > { %3531 = vmatprep.subr.bf16.mxu0 %v5318_v27  ;;  %3660 = vmatprep.subr.bf16.mxu1 %v5321_v3 }
 0x1b3   : > { %3532 = vmatpush1.bf16.msra.mxu0 %v5316_v28  ;;  %3661 = vmatpush1.bf16.msra.mxu1 %v5319_v29 }
 0x1b6   : > { %4573 = vmatmul.mubr.msk.bf16.vlgmr.msra.gmra.mrb[0].mxu0 %vm1289_vm1, %v2711_v33  ;;  %4574 = vmatmul.mubr.msk.bf16.vlgmr.msra.gmra.mrb[0].mxu1 %vm1289_vm1, %v2711_v33 }
 0x289   : > { %v3559_v43 = vpop.f32.mrb[0].mxu0  ;;  %v3688_v44 = vpop.f32.mrb[0].mxu1 }
 0x28a   : > { %v3727_v46 = vadd.f32 %v3710_v39, %v3559_v43  ;;  %v3729_v47 = vadd.f32 %v3718_v26, %v3688_v44  ;;  %v3561_v48 = vpop.f32.mrb[1].mxu0  ;;  %v3690_v49 = vpop.f32.mrb[1].mxu1 }
 0x28b   : > { %v3728_v50 = vadd.f32 %v3714_v40, %v3561_v48  ;;  %v3730_v51 = vadd.f32 %v3722_v41, %v3690_v49  ;;  %v3563_v55 = vpop.f32.mrb[2].mxu0  ;;  %v3692_v58 = vpop.f32.mrb[2].mxu1 }
 0x28c   : > { %v3735_v59 = vmax.f32 %v3727_v46, 0.0  ;;  %v3737_v53 = vmax.f32 %v3729_v47, 0.0  ;;  %v3731_v61 = vadd.f32 %v3710_v39, %v3563_v55  ;;  %v3733_v0 = vadd.f32 %v3718_v26, %v3692_v58  ;;  %v3565_v42 = vpop.f32.mrb[3].mxu0  ;;  %v3694_v45 = vpop.f32.mrb[3].mxu1 }
 0x28d   : > { %v3736_v1 = vmax.f32 %v3728_v50, 0.0  ;;  %v3738_v56 = vmax.f32 %v3730_v51, 0.0  ;;  %v3732_v2 = vadd.f32 %v3714_v40, %v3565_v42  ;;  %v3734_v4 = vadd.f32 %v3722_v41, %v3694_v45 }
 0x28e   : > { %v3739_v6 = vmax.f32 %v3731_v61, 0.0  ;;  %v3741_v7 = vmax.f32 %v3733_v0, 0.0 }
 0x28f   : > { %v4582_v8 = vpack.c.bf16 %v3736_v1, %v3735_v59  ;;  %v4583_v5 = vpack.c.bf16 %v3738_v56, %v3737_v53  ;;  %v3740_v9 = vmax.f32 %v3732_v2, 0.0  ;;  %v3742_v10 = vmax.f32 %v3734_v4, 0.0 }
 0x291   : > { %3767 = vst [vmem:[%s170_s18] sm:$0xff] %v4582_v8  ;;  %3768 = vst [vmem:[%s170_s18 + $0x8] sm:$0xff] %v4583_v5  ;;  %v4584_v60 = vpack.c.bf16 %v3740_v9, %v3739_v6  ;;  %v4585_v63 = vpack.c.bf16 %v3742_v10, %v3741_v7 }
 0x293   : > { %3769 = vst [vmem:[%s170_s18 + $0x10] sm:$0xff] %v4584_v60  ;;  %3770 = vst [vmem:[%s170_s18 + $0x18] sm:$0xff] %v4585_v63 }
 0x294 PF: > { %s13_s12 = sadd.s32 1, %s5333_s12  }
 0x295   : > { %p10_p4 = scmp.ge.s32.totalorder %s13_s12, 4  }
 0x297   :  { %12 = sbr.rel (!%p10_p4) target bundleno = 1 (0x1), region = 64 }

// kernel: classify_net_forward.5
= control target key start
LH: loop header
LB: loop body
LE: loop exit
PB: predicated region body
PF: predicated region fallthrough
CT: control target
= control target key end

     0   :  { %11 = vsyncpa [#allocation3], 0  ;;  %s7648_s0 = inlined_call_operand.vmem [shape: bf16[2,18,576], index: 0, kind: input, shape index: {}]   ;;  %s7649_s1 = inlined_call_operand.vmem [shape: bf16[2,16,512], index: 1, kind: input, shape index: {}]   ;;  %s7650_s2 = inlined_call_operand.vmem [shape: bf16[3,576,512], index: 2, kind: input, shape index: {}]   ;;  %s7651_s3 = inlined_call_operand.vmem [shape: f32[1,512], index: 3, kind: input, shape index: {}]   ;;  %s7652_s4 = inlined_call_operand.vmem [shape: f32[512,128], index: 4, kind: input, shape index: {}]   ;;  %s7653_s5 = inlined_call_operand.vmem [shape: f32[1,128], index: 5, kind: input, shape index: {}]   ;;  %s7654_s6 = inlined_call_operand.hbm [shape: f32[2,1,128], index: 6, kind: output, shape index: {}]  }
   0x1   :  { %13 = vsyncpa [#allocation3 + $0x1], 0  ;;  %s5931_s21 = smov 0   ;;  %s5933_s22 = smov 0  }
   0x2   :  { %s5935_s23 = smov 0   ;;  %s5937_s24 = smov 0  }
   0x3 LB: > { %s5952_s25 = sadd.s32 4294967295, %s5892_s24   ;;  %s4166_s26 = sadd.s32 4294967294, %s5892_s24   ;;  %s5892_s24 = sphi %s5937_s24, %s7660_s24   ;;  %s5888_s23 = sphi %s5935_s23, %s7659_s23   ;;  %s5884_s22 = sphi %s5933_s22, %s7658_s22   ;;  %s5880_s21 = sphi %s5931_s21, %s7657_s21  }
   0x4   : > { %s5956_s27 = sadd.s32 1, %s5892_s24   ;;  %s162_s28 = sadd.s32 1, %s5888_s23 }
   0x5   : > { %s159_s29 = ssub.s32 %s5892_s24, %s5956_s27  ;;  %p172_p0 = scmp.ne.s32.totalorder %s5888_s23, %s5884_s22 }
   0x6   : > { %p160_p1 = scmp.eq.s32.totalorder %s159_s29, 0  ;;  %p173_p2 = scmp.eq.s32.totalorder %s5952_s25, 1 }
   0x7   : > { %p178_p3 = scmp.ne.s32.totalorder %s5884_s22, %s5880_s21  ;;  %p179_p4 = scmp.eq.s32.totalorder %s4166_s26, 1 }
   0x8   : > { %s5967_s30 = scalar_select %p160_p1, %s5888_s23, %s162_s28  }
   0x9   : > { %p5969_p5 = por %p173_p2, %p172_p0  ;;  %p5973_p6 = por %p179_p4, %p178_p3 }
   0xa   : > { %p4169_p7 = scmp.ge.s32.totalorder %s5892_s24, 1  ;;  %p225_p8 = scmp.lt.s32.totalorder %s5892_s24, 3 }
   0xc   : > { %p226_p9 = pnand %p4169_p7, %p225_p8 }
   0xd   : > { %v5163_v0 = vld [vmem:[%s7650_s2 + $0x484] ss:$16 sps:$4 sm:$0xff] (!%p226_p9)   ;;  %v5165_v1 = vld [vmem:[%s7650_s2 + $0x48c] ss:$16 sps:$4 sm:$0xff] (!%p226_p9)   ;;  %v5167_v2 = vld [vmem:[%s7650_s2 + $0x480] ss:$16 sps:$4 sm:$0xff] (!%p226_p9)  }
   0xe   : > { %229 = sbr.rel (%p226_p9) target bundleno = 919 (0x397), region = 44  ;;  %1391 = vmatprep.subr.bf16.mxu0 (!%p226_p9), %v5163_v0  ;;  %v5168_v3 = vld [vmem:[%s7650_s2 + $0x488] ss:$16 sps:$4 sm:$0xff] (!%p226_p9)   ;;  %1520 = vmatprep.subr.bf16.mxu1 (!%p226_p9), %v5165_v1  ;;  %v5169_v4 = vld [vmem:[%s7650_s2 + $0x4a4] ss:$16 sps:$4 sm:$0xff] (!%p226_p9)   ;;  %p259_p10 = scmp.lt.s32.totalorder (!%p226_p9), %s5952_s25, 1 }
   0xf   : > { %1392 = vmatpush1.bf16.msra.mxu0 (!%p226_p9), %v5167_v2  ;;  %1521 = vmatpush1.bf16.msra.mxu1 (!%p226_p9), %v5168_v3  ;;  %v5171_v5 = vld [vmem:[%s7650_s2 + $0x4ac] ss:$16 sps:$4 sm:$0xff] (!%p226_p9)   ;;  %v5173_v6 = vld [vmem:[%s7650_s2 + $0x4a0] ss:$16 sps:$4 sm:$0xff] (!%p226_p9)   ;;  %v5174_v7 = vld [vmem:[%s7650_s2 + $0x4a8] ss:$16 sps:$4 sm:$0xff] (!%p226_p9)  }
  0x10   : > { %1393 = vmatprep.subr.bf16.mxu0 (!%p226_p9), %v5169_v4  ;;  %1522 = vmatprep.subr.bf16.mxu1 (!%p226_p9), %v5171_v5  ;;  %v5175_v8 = vld [vmem:[%s7650_s2 + $0x4c4] ss:$16 sps:$4 sm:$0xff] (!%p226_p9)   ;;  %v5177_v9 = vld [vmem:[%s7650_s2 + $0x4cc] ss:$16 sps:$4 sm:$0xff] (!%p226_p9)   ;;  %v5179_v10 = vld [vmem:[%s7650_s2 + $0x4c0] ss:$16 sps:$4 sm:$0xff] (!%p226_p9)  }
  0x11   : > { %v5180_v11 = vld [vmem:[%s7650_s2 + $0x4c8] ss:$16 sps:$4 sm:$0xff] (!%p226_p9)   ;;  %v5181_v12 = vld [vmem:[%s7650_s2 + $0x4e4] ss:$16 sps:$4 sm:$0xff] (!%p226_p9)   ;;  %v5183_v13 = vld [vmem:[%s7650_s2 + $0x4ec] ss:$16 sps:$4 sm:$0xff] (!%p226_p9)  }
  0x12   : > { %v5185_v14 = vld [vmem:[%s7650_s2 + $0x4e0] ss:$16 sps:$4 sm:$0xff] (!%p226_p9)   ;;  %v5186_v15 = vld [vmem:[%s7650_s2 + $0x4e8] ss:$16 sps:$4 sm:$0xff] (!%p226_p9)   ;;  %v5187_v16 = vld [vmem:[%s7650_s2 + $0x504] ss:$16 sps:$4 sm:$0xff] (!%p226_p9)  }
  0x13   : > { %1394 = vmatpush1.bf16.msra.mxu0 (!%p226_p9), %v5173_v6  ;;  %1523 = vmatpush1.bf16.msra.mxu1 (!%p226_p9), %v5174_v7  ;;  %v5189_v17 = vld [vmem:[%s7650_s2 + $0x50c] ss:$16 sps:$4 sm:$0xff] (!%p226_p9)   ;;  %v5191_v18 = vld [vmem:[%s7650_s2 + $0x500] ss:$16 sps:$4 sm:$0xff] (!%p226_p9)   ;;  %v5192_v19 = vld [vmem:[%s7650_s2 + $0x508] ss:$16 sps:$4 sm:$0xff] (!%p226_p9)  }
  0x14   : > { %1395 = vmatprep.subr.bf16.mxu0 (!%p226_p9), %v5175_v8  ;;  %1524 = vmatprep.subr.bf16.mxu1 (!%p226_p9), %v5177_v9  ;;  %v5193_v20 = vld [vmem:[%s7650_s2 + $0x524] ss:$16 sps:$4 sm:$0xff] (!%p226_p9)   ;;  %v5195_v21 = vld [vmem:[%s7650_s2 + $0x52c] ss:$16 sps:$4 sm:$0xff] (!%p226_p9)   ;;  %v5197_v22 = vld [vmem:[%s7650_s2 + $0x520] ss:$16 sps:$4 sm:$0xff] (!%p226_p9)  }
  0x15   : > { %v5198_v23 = vld [vmem:[%s7650_s2 + $0x528] ss:$16 sps:$4 sm:$0xff]   ;;  %v5199_v24 = vld [vmem:[%s7650_s2 + $0x544] ss:$16 sps:$4 sm:$0xff]   ;;  %v5201_v25 = vld [vmem:[%s7650_s2 + $0x54c] ss:$16 sps:$4 sm:$0xff]  }
  0x16   : > { %v5203_v26 = vld [vmem:[%s7650_s2 + $0x540] ss:$16 sps:$4 sm:$0xff]   ;;  %v5204_v27 = vld [vmem:[%s7650_s2 + $0x548] ss:$16 sps:$4 sm:$0xff]   ;;  %v5205_v28 = vld [vmem:[%s7650_s2 + $0x564] ss:$16 sps:$4 sm:$0xff]  }
  0x17   : > { %1396 = vmatpush1.bf16.msra.mxu0 %v5179_v10  ;;  %1525 = vmatpush1.bf16.msra.mxu1 %v5180_v11  ;;  %v5207_v29 = vld [vmem:[%s7650_s2 + $0x56c] ss:$16 sps:$4 sm:$0xff]   ;;  %v5209_v30 = vld [vmem:[%s7650_s2 + $0x560] ss:$16 sps:$4 sm:$0xff]   ;;  %v5210_v31 = vld [vmem:[%s7650_s2 + $0x568] ss:$16 sps:$4 sm:$0xff]  }
  0x18   : > { %1397 = vmatprep.subr.bf16.mxu0 %v5181_v12  ;;  %1526 = vmatprep.subr.bf16.mxu1 %v5183_v13  ;;  %v5211_v32 = vld [vmem:[%s7650_s2 + $0x584] ss:$16 sps:$4 sm:$0xff]   ;;  %v5213_v33 = vld [vmem:[%s7650_s2 + $0x58c] ss:$16 sps:$4 sm:$0xff]   ;;  %v5215_v34 = vld [vmem:[%s7650_s2 + $0x580] ss:$16 sps:$4 sm:$0xff]  }
  0x19   : > { %v5216_v35 = vld [vmem:[%s7650_s2 + $0x588] ss:$16 sps:$4 sm:$0xff]   ;;  %s6089_s26 = scalar_select %p259_p10, %s5952_s25, 1  ;;  %v5217_v36 = vld [vmem:[%s7650_s2 + $0x5a4] ss:$16 sps:$4 sm:$0xff]   ;;  %vm1387_vm1 = vcmask 523264  }
  0x1a   : > { %v5219_v37 = vld [vmem:[%s7650_s2 + $0x5ac] ss:$16 sps:$4 sm:$0xff]   ;;  %v5221_v38 = vld [vmem:[%s7650_s2 + $0x5a0] ss:$16 sps:$4 sm:$0xff]   ;;  %v5222_v39 = vld [vmem:[%s7650_s2 + $0x5a8] ss:$16 sps:$4 sm:$0xff]  }
  0x1b   : > { %1398 = vmatpush1.bf16.msra.mxu0 %v5185_v14  ;;  %1527 = vmatpush1.bf16.msra.mxu1 %v5186_v15  ;;  %s5122_s13 = smul.u32 60, %s6089_s26  ;;  %v5223_v40 = vld [vmem:[%s7650_s2 + $0x5c4] ss:$16 sps:$4 sm:$0xff]   ;;  %v5225_v41 = vld [vmem:[%s7650_s2 + $0x5cc] ss:$16 sps:$4 sm:$0xff]   ;;  %vm2794_vm2 = vcmask 1046528  }
  0x1c   : > { %1399 = vmatprep.subr.bf16.mxu0 %v5187_v16  ;;  %1528 = vmatprep.subr.bf16.mxu1 %v5189_v17  ;;  %v5227_v42 = vld [vmem:[%s7650_s2 + $0x5c0] ss:$16 sps:$4 sm:$0xff]   ;;  %v5228_v43 = vld [vmem:[%s7650_s2 + $0x5c8] ss:$16 sps:$4 sm:$0xff]   ;;  %v5229_v44 = vld [vmem:[%s7650_s2 + $0x5e4] ss:$16 sps:$4 sm:$0xff]  }
  0x1d   : > { %s6119_s12 = scalar_lea.vmem %s7648_s0, %s5122_s13  ;;  %v5231_v45 = vld [vmem:[%s7650_s2 + $0x5ec] ss:$16 sps:$4 sm:$0xff]   ;;  %v5233_v46 = vld [vmem:[%s7650_s2 + $0x5e0] ss:$16 sps:$4 sm:$0xff]   ;;  %v5234_v50 = vld [vmem:[%s7650_s2 + $0x5e8] ss:$16 sps:$4 sm:$0xff]  }
  0x1e   : > { %v270_v47 = vld [vmem:[%s6119_s12] sm:$0xff]  ;;  %v273_v48 = vld [vmem:[%s6119_s12 + $0x14] sm:$0xff]  ;;  %v420_v49 = vld [vmem:[%s6119_s12 + $0x28] sm:$0x11]  ;;  %vm602_vm0 = vsmask.f32 7424 }
  0x1f   : > { %1400 = vmatpush1.bf16.msra.mxu0 %v5191_v18  ;;  %1529 = vmatpush1.bf16.msra.mxu1 %v5192_v19  ;;  %v5235_v51 = vld [vmem:[%s7650_s2 + $0x604] ss:$16 sps:$4 sm:$0xff]   ;;  %v6139_v52 = vcombine.high %v270_v47, %v273_v48  ;;  %v6141_v53 = vcombine.high %v420_v49, %v420_v49  ;;  %v5237_v54 = vld [vmem:[%s7650_s2 + $0x60c] ss:$16 sps:$4 sm:$0xff]   ;;  %v5239_v58 = vld [vmem:[%s7650_s2 + $0x600] ss:$16 sps:$4 sm:$0xff]   ;;  %v6155_v62 = vcombine.low %v270_v47, %v273_v48 }
  0x20   : > { %1401 = vmatprep.subr.bf16.mxu0 %v5193_v20  ;;  %1530 = vmatprep.subr.bf16.mxu1 %v5195_v21  ;;  %v5240_v59 = vld [vmem:[%s7650_s2 + $0x608] ss:$16 sps:$4 sm:$0xff]   ;;  %v5241_v63 = vld [vmem:[%s7650_s2 + $0x624] ss:$16 sps:$4 sm:$0xff]   ;;  %v5243_v0 = vld [vmem:[%s7650_s2 + $0x62c] ss:$16 sps:$4 sm:$0xff]   ;;  %v6170_v5 = vcombine.low %v420_v49, %v420_v49 }
  0x21   : > { %v616_v55 = vshrl.u32 %v6139_v52, 16  ;;  %v618_v56 = vshll.u32 %v6139_v52, 16  ;;  %v623_v57 = vshll.u32 %v6141_v53, 16  ;;  %v5245_v2 = vld [vmem:[%s7650_s2 + $0x620] ss:$16 sps:$4 sm:$0xff]   ;;  %v606_v6 = vshll.u32 %v6155_v62, 16 }
  0x22   : > { %v5246_v3 = vld [vmem:[%s7650_s2 + $0x628] ss:$16 sps:$4 sm:$0xff]   ;;  %v5247_v7 = vld [vmem:[%s7650_s2 + $0x644] ss:$16 sps:$4 sm:$0xff]   ;;  %v5249_v8 = vld [vmem:[%s7650_s2 + $0x64c] ss:$16 sps:$4 sm:$0xff]  }
  0x23   : > { %1402 = vmatpush1.bf16.msra.mxu0 %v5197_v22  ;;  %1531 = vmatpush1.bf16.msra.mxu1 %v5198_v23  ;;  %v620_v60 = vrot.slane %v618_v56, 1  ;;  %v625_v61 = vrot.slane %v623_v57, 1  ;;  %v5251_v9 = vld [vmem:[%s7650_s2 + $0x640] ss:$16 sps:$4 sm:$0xff]   ;;  %v5252_v10 = vld [vmem:[%s7650_s2 + $0x648] ss:$16 sps:$4 sm:$0xff]  }
  0x24   : > { %1403 = vmatprep.subr.bf16.mxu0 %v5199_v24  ;;  %1532 = vmatprep.subr.bf16.mxu1 %v5201_v25  ;;  %v604_v11 = vshrl.u32 %v6155_v62, 16  ;;  %v608_v12 = vrot.slane %v606_v6, 1  ;;  %v611_v13 = vshll.u32 %v6170_v5, 16  ;;  %v5253_v14 = vld [vmem:[%s7650_s2 + $0x664] ss:$16 sps:$4 sm:$0xff]   ;;  %v6285_v49 = vld [vmem:[%s6119_s12 + $0x8] sm:$0xff] }
  0x25   : > { %v621_v1 = vor.u32 %v620_v60, %v616_v55  ;;  %v5255_v15 = vld [vmem:[%s7650_s2 + $0x66c] ss:$16 sps:$4 sm:$0xff]   ;;  %v5257_v16 = vld [vmem:[%s7650_s2 + $0x660] ss:$16 sps:$4 sm:$0xff]   ;;  %v5258_v17 = vld [vmem:[%s7650_s2 + $0x668] ss:$16 sps:$4 sm:$0xff]  }
  0x26   : > { %v609_v18 = vor.u32 %v608_v12, %v604_v11  ;;  %v613_v19 = vrot.slane %v611_v13, 1  ;;  %v5263_v20 = vld [vmem:[%s7650_s2 + $0x684] ss:$16 sps:$4 sm:$0xff]   ;;  %v5266_v21 = vld [vmem:[%s7650_s2 + $0x68c] ss:$16 sps:$4 sm:$0xff]   ;;  %s4914_s13 = sshll.u32 %s5952_s25, 4 }
  0x27   : > { %1404 = vmatpush1.bf16.msra.mxu0 %v5203_v26  ;;  %1533 = vmatpush1.bf16.msra.mxu1 %v5204_v27  ;;  %v626_v4 = vsel %vm602_vm0, %v621_v1, %v625_v61  ;;  %v5261_v22 = vld [vmem:[%s7650_s2 + $0x680] ss:$16 sps:$4 sm:$0xff]   ;;  %v5264_v23 = vld [vmem:[%s7650_s2 + $0x688] ss:$16 sps:$4 sm:$0xff]   ;;  %v5271_v25 = vld [vmem:[%s7650_s2 + $0x6a4] ss:$16 sps:$4 sm:$0xff]   ;;  %s7606_s10 = scalar_lea.hbm %s7654_s6, %s4914_s13 }
  0x28   : > { %1405 = vmatprep.subr.bf16.mxu0 %v5205_v28  ;;  %1534 = vmatprep.subr.bf16.mxu1 %v5207_v29  ;;  %v614_v24 = vsel %vm602_vm0, %v609_v18, %v613_v19  ;;  %v5274_v26 = vld [vmem:[%s7650_s2 + $0x6ac] ss:$16 sps:$4 sm:$0xff]   ;;  %v5269_v27 = vld [vmem:[%s7650_s2 + $0x6a0] ss:$16 sps:$4 sm:$0xff]   ;;  %v5272_v28 = vld [vmem:[%s7650_s2 + $0x6a8] ss:$16 sps:$4 sm:$0xff]  }
  0x29   : > { %1423 = vmatprep.mubr.bf16.mxu0 %v626_v4  ;;  %1552 = vmatprep.mubr.bf16.mxu1 %v626_v4  ;;  %v5277_v29 = vld [vmem:[%s7650_s2 + $0x6c4] ss:$16 sps:$4 sm:$0xff]   ;;  %v5299_v47 = vld [vmem:[%s7650_s2 + $0x740] ss:$16 sps:$4 sm:$0xff]   ;;  %v5302_v48 = vld [vmem:[%s7650_s2 + $0x748] ss:$16 sps:$4 sm:$0xff]  }
  0x2a   : > { %v5307_v55 = vld [vmem:[%s7650_s2 + $0x764] ss:$16 sps:$4 sm:$0xff]   ;;  %v5310_v56 = vld [vmem:[%s7650_s2 + $0x76c] ss:$16 sps:$4 sm:$0xff]   ;;  %v5305_v60 = vld [vmem:[%s7650_s2 + $0x760] ss:$16 sps:$4 sm:$0xff]  }
  0x2b   : > { %1406 = vmatpush1.bf16.msra.mxu0 %v5209_v30  ;;  %1535 = vmatpush1.bf16.msra.mxu1 %v5210_v31  ;;  %v5280_v30 = vld [vmem:[%s7650_s2 + $0x6cc] ss:$16 sps:$4 sm:$0xff]   ;;  %v5275_v31 = vld [vmem:[%s7650_s2 + $0x6c0] ss:$16 sps:$4 sm:$0xff]   ;;  %v5308_v61 = vld [vmem:[%s7650_s2 + $0x768] ss:$16 sps:$4 sm:$0xff]  }
  0x2c   : > { %1407 = vmatprep.subr.bf16.mxu0 %v5211_v32  ;;  %1536 = vmatprep.subr.bf16.mxu1 %v5213_v33  ;;  %v5278_v32 = vld [vmem:[%s7650_s2 + $0x6c8] ss:$16 sps:$4 sm:$0xff]   ;;  %v5283_v33 = vld [vmem:[%s7650_s2 + $0x6e4] ss:$16 sps:$4 sm:$0xff]   ;;  %v5316_v1 = vld [vmem:[%s7650_s2 + $0x78c] ss:$16 sps:$4 sm:$0xff]  }
  0x2d   : > { %v5311_v6 = vld [vmem:[%s7650_s2 + $0x780] ss:$16 sps:$4 sm:$0xff]   ;;  %v5320_v12 = vld [vmem:[%s7650_s2 + $0x7a8] ss:$16 sps:$4 sm:$0xff]   ;;  %v5325_v13 = vld [vmem:[%s7650_s2 + $0x7c4] ss:$16 sps:$4 sm:$0xff]  }
  0x2e   : > { %v5317_v11 = vld [vmem:[%s7650_s2 + $0x7a0] ss:$16 sps:$4 sm:$0xff]   ;;  %v5334_v18 = vld [vmem:[%s7650_s2 + $0x7ec] ss:$16 sps:$4 sm:$0xff]   ;;  %s5895_s25 = smov [#allocation2]  }
  0x2f   : > { %1408 = vmatpush1.bf16.msra.mxu0 %v5215_v34  ;;  %1537 = vmatpush1.bf16.msra.mxu1 %v5216_v35  ;;  %v5286_v34 = vld [vmem:[%s7650_s2 + $0x6ec] ss:$16 sps:$4 sm:$0xff]   ;;  %v5281_v35 = vld [vmem:[%s7650_s2 + $0x6e0] ss:$16 sps:$4 sm:$0xff]   ;;  %s5834_s14 = sshll.u32 %s5895_s25, 4  ;;  %s5835_s14 = int_to_ptr.vmem [resolvable:$false] %s5834_s14 }
  0x30   : > { %1409 = vmatprep.subr.bf16.mxu0 %v5217_v36  ;;  %1538 = vmatprep.subr.bf16.mxu1 %v5219_v37  ;;  %v5284_v36 = vld [vmem:[%s7650_s2 + $0x6e8] ss:$16 sps:$4 sm:$0xff]   ;;  %v5289_v37 = vld [vmem:[%s7650_s2 + $0x704] ss:$16 sps:$4 sm:$0xff]   ;;  %v5329_v19 = vld [vmem:[%s7650_s2 + $0x7e0] ss:$16 sps:$4 sm:$0xff]  }
  0x33   : > { %1410 = vmatpush1.bf16.msra.mxu0 %v5221_v38  ;;  %1539 = vmatpush1.bf16.msra.mxu1 %v5222_v39  ;;  %v5292_v38 = vld [vmem:[%s7650_s2 + $0x70c] ss:$16 sps:$4 sm:$0xff]   ;;  %v5287_v39 = vld [vmem:[%s7650_s2 + $0x700] ss:$16 sps:$4 sm:$0xff]  }
  0x34   : > { %1411 = vmatprep.subr.bf16.mxu0 %v5223_v40  ;;  %1540 = vmatprep.subr.bf16.mxu1 %v5225_v41  ;;  %v5290_v40 = vld [vmem:[%s7650_s2 + $0x708] ss:$16 sps:$4 sm:$0xff]   ;;  %v5295_v41 = vld [vmem:[%s7650_s2 + $0x724] ss:$16 sps:$4 sm:$0xff]  }
  0x37   : > { %1412 = vmatpush1.bf16.msra.mxu0 %v5227_v42  ;;  %1541 = vmatpush1.bf16.msra.mxu1 %v5228_v43  ;;  %v5298_v42 = vld [vmem:[%s7650_s2 + $0x72c] ss:$16 sps:$4 sm:$0xff]   ;;  %v5293_v43 = vld [vmem:[%s7650_s2 + $0x720] ss:$16 sps:$4 sm:$0xff]  }
  0x38   : > { %1413 = vmatprep.subr.bf16.mxu0 %v5229_v44  ;;  %1542 = vmatprep.subr.bf16.mxu1 %v5231_v45  ;;  %v5296_v44 = vld [vmem:[%s7650_s2 + $0x728] ss:$16 sps:$4 sm:$0xff]   ;;  %v5301_v45 = vld [vmem:[%s7650_s2 + $0x744] ss:$16 sps:$4 sm:$0xff]  }
  0x3b   : > { %1414 = vmatpush1.bf16.msra.mxu0 %v5233_v46  ;;  %1543 = vmatpush1.bf16.msra.mxu1 %v5234_v50  ;;  %v5304_v46 = vld [vmem:[%s7650_s2 + $0x74c] ss:$16 sps:$4 sm:$0xff]  }
  0x3c   : > { %1415 = vmatprep.subr.bf16.mxu0 %v5235_v51  ;;  %1544 = vmatprep.subr.bf16.mxu1 %v5237_v54  ;;  %v6288_v50 = vld [vmem:[%s6119_s12 + $0x1c] sm:$0xff]  ;;  %v6291_v51 = vld [vmem:[%s6119_s12 + $0x30] sm:$0x11] }
  0x3d   : > { %v6295_v54 = vcombine.high %v6285_v49, %v6288_v50  ;;  %v6305_v57 = vcombine.high %v6291_v51, %v6291_v51 }
  0x3f   : > { %1416 = vmatpush1.bf16.msra.mxu0 %v5239_v58  ;;  %1545 = vmatpush1.bf16.msra.mxu1 %v5240_v59  ;;  %v640_v58 = vshrl.u32 %v6295_v54, 16  ;;  %v642_v59 = vshll.u32 %v6295_v54, 16 }
  0x40   : > { %1417 = vmatprep.subr.bf16.mxu0 %v5241_v63  ;;  %1546 = vmatprep.subr.bf16.mxu1 %v5243_v0  ;;  %v647_v63 = vshll.u32 %v6305_v57, 16  ;;  %v5313_v0 = vld [vmem:[%s7650_s2 + $0x784] ss:$16 sps:$4 sm:$0xff]  }
  0x43   : > { %1418 = vmatpush1.bf16.msra.mxu0 %v5245_v2  ;;  %1547 = vmatpush1.bf16.msra.mxu1 %v5246_v3  ;;  %v644_v2 = vrot.slane %v642_v59, 1  ;;  %v649_v3 = vrot.slane %v647_v63, 1  ;;  %v5369_v59 = vld [vmem:[%s7650_s2 + $0x8a0] ss:$16 sps:$4 sm:$0xff]  }
  0x44   : > { %1419 = vmatprep.subr.bf16.mxu0 %v5247_v7  ;;  %1548 = vmatprep.subr.bf16.mxu1 %v5249_v8  ;;  %v5314_v7 = vld [vmem:[%s7650_s2 + $0x788] ss:$16 sps:$4 sm:$0xff]   ;;  %v5319_v8 = vld [vmem:[%s7650_s2 + $0x7a4] ss:$16 sps:$4 sm:$0xff]  }
  0x45   : > { %v645_v4 = vor.u32 %v644_v2, %v640_v58  ;;  %v5374_v58 = vld [vmem:[%s7650_s2 + $0x8ac] ss:$16 sps:$4 sm:$0xff]   ;;  %v5394_v63 = vld [vmem:[%s6119_s12 + $0x38] ss:$0 sps:$4 sm:$0x11]  }
  0x46   : > { %v5375_v2 = vld [vmem:[%s7650_s2 + $0x8c0] ss:$16 sps:$4 sm:$0xff]  }
  0x47   : > { %1420 = vmatpush1.bf16.msra.mxu0 %v5251_v9  ;;  %1549 = vmatpush1.bf16.msra.mxu1 %v5252_v10  ;;  %v650_v9 = vsel %vm602_vm0, %v645_v4, %v649_v3  ;;  %v5322_v10 = vld [vmem:[%s7650_s2 + $0x7ac] ss:$16 sps:$4 sm:$0xff]   ;;  %v5894_v3 = vmov 0   ;;  %v5378_v4 = vld [vmem:[%s7650_s2 + $0x8c8] ss:$16 sps:$4 sm:$0xff]  }
  0x48   : > { %1421 = vmatprep.subr.bf16.mxu0 %v5253_v14  ;;  %1550 = vmatprep.subr.bf16.mxu1 %v5255_v15  ;;  %v5328_v14 = vld [vmem:[%s7650_s2 + $0x7cc] ss:$16 sps:$4 sm:$0xff]   ;;  %v5323_v15 = vld [vmem:[%s7650_s2 + $0x7c0] ss:$16 sps:$4 sm:$0xff]  }
  0x4b   : > { %1422 = vmatpush1.bf16.msra.mxu0 %v5257_v16  ;;  %1551 = vmatpush1.bf16.msra.mxu1 %v5258_v17  ;;  %v5326_v16 = vld [vmem:[%s7650_s2 + $0x7c8] ss:$16 sps:$4 sm:$0xff]   ;;  %v5331_v17 = vld [vmem:[%s7650_s2 + $0x7e4] ss:$16 sps:$4 sm:$0xff]  }
  0x4c   : > { %1434 = vmatprep.subr.bf16.mxu0 %v5263_v20  ;;  %1563 = vmatprep.subr.bf16.mxu1 %v5266_v21  ;;  %v5332_v20 = vld [vmem:[%s7650_s2 + $0x7e8] ss:$16 sps:$4 sm:$0xff]   ;;  %v5337_v21 = vld [vmem:[%s7650_s2 + $0x804] ss:$16 sps:$4 sm:$0xff]  }
  0x4e   : > { %1424 = vmatmul.mubr.bf16.vlgmr.msra.gmra.mrb[0].mxu0 %v614_v24  ;;  %1553 = vmatmul.mubr.bf16.vlgmr.msra.gmra.mrb[0].mxu1 %v614_v24  ;;  %v5338_v24 = vld [vmem:[%s7650_s2 + $0x808] ss:$16 sps:$4 sm:$0xff]  }
  0x4f   : > { %1435 = vmatpush1.bf16.msra.mxu0 %v5261_v22  ;;  %1564 = vmatpush1.bf16.msra.mxu1 %v5264_v23  ;;  %v5340_v22 = vld [vmem:[%s7650_s2 + $0x80c] ss:$16 sps:$4 sm:$0xff]   ;;  %v5335_v23 = vld [vmem:[%s7650_s2 + $0x800] ss:$16 sps:$4 sm:$0xff]  }
  0x50   : > { %1436 = vmatprep.subr.bf16.mxu0 %v5271_v25  ;;  %1565 = vmatprep.subr.bf16.mxu1 %v5274_v26  ;;  %v5343_v25 = vld [vmem:[%s7650_s2 + $0x824] ss:$16 sps:$4 sm:$0xff]   ;;  %v6382_v26 = vcombine.low %v6285_v49, %v6288_v50  ;;  %v5361_v49 = vld [vmem:[%s7650_s2 + $0x880] ss:$16 sps:$4 sm:$0xff]   ;;  %v5364_v50 = vld [vmem:[%s7650_s2 + $0x888] ss:$16 sps:$4 sm:$0xff]  }
  0x51   : > { %1466 = vmatprep.mubr.bf16.mxu0 %v650_v9  ;;  %1595 = vmatprep.mubr.bf16.mxu1 %v650_v9  ;;  %v659_v9 = vshll.u32 %v5394_v63, 16  ;;  %v5451_v63 = vld [vmem:[%s7650_s2 + $0x144] ss:$16 sps:$4 sm:$0xff]  }
  0x53   : > { %1437 = vmatpush1.bf16.msra.mxu0 %v5269_v27  ;;  %1566 = vmatpush1.bf16.msra.mxu1 %v5272_v28  ;;  %v5346_v27 = vld [vmem:[%s7650_s2 + $0x82c] ss:$16 sps:$4 sm:$0xff]   ;;  %v5341_v28 = vld [vmem:[%s7650_s2 + $0x820] ss:$16 sps:$4 sm:$0xff]  }
  0x54   : > { %1438 = vmatprep.subr.bf16.mxu0 %v5277_v29  ;;  %1567 = vmatprep.subr.bf16.mxu1 %v5280_v30  ;;  %v5344_v29 = vld [vmem:[%s7650_s2 + $0x828] ss:$16 sps:$4 sm:$0xff]   ;;  %v5349_v30 = vld [vmem:[%s7650_s2 + $0x844] ss:$16 sps:$4 sm:$0xff]  }
  0x57   : > { %1439 = vmatpush1.bf16.msra.mxu0 %v5275_v31  ;;  %1568 = vmatpush1.bf16.msra.mxu1 %v5278_v32  ;;  %v6398_v31 = vcombine.low %v6291_v51, %v6291_v51  ;;  %v630_v32 = vshll.u32 %v6382_v26, 16 }
  0x58   : > { %1440 = vmatprep.subr.bf16.mxu0 %v5283_v33  ;;  %1569 = vmatprep.subr.bf16.mxu1 %v5286_v34  ;;  %v5352_v33 = vld [vmem:[%s7650_s2 + $0x84c] ss:$16 sps:$4 sm:$0xff]   ;;  %v5347_v34 = vld [vmem:[%s7650_s2 + $0x840] ss:$16 sps:$4 sm:$0xff]  }
  0x5b   : > { %1441 = vmatpush1.bf16.msra.mxu0 %v5281_v35  ;;  %1570 = vmatpush1.bf16.msra.mxu1 %v5284_v36  ;;  %v5350_v35 = vld [vmem:[%s7650_s2 + $0x848] ss:$16 sps:$4 sm:$0xff]   ;;  %v5355_v36 = vld [vmem:[%s7650_s2 + $0x864] ss:$16 sps:$4 sm:$0xff]  }
  0x5c   : > { %1442 = vmatprep.subr.bf16.mxu0 %v5289_v37  ;;  %1571 = vmatprep.subr.bf16.mxu1 %v5292_v38  ;;  %v628_v37 = vshrl.u32 %v6382_v26, 16  ;;  %v632_v38 = vrot.slane %v630_v32, 1  ;;  %v5410_v32 = vld [vmem:[%s7650_s2 + $0x68] ss:$16 sps:$4 sm:$0xff]  }
  0x5f   : > { %1443 = vmatpush1.bf16.msra.mxu0 %v5287_v39  ;;  %1572 = vmatpush1.bf16.msra.mxu1 %v5290_v40  ;;  %v635_v39 = vshll.u32 %v6398_v31, 16  ;;  %v5358_v40 = vld [vmem:[%s7650_s2 + $0x86c] ss:$16 sps:$4 sm:$0xff]  }
  0x60   : > { %1444 = vmatprep.subr.bf16.mxu0 %v5295_v41  ;;  %1573 = vmatprep.subr.bf16.mxu1 %v5298_v42  ;;  %v5353_v41 = vld [vmem:[%s7650_s2 + $0x860] ss:$16 sps:$4 sm:$0xff]   ;;  %v5356_v42 = vld [vmem:[%s7650_s2 + $0x868] ss:$16 sps:$4 sm:$0xff]  }
  0x63   : > { %1445 = vmatpush1.bf16.msra.mxu0 %v5293_v43  ;;  %1574 = vmatpush1.bf16.msra.mxu1 %v5296_v44  ;;  %v5363_v43 = vld [vmem:[%s7650_s2 + $0x884] ss:$16 sps:$4 sm:$0xff]   ;;  %v5366_v44 = vld [vmem:[%s7650_s2 + $0x88c] ss:$16 sps:$4 sm:$0xff]  }
  0x64   : > { %1446 = vmatprep.subr.bf16.mxu0 %v5301_v45  ;;  %1575 = vmatprep.subr.bf16.mxu1 %v5304_v46  ;;  %v633_v45 = vor.u32 %v632_v38, %v628_v37  ;;  %v637_v46 = vrot.slane %v635_v39, 1  ;;  %v5421_v37 = vld [vmem:[%s7650_s2 + $0xa4] ss:$16 sps:$4 sm:$0xff]   ;;  %v5424_v38 = vld [vmem:[%s7650_s2 + $0xac] ss:$16 sps:$4 sm:$0xff]  }
  0x65   : > { %v5419_v39 = vld [vmem:[%s7650_s2 + $0xa0] ss:$16 sps:$4 sm:$0xff]  }
  0x66   : > { %v638_v51 = vsel %vm602_vm0, %v633_v45, %v637_v46  ;;  %v5433_v45 = vld [vmem:[%s7650_s2 + $0xe4] ss:$16 sps:$4 sm:$0xff]   ;;  %v5436_v46 = vld [vmem:[%s7650_s2 + $0xec] ss:$16 sps:$4 sm:$0xff]  }
  0x67   : > { %1447 = vmatpush1.bf16.msra.mxu0 %v5299_v47  ;;  %1576 = vmatpush1.bf16.msra.mxu1 %v5302_v48  ;;  %v272_v47 = vld [vmem:[%s6119_s12 + $0x10] sm:$0xf]  ;;  %v275_v48 = vld [vmem:[%s6119_s12 + $0x24] sm:$0xf] }
  0x68   : > { %1448 = vmatprep.subr.bf16.mxu0 %v5307_v55  ;;  %1577 = vmatprep.subr.bf16.mxu1 %v5310_v56  ;;  %v5371_v55 = vld [vmem:[%s7650_s2 + $0x8a4] ss:$16 sps:$4 sm:$0xff]   ;;  %v6442_v56 = vcombine.low %v272_v47, %v275_v48  ;;  %v5431_v47 = vld [vmem:[%s7650_s2 + $0xe0] ss:$16 sps:$4 sm:$0xff]   ;;  %v5434_v48 = vld [vmem:[%s7650_s2 + $0xe8] ss:$16 sps:$4 sm:$0xff]  }
  0x6b   : > { %1449 = vmatpush1.bf16.msra.mxu0 %v5305_v60  ;;  %1578 = vmatpush1.bf16.msra.mxu1 %v5308_v61  ;;  %v5372_v60 = vld [vmem:[%s7650_s2 + $0x8a8] ss:$16 sps:$4 sm:$0xff]   ;;  %v5377_v61 = vld [vmem:[%s7650_s2 + $0x8c4] ss:$16 sps:$4 sm:$0xff]  }
  0x6c   : > { %1450 = vmatprep.subr.bf16.mxu0 %v5313_v0  ;;  %1579 = vmatprep.subr.bf16.mxu1 %v5316_v1  ;;  %v654_v0 = vshll.u32 %v6442_v56, 16  ;;  %v5380_v1 = vld [vmem:[%s7650_s2 + $0x8cc] ss:$16 sps:$4 sm:$0xff]  }
  0x6f   : > { %1451 = vmatpush1.bf16.msra.mxu0 %v5311_v6  ;;  %1580 = vmatpush1.bf16.msra.mxu1 %v5314_v7  ;;  %v5383_v6 = vld [vmem:[%s7650_s2 + $0x8e4] ss:$16 sps:$4 sm:$0xff]   ;;  %v652_v7 = vshrl.u32 %v6442_v56, 16 }
  0x70   : > { %1452 = vmatprep.subr.bf16.mxu0 %v5319_v8  ;;  %1581 = vmatprep.subr.bf16.mxu1 %v5322_v10  ;;  %v656_v8 = vrot.slane %v654_v0, 1  ;;  %v5386_v10 = vld [vmem:[%s7650_s2 + $0x8ec] ss:$16 sps:$4 sm:$0xff]  }
  0x71   : > { %v5454_v0 = vld [vmem:[%s7650_s2 + $0x14c] ss:$16 sps:$4 sm:$0xff]  }
  0x73   : > { %1453 = vmatpush1.bf16.msra.mxu0 %v5317_v11  ;;  %1582 = vmatpush1.bf16.msra.mxu1 %v5320_v12  ;;  %v5381_v11 = vld [vmem:[%s7650_s2 + $0x8e0] ss:$16 sps:$4 sm:$0xff]   ;;  %v5384_v12 = vld [vmem:[%s7650_s2 + $0x8e8] ss:$16 sps:$4 sm:$0xff]  }
  0x74   : > { %1454 = vmatprep.subr.bf16.mxu0 %v5325_v13  ;;  %1583 = vmatprep.subr.bf16.mxu1 %v5328_v14  ;;  %v5389_v13 = vld [vmem:[%s7650_s2 + $0x4] ss:$16 sps:$4 sm:$0xff]   ;;  %v657_v14 = vor.u32 %v656_v8, %v652_v7  ;;  %v5455_v7 = vld [vmem:[%s7650_s2 + $0x160] ss:$16 sps:$4 sm:$0xff]   ;;  %v5458_v8 = vld [vmem:[%s7650_s2 + $0x168] ss:$16 sps:$4 sm:$0xff]  }
  0x77   : > { %1455 = vmatpush1.bf16.msra.mxu0 %v5323_v15  ;;  %1584 = vmatpush1.bf16.msra.mxu1 %v5326_v16  ;;  %v661_v15 = vrot.slane %v659_v9, 1  ;;  %v5392_v16 = vld [vmem:[%s7650_s2 + $0xc] ss:$16 sps:$4 sm:$0xff]   ;;  %v5463_v9 = vld [vmem:[%s7650_s2 + $0x184] ss:$16 sps:$4 sm:$0xff]  }
  0x78   : > { %1456 = vmatprep.subr.bf16.mxu0 %v5331_v17  ;;  %1585 = vmatprep.subr.bf16.mxu1 %v5334_v18  ;;  %v5387_v17 = vld [vmem:[%s7650_s2] ss:$16 sps:$4 sm:$0xff]   ;;  %v5390_v18 = vld [vmem:[%s7650_s2 + $0x8] ss:$16 sps:$4 sm:$0xff]  }
  0x7b   : > { %1457 = vmatpush1.bf16.msra.mxu0 %v5329_v19  ;;  %1586 = vmatpush1.bf16.msra.mxu1 %v5332_v20  ;;  %v662_v19 = vsel %vm602_vm0, %v657_v14, %v661_v15  ;;  %v5397_v20 = vld [vmem:[%s7650_s2 + $0x24] ss:$16 sps:$4 sm:$0xff]   ;;  %v5472_v14 = vld [vmem:[%s7650_s2 + $0x1ac] ss:$16 sps:$4 sm:$0xff]   ;;  %v5467_v15 = vld [vmem:[%s7650_s2 + $0x1a0] ss:$16 sps:$4 sm:$0xff]  }
  0x7c   : > { %1458 = vmatprep.subr.bf16.mxu0 %v5337_v21  ;;  %1587 = vmatprep.subr.bf16.mxu1 %v5340_v22  ;;  %v5400_v21 = vld [vmem:[%s7650_s2 + $0x2c] ss:$16 sps:$4 sm:$0xff]   ;;  %v5395_v22 = vld [vmem:[%s7650_s2 + $0x20] ss:$16 sps:$4 sm:$0xff]  }
  0x7f   : > { %1459 = vmatpush1.bf16.msra.mxu0 %v5335_v23  ;;  %1588 = vmatpush1.bf16.msra.mxu1 %v5338_v24  ;;  %v5398_v23 = vld [vmem:[%s7650_s2 + $0x28] ss:$16 sps:$4 sm:$0xff]   ;;  %v5403_v24 = vld [vmem:[%s7650_s2 + $0x44] ss:$16 sps:$4 sm:$0xff]  }
  0x80   : > { %1460 = vmatprep.subr.bf16.mxu0 %v5343_v25  ;;  %1589 = vmatprep.subr.bf16.mxu1 %v5346_v27  ;;  %v5406_v25 = vld [vmem:[%s7650_s2 + $0x4c] ss:$16 sps:$4 sm:$0xff]   ;;  %v5401_v27 = vld [vmem:[%s7650_s2 + $0x40] ss:$16 sps:$4 sm:$0xff]  }
  0x83   : > { %1461 = vmatpush1.bf16.msra.mxu0 %v5341_v28  ;;  %1590 = vmatpush1.bf16.msra.mxu1 %v5344_v29  ;;  %v5404_v28 = vld [vmem:[%s7650_s2 + $0x48] ss:$16 sps:$4 sm:$0xff]   ;;  %v5409_v29 = vld [vmem:[%s7650_s2 + $0x64] ss:$16 sps:$4 sm:$0xff]  }
  0x84   : > { %1462 = vmatprep.subr.bf16.mxu0 %v5349_v30  ;;  %1591 = vmatprep.subr.bf16.mxu1 %v5352_v33  ;;  %v5407_v30 = vld [vmem:[%s7650_s2 + $0x60] ss:$16 sps:$4 sm:$0xff]   ;;  %v5415_v33 = vld [vmem:[%s7650_s2 + $0x84] ss:$16 sps:$4 sm:$0xff]  }
  0x87   : > { %1463 = vmatpush1.bf16.msra.mxu0 %v5347_v34  ;;  %1592 = vmatpush1.bf16.msra.mxu1 %v5350_v35  ;;  %v5418_v34 = vld [vmem:[%s7650_s2 + $0x8c] ss:$16 sps:$4 sm:$0xff]   ;;  %v5413_v35 = vld [vmem:[%s7650_s2 + $0x80] ss:$16 sps:$4 sm:$0xff]  }
  0x88   : > { %1464 = vmatprep.subr.bf16.mxu0 %v5355_v36  ;;  %1593 = vmatprep.subr.bf16.mxu1 %v5358_v40  ;;  %v5416_v36 = vld [vmem:[%s7650_s2 + $0x88] ss:$16 sps:$4 sm:$0xff]  }
  0x89   : > { %v5422_v40 = vld [vmem:[%s7650_s2 + $0xa8] ss:$16 sps:$4 sm:$0xff]  }
  0x8b   : > { %1465 = vmatpush1.bf16.msra.mxu0 %v5353_v41  ;;  %1594 = vmatpush1.bf16.msra.mxu1 %v5356_v42  ;;  %v5427_v41 = vld [vmem:[%s7650_s2 + $0xc4] ss:$16 sps:$4 sm:$0xff]   ;;  %v5430_v42 = vld [vmem:[%s7650_s2 + $0xcc] ss:$16 sps:$4 sm:$0xff]  }
  0x8c   : > { %1477 = vmatprep.subr.bf16.mxu0 %v5363_v43  ;;  %1606 = vmatprep.subr.bf16.mxu1 %v5366_v44  ;;  %v5425_v43 = vld [vmem:[%s7650_s2 + $0xc0] ss:$16 sps:$4 sm:$0xff]   ;;  %v5428_v44 = vld [vmem:[%s7650_s2 + $0xc8] ss:$16 sps:$4 sm:$0xff]  }
  0x8e   : > { %1467 = vmatmul.mubr.bf16.vlgmr.msra.gmra.mrb[0].mxu0 %v638_v51  ;;  %1596 = vmatmul.mubr.bf16.vlgmr.msra.gmra.mrb[0].mxu1 %v638_v51  ;;  %v5437_v51 = vld [vmem:[%s7650_s2 + $0x100] ss:$16 sps:$4 sm:$0xff]  }
  0x8f   : > { %1478 = vmatpush1.bf16.msra.mxu0 %v5361_v49  ;;  %1607 = vmatpush1.bf16.msra.mxu1 %v5364_v50  ;;  %v5439_v49 = vld [vmem:[%s7650_s2 + $0x104] ss:$16 sps:$4 sm:$0xff]   ;;  %v5442_v50 = vld [vmem:[%s7650_s2 + $0x10c] ss:$16 sps:$4 sm:$0xff]  }
  0x90   : > { %1479 = vmatprep.subr.bf16.mxu0 %v5371_v55  ;;  %1608 = vmatprep.subr.bf16.mxu1 %v5374_v58  ;;  %v5440_v55 = vld [vmem:[%s7650_s2 + $0x108] ss:$16 sps:$4 sm:$0xff]   ;;  %v5445_v58 = vld [vmem:[%s7650_s2 + $0x124] ss:$16 sps:$4 sm:$0xff]  }
  0x91   : > { %1509 = vmatprep.mubr.bf16.mxu0 %v5894_v3  ;;  %1638 = vmatprep.mubr.bf16.mxu1 %v5894_v3 }
  0x93   : > { %1480 = vmatpush1.bf16.msra.mxu0 %v5369_v59  ;;  %1609 = vmatpush1.bf16.msra.mxu1 %v5372_v60  ;;  %v5448_v59 = vld [vmem:[%s7650_s2 + $0x12c] ss:$16 sps:$4 sm:$0xff]   ;;  %v5443_v60 = vld [vmem:[%s7650_s2 + $0x120] ss:$16 sps:$4 sm:$0xff]  }
  0x94   : > { %1481 = vmatprep.subr.bf16.mxu0 %v5377_v61  ;;  %1610 = vmatprep.subr.bf16.mxu1 %v5380_v1  ;;  %v5446_v61 = vld [vmem:[%s7650_s2 + $0x128] ss:$16 sps:$4 sm:$0xff]   ;;  %v5449_v1 = vld [vmem:[%s7650_s2 + $0x140] ss:$16 sps:$4 sm:$0xff]  }
  0x97   : > { %1482 = vmatpush1.bf16.msra.mxu0 %v5375_v2  ;;  %1611 = vmatpush1.bf16.msra.mxu1 %v5378_v4  ;;  %v5452_v2 = vld [vmem:[%s7650_s2 + $0x148] ss:$16 sps:$4 sm:$0xff]   ;;  %v5457_v4 = vld [vmem:[%s7650_s2 + $0x164] ss:$16 sps:$4 sm:$0xff]  }
  0x98   : > { %1483 = vmatprep.subr.bf16.mxu0 %v5383_v6  ;;  %1612 = vmatprep.subr.bf16.mxu1 %v5386_v10  ;;  %v5460_v6 = vld [vmem:[%s7650_s2 + $0x16c] ss:$16 sps:$4 sm:$0xff]  }
  0x99   : > { %v5466_v10 = vld [vmem:[%s7650_s2 + $0x18c] ss:$16 sps:$4 sm:$0xff]  }
  0x9b   : > { %1484 = vmatpush1.bf16.msra.mxu0 %v5381_v11  ;;  %1613 = vmatpush1.bf16.msra.mxu1 %v5384_v12  ;;  %v5461_v11 = vld [vmem:[%s7650_s2 + $0x180] ss:$16 sps:$4 sm:$0xff]   ;;  %v5464_v12 = vld [vmem:[%s7650_s2 + $0x188] ss:$16 sps:$4 sm:$0xff]  }
  0x9c   : > { %2375 = vmatprep.subr.bf16.mxu0 %v5389_v13  ;;  %2504 = vmatprep.subr.bf16.mxu1 %v5392_v16  ;;  %v5469_v13 = vld [vmem:[%s7650_s2 + $0x1a4] ss:$16 sps:$4 sm:$0xff]   ;;  %v5470_v16 = vld [vmem:[%s7650_s2 + $0x1a8] ss:$16 sps:$4 sm:$0xff]  }
  0x9e   : > { %4471 = vmatmul.mubr.msk.bf16.vlgmr.msra.gmra.mrb[0].mxu0 %vm1387_vm1, %v662_v19  ;;  %4472 = vmatmul.mubr.msk.bf16.vlgmr.msra.gmra.mrb[0].mxu1 %vm1387_vm1, %v662_v19  ;;  %v5473_v19 = vld [vmem:[%s7650_s2 + $0x1c0] ss:$16 sps:$4 sm:$0xff]  }
  0x9f   : > { %2376 = vmatpush1.bf16.msra.mxu0 %v5387_v17  ;;  %2505 = vmatpush1.bf16.msra.mxu1 %v5390_v18  ;;  %v5475_v17 = vld [vmem:[%s7650_s2 + $0x1c4] ss:$16 sps:$4 sm:$0xff]   ;;  %v5478_v18 = vld [vmem:[%s7650_s2 + $0x1cc] ss:$16 sps:$4 sm:$0xff]  }
  0xa0   : > { %2377 = vmatprep.subr.bf16.mxu0 %v5397_v20  ;;  %2506 = vmatprep.subr.bf16.mxu1 %v5400_v21  ;;  %v5476_v20 = vld [vmem:[%s7650_s2 + $0x1c8] ss:$16 sps:$4 sm:$0xff]   ;;  %v5481_v21 = vld [vmem:[%s7650_s2 + $0x1e4] ss:$16 sps:$4 sm:$0xff]  }
  0xa1   : > { %2407 = vmatprep.mubr.bf16.mxu0 %v6139_v52  ;;  %2536 = vmatprep.mubr.bf16.mxu1 %v6139_v52  ;;  %v5412_v52 = vld [vmem:[%s7650_s2 + $0x6c] ss:$16 sps:$4 sm:$0xff]  }
  0xa3   : > { %2378 = vmatpush1.bf16.msra.mxu0 %v5395_v22  ;;  %2507 = vmatpush1.bf16.msra.mxu1 %v5398_v23  ;;  %v5484_v22 = vld [vmem:[%s7650_s2 + $0x1ec] ss:$16 sps:$4 sm:$0xff]   ;;  %v5479_v23 = vld [vmem:[%s7650_s2 + $0x1e0] ss:$16 sps:$4 sm:$0xff]  }
  0xa4   : > { %2379 = vmatprep.subr.bf16.mxu0 %v5403_v24  ;;  %2508 = vmatprep.subr.bf16.mxu1 %v5406_v25  ;;  %v5482_v24 = vld [vmem:[%s7650_s2 + $0x1e8] ss:$16 sps:$4 sm:$0xff]   ;;  %v5487_v25 = vld [vmem:[%s7650_s2 + $0x204] ss:$16 sps:$4 sm:$0xff]  }
  0xa7   : > { %2380 = vmatpush1.bf16.msra.mxu0 %v5401_v27  ;;  %2509 = vmatpush1.bf16.msra.mxu1 %v5404_v28  ;;  %v5490_v27 = vld [vmem:[%s7650_s2 + $0x20c] ss:$16 sps:$4 sm:$0xff]   ;;  %v5485_v28 = vld [vmem:[%s7650_s2 + $0x200] ss:$16 sps:$4 sm:$0xff]  }
  0xa8   : > { %2381 = vmatprep.subr.bf16.mxu0 %v5409_v29  ;;  %2510 = vmatprep.subr.bf16.mxu1 %v5412_v52  ;;  %v5488_v29 = vld [vmem:[%s7650_s2 + $0x208] ss:$16 sps:$4 sm:$0xff]   ;;  %v5493_v52 = vld [vmem:[%s7650_s2 + $0x224] ss:$16 sps:$4 sm:$0xff]  }
  0xab   : > { %2382 = vmatpush1.bf16.msra.mxu0 %v5407_v30  ;;  %2511 = vmatpush1.bf16.msra.mxu1 %v5410_v32  ;;  %v5496_v30 = vld [vmem:[%s7650_s2 + $0x22c] ss:$16 sps:$4 sm:$0xff]   ;;  %v5491_v32 = vld [vmem:[%s7650_s2 + $0x220] ss:$16 sps:$4 sm:$0xff]  }
  0xac   : > { %2383 = vmatprep.subr.bf16.mxu0 %v5415_v33  ;;  %2512 = vmatprep.subr.bf16.mxu1 %v5418_v34  ;;  %v5494_v33 = vld [vmem:[%s7650_s2 + $0x228] ss:$16 sps:$4 sm:$0xff]   ;;  %v5499_v34 = vld [vmem:[%s7650_s2 + $0x244] ss:$16 sps:$4 sm:$0xff]  }
  0xaf   : > { %2384 = vmatpush1.bf16.msra.mxu0 %v5413_v35  ;;  %2513 = vmatpush1.bf16.msra.mxu1 %v5416_v36  ;;  %v5497_v35 = vld [vmem:[%s7650_s2 + $0x240] ss:$16 sps:$4 sm:$0xff]   ;;  %v5500_v36 = vld [vmem:[%s7650_s2 + $0x248] ss:$16 sps:$4 sm:$0xff]  }
  0xb0   : > { %2385 = vmatprep.subr.bf16.mxu0 %v5421_v37  ;;  %2514 = vmatprep.subr.bf16.mxu1 %v5424_v38  ;;  %v5505_v37 = vld [vmem:[%s7650_s2 + $0x264] ss:$16 sps:$4 sm:$0xff]   ;;  %v5503_v38 = vld [vmem:[%s7650_s2 + $0x260] ss:$16 sps:$4 sm:$0xff]  }
  0xb3   : > { %2386 = vmatpush1.bf16.msra.mxu0 %v5419_v39  ;;  %2515 = vmatpush1.bf16.msra.mxu1 %v5422_v40  ;;  %v5506_v39 = vld [vmem:[%s7650_s2 + $0x268] ss:$16 sps:$4 sm:$0xff]   ;;  %v5511_v40 = vld [vmem:[%s7650_s2 + $0x284] ss:$16 sps:$4 sm:$0xff]  }
  0xb4   : > { %2387 = vmatprep.subr.bf16.mxu0 %v5427_v41  ;;  %2516 = vmatprep.subr.bf16.mxu1 %v5430_v42  ;;  %v5514_v41 = vld [vmem:[%s7650_s2 + $0x28c] ss:$16 sps:$4 sm:$0xff]   ;;  %v5509_v42 = vld [vmem:[%s7650_s2 + $0x280] ss:$16 sps:$4 sm:$0xff]  }
  0xb7   : > { %2388 = vmatpush1.bf16.msra.mxu0 %v5425_v43  ;;  %2517 = vmatpush1.bf16.msra.mxu1 %v5428_v44  ;;  %v5512_v43 = vld [vmem:[%s7650_s2 + $0x288] ss:$16 sps:$4 sm:$0xff]   ;;  %v5517_v44 = vld [vmem:[%s7650_s2 + $0x2a4] ss:$16 sps:$4 sm:$0xff]  }
  0xb8   : > { %2389 = vmatprep.subr.bf16.mxu0 %v5433_v45  ;;  %2518 = vmatprep.subr.bf16.mxu1 %v5436_v46  ;;  %v5520_v45 = vld [vmem:[%s7650_s2 + $0x2ac] ss:$16 sps:$4 sm:$0xff]   ;;  %v5515_v46 = vld [vmem:[%s7650_s2 + $0x2a0] ss:$16 sps:$4 sm:$0xff]  }
  0xbb   : > { %2390 = vmatpush1.bf16.msra.mxu0 %v5431_v47  ;;  %2519 = vmatpush1.bf16.msra.mxu1 %v5434_v48  ;;  %v5518_v47 = vld [vmem:[%s7650_s2 + $0x2a8] ss:$16 sps:$4 sm:$0xff]   ;;  %v5523_v48 = vld [vmem:[%s7650_s2 + $0x2c4] ss:$16 sps:$4 sm:$0xff]  }
  0xbc   : > { %2391 = vmatprep.subr.bf16.mxu0 %v5439_v49  ;;  %2520 = vmatprep.subr.bf16.mxu1 %v5442_v50  ;;  %v5526_v49 = vld [vmem:[%s7650_s2 + $0x2cc] ss:$16 sps:$4 sm:$0xff]   ;;  %v5521_v50 = vld [vmem:[%s7650_s2 + $0x2c0] ss:$16 sps:$4 sm:$0xff]  }
  0xbf   : > { %2392 = vmatpush1.bf16.msra.mxu0 %v5437_v51  ;;  %2521 = vmatpush1.bf16.msra.mxu1 %v5440_v55  ;;  %v5524_v51 = vld [vmem:[%s7650_s2 + $0x2c8] ss:$16 sps:$4 sm:$0xff]   ;;  %v5529_v55 = vld [vmem:[%s7650_s2 + $0x2e4] ss:$16 sps:$4 sm:$0xff]  }
  0xc0   : > { %2393 = vmatprep.subr.bf16.mxu0 %v5445_v58  ;;  %2522 = vmatprep.subr.bf16.mxu1 %v5448_v59  ;;  %v5532_v58 = vld [vmem:[%s7650_s2 + $0x2ec] ss:$16 sps:$4 sm:$0xff]   ;;  %v5527_v59 = vld [vmem:[%s7650_s2 + $0x2e0] ss:$16 sps:$4 sm:$0xff]  }
  0xc3   : > { %2394 = vmatpush1.bf16.msra.mxu0 %v5443_v60  ;;  %2523 = vmatpush1.bf16.msra.mxu1 %v5446_v61  ;;  %v5530_v60 = vld [vmem:[%s7650_s2 + $0x2e8] ss:$16 sps:$4 sm:$0xff]   ;;  %v5535_v61 = vld [vmem:[%s7650_s2 + $0x304] ss:$16 sps:$4 sm:$0xff]  }
  0xc4   : > { %2395 = vmatprep.subr.bf16.mxu0 %v5451_v63  ;;  %2524 = vmatprep.subr.bf16.mxu1 %v5454_v0  ;;  %v5538_v63 = vld [vmem:[%s7650_s2 + $0x30c] ss:$16 sps:$4 sm:$0xff]   ;;  %v5533_v0 = vld [vmem:[%s7650_s2 + $0x300] ss:$16 sps:$4 sm:$0xff]  }
  0xc7   : > { %2396 = vmatpush1.bf16.msra.mxu0 %v5449_v1  ;;  %2525 = vmatpush1.bf16.msra.mxu1 %v5452_v2  ;;  %v5536_v1 = vld [vmem:[%s7650_s2 + $0x308] ss:$16 sps:$4 sm:$0xff]   ;;  %v5541_v2 = vld [vmem:[%s7650_s2 + $0x324] ss:$16 sps:$4 sm:$0xff]  }
  0xc8   : > { %2397 = vmatprep.subr.bf16.mxu0 %v5457_v4  ;;  %2526 = vmatprep.subr.bf16.mxu1 %v5460_v6  ;;  %v5544_v4 = vld [vmem:[%s7650_s2 + $0x32c] ss:$16 sps:$4 sm:$0xff]   ;;  %v5539_v6 = vld [vmem:[%s7650_s2 + $0x320] ss:$16 sps:$4 sm:$0xff]  }
  0xcb   : > { %2398 = vmatpush1.bf16.msra.mxu0 %v5455_v7  ;;  %2527 = vmatpush1.bf16.msra.mxu1 %v5458_v8  ;;  %v5542_v7 = vld [vmem:[%s7650_s2 + $0x328] ss:$16 sps:$4 sm:$0xff]   ;;  %v5547_v8 = vld [vmem:[%s7650_s2 + $0x344] ss:$16 sps:$4 sm:$0xff]  }
  0xcc   : > { %2399 = vmatprep.subr.bf16.mxu0 %v5463_v9  ;;  %2528 = vmatprep.subr.bf16.mxu1 %v5466_v10  ;;  %v5550_v9 = vld [vmem:[%s7650_s2 + $0x34c] ss:$16 sps:$4 sm:$0xff]   ;;  %v5545_v10 = vld [vmem:[%s7650_s2 + $0x340] ss:$16 sps:$4 sm:$0xff]  }
  0xcf   : > { %2400 = vmatpush1.bf16.msra.mxu0 %v5461_v11  ;;  %2529 = vmatpush1.bf16.msra.mxu1 %v5464_v12  ;;  %v5548_v11 = vld [vmem:[%s7650_s2 + $0x348] ss:$16 sps:$4 sm:$0xff]   ;;  %v5553_v12 = vld [vmem:[%s7650_s2 + $0x364] ss:$16 sps:$4 sm:$0xff]  }
  0xd0   : > { %2401 = vmatprep.subr.bf16.mxu0 %v5469_v13  ;;  %2530 = vmatprep.subr.bf16.mxu1 %v5472_v14  ;;  %v5556_v13 = vld [vmem:[%s7650_s2 + $0x36c] ss:$16 sps:$4 sm:$0xff]   ;;  %v5551_v14 = vld [vmem:[%s7650_s2 + $0x360] ss:$16 sps:$4 sm:$0xff]  }
  0xd3   : > { %2402 = vmatpush1.bf16.msra.mxu0 %v5467_v15  ;;  %2531 = vmatpush1.bf16.msra.mxu1 %v5470_v16  ;;  %v5554_v15 = vld [vmem:[%s7650_s2 + $0x368] ss:$16 sps:$4 sm:$0xff]   ;;  %v5559_v16 = vld [vmem:[%s7650_s2 + $0x384] ss:$16 sps:$4 sm:$0xff]  }
  0xd4   : > { %2403 = vmatprep.subr.bf16.mxu0 %v5475_v17  ;;  %2532 = vmatprep.subr.bf16.mxu1 %v5478_v18  ;;  %v5562_v17 = vld [vmem:[%s7650_s2 + $0x38c] ss:$16 sps:$4 sm:$0xff]   ;;  %v5557_v18 = vld [vmem:[%s7650_s2 + $0x380] ss:$16 sps:$4 sm:$0xff]  }
  0xd7   : > { %2404 = vmatpush1.bf16.msra.mxu0 %v5473_v19  ;;  %2533 = vmatpush1.bf16.msra.mxu1 %v5476_v20  ;;  %v5560_v19 = vld [vmem:[%s7650_s2 + $0x388] ss:$16 sps:$4 sm:$0xff]   ;;  %v5565_v20 = vld [vmem:[%s7650_s2 + $0x3a4] ss:$16 sps:$4 sm:$0xff]  }
  0xd8   : > { %2405 = vmatprep.subr.bf16.mxu0 %v5481_v21  ;;  %2534 = vmatprep.subr.bf16.mxu1 %v5484_v22  ;;  %v5568_v21 = vld [vmem:[%s7650_s2 + $0x3ac] ss:$16 sps:$4 sm:$0xff]   ;;  %v5563_v22 = vld [vmem:[%s7650_s2 + $0x3a0] ss:$16 sps:$4 sm:$0xff]  }
  0xdb   : > { %2406 = vmatpush1.bf16.msra.mxu0 %v5479_v23  ;;  %2535 = vmatpush1.bf16.msra.mxu1 %v5482_v24  ;;  %v5566_v23 = vld [vmem:[%s7650_s2 + $0x3a8] ss:$16 sps:$4 sm:$0xff]   ;;  %v5571_v24 = vld [vmem:[%s7650_s2 + $0x3c4] ss:$16 sps:$4 sm:$0xff]  }
  0xdc   : > { %2418 = vmatprep.subr.bf16.mxu0 %v5487_v25  ;;  %2547 = vmatprep.subr.bf16.mxu1 %v5490_v27  ;;  %v5574_v25 = vld [vmem:[%s7650_s2 + $0x3cc] ss:$16 sps:$4 sm:$0xff]   ;;  %v5569_v27 = vld [vmem:[%s7650_s2 + $0x3c0] ss:$16 sps:$4 sm:$0xff]  }
  0xde   : > { %2408 = vmatmul.mubr.bf16.vlgmr.msra.gmra.mrb[0].mxu0 %v6155_v62  ;;  %2537 = vmatmul.mubr.bf16.vlgmr.msra.gmra.mrb[0].mxu1 %v6155_v62  ;;  %v5502_v62 = vld [vmem:[%s7650_s2 + $0x24c] ss:$16 sps:$4 sm:$0xff]  }
  0xdf   : > { %2419 = vmatpush1.bf16.msra.mxu0 %v5485_v28  ;;  %2548 = vmatpush1.bf16.msra.mxu1 %v5488_v29  ;;  %v5572_v28 = vld [vmem:[%s7650_s2 + $0x3c8] ss:$16 sps:$4 sm:$0xff]   ;;  %v5577_v29 = vld [vmem:[%s7650_s2 + $0x3e4] ss:$16 sps:$4 sm:$0xff]  }
  0xe0   : > { %2420 = vmatprep.subr.bf16.mxu0 %v5493_v52  ;;  %2549 = vmatprep.subr.bf16.mxu1 %v5496_v30  ;;  %v5580_v52 = vld [vmem:[%s7650_s2 + $0x3ec] ss:$16 sps:$4 sm:$0xff]   ;;  %v5575_v30 = vld [vmem:[%s7650_s2 + $0x3e0] ss:$16 sps:$4 sm:$0xff]  }
  0xe1   : > { %2450 = vmatprep.mubr.bf16.mxu0 %v6295_v54  ;;  %2579 = vmatprep.mubr.bf16.mxu1 %v6295_v54  ;;  %v5508_v54 = vld [vmem:[%s7650_s2 + $0x26c] ss:$16 sps:$4 sm:$0xff]  }
  0xe3   : > { %2421 = vmatpush1.bf16.msra.mxu0 %v5491_v32  ;;  %2550 = vmatpush1.bf16.msra.mxu1 %v5494_v33  ;;  %v5578_v32 = vld [vmem:[%s7650_s2 + $0x3e8] ss:$16 sps:$4 sm:$0xff]   ;;  %v5583_v33 = vld [vmem:[%s7650_s2 + $0x404] ss:$16 sps:$4 sm:$0xff]  }
  0xe4   : > { %2422 = vmatprep.subr.bf16.mxu0 %v5499_v34  ;;  %2551 = vmatprep.subr.bf16.mxu1 %v5502_v62  ;;  %v5586_v34 = vld [vmem:[%s7650_s2 + $0x40c] ss:$16 sps:$4 sm:$0xff]   ;;  %v5581_v62 = vld [vmem:[%s7650_s2 + $0x400] ss:$16 sps:$4 sm:$0xff]  }
  0xe7   : > { %2423 = vmatpush1.bf16.msra.mxu0 %v5497_v35  ;;  %2552 = vmatpush1.bf16.msra.mxu1 %v5500_v36  ;;  %v5584_v35 = vld [vmem:[%s7650_s2 + $0x408] ss:$16 sps:$4 sm:$0xff]   ;;  %v5589_v36 = vld [vmem:[%s7650_s2 + $0x424] ss:$16 sps:$4 sm:$0xff]  }
  0xe8   : > { %2424 = vmatprep.subr.bf16.mxu0 %v5505_v37  ;;  %2553 = vmatprep.subr.bf16.mxu1 %v5508_v54  ;;  %v5592_v37 = vld [vmem:[%s7650_s2 + $0x42c] ss:$16 sps:$4 sm:$0xff]   ;;  %v5587_v54 = vld [vmem:[%s7650_s2 + $0x420] ss:$16 sps:$4 sm:$0xff]  }
  0xeb   : > { %2425 = vmatpush1.bf16.msra.mxu0 %v5503_v38  ;;  %2554 = vmatpush1.bf16.msra.mxu1 %v5506_v39  ;;  %v5590_v38 = vld [vmem:[%s7650_s2 + $0x428] ss:$16 sps:$4 sm:$0xff]   ;;  %v5595_v39 = vld [vmem:[%s7650_s2 + $0x444] ss:$16 sps:$4 sm:$0xff]  }
  0xec   : > { %2426 = vmatprep.subr.bf16.mxu0 %v5511_v40  ;;  %2555 = vmatprep.subr.bf16.mxu1 %v5514_v41  ;;  %v5593_v40 = vld [vmem:[%s7650_s2 + $0x440] ss:$16 sps:$4 sm:$0xff]   ;;  %v5596_v41 = vld [vmem:[%s7650_s2 + $0x448] ss:$16 sps:$4 sm:$0xff]  }
  0xef   : > { %2427 = vmatpush1.bf16.msra.mxu0 %v5509_v42  ;;  %2556 = vmatpush1.bf16.msra.mxu1 %v5512_v43  ;;  %v6916_v42 = vld [vmem:[%s6119_s12] sm:$0xee] }
  0xf0   : > { %2428 = vmatprep.subr.bf16.mxu0 %v5517_v44  ;;  %2557 = vmatprep.subr.bf16.mxu1 %v5520_v45  ;;  %v5601_v43 = vld [vmem:[%s7650_s2 + $0x464] ss:$16 sps:$4 sm:$0xff]   ;;  %v5604_v44 = vld [vmem:[%s7650_s2 + $0x46c] ss:$16 sps:$4 sm:$0xff]  }
  0xf1   : > { %v6925_v45 = vld [vmem:[%s6119_s12 + $0x14] sm:$0xff] }
  0xf3   : > { %2429 = vmatpush1.bf16.msra.mxu0 %v5515_v46  ;;  %2558 = vmatpush1.bf16.msra.mxu1 %v5518_v47  ;;  %v4764_v46 = vcombine.high %v6916_v42, %v6925_v45  ;;  %v5599_v47 = vld [vmem:[%s7650_s2 + $0x460] ss:$16 sps:$4 sm:$0xff]  }
  0xf4   : > { %2430 = vmatprep.subr.bf16.mxu0 %v5523_v48  ;;  %2559 = vmatprep.subr.bf16.mxu1 %v5526_v49  ;;  %v5602_v48 = vld [vmem:[%s7650_s2 + $0x468] ss:$16 sps:$4 sm:$0xff]   ;;  %v5607_v49 = vld [vmem:[%s7650_s2 + $0x904] ss:$16 sps:$4 sm:$0xff]  }
  0xf7   : > { %2431 = vmatpush1.bf16.msra.mxu0 %v5521_v50  ;;  %2560 = vmatpush1.bf16.msra.mxu1 %v5524_v51  ;;  %v5610_v50 = vld [vmem:[%s7650_s2 + $0x90c] ss:$16 sps:$4 sm:$0xff]   ;;  %v2798_v51 = vrot.slane %v4764_v46, 1  ;;  %v5685_v46 = vld [vmem:[%s7650_s2 + $0xaa4] ss:$16 sps:$4 sm:$0xff]  }
  0xf8   : > { %2432 = vmatprep.subr.bf16.mxu0 %v5529_v55  ;;  %2561 = vmatprep.subr.bf16.mxu1 %v5532_v58  ;;  %v2799_v55 = vrot.slane %v6141_v53, 1  ;;  %v5605_v58 = vld [vmem:[%s7650_s2 + $0x900] ss:$16 sps:$4 sm:$0xff]   ;;  %v5616_v53 = vld [vmem:[%s7650_s2 + $0x92c] ss:$16 sps:$4 sm:$0xff]  }
  0xfb   : > { %2433 = vmatpush1.bf16.msra.mxu0 %v5527_v59  ;;  %2562 = vmatpush1.bf16.msra.mxu1 %v5530_v60  ;;  %v5608_v59 = vld [vmem:[%s7650_s2 + $0x908] ss:$16 sps:$4 sm:$0xff]   ;;  %v5613_v60 = vld [vmem:[%s7650_s2 + $0x924] ss:$16 sps:$4 sm:$0xff]  }
  0xfc   : > { %2434 = vmatprep.subr.bf16.mxu0 %v5535_v61  ;;  %2563 = vmatprep.subr.bf16.mxu1 %v5538_v63  ;;  %v2800_v61 = vsel %vm2794_vm2, %v2798_v51, %v2799_v55  ;;  %v5611_v63 = vld [vmem:[%s7650_s2 + $0x920] ss:$16 sps:$4 sm:$0xff]   ;;  %v5694_v51 = vld [vmem:[%s7650_s2 + $0xacc] ss:$16 sps:$4 sm:$0xff]  }
  0xfd   : > { %v5689_v55 = vld [vmem:[%s7650_s2 + $0xac0] ss:$16 sps:$4 sm:$0xff]  }
  0xff   : > { %2435 = vmatpush1.bf16.msra.mxu0 %v5533_v0  ;;  %2564 = vmatpush1.bf16.msra.mxu1 %v5536_v1  ;;  %v5614_v0 = vld [vmem:[%s7650_s2 + $0x928] ss:$16 sps:$4 sm:$0xff]   ;;  %v5619_v1 = vld [vmem:[%s7650_s2 + $0x944] ss:$16 sps:$4 sm:$0xff]  }
 0x100   : > { %2436 = vmatprep.subr.bf16.mxu0 %v5541_v2  ;;  %2565 = vmatprep.subr.bf16.mxu1 %v5544_v4  ;;  %v5617_v2 = vld [vmem:[%s7650_s2 + $0x940] ss:$16 sps:$4 sm:$0xff]   ;;  %v5620_v4 = vld [vmem:[%s7650_s2 + $0x948] ss:$16 sps:$4 sm:$0xff]  }
 0x103   : > { %2437 = vmatpush1.bf16.msra.mxu0 %v5539_v6  ;;  %2566 = vmatpush1.bf16.msra.mxu1 %v5542_v7  ;;  %v5625_v6 = vld [vmem:[%s7650_s2 + $0x964] ss:$16 sps:$4 sm:$0xff]   ;;  %v5628_v7 = vld [vmem:[%s7650_s2 + $0x96c] ss:$16 sps:$4 sm:$0xff]  }
 0x104   : > { %2438 = vmatprep.subr.bf16.mxu0 %v5547_v8  ;;  %2567 = vmatprep.subr.bf16.mxu1 %v5550_v9  ;;  %v5623_v8 = vld [vmem:[%s7650_s2 + $0x960] ss:$16 sps:$4 sm:$0xff]   ;;  %v5626_v9 = vld [vmem:[%s7650_s2 + $0x968] ss:$16 sps:$4 sm:$0xff]  }
 0x107   : > { %2439 = vmatpush1.bf16.msra.mxu0 %v5545_v10  ;;  %2568 = vmatpush1.bf16.msra.mxu1 %v5548_v11  ;;  %v5631_v10 = vld [vmem:[%s7650_s2 + $0x984] ss:$16 sps:$4 sm:$0xff]   ;;  %v5634_v11 = vld [vmem:[%s7650_s2 + $0x98c] ss:$16 sps:$4 sm:$0xff]  }
 0x108   : > { %2440 = vmatprep.subr.bf16.mxu0 %v5553_v12  ;;  %2569 = vmatprep.subr.bf16.mxu1 %v5556_v13  ;;  %v5629_v12 = vld [vmem:[%s7650_s2 + $0x980] ss:$16 sps:$4 sm:$0xff]   ;;  %v5632_v13 = vld [vmem:[%s7650_s2 + $0x988] ss:$16 sps:$4 sm:$0xff]  }
 0x10b   : > { %2441 = vmatpush1.bf16.msra.mxu0 %v5551_v14  ;;  %2570 = vmatpush1.bf16.msra.mxu1 %v5554_v15  ;;  %v5637_v14 = vld [vmem:[%s7650_s2 + $0x9a4] ss:$16 sps:$4 sm:$0xff]   ;;  %v5640_v15 = vld [vmem:[%s7650_s2 + $0x9ac] ss:$16 sps:$4 sm:$0xff]  }
 0x10c   : > { %2442 = vmatprep.subr.bf16.mxu0 %v5559_v16  ;;  %2571 = vmatprep.subr.bf16.mxu1 %v5562_v17  ;;  %v5635_v16 = vld [vmem:[%s7650_s2 + $0x9a0] ss:$16 sps:$4 sm:$0xff]   ;;  %v5638_v17 = vld [vmem:[%s7650_s2 + $0x9a8] ss:$16 sps:$4 sm:$0xff]  }
 0x10f   : > { %2443 = vmatpush1.bf16.msra.mxu0 %v5557_v18  ;;  %2572 = vmatpush1.bf16.msra.mxu1 %v5560_v19  ;;  %v5643_v18 = vld [vmem:[%s7650_s2 + $0x9c4] ss:$16 sps:$4 sm:$0xff]   ;;  %v5646_v19 = vld [vmem:[%s7650_s2 + $0x9cc] ss:$16 sps:$4 sm:$0xff]  }
 0x110   : > { %2444 = vmatprep.subr.bf16.mxu0 %v5565_v20  ;;  %2573 = vmatprep.subr.bf16.mxu1 %v5568_v21  ;;  %v5641_v20 = vld [vmem:[%s7650_s2 + $0x9c0] ss:$16 sps:$4 sm:$0xff]   ;;  %v5644_v21 = vld [vmem:[%s7650_s2 + $0x9c8] ss:$16 sps:$4 sm:$0xff]  }
 0x113   : > { %2445 = vmatpush1.bf16.msra.mxu0 %v5563_v22  ;;  %2574 = vmatpush1.bf16.msra.mxu1 %v5566_v23  ;;  %v5649_v22 = vld [vmem:[%s7650_s2 + $0x9e4] ss:$16 sps:$4 sm:$0xff]   ;;  %v5652_v23 = vld [vmem:[%s7650_s2 + $0x9ec] ss:$16 sps:$4 sm:$0xff]  }
 0x114   : > { %2446 = vmatprep.subr.bf16.mxu0 %v5571_v24  ;;  %2575 = vmatprep.subr.bf16.mxu1 %v5574_v25  ;;  %v5647_v24 = vld [vmem:[%s7650_s2 + $0x9e0] ss:$16 sps:$4 sm:$0xff]   ;;  %v5650_v25 = vld [vmem:[%s7650_s2 + $0x9e8] ss:$16 sps:$4 sm:$0xff]  }
 0x117   : > { %2447 = vmatpush1.bf16.msra.mxu0 %v5569_v27  ;;  %2576 = vmatpush1.bf16.msra.mxu1 %v5572_v28  ;;  %v5655_v27 = vld [vmem:[%s7650_s2 + $0xa04] ss:$16 sps:$4 sm:$0xff]   ;;  %v5658_v28 = vld [vmem:[%s7650_s2 + $0xa0c] ss:$16 sps:$4 sm:$0xff]  }
 0x118   : > { %2448 = vmatprep.subr.bf16.mxu0 %v5577_v29  ;;  %2577 = vmatprep.subr.bf16.mxu1 %v5580_v52  ;;  %v5653_v29 = vld [vmem:[%s7650_s2 + $0xa00] ss:$16 sps:$4 sm:$0xff]   ;;  %v5656_v52 = vld [vmem:[%s7650_s2 + $0xa08] ss:$16 sps:$4 sm:$0xff]  }
 0x11b   : > { %2449 = vmatpush1.bf16.msra.mxu0 %v5575_v30  ;;  %2578 = vmatpush1.bf16.msra.mxu1 %v5578_v32  ;;  %v5661_v30 = vld [vmem:[%s7650_s2 + $0xa24] ss:$16 sps:$4 sm:$0xff]   ;;  %v5664_v32 = vld [vmem:[%s7650_s2 + $0xa2c] ss:$16 sps:$4 sm:$0xff]  }
 0x11c   : > { %2461 = vmatprep.subr.bf16.mxu0 %v5583_v33  ;;  %2590 = vmatprep.subr.bf16.mxu1 %v5586_v34  ;;  %v5659_v33 = vld [vmem:[%s7650_s2 + $0xa20] ss:$16 sps:$4 sm:$0xff]   ;;  %v5662_v34 = vld [vmem:[%s7650_s2 + $0xa28] ss:$16 sps:$4 sm:$0xff]  }
 0x11e   : > { %2451 = vmatmul.mubr.bf16.vlgmr.msra.gmra.mrb[0].mxu0 %v6382_v26  ;;  %2580 = vmatmul.mubr.bf16.vlgmr.msra.gmra.mrb[0].mxu1 %v6382_v26  ;;  %v5598_v26 = vld [vmem:[%s7650_s2 + $0x44c] ss:$16 sps:$4 sm:$0xff]  }
 0x11f   : > { %2462 = vmatpush1.bf16.msra.mxu0 %v5581_v62  ;;  %2591 = vmatpush1.bf16.msra.mxu1 %v5584_v35  ;;  %v5667_v62 = vld [vmem:[%s7650_s2 + $0xa44] ss:$16 sps:$4 sm:$0xff]   ;;  %v5670_v35 = vld [vmem:[%s7650_s2 + $0xa4c] ss:$16 sps:$4 sm:$0xff]  }
 0x120   : > { %2463 = vmatprep.subr.bf16.mxu0 %v5589_v36  ;;  %2592 = vmatprep.subr.bf16.mxu1 %v5592_v37  ;;  %v5665_v36 = vld [vmem:[%s7650_s2 + $0xa40] ss:$16 sps:$4 sm:$0xff]   ;;  %v5668_v37 = vld [vmem:[%s7650_s2 + $0xa48] ss:$16 sps:$4 sm:$0xff]  }
 0x121   : > { %2493 = vmatprep.mubr.bf16.mxu0 %v5894_v3  ;;  %2622 = vmatprep.mubr.bf16.mxu1 %v5894_v3 }
 0x123   : > { %2464 = vmatpush1.bf16.msra.mxu0 %v5587_v54  ;;  %2593 = vmatpush1.bf16.msra.mxu1 %v5590_v38  ;;  %v5673_v54 = vld [vmem:[%s7650_s2 + $0xa64] ss:$16 sps:$4 sm:$0xff]   ;;  %v5676_v38 = vld [vmem:[%s7650_s2 + $0xa6c] ss:$16 sps:$4 sm:$0xff]  }
 0x124   : > { %2465 = vmatprep.subr.bf16.mxu0 %v5595_v39  ;;  %2594 = vmatprep.subr.bf16.mxu1 %v5598_v26  ;;  %v5671_v39 = vld [vmem:[%s7650_s2 + $0xa60] ss:$16 sps:$4 sm:$0xff]   ;;  %v5674_v26 = vld [vmem:[%s7650_s2 + $0xa68] ss:$16 sps:$4 sm:$0xff]  }
 0x127   : > { %2466 = vmatpush1.bf16.msra.mxu0 %v5593_v40  ;;  %2595 = vmatpush1.bf16.msra.mxu1 %v5596_v41  ;;  %v5679_v40 = vld [vmem:[%s7650_s2 + $0xa84] ss:$16 sps:$4 sm:$0xff]   ;;  %v5682_v41 = vld [vmem:[%s7650_s2 + $0xa8c] ss:$16 sps:$4 sm:$0xff]  }
 0x128   : > { %2467 = vmatprep.subr.bf16.mxu0 %v5601_v43  ;;  %2596 = vmatprep.subr.bf16.mxu1 %v5604_v44  ;;  %v5677_v43 = vld [vmem:[%s7650_s2 + $0xa80] ss:$16 sps:$4 sm:$0xff]   ;;  %v5680_v44 = vld [vmem:[%s7650_s2 + $0xa88] ss:$16 sps:$4 sm:$0xff]  }
 0x12b   : > { %2468 = vmatpush1.bf16.msra.mxu0 %v5599_v47  ;;  %2597 = vmatpush1.bf16.msra.mxu1 %v5602_v48  ;;  %v5688_v47 = vld [vmem:[%s7650_s2 + $0xaac] ss:$16 sps:$4 sm:$0xff]   ;;  %v5683_v48 = vld [vmem:[%s7650_s2 + $0xaa0] ss:$16 sps:$4 sm:$0xff]  }
 0x12c   : > { %3537 = vmatprep.subr.bf16.mxu0 %v5607_v49  ;;  %3666 = vmatprep.subr.bf16.mxu1 %v5610_v50  ;;  %v5686_v49 = vld [vmem:[%s7650_s2 + $0xaa8] ss:$16 sps:$4 sm:$0xff]   ;;  %v5691_v50 = vld [vmem:[%s7650_s2 + $0xac4] ss:$16 sps:$4 sm:$0xff]  }
 0x12e   : > { %4617 = vmatmul.mubr.msk.bf16.vlgmr.msra.gmra.mrb[0].mxu0 %vm1387_vm1, %v6442_v56  ;;  %4618 = vmatmul.mubr.msk.bf16.vlgmr.msra.gmra.mrb[0].mxu1 %vm1387_vm1, %v6442_v56  ;;  %v5622_v56 = vld [vmem:[%s7650_s2 + $0x94c] ss:$16 sps:$4 sm:$0xff]  }
 0x12f   : > { %3538 = vmatpush1.bf16.msra.mxu0 %v5605_v58  ;;  %3667 = vmatpush1.bf16.msra.mxu1 %v5608_v59  ;;  %v5692_v58 = vld [vmem:[%s7650_s2 + $0xac8] ss:$16 sps:$4 sm:$0xff]   ;;  %v4763_v59 = vcombine.low %v6916_v42, %v6925_v45  ;;  %v5695_v42 = vld [vmem:[%s7650_s2 + $0xae0] ss:$16 sps:$4 sm:$0xff]  }
 0x130   : > { %3539 = vmatprep.subr.bf16.mxu0 %v5613_v60  ;;  %3668 = vmatprep.subr.bf16.mxu1 %v5616_v53  ;;  %v7124_v60 = vld [vmem:[%s6119_s12 + $0x8] sm:$0xee]  ;;  %v5697_v53 = vld [vmem:[%s7650_s2 + $0xae4] ss:$16 sps:$4 sm:$0xff]  }
 0x131   : > { %3569 = vmatprep.mubr.bf16.mxu0 %v2800_v61  ;;  %3698 = vmatprep.mubr.bf16.mxu1 %v2800_v61  ;;  %v5700_v61 = vld [vmem:[%s7650_s2 + $0xaec] ss:$16 sps:$4 sm:$0xff]   ;;  %v5698_v45 = vld [vmem:[%s7650_s2 + $0xae8] ss:$16 sps:$4 sm:$0xff]  }
 0x133   : > { %3540 = vmatpush1.bf16.msra.mxu0 %v5611_v63  ;;  %3669 = vmatpush1.bf16.msra.mxu1 %v5614_v0  ;;  %v7133_v63 = vld [vmem:[%s6119_s12 + $0x1c] sm:$0xff] }
 0x134   : > { %3541 = vmatprep.subr.bf16.mxu0 %v5619_v1  ;;  %3670 = vmatprep.subr.bf16.mxu1 %v5622_v56  ;;  %v4766_v0 = vcombine.high %v7124_v60, %v7133_v63  ;;  %v2795_v1 = vrot.slane %v4763_v59, 1  ;;  %v2796_v56 = vrot.slane %v6170_v5, 1  ;;  %v5705_v5 = vld [vmem:[%s7650_s2 + $0xb08] ss:$16 sps:$4 sm:$0xff]   ;;  %v5777_v59 = vld [vmem:[%s7650_s2 + $0xc84] ss:$16 sps:$4 sm:$0xff]  }
 0x137   : > { %3542 = vmatpush1.bf16.msra.mxu0 %v5617_v2  ;;  %3671 = vmatpush1.bf16.msra.mxu1 %v5620_v4  ;;  %v5704_v2 = vld [vmem:[%s7650_s2 + $0xb04] ss:$16 sps:$4 sm:$0xff]   ;;  %v5707_v4 = vld [vmem:[%s7650_s2 + $0xb0c] ss:$16 sps:$4 sm:$0xff]  }
 0x138   : > { %3543 = vmatprep.subr.bf16.mxu0 %v5625_v6  ;;  %3672 = vmatprep.subr.bf16.mxu1 %v5628_v7  ;;  %v2804_v6 = vrot.slane %v4766_v0, 1  ;;  %v2805_v7 = vrot.slane %v6305_v57, 1  ;;  %v5714_v57 = vld [vmem:[%s7650_s2 + $0xb2c] ss:$16 sps:$4 sm:$0xff]   ;;  %v5778_v0 = vld [vmem:[%s7650_s2 + $0xc88] ss:$16 sps:$4 sm:$0xff]  }
 0x13b   : > { %3544 = vmatpush1.bf16.msra.mxu0 %v5623_v8  ;;  %3673 = vmatpush1.bf16.msra.mxu1 %v5626_v9  ;;  %v5702_v8 = vld [vmem:[%s7650_s2 + $0xb00] ss:$16 sps:$4 sm:$0xff]   ;;  %v2797_v9 = vsel %vm2794_vm2, %v2795_v1, %v2796_v56  ;;  %v5784_v56 = vld [vmem:[%s7650_s2 + $0xca8] ss:$16 sps:$4 sm:$0xff]  }
 0x13c   : > { %3545 = vmatprep.subr.bf16.mxu0 %v5631_v10  ;;  %3674 = vmatprep.subr.bf16.mxu1 %v5634_v11  ;;  %v5711_v10 = vld [vmem:[%s7650_s2 + $0xb24] ss:$16 sps:$4 sm:$0xff]   ;;  %v2806_v11 = vsel %vm2794_vm2, %v2804_v6, %v2805_v7  ;;  %v5781_v1 = vld [vmem:[%s7650_s2 + $0xca0] ss:$16 sps:$4 sm:$0xff]   ;;  %v5790_v7 = vld [vmem:[%s7650_s2 + $0xcc8] ss:$16 sps:$4 sm:$0xff]  }
 0x13d   : > { %v5787_v6 = vld [vmem:[%s7650_s2 + $0xcc0] ss:$16 sps:$4 sm:$0xff]  }
 0x13f   : > { %3546 = vmatpush1.bf16.msra.mxu0 %v5629_v12  ;;  %3675 = vmatpush1.bf16.msra.mxu1 %v5632_v13  ;;  %v5709_v12 = vld [vmem:[%s7650_s2 + $0xb20] ss:$16 sps:$4 sm:$0xff]   ;;  %v5712_v13 = vld [vmem:[%s7650_s2 + $0xb28] ss:$16 sps:$4 sm:$0xff]  }
 0x140   : > { %3547 = vmatprep.subr.bf16.mxu0 %v5637_v14  ;;  %3676 = vmatprep.subr.bf16.mxu1 %v5640_v15  ;;  %v5717_v14 = vld [vmem:[%s7650_s2 + $0xb44] ss:$16 sps:$4 sm:$0xff]   ;;  %v5720_v15 = vld [vmem:[%s7650_s2 + $0xb4c] ss:$16 sps:$4 sm:$0xff]  }
 0x143   : > { %3548 = vmatpush1.bf16.msra.mxu0 %v5635_v16  ;;  %3677 = vmatpush1.bf16.msra.mxu1 %v5638_v17  ;;  %v5715_v16 = vld [vmem:[%s7650_s2 + $0xb40] ss:$16 sps:$4 sm:$0xff]   ;;  %v5718_v17 = vld [vmem:[%s7650_s2 + $0xb48] ss:$16 sps:$4 sm:$0xff]  }
 0x144   : > { %3549 = vmatprep.subr.bf16.mxu0 %v5643_v18  ;;  %3678 = vmatprep.subr.bf16.mxu1 %v5646_v19  ;;  %v5723_v18 = vld [vmem:[%s7650_s2 + $0xb64] ss:$16 sps:$4 sm:$0xff]   ;;  %v5726_v19 = vld [vmem:[%s7650_s2 + $0xb6c] ss:$16 sps:$4 sm:$0xff]  }
 0x147   : > { %3550 = vmatpush1.bf16.msra.mxu0 %v5641_v20  ;;  %3679 = vmatpush1.bf16.msra.mxu1 %v5644_v21  ;;  %v5721_v20 = vld [vmem:[%s7650_s2 + $0xb60] ss:$16 sps:$4 sm:$0xff]   ;;  %v5724_v21 = vld [vmem:[%s7650_s2 + $0xb68] ss:$16 sps:$4 sm:$0xff]  }
 0x148   : > { %3551 = vmatprep.subr.bf16.mxu0 %v5649_v22  ;;  %3680 = vmatprep.subr.bf16.mxu1 %v5652_v23  ;;  %v5729_v22 = vld [vmem:[%s7650_s2 + $0xb84] ss:$16 sps:$4 sm:$0xff]   ;;  %v5732_v23 = vld [vmem:[%s7650_s2 + $0xb8c] ss:$16 sps:$4 sm:$0xff]  }
 0x14b   : > { %3552 = vmatpush1.bf16.msra.mxu0 %v5647_v24  ;;  %3681 = vmatpush1.bf16.msra.mxu1 %v5650_v25  ;;  %v5727_v24 = vld [vmem:[%s7650_s2 + $0xb80] ss:$16 sps:$4 sm:$0xff]   ;;  %v5730_v25 = vld [vmem:[%s7650_s2 + $0xb88] ss:$16 sps:$4 sm:$0xff]  }
 0x14c   : > { %3553 = vmatprep.subr.bf16.mxu0 %v5655_v27  ;;  %3682 = vmatprep.subr.bf16.mxu1 %v5658_v28  ;;  %v5735_v27 = vld [vmem:[%s7650_s2 + $0xba4] ss:$16 sps:$4 sm:$0xff]   ;;  %v5738_v28 = vld [vmem:[%s7650_s2 + $0xbac] ss:$16 sps:$4 sm:$0xff]  }
 0x14f   : > { %3554 = vmatpush1.bf16.msra.mxu0 %v5653_v29  ;;  %3683 = vmatpush1.bf16.msra.mxu1 %v5656_v52  ;;  %v5733_v29 = vld [vmem:[%s7650_s2 + $0xba0] ss:$16 sps:$4 sm:$0xff]   ;;  %v5736_v52 = vld [vmem:[%s7650_s2 + $0xba8] ss:$16 sps:$4 sm:$0xff]  }
 0x150   : > { %3555 = vmatprep.subr.bf16.mxu0 %v5661_v30  ;;  %3684 = vmatprep.subr.bf16.mxu1 %v5664_v32  ;;  %v5741_v30 = vld [vmem:[%s7650_s2 + $0xbc4] ss:$16 sps:$4 sm:$0xff]   ;;  %v5744_v32 = vld [vmem:[%s7650_s2 + $0xbcc] ss:$16 sps:$4 sm:$0xff]  }
 0x153   : > { %3556 = vmatpush1.bf16.msra.mxu0 %v5659_v33  ;;  %3685 = vmatpush1.bf16.msra.mxu1 %v5662_v34  ;;  %v5739_v33 = vld [vmem:[%s7650_s2 + $0xbc0] ss:$16 sps:$4 sm:$0xff]   ;;  %v5742_v34 = vld [vmem:[%s7650_s2 + $0xbc8] ss:$16 sps:$4 sm:$0xff]  }
 0x154   : > { %3557 = vmatprep.subr.bf16.mxu0 %v5667_v62  ;;  %3686 = vmatprep.subr.bf16.mxu1 %v5670_v35  ;;  %v5747_v62 = vld [vmem:[%s7650_s2 + $0xbe4] ss:$16 sps:$4 sm:$0xff]   ;;  %v5750_v35 = vld [vmem:[%s7650_s2 + $0xbec] ss:$16 sps:$4 sm:$0xff]  }
 0x157   : > { %3558 = vmatpush1.bf16.msra.mxu0 %v5665_v36  ;;  %3687 = vmatpush1.bf16.msra.mxu1 %v5668_v37  ;;  %v5745_v36 = vld [vmem:[%s7650_s2 + $0xbe0] ss:$16 sps:$4 sm:$0xff]   ;;  %v5748_v37 = vld [vmem:[%s7650_s2 + $0xbe8] ss:$16 sps:$4 sm:$0xff]  }
 0x158   : > { %3559 = vmatprep.subr.bf16.mxu0 %v5673_v54  ;;  %3688 = vmatprep.subr.bf16.mxu1 %v5676_v38  ;;  %v5753_v54 = vld [vmem:[%s7650_s2 + $0xc04] ss:$16 sps:$4 sm:$0xff]   ;;  %v5756_v38 = vld [vmem:[%s7650_s2 + $0xc0c] ss:$16 sps:$4 sm:$0xff]  }
 0x15b   : > { %3560 = vmatpush1.bf16.msra.mxu0 %v5671_v39  ;;  %3689 = vmatpush1.bf16.msra.mxu1 %v5674_v26  ;;  %v5751_v39 = vld [vmem:[%s7650_s2 + $0xc00] ss:$16 sps:$4 sm:$0xff]   ;;  %v5754_v26 = vld [vmem:[%s7650_s2 + $0xc08] ss:$16 sps:$4 sm:$0xff]  }
 0x15c   : > { %3561 = vmatprep.subr.bf16.mxu0 %v5679_v40  ;;  %3690 = vmatprep.subr.bf16.mxu1 %v5682_v41  ;;  %v5759_v40 = vld [vmem:[%s7650_s2 + $0xc24] ss:$16 sps:$4 sm:$0xff]   ;;  %v5762_v41 = vld [vmem:[%s7650_s2 + $0xc2c] ss:$16 sps:$4 sm:$0xff]  }
 0x15f   : > { %3562 = vmatpush1.bf16.msra.mxu0 %v5677_v43  ;;  %3691 = vmatpush1.bf16.msra.mxu1 %v5680_v44  ;;  %v5757_v43 = vld [vmem:[%s7650_s2 + $0xc20] ss:$16 sps:$4 sm:$0xff]   ;;  %v5760_v44 = vld [vmem:[%s7650_s2 + $0xc28] ss:$16 sps:$4 sm:$0xff]  }
 0x160   : > { %3563 = vmatprep.subr.bf16.mxu0 %v5685_v46  ;;  %3692 = vmatprep.subr.bf16.mxu1 %v5688_v47  ;;  %v5765_v46 = vld [vmem:[%s7650_s2 + $0xc44] ss:$16 sps:$4 sm:$0xff]   ;;  %v5768_v47 = vld [vmem:[%s7650_s2 + $0xc4c] ss:$16 sps:$4 sm:$0xff]  }
 0x163   : > { %3564 = vmatpush1.bf16.msra.mxu0 %v5683_v48  ;;  %3693 = vmatpush1.bf16.msra.mxu1 %v5686_v49  ;;  %v5763_v48 = vld [vmem:[%s7650_s2 + $0xc40] ss:$16 sps:$4 sm:$0xff]   ;;  %v5766_v49 = vld [vmem:[%s7650_s2 + $0xc48] ss:$16 sps:$4 sm:$0xff]  }
 0x164   : > { %3565 = vmatprep.subr.bf16.mxu0 %v5691_v50  ;;  %3694 = vmatprep.subr.bf16.mxu1 %v5694_v51  ;;  %v5771_v50 = vld [vmem:[%s7650_s2 + $0xc64] ss:$16 sps:$4 sm:$0xff]   ;;  %v5774_v51 = vld [vmem:[%s7650_s2 + $0xc6c] ss:$16 sps:$4 sm:$0xff]  }
 0x167   : > { %3566 = vmatpush1.bf16.msra.mxu0 %v5689_v55  ;;  %3695 = vmatpush1.bf16.msra.mxu1 %v5692_v58  ;;  %v5769_v55 = vld [vmem:[%s7650_s2 + $0xc60] ss:$16 sps:$4 sm:$0xff]   ;;  %v5772_v58 = vld [vmem:[%s7650_s2 + $0xc68] ss:$16 sps:$4 sm:$0xff]  }
 0x168   : > { %3567 = vmatprep.subr.bf16.mxu0 %v5697_v53  ;;  %3696 = vmatprep.subr.bf16.mxu1 %v5700_v61  ;;  %v5780_v53 = vld [vmem:[%s7650_s2 + $0xc8c] ss:$16 sps:$4 sm:$0xff]   ;;  %v5775_v61 = vld [vmem:[%s7650_s2 + $0xc80] ss:$16 sps:$4 sm:$0xff]  }
 0x16b   : > { %3568 = vmatpush1.bf16.msra.mxu0 %v5695_v42  ;;  %3697 = vmatpush1.bf16.msra.mxu1 %v5698_v45  ;;  %v5783_v42 = vld [vmem:[%s7650_s2 + $0xca4] ss:$16 sps:$4 sm:$0xff]   ;;  %v5786_v45 = vld [vmem:[%s7650_s2 + $0xcac] ss:$16 sps:$4 sm:$0xff]  }
 0x16c   : > { %3580 = vmatprep.subr.bf16.mxu0 %v5704_v2  ;;  %3709 = vmatprep.subr.bf16.mxu1 %v5707_v4  ;;  %v5789_v2 = vld [vmem:[%s7650_s2 + $0xcc4] ss:$16 sps:$4 sm:$0xff]   ;;  %v5792_v4 = vld [vmem:[%s7650_s2 + $0xccc] ss:$16 sps:$4 sm:$0xff]  }
 0x16e   : > { %3570 = vmatmul.mubr.bf16.vlgmr.msra.gmra.mrb[0].mxu0 %v2797_v9  ;;  %3699 = vmatmul.mubr.bf16.vlgmr.msra.gmra.mrb[0].mxu1 %v2797_v9  ;;  %v5798_v9 = vld [vmem:[%s7650_s2 + $0xcec] ss:$16 sps:$4 sm:$0xff]  }
 0x16f   : > { %3581 = vmatpush1.bf16.msra.mxu0 %v5702_v8  ;;  %3710 = vmatpush1.bf16.msra.mxu1 %v5705_v5  ;;  %v4765_v8 = vcombine.low %v7124_v60, %v7133_v63  ;;  %v5795_v5 = vld [vmem:[%s7650_s2 + $0xce4] ss:$16 sps:$4 sm:$0xff]   ;;  %v5796_v60 = vld [vmem:[%s7650_s2 + $0xce8] ss:$16 sps:$4 sm:$0xff]  }
 0x170   : > { %3582 = vmatprep.subr.bf16.mxu0 %v5711_v10  ;;  %3711 = vmatprep.subr.bf16.mxu1 %v5714_v57  ;;  %v5793_v10 = vld [vmem:[%s7650_s2 + $0xce0] ss:$16 sps:$4 sm:$0xff]   ;;  %v2802_v57 = vrot.slane %v6398_v31, 1  ;;  %v5803_v31 = vld [vmem:[%s7650_s2 + $0xd08] ss:$16 sps:$4 sm:$0xff]  }
 0x171   : > { %3612 = vmatprep.mubr.bf16.mxu0 %v2806_v11  ;;  %3741 = vmatprep.mubr.bf16.mxu1 %v2806_v11  ;;  %v2801_v63 = vrot.slane %v4765_v8, 1  ;;  %v5802_v11 = vld [vmem:[%s7650_s2 + $0xd04] ss:$16 sps:$4 sm:$0xff]   ;;  %v3898_v8 = vld [vmem:[%s7652_s4 + $0x128] sm:$0xff] }
 0x173   : > { %3583 = vmatpush1.bf16.msra.mxu0 %v5709_v12  ;;  %3712 = vmatpush1.bf16.msra.mxu1 %v5712_v13  ;;  %v5805_v12 = vld [vmem:[%s7650_s2 + $0xd0c] ss:$16 sps:$4 sm:$0xff]   ;;  %v5800_v13 = vld [vmem:[%s7650_s2 + $0xd00] ss:$16 sps:$4 sm:$0xff]  }
 0x174   : > { %3584 = vmatprep.subr.bf16.mxu0 %v5717_v14  ;;  %3713 = vmatprep.subr.bf16.mxu1 %v5720_v15  ;;  %v2803_v14 = vsel %vm2794_vm2, %v2801_v63, %v2802_v57  ;;  %v5809_v15 = vld [vmem:[%s7650_s2 + $0xd24] ss:$16 sps:$4 sm:$0xff]  }
 0x177   : > { %3585 = vmatpush1.bf16.msra.mxu0 %v5715_v16  ;;  %3714 = vmatpush1.bf16.msra.mxu1 %v5718_v17  ;;  %v5812_v16 = vld [vmem:[%s7650_s2 + $0xd2c] ss:$16 sps:$4 sm:$0xff]   ;;  %v5807_v17 = vld [vmem:[%s7650_s2 + $0xd20] ss:$16 sps:$4 sm:$0xff]  }
 0x178   : > { %3586 = vmatprep.subr.bf16.mxu0 %v5723_v18  ;;  %3715 = vmatprep.subr.bf16.mxu1 %v5726_v19  ;;  %v5810_v18 = vld [vmem:[%s7650_s2 + $0xd28] ss:$16 sps:$4 sm:$0xff]   ;;  %v5815_v19 = vld [vmem:[%s7650_s2 + $0xd44] ss:$16 sps:$4 sm:$0xff]  }
 0x17b   : > { %3587 = vmatpush1.bf16.msra.mxu0 %v5721_v20  ;;  %3716 = vmatpush1.bf16.msra.mxu1 %v5724_v21  ;;  %v5818_v20 = vld [vmem:[%s7650_s2 + $0xd4c] ss:$16 sps:$4 sm:$0xff]   ;;  %v2635_v21 = vld [vmem:[%s6119_s12 + $0x10] sm:$0xe] }
 0x17c   : > { %3588 = vmatprep.subr.bf16.mxu0 %v5729_v22  ;;  %3717 = vmatprep.subr.bf16.mxu1 %v5732_v23  ;;  %v5813_v22 = vld [vmem:[%s7650_s2 + $0xd40] ss:$16 sps:$4 sm:$0xff]   ;;  %v5816_v23 = vld [vmem:[%s7650_s2 + $0xd48] ss:$16 sps:$4 sm:$0xff]  }
 0x17f   : > { %3589 = vmatpush1.bf16.msra.mxu0 %v5727_v24  ;;  %3718 = vmatpush1.bf16.msra.mxu1 %v5730_v25  ;;  %v5828_v24 = vld [vmem:[%s6119_s12 + $0x24] sm:$0xf] }
 0x180   : > { %3590 = vmatprep.subr.bf16.mxu0 %v5735_v27  ;;  %3719 = vmatprep.subr.bf16.mxu1 %v5738_v28  ;;  %v4767_v25 = vcombine.low %v2635_v21, %v5828_v24  ;;  %v5821_v27 = vld [vmem:[%s7650_s2 + $0xd64] ss:$16 sps:$4 sm:$0xff]  }
 0x181   : > { %v3877_v28 = vld [vmem:[%s7652_s4 + $0x80] sm:$0xff] }
 0x183   : > { %3591 = vmatpush1.bf16.msra.mxu0 %v5733_v29  ;;  %3720 = vmatpush1.bf16.msra.mxu1 %v5736_v52  ;;  %v3878_v29 = vld [vmem:[%s7652_s4 + $0x88] sm:$0xff]  ;;  %v3909_v52 = vld [vmem:[%s7652_s4 + $0x180] sm:$0xff] }
 0x184   : > { %3592 = vmatprep.subr.bf16.mxu0 %v5741_v30  ;;  %3721 = vmatprep.subr.bf16.mxu1 %v5744_v32  ;;  %v3910_v30 = vld [vmem:[%s7652_s4 + $0x188] sm:$0xff]  ;;  %v5819_v32 = vld [vmem:[%s7650_s2 + $0xd60] ss:$16 sps:$4 sm:$0xff]  }
 0x187   : > { %3593 = vmatpush1.bf16.msra.mxu0 %v5739_v33  ;;  %3722 = vmatpush1.bf16.msra.mxu1 %v5742_v34  ;;  %v5822_v33 = vld [vmem:[%s7650_s2 + $0xd68] ss:$16 sps:$4 sm:$0xff]   ;;  %v2807_v34 = vrot.slane %v4767_v25, 1 }
 0x188   : > { %3594 = vmatprep.subr.bf16.mxu0 %v5747_v62  ;;  %3723 = vmatprep.subr.bf16.mxu1 %v5750_v35  ;;  %v5829_v62 = vld [vmem:[%s6119_s12 + $0x38] ss:$0 sps:$4 sm:$0x11]   ;;  %s4917_s12 = sshll.u32 %s6089_s26, 5  ;;  %s257_s26 = sand.u32 1, %s5884_s22  }
 0x189   : > { %v2808_v35 = vrot.slane %v5829_v62, 1  ;;  %s268_s15 = scalar_lea.vmem %s7649_s1, %s4917_s12  ;;  %s258_s20 = scalar_lea.vmem [#allocation2], %s257_s26 }
 0x18a   : > { %s4099_s28 = sshll.u32 %s258_s20, 4  ;;  %s4087_s12 = scalar_lea.sflag [#allocation3], %s257_s26  ;;  %s7608_s28 = int_to_ptr.vmem [resolvable:$true] %s4099_s28 }
 0x18b   : > { %3595 = vmatpush1.bf16.msra.mxu0 %v5745_v36  ;;  %3724 = vmatpush1.bf16.msra.mxu1 %v5748_v37  ;;  %v3861_v36 = vld [vmem:[%s7652_s4] sm:$0xff]  ;;  %v3862_v37 = vld [vmem:[%s7652_s4 + $0x8] sm:$0xff]  ;;  %s5830_s11 = scalar_lea.vmem %s7608_s28, 16  ;;  %p5837_p0 = scmp.lt.s32.totalorder %s7608_s28, %s5835_s14 }
 0x18c   : > { %3596 = vmatprep.subr.bf16.mxu0 %v5753_v54  ;;  %3725 = vmatprep.subr.bf16.mxu1 %v5756_v38  ;;  %v4994_v54 = vpack.c.bf16 %v3878_v29, %v3877_v28  ;;  %v5026_v38 = vpack.c.bf16 %v3910_v30, %v3909_v52  ;;  %v3887_v28 = vld [vmem:[%s7652_s4 + $0xd0] sm:$0xff]  ;;  %v3888_v29 = vld [vmem:[%s7652_s4 + $0xd8] sm:$0xff]  ;;  %p5831_p11 = scmp.ne.s32.totalorder %s7608_s28, %s5830_s11 }
 0x18d   : > { %v3919_v52 = vld [vmem:[%s7652_s4 + $0x1d0] sm:$0xff]  ;;  %v3920_v30 = vld [vmem:[%s7652_s4 + $0x1d8] sm:$0xff]  ;;  %v5014_v62 = vpack.c.bf16 %v3888_v29, %v3887_v28 }
 0x18e   : > { %p5832_p12 = pnand %p5831_p11, %p5969_p5 }
 0x18f   : > { %3597 = vmatpush1.bf16.msra.mxu0 %v5751_v39  ;;  %3726 = vmatpush1.bf16.msra.mxu1 %v5754_v26  ;;  %v3893_v39 = vld [vmem:[%s7652_s4 + $0x100] sm:$0xff]  ;;  %v3894_v26 = vld [vmem:[%s7652_s4 + $0x108] sm:$0xff] }
 0x190   : > { %3598 = vmatprep.subr.bf16.mxu0 %v5759_v40  ;;  %3727 = vmatprep.subr.bf16.mxu1 %v5762_v41  ;;  %v3879_v40 = vld [vmem:[%s7652_s4 + $0x90] sm:$0xff]  ;;  %v3880_v41 = vld [vmem:[%s7652_s4 + $0x98] sm:$0xff]  ;;  %p5833_p13 = pneg %p5832_p12 }
 0x193   : > { %3599 = vmatpush1.bf16.msra.mxu0 %v5757_v43  ;;  %3728 = vmatpush1.bf16.msra.mxu1 %v5760_v44  ;;  %v3911_v43 = vld [vmem:[%s7652_s4 + $0x190] sm:$0xff]  ;;  %v3912_v44 = vld [vmem:[%s7652_s4 + $0x198] sm:$0xff] }
 0x194   : > { %3600 = vmatprep.subr.bf16.mxu0 %v5765_v46  ;;  %3729 = vmatprep.subr.bf16.mxu1 %v5768_v47  ;;  %v2809_v46 = vsel %vm2794_vm2, %v2807_v34, %v2808_v35  ;;  %v4996_v47 = vpack.c.bf16 %v3862_v37, %v3861_v36  ;;  %v3871_v34 = vld [vmem:[%s7652_s4 + $0x50] sm:$0xff]  ;;  %v5046_v35 = vpack.c.bf16 %v3920_v30, %v3919_v52  ;;  %v3872_v36 = vld [vmem:[%s7652_s4 + $0x58] sm:$0xff] }
 0x195   : > { %v3903_v37 = vld [vmem:[%s7652_s4 + $0x150] sm:$0xff] }
 0x197   : > { %3601 = vmatpush1.bf16.msra.mxu0 %v5763_v48  ;;  %3730 = vmatpush1.bf16.msra.mxu1 %v5766_v49  ;;  %v5028_v48 = vpack.c.bf16 %v3894_v26, %v3893_v39  ;;  %v3863_v49 = vld [vmem:[%s7652_s4 + $0x10] sm:$0xff]  ;;  %v3889_v26 = vld [vmem:[%s7652_s4 + $0xe0] sm:$0xff] }
 0x198   : > { %3602 = vmatprep.subr.bf16.mxu0 %v5771_v50  ;;  %3731 = vmatprep.subr.bf16.mxu1 %v5774_v51  ;;  %v3864_v50 = vld [vmem:[%s7652_s4 + $0x18] sm:$0xff]  ;;  %v4998_v51 = vpack.c.bf16 %v3880_v41, %v3879_v40  ;;  %v3890_v40 = vld [vmem:[%s7652_s4 + $0xe8] sm:$0xff] }
 0x199   : > { %v5018_v41 = vpack.c.bf16 %v3890_v40, %v3889_v26 }
 0x19b   : > { %3603 = vmatpush1.bf16.msra.mxu0 %v5769_v55  ;;  %3732 = vmatpush1.bf16.msra.mxu1 %v5772_v58  ;;  %v5030_v55 = vpack.c.bf16 %v3912_v44, %v3911_v43  ;;  %v3895_v58 = vld [vmem:[%s7652_s4 + $0x110] sm:$0xff]  ;;  %v3921_v43 = vld [vmem:[%s7652_s4 + $0x1e0] sm:$0xff]  ;;  %v3922_v44 = vld [vmem:[%s7652_s4 + $0x1e8] sm:$0xff] }
 0x19c   : > { %3604 = vmatprep.subr.bf16.mxu0 %v5777_v59  ;;  %3733 = vmatprep.subr.bf16.mxu1 %v5780_v53  ;;  %v3896_v59 = vld [vmem:[%s7652_s4 + $0x118] sm:$0xff]  ;;  %v3881_v53 = vld [vmem:[%s7652_s4 + $0xa0] sm:$0xff] }
 0x19f   : > { %3605 = vmatpush1.bf16.msra.mxu0 %v5775_v61  ;;  %3734 = vmatpush1.bf16.msra.mxu1 %v5778_v0  ;;  %v3882_v61 = vld [vmem:[%s7652_s4 + $0xa8] sm:$0xff]  ;;  %v3913_v0 = vld [vmem:[%s7652_s4 + $0x1a0] sm:$0xff] }
 0x1a0   : > { %3606 = vmatprep.subr.bf16.mxu0 %v5783_v42  ;;  %3735 = vmatprep.subr.bf16.mxu1 %v5786_v45  ;;  %v3914_v42 = vld [vmem:[%s7652_s4 + $0x1a8] sm:$0xff]  ;;  %v5000_v45 = vpack.c.bf16 %v3864_v50, %v3863_v49  ;;  %v3905_v50 = vld [vmem:[%s7652_s4 + $0x160] sm:$0xff] }
 0x1a3   : > { %3607 = vmatpush1.bf16.msra.mxu0 %v5781_v1  ;;  %3736 = vmatpush1.bf16.msra.mxu1 %v5784_v56  ;;  %v5032_v1 = vpack.c.bf16 %v3896_v59, %v3895_v58  ;;  %v3865_v56 = vld [vmem:[%s7652_s4 + $0x20] sm:$0xff]  ;;  %v3891_v58 = vld [vmem:[%s7652_s4 + $0xf0] sm:$0xff]  ;;  %v3892_v59 = vld [vmem:[%s7652_s4 + $0xf8] sm:$0xff] }
 0x1a4   : > { %3608 = vmatprep.subr.bf16.mxu0 %v5789_v2  ;;  %3737 = vmatprep.subr.bf16.mxu1 %v5792_v4  ;;  %v3866_v2 = vld [vmem:[%s7652_s4 + $0x28] sm:$0xff]  ;;  %v5002_v4 = vpack.c.bf16 %v3882_v61, %v3881_v53  ;;  %v3923_v53 = vld [vmem:[%s7652_s4 + $0x1f0] sm:$0xff]  ;;  %v3924_v61 = vld [vmem:[%s7652_s4 + $0x1f8] sm:$0xff] }
 0x1a5   : > { %v5004_v63 = vpack.c.bf16 %v3866_v2, %v3865_v56  ;;  %v3907_v56 = vld [vmem:[%s7652_s4 + $0x170] sm:$0xff] }
 0x1a7   : > { %3609 = vmatpush1.bf16.msra.mxu0 %v5787_v6  ;;  %3738 = vmatpush1.bf16.msra.mxu1 %v5790_v7  ;;  %v5034_v6 = vpack.c.bf16 %v3914_v42, %v3913_v0  ;;  %v3897_v7 = vld [vmem:[%s7652_s4 + $0x120] sm:$0xff]  ;;  %v5022_v0 = vpack.c.bf16 %v3892_v59, %v3891_v58  ;;  %v5054_v42 = vpack.c.bf16 %v3924_v61, %v3923_v53 }
 0x1a8   : > { %3610 = vmatprep.subr.bf16.mxu0 %v5795_v5  ;;  %3739 = vmatprep.subr.bf16.mxu1 %v5798_v9  ;;  %v3883_v5 = vld [vmem:[%s7652_s4 + $0xb0] sm:$0xff]  ;;  %v3884_v9 = vld [vmem:[%s7652_s4 + $0xb8] sm:$0xff]  ;;  %v5036_v57 = vpack.c.bf16 %v3898_v8, %v3897_v7  ;;  %v3805_v7 = vlaneseq }
 0x1aa   : > { %v3806_v8 = vshrl.u32 %v3805_v7, 7 }
 0x1ab   : > { %3611 = vmatpush1.bf16.msra.mxu0 %v5793_v10  ;;  %3740 = vmatpush1.bf16.msra.mxu1 %v5796_v60  ;;  %v3915_v10 = vld [vmem:[%s7652_s4 + $0x1b0] sm:$0xff]  ;;  %v3916_v60 = vld [vmem:[%s7652_s4 + $0x1b8] sm:$0xff] }
 0x1ac   : > { %3623 = vmatprep.subr.bf16.mxu0 %v5802_v11  ;;  %3752 = vmatprep.subr.bf16.mxu1 %v5805_v12  ;;  %v3867_v11 = vld [vmem:[%s7652_s4 + $0x30] sm:$0xff]  ;;  %v3868_v12 = vld [vmem:[%s7652_s4 + $0x38] sm:$0xff] }
 0x1ae   : > { %3613 = vmatmul.mubr.bf16.vlgmr.msra.gmra.mrb[0].mxu0 %v2803_v14  ;;  %3742 = vmatmul.mubr.bf16.vlgmr.msra.gmra.mrb[0].mxu1 %v2803_v14  ;;  %v3899_v14 = vld [vmem:[%s7652_s4 + $0x130] sm:$0xff] }
 0x1af   : > { %3624 = vmatpush1.bf16.msra.mxu0 %v5800_v13  ;;  %3753 = vmatpush1.bf16.msra.mxu1 %v5803_v31  ;;  %v5006_v13 = vpack.c.bf16 %v3884_v9, %v3883_v5  ;;  %v5038_v31 = vpack.c.bf16 %v3916_v60, %v3915_v10  ;;  %v3807_v5 = vsub.s32 0, %v3806_v8  ;;  %v3815_v9 = vsub.s32 2, %v3806_v8  ;;  %v3803_v10 = vld [vmem:[%s7651_s3] sm:$0xf] }
 0x1b0   : > { %3625 = vmatprep.subr.bf16.mxu0 %v5809_v15  ;;  %3754 = vmatprep.subr.bf16.mxu1 %v5812_v16  ;;  %v3900_v15 = vld [vmem:[%s7652_s4 + $0x138] sm:$0xff]  ;;  %v3885_v16 = vld [vmem:[%s7652_s4 + $0xc0] sm:$0xff]  ;;  %v3811_v60 = vsub.s32 1, %v3806_v8 }
 0x1b1   : > { %3655 = vmatprep.mubr.bf16.mxu0 %v5894_v3  ;;  %3784 = vmatprep.mubr.bf16.mxu1 %v5894_v3  ;;  %v5824_v3 = vld [vmem:[%s7650_s2 + $0xd6c] ss:$16 sps:$4 sm:$0xff]   ;;  %v5040_v21 = vpack.c.bf16 %v3900_v15, %v3899_v14  ;;  %v3835_v15 = vld [vmem:[%s268_s15 + $0x10] sm:$0xff] }
 0x1b3   : > { %3626 = vmatpush1.bf16.msra.mxu0 %v5807_v17  ;;  %3755 = vmatpush1.bf16.msra.mxu1 %v5810_v18  ;;  %v3886_v17 = vld [vmem:[%s7652_s4 + $0xc8] sm:$0xff]  ;;  %v3917_v18 = vld [vmem:[%s7652_s4 + $0x1c0] sm:$0xff] }
 0x1b4   : > { %3627 = vmatprep.subr.bf16.mxu0 %v5815_v19  ;;  %3756 = vmatprep.subr.bf16.mxu1 %v5818_v20  ;;  %v3918_v19 = vld [vmem:[%s7652_s4 + $0x1c8] sm:$0xff]  ;;  %v5008_v20 = vpack.c.bf16 %v3868_v12, %v3867_v11  ;;  %v5010_v24 = vpack.c.bf16 %v3886_v17, %v3885_v16  ;;  %v3808_v12 = vrot.slane %v3803_v10, %v3807_v5  ;;  %v3836_v16 = vld [vmem:[%s268_s15 + $0x18] sm:$0xff] }
 0x1b5   : > { %v5042_v25 = vpack.c.bf16 %v3918_v19, %v3917_v18  ;;  %v3834_v11 = vld [vmem:[%s268_s15 + $0x8] sm:$0xff]  ;;  %v3843_v28 = vunpack.c.l.bf16 %v3836_v16 }
 0x1b6   : > { %v3839_v18 = vunpack.c.l.bf16 %v3834_v11 }
 0x1b7   : > { %3628 = vmatpush1.bf16.msra.mxu0 %v5813_v22  ;;  %3757 = vmatpush1.bf16.msra.mxu1 %v5816_v23  ;;  %v3869_v22 = vld [vmem:[%s7652_s4 + $0x40] sm:$0xff]  ;;  %v3870_v23 = vld [vmem:[%s7652_s4 + $0x48] sm:$0xff] }
 0x1b8   : > { %3629 = vmatprep.subr.bf16.mxu0 %v5821_v27  ;;  %3758 = vmatprep.subr.bf16.mxu1 %v5824_v3  ;;  %v3901_v27 = vld [vmem:[%s7652_s4 + $0x140] sm:$0xff]  ;;  %v3902_v3 = vld [vmem:[%s7652_s4 + $0x148] sm:$0xff] }
 0x1bb   : > { %3630 = vmatpush1.bf16.msra.mxu0 %v5819_v32  ;;  %3759 = vmatpush1.bf16.msra.mxu1 %v5822_v33  ;;  %v5012_v32 = vpack.c.bf16 %v3870_v23, %v3869_v22  ;;  %v5044_v33 = vpack.c.bf16 %v3902_v3, %v3901_v27  ;;  %v3840_v22 = vunpack.c.h.bf16 %v3834_v11  ;;  %v3841_v3 = vunpack.c.l.bf16 %v3835_v15 }
 0x1bc   : > { %4995 = vmatprep.subr.bf16.mxu0 %v4994_v54  ;;  %5027 = vmatprep.subr.bf16.mxu1 %v5026_v38  ;;  %v3904_v54 = vld [vmem:[%s7652_s4 + $0x158] sm:$0xff]  ;;  %v5016_v38 = vpack.c.bf16 %v3872_v36, %v3871_v34  ;;  %v3844_v34 = vunpack.c.h.bf16 %v3836_v16 }
 0x1bd   : > { %v5048_v39 = vpack.c.bf16 %v3904_v54, %v3903_v37 }
 0x1be   : > { %4912 = vmatmul.mubr.msk.bf16.vlgmr.msra.gmra.mrb[0].mxu0 %vm1387_vm1, %v2809_v46  ;;  %4913 = vmatmul.mubr.msk.bf16.vlgmr.msra.gmra.mrb[0].mxu1 %vm1387_vm1, %v2809_v46  ;;  %v3873_v46 = vld [vmem:[%s7652_s4 + $0x60] sm:$0xff] }
 0x1bf   : > { %4997 = vmatpush3.bf16.msra.mxu0 %v4996_v47  ;;  %5029 = vmatpush3.bf16.msra.mxu1 %v5028_v48  ;;  %v5050_v47 = vpack.c.bf16 %v3922_v44, %v3921_v43  ;;  %v3874_v48 = vld [vmem:[%s7652_s4 + $0x68] sm:$0xff] }
 0x1c0   : > { %4999 = vmatprep.subr.bf16.mxu0 %v4998_v51  ;;  %5031 = vmatprep.subr.bf16.mxu1 %v5030_v55  ;;  %v5020_v49 = vpack.c.bf16 %v3874_v48, %v3873_v46  ;;  %v3906_v51 = vld [vmem:[%s7652_s4 + $0x168] sm:$0xff] }
 0x1c1   : > { %v5052_v55 = vpack.c.bf16 %v3906_v51, %v3905_v50 }
 0x1c3   : > { %5001 = vmatpush3.bf16.msra.mxu0 %v5000_v45  ;;  %5033 = vmatpush3.bf16.msra.mxu1 %v5032_v1  ;;  %v3875_v45 = vld [vmem:[%s7652_s4 + $0x70] sm:$0xff]  ;;  %v3876_v1 = vld [vmem:[%s7652_s4 + $0x78] sm:$0xff] }
 0x1c4   : > { %5003 = vmatprep.subr.bf16.mxu0 %v5002_v4  ;;  %5035 = vmatprep.subr.bf16.mxu1 %v5034_v6  ;;  %v5024_v2 = vpack.c.bf16 %v3876_v1, %v3875_v45  ;;  %v3908_v4 = vld [vmem:[%s7652_s4 + $0x178] sm:$0xff] }
 0x1c5   : > { %v5056_v6 = vpack.c.bf16 %v3908_v4, %v3907_v56 }
 0x1c7   : > { %5005 = vmatpush3.bf16.msra.mxu0 %v5004_v63  ;;  %5037 = vmatpush3.bf16.msra.mxu1 %v5036_v57  ;;  %v3819_v63 = vsub.s32 3, %v3806_v8  ;;  %v3833_v57 = vld [vmem:[%s268_s15] sm:$0xff]  ;;  %s5836_s15 = scalar_lea.vmem %s5835_s14, 32 }
 0x1c8   : > { %5007 = vmatprep.subr.bf16.mxu0 %v5006_v13  ;;  %5039 = vmatprep.subr.bf16.mxu1 %v5038_v31  ;;  %v3816_v13 = vrot.slane %v3803_v10, %v3815_v9  ;;  %v3812_v31 = vrot.slane %v3803_v10, %v3811_v60  ;;  %v3837_v17 = vunpack.c.l.bf16 %v3833_v57  ;;  %p5838_p1 = scmp.lt.s32.totalorder %s5836_s15, %s5830_s11 }
 0x1c9   : > { %v3820_v14 = vrot.slane %v3803_v10, %v3819_v63 }
 0x1ca   : > { %p5839_p2 = por %p5838_p1, %p5837_p0 }
 0x1cb   : > { %5009 = vmatpush3.bf16.msra.mxu0 %v5008_v20  ;;  %5041 = vmatpush3.bf16.msra.mxu1 %v5040_v21  ;;  %v3838_v21 = vunpack.c.h.bf16 %v3833_v57 }
 0x1cc   : > { %5011 = vmatprep.subr.bf16.mxu0 %v5010_v24  ;;  %5043 = vmatprep.subr.bf16.mxu1 %v5042_v25  ;;  %p5840_p3 = pnand %p5839_p2, %p5833_p13 }
 0x1cf   : > { %5013 = vmatpush3.bf16.msra.mxu0 %v5012_v32  ;;  %5045 = vmatpush3.bf16.msra.mxu1 %v5044_v33  ;;  %v3842_v33 = vunpack.c.h.bf16 %v3835_v15 }
 0x1d0   : > { %5015 = vmatprep.subr.bf16.mxu0 %v5014_v62  ;;  %5047 = vmatprep.subr.bf16.mxu1 %v5046_v35 }
 0x1d3   : > { %5017 = vmatpush3.bf16.msra.mxu0 %v5016_v38  ;;  %5049 = vmatpush3.bf16.msra.mxu1 %v5048_v39 }
 0x1d4   : > { %5019 = vmatprep.subr.bf16.mxu0 %v5018_v41  ;;  %5051 = vmatprep.subr.bf16.mxu1 %v5050_v47 }
 0x1d7   : > { %5021 = vmatpush3.bf16.msra.mxu0 %v5020_v49  ;;  %5053 = vmatpush3.bf16.msra.mxu1 %v5052_v55 }
 0x1d8   : > { %5023 = vmatprep.subr.bf16.mxu0 %v5022_v0  ;;  %5055 = vmatprep.subr.bf16.mxu1 %v5054_v42 }
 0x1db   : > { %5025 = vmatpush3.bf16.msra.mxu0 %v5024_v2  ;;  %5057 = vmatpush3.bf16.msra.mxu1 %v5056_v6 }
 0x291   : > { %v3657_v19 = vpop.f32.mrb[0].mxu0  ;;  %v3786_v20 = vpop.f32.mrb[0].mxu1 }
 0x292   : > { %v3825_v23 = vadd.f32 %v3808_v12, %v3657_v19  ;;  %v3827_v24 = vadd.f32 %v3816_v13, %v3786_v20  ;;  %v3659_v25 = vpop.f32.mrb[1].mxu0  ;;  %v3788_v27 = vpop.f32.mrb[1].mxu1 }
 0x293   : > { %v3826_v29 = vadd.f32 %v3812_v31, %v3659_v25  ;;  %v3828_v52 = vadd.f32 %v3820_v14, %v3788_v27  ;;  %v3661_v30 = vpop.f32.mrb[2].mxu0  ;;  %v3790_v32 = vpop.f32.mrb[2].mxu1 }
 0x294   : > { %v3845_v62 = vadd.f32 %v3837_v17, %v3825_v23  ;;  %v3847_v35 = vadd.f32 %v3839_v18, %v3827_v24  ;;  %v3829_v36 = vadd.f32 %v3808_v12, %v3661_v30  ;;  %v3831_v37 = vadd.f32 %v3816_v13, %v3790_v32  ;;  %v3663_v54 = vpop.f32.mrb[3].mxu0  ;;  %v3792_v38 = vpop.f32.mrb[3].mxu1 }
 0x295   : > { %v3846_v39 = vadd.f32 %v3838_v21, %v3826_v29  ;;  %v3848_v26 = vadd.f32 %v3840_v22, %v3828_v52  ;;  %v3830_v40 = vadd.f32 %v3812_v31, %v3663_v54  ;;  %v3832_v41 = vadd.f32 %v3820_v14, %v3792_v38  ;;  %v4083_v14 = vld [vmem:[%s7653_s5] sm:$0x1] }
 0x296   : > { %v3853_v48 = vmax.f32 %v3845_v62, 0.0  ;;  %v3855_v49 = vmax.f32 %v3847_v35, 0.0  ;;  %v3849_v50 = vadd.f32 %v3841_v3, %v3829_v36  ;;  %v3851_v51 = vadd.f32 %v3843_v28, %v3831_v37 }
 0x297   : > { %v3854_v43 = vmax.f32 %v3846_v39, 0.0  ;;  %v3856_v44 = vmax.f32 %v3848_v26, 0.0  ;;  %v3850_v46 = vadd.f32 %v3842_v33, %v3830_v40  ;;  %v3852_v47 = vadd.f32 %v3844_v34, %v3832_v41 }
 0x298   : > { %v3857_v59 = vmax.f32 %v3849_v50, 0.0  ;;  %v3859_v53 = vmax.f32 %v3851_v51, 0.0 }
 0x299   : > { %v3858_v55 = vmax.f32 %v3850_v46, 0.0  ;;  %v3860_v58 = vmax.f32 %v3852_v47, 0.0  ;;  %3989 = vmatprep.mubr.f32.mxu0 %v3854_v43  ;;  %4064 = vmatprep.mubr.f32.mxu1 %v3856_v44 }
 0x29a   : > { %3990 = vmatmul.mubr.f32.vlgmr.msra.gmra.mrb[4].mxu0 %v3853_v48  ;;  %4065 = vmatmul.mubr.f32.vlgmr.msra.gmra.mrb[4].mxu1 %v3855_v49 }
 0x29b   : > { %3994 = vmatprep.mubr.f32.mxu0 %v3858_v55  ;;  %4069 = vmatprep.mubr.f32.mxu1 %v3860_v58 }
 0x29e   : > { %3995 = vmatmul.mubr.f32.gmra.mrb[6].mxu0 %v3857_v59  ;;  %4070 = vmatmul.mubr.f32.gmra.mrb[6].mxu1 %v3859_v53 }
 0x36d   : > { %v4950_v61 = vpop.f32.mrb[4].mxu0  ;;  %v4988_v0 = vpop.f32.mrb[4].mxu1 }
 0x36e   : > { %v4951_v42 = vpop.f32.mrb[5].mxu0  ;;  %v4989_v45 = vpop.f32.mrb[5].mxu1 }
 0x36f   : > { %v4952_v1 = vadd.f32 %v4951_v42, %v4950_v61  ;;  %v4990_v56 = vadd.f32 %v4989_v45, %v4988_v0 }
 0x371   : > { %v4067_v2 = vadd.f32 %v4990_v56, %v4952_v1  ;;  %v4953_v4 = vpop.f32.mrb[6].mxu0  ;;  %v4991_v6 = vpop.f32.mrb[6].mxu1 }
 0x372   : > { %v4954_v7 = vpop.f32.mrb[7].mxu0  ;;  %v4992_v8 = vpop.f32.mrb[7].mxu1 }
 0x373   : > { %v4955_v5 = vadd.f32 %v4954_v7, %v4953_v4  ;;  %v4993_v9 = vadd.f32 %v4992_v8, %v4991_v6 }
 0x375   : > { %v4072_v10 = vadd.f32 %v4993_v9, %v4955_v5 }
 0x377   : > { %v4075_v60 = vadd.f32 %v4072_v10, %v4067_v2 }
 0x379   : > { %v4076_v63 = vrot.slane %v4075_v60, 4 }
 0x37b   : > { %v4077_v57 = vadd.f32 %v4076_v63, %v4075_v60 }
 0x37d   : > { %v4078_v11 = vrot.slane %v4077_v57, 2 }
 0x37f   : > { %v4079_v12 = vadd.f32 %v4078_v11, %v4077_v57 }
 0x381   : > { %v4080_v13 = vrot.slane %v4079_v12, 1 }
 0x383   : > { %v4081_v31 = vadd.f32 %v4080_v13, %v4079_v12 }
 0x385   : > { %v4082_v15 = vmul.f32 0.00390625, %v4081_v31 }
 0x387   : > { %v4084_v16 = vadd.f32 %v4083_v14, %v4082_v15 }
 0x389   : > { %4085 = vst [vmem:[%s258_s20] sm:$0x1] %v4084_v16 }
 0x38a   : > { %5843 = shalt.err (!%p5840_p3)
}
 0x38b   : > { %s5844_s16 = scalar_lea.hbm %s7606_s10, 16  ;;  %s5848_s18 = scalar_lea.hbm %s7654_s6, 32 }
 0x38c   : > { %p5845_p4 = scmp.ne.s32.totalorder %s7606_s10, %s5844_s16  ;;  %p5849_p9 = scmp.lt.u32.totalorder %s7606_s10, %s7654_s6 }
 0x38d   : > { %p5850_p10 = scmp.lt.u32.totalorder %s5848_s18, %s5844_s16  ;;  %p5852_p12 = scmp.lt.u32.totalorder %s5844_s16, %s7606_s10 }
 0x38e   : > { %p5846_p7 = pnand %p5845_p4, %p5969_p5 }
 0x38f   : > { %p5851_p11 = por %p5850_p10, %p5849_p9 }
 0x390   : > { %p5847_p8 = pneg %p5846_p7 }
 0x391   : > { %p5853_p13 = por %p5852_p12, %p5851_p11 }
 0x393   : > { %p5854_p0 = pnand %p5853_p13, %p5847_p8 }
 0x395   : > { %5857 = shalt.err (!%p5854_p0)
}
 0x396   : > { %5123 = dma.vmem_to_hbm [thread:$0]  (%p5969_p5), %s7608_s28, 16, %s7606_s10, %s4087_s12  }
 0x397 PF: > { %p5129_p1 = scmp.ge.s32.totalorder %s5892_s24, 2  ;;  %s4111_s20 = sand.u32 1, %s5880_s21  }
 0x398   : > { %s4112_s29 = scalar_lea.sflag [#allocation3], %s4111_s20 }
 0x399   : > { %p5126_p2 = pnand %p5129_p1, %p5973_p6 }
 0x39b   : > { %5875 = dma.done.wait (!%p5126_p2), %s4112_s29, 16  }
 0x39c   : > { %5877 = vsyncadd (!%p5126_p2), %s4112_s29, 4294967280  ;;  %p16_p3 = scmp.ge.s32.totalorder %s5956_s27, 4   ;;  %s7657_s21 = smov %s5884_s22 }
 0x39d   : > { %s7658_s22 = smov %s5888_s23  ;;  %s7659_s23 = smov %s5967_s30 }
 0x39e   : > { %s7660_s24 = smov %s5956_s27  ;;  %18 = sbr.rel (!%p16_p3) target bundleno = 3 (0x3), region = 84 }
 0x3a5   :  { %4116 = vsyncpa [#allocation3], 1 }
 0x3a6   :  { %4118 = vsyncpa [#allocation3 + $0x1], 1 }

</bundles_post_ra>
